<compile_context>
chip_gen: v5e
topology: v5e:2x2
jax: 0.10.0
libtpu: 0.0.40
codegen_flags: <defaults>
</compile_context>

<pallas_src>
import functools

import jax
import jax.numpy as jnp
from jax.experimental import pallas as pl
from jax.experimental.pallas import tpu as pltpu

_BN_EPS = 1e-5


def _round_up(x, m):
    return ((x + m - 1) // m) * m


# ---------------------------------------------------------------------------
# Fused generator kernel: 4x (matmul [+ BN + ReLU]) + tanh, all in VMEM.
# Activations are (B_pad, C*OH*OW) with channel-major columns on the lane axis.
# ---------------------------------------------------------------------------
def _fused_generator_kernel(z_ref,
                            m1_ref, m2_ref, m3_hbm, m4_hbm,
                            e1_ref, et1_ref, gb1_ref,
                            e2_ref, et2_ref, gb2_ref,
                            e3_ref, et3_ref, gb3_ref,
                            out_ref,
                            m3_vmem, m4_vmem, dma_sem,
                            *, b_real):
    # Overlap the two large weight DMAs with the first two (small) layers:
    # issue now, wait right before each use.
    cp3 = pltpu.make_async_copy(m3_hbm, m3_vmem, dma_sem.at[0])
    cp4 = pltpu.make_async_copy(m4_hbm, m4_vmem, dma_sem.at[1])
    cp3.start()
    cp4.start()

    b_pad = z_ref.shape[0]
    if b_real < b_pad:
        row_ids = jax.lax.broadcasted_iota(jnp.int32, (b_pad, 1), 0)
        row_mask = (row_ids < b_real).astype(jnp.float32)
    else:
        row_mask = None

    def deconv(h, m_ref):
        # ConvTranspose2d as one lane-dense MXU matmul against the precomputed
        # dense operator (bf16 operands, f32 accumulation).
        return jnp.dot(h.astype(jnp.bfloat16), m_ref[...],
                       preferred_element_type=jnp.float32)

    def bn_relu(a, e_ref, et_ref, gb_ref):
        # Train-mode BatchNorm2d with batch stats over the REAL batch only
        # (padded rows of `a` are exactly zero, so they do not perturb sums).
        c = e_ref.shape[1]
        ohw = e_ref.shape[0] // c
        inv_n = 1.0 / float(b_real * ohw)
        # Batch-first reduction on the VPU, then ONE 2-row bf16 MXU dot to
        # fold the channel-major lane axis down to per-channel (sum x, sum x^2).
        colsum = jnp.sum(a, axis=0, keepdims=True)                # (1, C*OHW)
        colsq = jnp.sum(a * a, axis=0, keepdims=True)             # (1, C*OHW)
        stats = jnp.concatenate([colsum, colsq], axis=0)          # (2, C*OHW)
        s = jnp.dot(stats.astype(jnp.bfloat16), e_ref[...],
                    preferred_element_type=jnp.float32)           # (2, C)
        mean = s[0:1, :] * inv_n
        var = jnp.maximum(s[1:2, :] * inv_n - mean * mean, 0.0)
        gamma = gb_ref[0:1, :]                                    # (1, C)
        beta = gb_ref[1:2, :]                                     # (1, C)
        scale = gamma * jax.lax.rsqrt(var + _BN_EPS)              # (1, C)
        shift = beta - mean * scale                               # (1, C)
        # ONE fused broadcast matmul back to the (1, C*OHW) lane layout.
        ss = jnp.concatenate([scale, shift], axis=0)              # (2, C)
        ssf = jnp.dot(ss.astype(jnp.bfloat16), et_ref[...],
                      preferred_element_type=jnp.float32)         # (2, C*OHW)
        y = jnp.maximum(a * ssf[0:1, :] + ssf[1:2, :], 0.0)       # BN + ReLU
        if row_mask is not None:
            # Keep padded batch rows exactly zero so later layers' statistics
            # stay identical to the unpadded computation.
            y = y * row_mask
        return y

    x = z_ref[...]                                                # (B_pad, nz)
    h = bn_relu(deconv(x, m1_ref), e1_ref, et1_ref, gb1_ref)      # 1x1  -> 2x2
    h = bn_relu(deconv(h, m2_ref), e2_ref, et2_ref, gb2_ref)      # 2x2  -> 6x6
    cp3.wait()
    h = bn_relu(deconv(h, m3_vmem), e3_ref, et3_ref, gb3_ref)     # 6x6  -> 14x14
    cp4.wait()
    out_ref[...] = jnp.tanh(deconv(h, m4_vmem))                   # 14x14 -> 28x28


_VMEM = pl.BlockSpec(memory_space=pltpu.MemorySpace.VMEM)
_ANY = pl.BlockSpec(memory_space=pl.ANY)


def _vmem_limit_bytes():
    """Generation-aware scoped-VMEM limit: v7x has 64 MiB physical per core,
    v5e/v6e have 128 MiB."""
    kind = ""
    try:
        kind = jax.devices()[0].device_kind.lower()
    except Exception:
        pass
    if "v7" in kind or "7x" in kind:
        return 56 * 1024 * 1024
    return 100 * 1024 * 1024


def generator_forward(z_nchw, ops):
    """z_nchw: (B, nz, 1, 1) -> images (B, nc, 28, 28); one fused Pallas kernel."""
    B = z_nchw.shape[0]
    b_pad = max(8, _round_up(B, 8))                      # fill MXU sublanes
    z2d = z_nchw.reshape(B, -1).astype(jnp.float32)      # (B, nz)
    if b_pad != B:
        z2d = jnp.pad(z2d, ((0, b_pad - B), (0, 0)))     # zero rows -> exact BN

    n_out_pad = ops["m4"].shape[1]                       # lane-padded nc*784
    nc = n_out_pad // (28 * 28)                          # pad < 128 < 784 => exact
    n_out = nc * 28 * 28

    kernel = functools.partial(_fused_generator_kernel, b_real=B)
    out_flat = pl.pallas_call(
        kernel,
        out_shape=jax.ShapeDtypeStruct((b_pad, n_out_pad), jnp.float32),
        in_specs=[_VMEM, _VMEM, _VMEM, _ANY, _ANY] + [_VMEM] * 9,
        out_specs=_VMEM,
        scratch_shapes=[
            pltpu.VMEM(ops["m3"].shape, jnp.bfloat16),   # m3 double-buffer target
            pltpu.VMEM(ops["m4"].shape, jnp.bfloat16),   # m4 double-buffer target
            pltpu.SemaphoreType.DMA((2,)),
        ],
        compiler_params=pltpu.CompilerParams(vmem_limit_bytes=_vmem_limit_bytes()),
    )(z2d,
      ops["m1"], ops["m2"], ops["m3"], ops["m4"],
      ops["e1"], ops["et1"], ops["gb1"],
      ops["e2"], ops["et2"], ops["gb2"],
      ops["e3"], ops["et3"], ops["gb3"])
    return out_flat[:B, :n_out].reshape(B, nc, 28, 28)


# ---------------------------------------------------------------------------
# Init-time parameter transforms (run once, NOT in the per-forward path).
# ---------------------------------------------------------------------------
def _convt_nchw(x, w_ct, stride, padding):
    """ConvTranspose2d (PyTorch semantics, bias=False) via lax conv with
    lhs_dilation.  x: (N, C_in, H, W); w_ct: (C_in, C_out, K, K)."""
    K = w_ct.shape[2]
    w_conv = jnp.transpose(jnp.flip(w_ct, (2, 3)), (1, 0, 2, 3))   # (C_out, C_in, K, K)
    pad = K - 1 - padding
    return jax.lax.conv_general_dilated(
        x, w_conv, window_strides=(1, 1), padding=[(pad, pad), (pad, pad)],
        lhs_dilation=(stride, stride),
        dimension_numbers=("NCHW", "OIHW", "NCHW"))


def _convt_dense_operator(w_ct, H, W, stride, padding):
    """Unroll the (tiny, fixed-size) transposed conv into a dense matrix
    M: (C_in*H*W, C_out*OH*OW), channel-major / row-major spatial on both sides."""
    C_in = w_ct.shape[0]
    eye = jnp.eye(C_in * H * W, dtype=jnp.float32).reshape(C_in * H * W, C_in, H, W)
    out = _convt_nchw(eye, w_ct, stride, padding)          # (C_in*H*W, C_out, OH, OW)
    OH, OW = out.shape[2], out.shape[3]
    return out.reshape(C_in * H * W, -1), (OH, OW)


def init_raw_params(key, nz, ngf, nc):
    """PyTorch-layout parameters: ConvTranspose2d weights (C_in, C_out, K, K),
    BatchNorm gamma=1, beta=0."""
    k1, k2, k3, k4 = jax.random.split(key, 4)
    scale = 0.05
    return {
        "w1": jax.random.normal(k1, (nz, 4 * ngf, 4, 4), jnp.float32) * scale,
        "w2": jax.random.normal(k2, (4 * ngf, 2 * ngf, 4, 4), jnp.float32) * scale,
        "w3": jax.random.normal(k3, (2 * ngf, ngf, 4, 4), jnp.float32) * scale,
        "w4": jax.random.normal(k4, (ngf, nc, 4, 4), jnp.float32) * scale,
        "g1": jnp.ones((4 * ngf,), jnp.float32), "b1": jnp.zeros((4 * ngf,), jnp.float32),
        "g2": jnp.ones((2 * ngf,), jnp.float32), "b2": jnp.zeros((2 * ngf,), jnp.float32),
        "g3": jnp.ones((ngf,), jnp.float32), "b3": jnp.zeros((ngf,), jnp.float32),
    }


def build_generator_operators(raw):
    """One-time weight transform: dense bf16 ConvTranspose operators, bf16 0/1
    channel-aggregation matrices, and packed (2, C) BatchNorm params."""
    m1, (oh1, ow1) = _convt_dense_operator(raw["w1"], 1, 1, stride=2, padding=1)
    m2, (oh2, ow2) = _convt_dense_operator(raw["w2"], oh1, ow1, stride=2, padding=0)
    m3, (oh3, ow3) = _convt_dense_operator(raw["w3"], oh2, ow2, stride=2, padding=0)
    m4, _ = _convt_dense_operator(raw["w4"], oh3, ow3, stride=2, padding=1)

    # Lane-dense output: pad the final operator's columns to a multiple of 128
    # so the only HBM writeback uses unmasked full-lane stores.
    n_out = m4.shape[1]
    n_out_pad = _round_up(n_out, 128)
    if n_out_pad != n_out:
        m4 = jnp.pad(m4, ((0, 0), (0, n_out_pad - n_out)))

    def bn_pack(gamma, beta, ohw):
        C = gamma.shape[0]
        eye = jnp.eye(C, dtype=jnp.float32)
        e = jnp.repeat(eye, ohw, axis=0).astype(jnp.bfloat16)    # (C*OHW, C), 0/1 exact
        et = jnp.repeat(eye, ohw, axis=1).astype(jnp.bfloat16)   # (C, C*OHW)
        gb = jnp.stack([gamma, beta], axis=0)                    # (2, C) f32
        return e, et, gb

    e1, et1, gb1 = bn_pack(raw["g1"], raw["b1"], oh1 * ow1)
    e2, et2, gb2 = bn_pack(raw["g2"], raw["b2"], oh2 * ow2)
    e3, et3, gb3 = bn_pack(raw["g3"], raw["b3"], oh3 * ow3)

    return {
        "m1": m1.astype(jnp.bfloat16), "m2": m2.astype(jnp.bfloat16),
        "m3": m3.astype(jnp.bfloat16), "m4": m4.astype(jnp.bfloat16),
        "e1": e1, "et1": et1, "gb1": gb1,
        "e2": e2, "et2": et2, "gb2": gb2,
        "e3": e3, "et3": et3, "gb3": gb3,
    }


# ---------------------------------------------------------------------------
# Pure-JAX f32 reference (identical train-mode BN semantics) for validation.
# ---------------------------------------------------------------------------
def _bn_relu_ref(x, gamma, beta):
    mean = jnp.mean(x, axis=(0, 2, 3), keepdims=True)
    var = jnp.mean(jnp.square(x - mean), axis=(0, 2, 3), keepdims=True)
    y = (x - mean) * jax.lax.rsqrt(var + _BN_EPS)
    return jnp.maximum(y * gamma.reshape(1, -1, 1, 1) + beta.reshape(1, -1, 1, 1), 0.0)


def reference_forward(z, raw):
    x = _bn_relu_ref(_convt_nchw(z, raw["w1"], 2, 1), raw["g1"], raw["b1"])
    x = _bn_relu_ref(_convt_nchw(x, raw["w2"], 2, 0), raw["g2"], raw["b2"])
    x = _bn_relu_ref(_convt_nchw(x, raw["w3"], 2, 0), raw["g3"], raw["b3"])
    return jnp.tanh(_convt_nchw(x, raw["w4"], 2, 1))


if __name__ == "__main__":
    nz, ngf, nc, B = 16, 8, 1, 2
    key = jax.random.PRNGKey(0)
    kp, kz = jax.random.split(key)
    raw = init_raw_params(kp, nz, ngf, nc)
    ops = build_generator_operators(raw)
    z = jax.random.normal(kz, (B, nz, 1, 1), jnp.float32)

    out = jax.block_until_ready(jax.jit(generator_forward)(z, ops))

    assert out.shape == (B, nc, 28, 28), out.shape
    assert out.dtype == jnp.float32
    assert bool(jnp.all(jnp.isfinite(out)))
    assert bool(jnp.all(jnp.abs(out) <= 1.0))   # tanh output range

    # Numerical check vs. pure-JAX f32 reference (tolerance covers the bf16
    # MXU operands / bf16 per-channel scale+shift used inside the kernel).
    ref = jax.block_until_ready(jax.jit(reference_forward)(z, raw))
    max_err = float(jnp.max(jnp.abs(out - ref)))
    assert ref.shape == out.shape
    assert max_err < 7.5e-2, max_err

    print("KERNEL_OK")
</pallas_src>

<mosaic_0001>
module attributes {stable_mosaic.version = 11 : i64} {
  func.func @_fused_generator_kernel(%arg0: memref<8x16xf32, #tpu.memory_space<vmem>>, %arg1: memref<16x128xbf16, #tpu.memory_space<vmem>>, %arg2: memref<128x576xbf16, #tpu.memory_space<vmem>>, %arg3: memref<576x1568xbf16, #tpu.memory_space<any>>, %arg4: memref<1568x896xbf16, #tpu.memory_space<any>>, %arg5: memref<128x32xbf16, #tpu.memory_space<vmem>>, %arg6: memref<32x128xbf16, #tpu.memory_space<vmem>>, %arg7: memref<2x32xf32, #tpu.memory_space<vmem>>, %arg8: memref<576x16xbf16, #tpu.memory_space<vmem>>, %arg9: memref<16x576xbf16, #tpu.memory_space<vmem>>, %arg10: memref<2x16xf32, #tpu.memory_space<vmem>>, %arg11: memref<1568x8xbf16, #tpu.memory_space<vmem>>, %arg12: memref<8x1568xbf16, #tpu.memory_space<vmem>>, %arg13: memref<2x8xf32, #tpu.memory_space<vmem>>, %arg14: memref<8x896xf32, #tpu.memory_space<vmem>>, %arg15: memref<576x1568xbf16, #tpu.memory_space<vmem>>, %arg16: memref<1568x896xbf16, #tpu.memory_space<vmem>>, %arg17: memref<2x!tpu.dma_semaphore, #tpu.memory_space<semaphore_mem>>) attributes {dimension_semantics = [], scalar_prefetch = 0 : i64, scratch_operands = 3 : i64, tpu.core_type = #tpu.core_type<tc>} {
    %c0_i32 = arith.constant 0 : i32
    %0 = tpu.memref_slice %arg17[%c0_i32] : memref<2x!tpu.dma_semaphore, #tpu.memory_space<semaphore_mem>> -> memref<1x!tpu.dma_semaphore, #tpu.memory_space<semaphore_mem>>
    %1 = tpu.memref_squeeze %0 : memref<1x!tpu.dma_semaphore, #tpu.memory_space<semaphore_mem>> -> memref<!tpu.dma_semaphore, #tpu.memory_space<semaphore_mem>>
    tpu.enqueue_dma source(%arg3 : memref<576x1568xbf16, #tpu.memory_space<any>>) target(%arg15 : memref<576x1568xbf16, #tpu.memory_space<vmem>>) target_semaphore(%1 : memref<!tpu.dma_semaphore, #tpu.memory_space<semaphore_mem>>)
    %c1_i32 = arith.constant 1 : i32
    %2 = tpu.memref_slice %arg17[%c1_i32] : memref<2x!tpu.dma_semaphore, #tpu.memory_space<semaphore_mem>> -> memref<1x!tpu.dma_semaphore, #tpu.memory_space<semaphore_mem>>
    %3 = tpu.memref_squeeze %2 : memref<1x!tpu.dma_semaphore, #tpu.memory_space<semaphore_mem>> -> memref<!tpu.dma_semaphore, #tpu.memory_space<semaphore_mem>>
    tpu.enqueue_dma source(%arg4 : memref<1568x896xbf16, #tpu.memory_space<any>>) target(%arg16 : memref<1568x896xbf16, #tpu.memory_space<vmem>>) target_semaphore(%3 : memref<!tpu.dma_semaphore, #tpu.memory_space<semaphore_mem>>)
    %4 = tpu.iota {dimensions = array<i32: 0>} : vector<8x1xi32>
    %c2_i32 = arith.constant 2 : i32
    %5 = vector.broadcast %c2_i32 : i32 to vector<8x1xi32>
    %6 = arith.cmpi slt, %4, %5 : vector<8x1xi32>
    %7 = arith.extui %6 : vector<8x1xi1> to vector<8x1xi32>
    %8 = arith.sitofp %7 : vector<8x1xi32> to vector<8x1xf32>
    %c0 = arith.constant 0 : index
    %c0_0 = arith.constant 0 : index
    %9 = vector.load %arg0[%c0, %c0_0] : memref<8x16xf32, #tpu.memory_space<vmem>>, vector<8x16xf32>
    %10 = arith.truncf %9 : vector<8x16xf32> to vector<8x16xbf16>
    %c0_1 = arith.constant 0 : index
    %c0_2 = arith.constant 0 : index
    %11 = vector.load %arg1[%c0_1, %c0_2] : memref<16x128xbf16, #tpu.memory_space<vmem>>, vector<16x128xbf16>
    %cst = arith.constant dense<0.000000e+00> : vector<8x128xf32>
    %12 = tpu.matmul %10, %11, %cst {dimension_numbers = #tpu.dot_dimension_numbers<[1], [0], [0], [1], [0, 0, 1, 1], [], []>} : vector<8x16xbf16>, vector<16x128xbf16>, vector<8x128xf32> -> vector<8x128xf32>
    %cst_3 = arith.constant dense<0.000000e+00> : vector<128xf32>
    %13 = vector.multi_reduction <add>, %12, %cst_3 [0] : vector<8x128xf32> to vector<128xf32>
    %14 = vector.shape_cast %13 : vector<128xf32> to vector<1x128xf32>
    %15 = arith.mulf %12, %12 : vector<8x128xf32>
    %cst_4 = arith.constant dense<0.000000e+00> : vector<128xf32>
    %16 = vector.multi_reduction <add>, %15, %cst_4 [0] : vector<8x128xf32> to vector<128xf32>
    %17 = vector.shape_cast %16 : vector<128xf32> to vector<1x128xf32>
    %18 = tpu.concatenate %14, %17 in 0 : vector<1x128xf32>, vector<1x128xf32> -> vector<2x128xf32>
    %19 = arith.truncf %18 : vector<2x128xf32> to vector<2x128xbf16>
    %c0_5 = arith.constant 0 : index
    %c0_6 = arith.constant 0 : index
    %20 = vector.load %arg5[%c0_5, %c0_6] : memref<128x32xbf16, #tpu.memory_space<vmem>>, vector<128x32xbf16>
    %cst_7 = arith.constant dense<0.000000e+00> : vector<2x32xf32>
    %21 = tpu.matmul %19, %20, %cst_7 {dimension_numbers = #tpu.dot_dimension_numbers<[1], [0], [0], [1], [0, 0, 1, 1], [], []>} : vector<2x128xbf16>, vector<128x32xbf16>, vector<2x32xf32> -> vector<2x32xf32>
    %22 = vector.extract_strided_slice %21 {offsets = [0, 0], sizes = [1, 32], strides = [1, 1]} : vector<2x32xf32> to vector<1x32xf32>
    %cst_8 = arith.constant 1.250000e-01 : f32
    %23 = vector.broadcast %cst_8 : f32 to vector<1x32xf32>
    %24 = arith.mulf %22, %23 : vector<1x32xf32>
    %25 = vector.extract_strided_slice %21 {offsets = [1, 0], sizes = [1, 32], strides = [1, 1]} : vector<2x32xf32> to vector<1x32xf32>
    %cst_9 = arith.constant 1.250000e-01 : f32
    %26 = vector.broadcast %cst_9 : f32 to vector<1x32xf32>
    %27 = arith.mulf %25, %26 : vector<1x32xf32>
    %28 = arith.mulf %24, %24 : vector<1x32xf32>
    %29 = arith.subf %27, %28 : vector<1x32xf32>
    %cst_10 = arith.constant 0.000000e+00 : f32
    %30 = vector.broadcast %cst_10 : f32 to vector<1x32xf32>
    %31 = arith.maximumf %29, %30 : vector<1x32xf32>
    %c0_11 = arith.constant 0 : index
    %c0_12 = arith.constant 0 : index
    %32 = vector.load %arg7[%c0_11, %c0_12] : memref<2x32xf32, #tpu.memory_space<vmem>>, vector<1x32xf32>
    %c1 = arith.constant 1 : index
    %c0_13 = arith.constant 0 : index
    %33 = vector.load %arg7[%c1, %c0_13] : memref<2x32xf32, #tpu.memory_space<vmem>>, vector<1x32xf32>
    %cst_14 = arith.constant 9.99999974E-6 : f32
    %34 = vector.broadcast %cst_14 : f32 to vector<1x32xf32>
    %35 = arith.addf %31, %34 : vector<1x32xf32>
    %36 = math.rsqrt %35 : vector<1x32xf32>
    %37 = arith.mulf %32, %36 : vector<1x32xf32>
    %38 = arith.mulf %24, %37 : vector<1x32xf32>
    %39 = arith.subf %33, %38 : vector<1x32xf32>
    %40 = tpu.concatenate %37, %39 in 0 : vector<1x32xf32>, vector<1x32xf32> -> vector<2x32xf32>
    %41 = arith.truncf %40 : vector<2x32xf32> to vector<2x32xbf16>
    %c0_15 = arith.constant 0 : index
    %c0_16 = arith.constant 0 : index
    %42 = vector.load %arg6[%c0_15, %c0_16] : memref<32x128xbf16, #tpu.memory_space<vmem>>, vector<32x128xbf16>
    %cst_17 = arith.constant dense<0.000000e+00> : vector<2x128xf32>
    %43 = tpu.matmul %41, %42, %cst_17 {dimension_numbers = #tpu.dot_dimension_numbers<[1], [0], [0], [1], [0, 0, 1, 1], [], []>} : vector<2x32xbf16>, vector<32x128xbf16>, vector<2x128xf32> -> vector<2x128xf32>
    %44 = vector.extract_strided_slice %43 {offsets = [0, 0], sizes = [1, 128], strides = [1, 1]} : vector<2x128xf32> to vector<1x128xf32>
    %45 = vector.broadcast %44 : vector<1x128xf32> to vector<8x128xf32>
    %46 = arith.mulf %12, %45 : vector<8x128xf32>
    %47 = vector.extract_strided_slice %43 {offsets = [1, 0], sizes = [1, 128], strides = [1, 1]} : vector<2x128xf32> to vector<1x128xf32>
    %48 = vector.broadcast %47 : vector<1x128xf32> to vector<8x128xf32>
    %49 = arith.addf %46, %48 : vector<8x128xf32>
    %cst_18 = arith.constant 0.000000e+00 : f32
    %50 = vector.broadcast %cst_18 : f32 to vector<8x128xf32>
    %51 = arith.maximumf %49, %50 : vector<8x128xf32>
    %52 = vector.broadcast %8 : vector<8x1xf32> to vector<8x128xf32>
    %53 = arith.mulf %51, %52 : vector<8x128xf32>
    %54 = arith.truncf %53 : vector<8x128xf32> to vector<8x128xbf16>
    %c0_19 = arith.constant 0 : index
    %c0_20 = arith.constant 0 : index
    %55 = vector.load %arg2[%c0_19, %c0_20] : memref<128x576xbf16, #tpu.memory_space<vmem>>, vector<128x576xbf16>
    %cst_21 = arith.constant dense<0.000000e+00> : vector<8x576xf32>
    %56 = tpu.matmul %54, %55, %cst_21 {dimension_numbers = #tpu.dot_dimension_numbers<[1], [0], [0], [1], [0, 0, 1, 1], [], []>} : vector<8x128xbf16>, vector<128x576xbf16>, vector<8x576xf32> -> vector<8x576xf32>
    %cst_22 = arith.constant dense<0.000000e+00> : vector<576xf32>
    %57 = vector.multi_reduction <add>, %56, %cst_22 [0] : vector<8x576xf32> to vector<576xf32>
    %58 = vector.shape_cast %57 : vector<576xf32> to vector<1x576xf32>
    %59 = arith.mulf %56, %56 : vector<8x576xf32>
    %cst_23 = arith.constant dense<0.000000e+00> : vector<576xf32>
    %60 = vector.multi_reduction <add>, %59, %cst_23 [0] : vector<8x576xf32> to vector<576xf32>
    %61 = vector.shape_cast %60 : vector<576xf32> to vector<1x576xf32>
    %62 = tpu.concatenate %58, %61 in 0 : vector<1x576xf32>, vector<1x576xf32> -> vector<2x576xf32>
    %63 = arith.truncf %62 : vector<2x576xf32> to vector<2x576xbf16>
    %c0_24 = arith.constant 0 : index
    %c0_25 = arith.constant 0 : index
    %64 = vector.load %arg8[%c0_24, %c0_25] : memref<576x16xbf16, #tpu.memory_space<vmem>>, vector<576x16xbf16>
    %cst_26 = arith.constant dense<0.000000e+00> : vector<2x16xf32>
    %65 = tpu.matmul %63, %64, %cst_26 {dimension_numbers = #tpu.dot_dimension_numbers<[1], [0], [0], [1], [0, 0, 1, 1], [], []>} : vector<2x576xbf16>, vector<576x16xbf16>, vector<2x16xf32> -> vector<2x16xf32>
    %66 = vector.extract_strided_slice %65 {offsets = [0, 0], sizes = [1, 16], strides = [1, 1]} : vector<2x16xf32> to vector<1x16xf32>
    %cst_27 = arith.constant 0.013888889 : f32
    %67 = vector.broadcast %cst_27 : f32 to vector<1x16xf32>
    %68 = arith.mulf %66, %67 : vector<1x16xf32>
    %69 = vector.extract_strided_slice %65 {offsets = [1, 0], sizes = [1, 16], strides = [1, 1]} : vector<2x16xf32> to vector<1x16xf32>
    %cst_28 = arith.constant 0.013888889 : f32
    %70 = vector.broadcast %cst_28 : f32 to vector<1x16xf32>
    %71 = arith.mulf %69, %70 : vector<1x16xf32>
    %72 = arith.mulf %68, %68 : vector<1x16xf32>
    %73 = arith.subf %71, %72 : vector<1x16xf32>
    %cst_29 = arith.constant 0.000000e+00 : f32
    %74 = vector.broadcast %cst_29 : f32 to vector<1x16xf32>
    %75 = arith.maximumf %73, %74 : vector<1x16xf32>
    %c0_30 = arith.constant 0 : index
    %c0_31 = arith.constant 0 : index
    %76 = vector.load %arg10[%c0_30, %c0_31] : memref<2x16xf32, #tpu.memory_space<vmem>>, vector<1x16xf32>
    %c1_32 = arith.constant 1 : index
    %c0_33 = arith.constant 0 : index
    %77 = vector.load %arg10[%c1_32, %c0_33] : memref<2x16xf32, #tpu.memory_space<vmem>>, vector<1x16xf32>
    %cst_34 = arith.constant 9.99999974E-6 : f32
    %78 = vector.broadcast %cst_34 : f32 to vector<1x16xf32>
    %79 = arith.addf %75, %78 : vector<1x16xf32>
    %80 = math.rsqrt %79 : vector<1x16xf32>
    %81 = arith.mulf %76, %80 : vector<1x16xf32>
    %82 = arith.mulf %68, %81 : vector<1x16xf32>
    %83 = arith.subf %77, %82 : vector<1x16xf32>
    %84 = tpu.concatenate %81, %83 in 0 : vector<1x16xf32>, vector<1x16xf32> -> vector<2x16xf32>
    %85 = arith.truncf %84 : vector<2x16xf32> to vector<2x16xbf16>
    %c0_35 = arith.constant 0 : index
    %c0_36 = arith.constant 0 : index
    %86 = vector.load %arg9[%c0_35, %c0_36] : memref<16x576xbf16, #tpu.memory_space<vmem>>, vector<16x576xbf16>
    %cst_37 = arith.constant dense<0.000000e+00> : vector<2x576xf32>
    %87 = tpu.matmul %85, %86, %cst_37 {dimension_numbers = #tpu.dot_dimension_numbers<[1], [0], [0], [1], [0, 0, 1, 1], [], []>} : vector<2x16xbf16>, vector<16x576xbf16>, vector<2x576xf32> -> vector<2x576xf32>
    %88 = vector.extract_strided_slice %87 {offsets = [0, 0], sizes = [1, 576], strides = [1, 1]} : vector<2x576xf32> to vector<1x576xf32>
    %89 = vector.broadcast %88 : vector<1x576xf32> to vector<8x576xf32>
    %90 = arith.mulf %56, %89 : vector<8x576xf32>
    %91 = vector.extract_strided_slice %87 {offsets = [1, 0], sizes = [1, 576], strides = [1, 1]} : vector<2x576xf32> to vector<1x576xf32>
    %92 = vector.broadcast %91 : vector<1x576xf32> to vector<8x576xf32>
    %93 = arith.addf %90, %92 : vector<8x576xf32>
    %cst_38 = arith.constant 0.000000e+00 : f32
    %94 = vector.broadcast %cst_38 : f32 to vector<8x576xf32>
    %95 = arith.maximumf %93, %94 : vector<8x576xf32>
    %96 = vector.broadcast %8 : vector<8x1xf32> to vector<8x576xf32>
    %97 = arith.mulf %95, %96 : vector<8x576xf32>
    %c0_i32_39 = arith.constant 0 : i32
    %98 = tpu.memref_slice %arg17[%c0_i32_39] : memref<2x!tpu.dma_semaphore, #tpu.memory_space<semaphore_mem>> -> memref<1x!tpu.dma_semaphore, #tpu.memory_space<semaphore_mem>>
    %99 = tpu.memref_squeeze %98 : memref<1x!tpu.dma_semaphore, #tpu.memory_space<semaphore_mem>> -> memref<!tpu.dma_semaphore, #tpu.memory_space<semaphore_mem>>
    tpu.wait_dma2 semaphore(%99 : memref<!tpu.dma_semaphore, #tpu.memory_space<semaphore_mem>>) src(%arg3 : memref<576x1568xbf16, #tpu.memory_space<any>>) dst(%arg15 : memref<576x1568xbf16, #tpu.memory_space<vmem>>)
    %100 = arith.truncf %97 : vector<8x576xf32> to vector<8x576xbf16>
    %c0_40 = arith.constant 0 : index
    %c0_41 = arith.constant 0 : index
    %101 = vector.load %arg15[%c0_40, %c0_41] : memref<576x1568xbf16, #tpu.memory_space<vmem>>, vector<576x1568xbf16>
    %cst_42 = arith.constant dense<0.000000e+00> : vector<8x1568xf32>
    %102 = tpu.matmul %100, %101, %cst_42 {dimension_numbers = #tpu.dot_dimension_numbers<[1], [0], [0], [1], [0, 0, 1, 1], [], []>} : vector<8x576xbf16>, vector<576x1568xbf16>, vector<8x1568xf32> -> vector<8x1568xf32>
    %cst_43 = arith.constant dense<0.000000e+00> : vector<1568xf32>
    %103 = vector.multi_reduction <add>, %102, %cst_43 [0] : vector<8x1568xf32> to vector<1568xf32>
    %104 = vector.shape_cast %103 : vector<1568xf32> to vector<1x1568xf32>
    %105 = arith.mulf %102, %102 : vector<8x1568xf32>
    %cst_44 = arith.constant dense<0.000000e+00> : vector<1568xf32>
    %106 = vector.multi_reduction <add>, %105, %cst_44 [0] : vector<8x1568xf32> to vector<1568xf32>
    %107 = vector.shape_cast %106 : vector<1568xf32> to vector<1x1568xf32>
    %108 = tpu.concatenate %104, %107 in 0 : vector<1x1568xf32>, vector<1x1568xf32> -> vector<2x1568xf32>
    %109 = arith.truncf %108 : vector<2x1568xf32> to vector<2x1568xbf16>
    %c0_45 = arith.constant 0 : index
    %c0_46 = arith.constant 0 : index
    %110 = vector.load %arg11[%c0_45, %c0_46] : memref<1568x8xbf16, #tpu.memory_space<vmem>>, vector<1568x8xbf16>
    %cst_47 = arith.constant dense<0.000000e+00> : vector<2x8xf32>
    %111 = tpu.matmul %109, %110, %cst_47 {dimension_numbers = #tpu.dot_dimension_numbers<[1], [0], [0], [1], [0, 0, 1, 1], [], []>} : vector<2x1568xbf16>, vector<1568x8xbf16>, vector<2x8xf32> -> vector<2x8xf32>
    %112 = vector.extract_strided_slice %111 {offsets = [0, 0], sizes = [1, 8], strides = [1, 1]} : vector<2x8xf32> to vector<1x8xf32>
    %cst_48 = arith.constant 0.00255102036 : f32
    %113 = vector.broadcast %cst_48 : f32 to vector<1x8xf32>
    %114 = arith.mulf %112, %113 : vector<1x8xf32>
    %115 = vector.extract_strided_slice %111 {offsets = [1, 0], sizes = [1, 8], strides = [1, 1]} : vector<2x8xf32> to vector<1x8xf32>
    %cst_49 = arith.constant 0.00255102036 : f32
    %116 = vector.broadcast %cst_49 : f32 to vector<1x8xf32>
    %117 = arith.mulf %115, %116 : vector<1x8xf32>
    %118 = arith.mulf %114, %114 : vector<1x8xf32>
    %119 = arith.subf %117, %118 : vector<1x8xf32>
    %cst_50 = arith.constant 0.000000e+00 : f32
    %120 = vector.broadcast %cst_50 : f32 to vector<1x8xf32>
    %121 = arith.maximumf %119, %120 : vector<1x8xf32>
    %c0_51 = arith.constant 0 : index
    %c0_52 = arith.constant 0 : index
    %122 = vector.load %arg13[%c0_51, %c0_52] : memref<2x8xf32, #tpu.memory_space<vmem>>, vector<1x8xf32>
    %c1_53 = arith.constant 1 : index
    %c0_54 = arith.constant 0 : index
    %123 = vector.load %arg13[%c1_53, %c0_54] : memref<2x8xf32, #tpu.memory_space<vmem>>, vector<1x8xf32>
    %cst_55 = arith.constant 9.99999974E-6 : f32
    %124 = vector.broadcast %cst_55 : f32 to vector<1x8xf32>
    %125 = arith.addf %121, %124 : vector<1x8xf32>
    %126 = math.rsqrt %125 : vector<1x8xf32>
    %127 = arith.mulf %122, %126 : vector<1x8xf32>
    %128 = arith.mulf %114, %127 : vector<1x8xf32>
    %129 = arith.subf %123, %128 : vector<1x8xf32>
    %130 = tpu.concatenate %127, %129 in 0 : vector<1x8xf32>, vector<1x8xf32> -> vector<2x8xf32>
    %131 = arith.truncf %130 : vector<2x8xf32> to vector<2x8xbf16>
    %c0_56 = arith.constant 0 : index
    %c0_57 = arith.constant 0 : index
    %132 = vector.load %arg12[%c0_56, %c0_57] : memref<8x1568xbf16, #tpu.memory_space<vmem>>, vector<8x1568xbf16>
    %cst_58 = arith.constant dense<0.000000e+00> : vector<2x1568xf32>
    %133 = tpu.matmul %131, %132, %cst_58 {dimension_numbers = #tpu.dot_dimension_numbers<[1], [0], [0], [1], [0, 0, 1, 1], [], []>} : vector<2x8xbf16>, vector<8x1568xbf16>, vector<2x1568xf32> -> vector<2x1568xf32>
    %134 = vector.extract_strided_slice %133 {offsets = [0, 0], sizes = [1, 1568], strides = [1, 1]} : vector<2x1568xf32> to vector<1x1568xf32>
    %135 = vector.broadcast %134 : vector<1x1568xf32> to vector<8x1568xf32>
    %136 = arith.mulf %102, %135 : vector<8x1568xf32>
    %137 = vector.extract_strided_slice %133 {offsets = [1, 0], sizes = [1, 1568], strides = [1, 1]} : vector<2x1568xf32> to vector<1x1568xf32>
    %138 = vector.broadcast %137 : vector<1x1568xf32> to vector<8x1568xf32>
    %139 = arith.addf %136, %138 : vector<8x1568xf32>
    %cst_59 = arith.constant 0.000000e+00 : f32
    %140 = vector.broadcast %cst_59 : f32 to vector<8x1568xf32>
    %141 = arith.maximumf %139, %140 : vector<8x1568xf32>
    %142 = vector.broadcast %8 : vector<8x1xf32> to vector<8x1568xf32>
    %143 = arith.mulf %141, %142 : vector<8x1568xf32>
    %c1_i32_60 = arith.constant 1 : i32
    %144 = tpu.memref_slice %arg17[%c1_i32_60] : memref<2x!tpu.dma_semaphore, #tpu.memory_space<semaphore_mem>> -> memref<1x!tpu.dma_semaphore, #tpu.memory_space<semaphore_mem>>
    %145 = tpu.memref_squeeze %144 : memref<1x!tpu.dma_semaphore, #tpu.memory_space<semaphore_mem>> -> memref<!tpu.dma_semaphore, #tpu.memory_space<semaphore_mem>>
    tpu.wait_dma2 semaphore(%145 : memref<!tpu.dma_semaphore, #tpu.memory_space<semaphore_mem>>) src(%arg4 : memref<1568x896xbf16, #tpu.memory_space<any>>) dst(%arg16 : memref<1568x896xbf16, #tpu.memory_space<vmem>>)
    %146 = arith.truncf %143 : vector<8x1568xf32> to vector<8x1568xbf16>
    %c0_61 = arith.constant 0 : index
    %c0_62 = arith.constant 0 : index
    %147 = vector.load %arg16[%c0_61, %c0_62] : memref<1568x896xbf16, #tpu.memory_space<vmem>>, vector<1568x896xbf16>
    %cst_63 = arith.constant dense<0.000000e+00> : vector<8x896xf32>
    %148 = tpu.matmul %146, %147, %cst_63 {dimension_numbers = #tpu.dot_dimension_numbers<[1], [0], [0], [1], [0, 0, 1, 1], [], []>} : vector<8x1568xbf16>, vector<1568x896xbf16>, vector<8x896xf32> -> vector<8x896xf32>
    %149 = math.tanh %148 : vector<8x896xf32>
    %c0_64 = arith.constant 0 : index
    %c0_65 = arith.constant 0 : index
    %150 = vector.load %arg14[%c0_64, %c0_65] : memref<8x896xf32, #tpu.memory_space<vmem>>, vector<8x896xf32>
    tpu.vector_store %arg14[%c0_64, %c0_65], %149 {strides = array<i32>} : memref<8x896xf32, #tpu.memory_space<vmem>>, vector<8x896xf32>,
    return
  }
}

</mosaic_0001>

<bundles_post_ra>
// kernel: generator_forward.1
= control target key start
LH: loop header
LB: loop body
LE: loop exit
PB: predicated region body
PF: predicated region fallthrough
CT: control target
= control target key end

     0   :  { %19 = vsyncpa [#allocation6], 0  ;;  %s20587_s0 = inlined_call_operand.vmem [shape: f32[8,16], index: 0, kind: input, shape index: {}]   ;;  %s20588_s1 = inlined_call_operand.hbm [shape: bf16[16,128], index: 1, kind: input, shape index: {}]   ;;  %s20589_s2 = inlined_call_operand.vmem [shape: bf16[128,576], index: 2, kind: input, shape index: {}]   ;;  %s20590_s3 = inlined_call_operand.hbm [shape: bf16[576,1568], index: 3, kind: input, shape index: {}]   ;;  %s20591_s4 = inlined_call_operand.hbm [shape: bf16[1568,896], index: 4, kind: input, shape index: {}]   ;;  %s20592_s5 = inlined_call_operand.vmem [shape: bf16[128,32], index: 5, kind: input, shape index: {}]   ;;  %s20593_s6 = inlined_call_operand.hbm [shape: bf16[32,128], index: 6, kind: input, shape index: {}]   ;;  %s20594_s7 = inlined_call_operand.hbm [shape: f32[2,32], index: 7, kind: input, shape index: {}]   ;;  %s20595_s8 = inlined_call_operand.vmem [shape: bf16[576,16], index: 8, kind: input, shape index: {}]   ;;  %s20596_s9 = inlined_call_operand.hbm [shape: bf16[16,576], index: 9, kind: input, shape index: {}]   ;;  %s20597_s10 = inlined_call_operand.hbm [shape: f32[2,16], index: 10, kind: input, shape index: {}]   ;;  %s20598_s11 = inlined_call_operand.vmem [shape: bf16[1568,8], index: 11, kind: input, shape index: {}]   ;;  %s20599_s12 = inlined_call_operand.hbm [shape: bf16[8,1568], index: 12, kind: input, shape index: {}]   ;;  %s20600_s13 = inlined_call_operand.hbm [shape: f32[2,8], index: 13, kind: input, shape index: {}]   ;;  %s20601_s14 = inlined_call_operand.vmem [shape: f32[8,896], index: 14, kind: output, shape index: {}]  }
   0x1   :  { %20 = vsyncpa [#allocation8], 0 }
   0x2   :  { %21 = vsyncpa [#allocation11], 0 }
   0x3   :  { %22 = vsyncpa [#allocation14], 0  ;;  %s46_s15 = sshll.u32 %s20593_s6, 4  ;;  %s19113_s16 = smov [#allocation7]   ;;  %s47_s15 = int_to_ptr.hbm [resolvable:$true] %s46_s15 }
   0x4   :  { %s48_s17 = sshll.u32 %s19113_s16, 4  ;;  %s72_s20 = sshll.u32 %s20596_s9, 4  ;;  %s49_s17 = int_to_ptr.vmem [resolvable:$true] %s48_s17  ;;  %s73_s20 = int_to_ptr.hbm [resolvable:$true] %s72_s20 }
   0x5   :  { %s19114_s21 = smov 64   ;;  %s19115_s22 = smov 4  }
   0x6   :  { %54 = dma.hbm_to_vmem [thread:$0]  %s47_s15, 256, %s49_s17, [#allocation8], %s19114_s21, %s19114_s21, %s19115_s22  }
   0x7   :  { %s19116_s23 = smov [#allocation10]   ;;  %s19117_s25 = smov 320  }
   0x8   :  { %s74_s24 = sshll.u32 %s19116_s23, 4  ;;  %s19118_s26 = smov 20   ;;  %s75_s24 = int_to_ptr.vmem [resolvable:$true] %s74_s24 }
   0x9   :  { %80 = dma.hbm_to_vmem [thread:$0]  %s73_s20, 640, %s75_s24, [#allocation11], %s19117_s25, %s19117_s25, %s19118_s26  }
   0xa   :  { %s99_s28 = sshll.u32 %s20599_s12, 4  ;;  %s19119_s29 = smov [#allocation13]   ;;  %s100_s28 = int_to_ptr.hbm [resolvable:$true] %s99_s28 }
   0xb   :  { %s101_s30 = sshll.u32 %s19119_s29, 4  ;;  %s29_s18 = sshll.u32 %s20588_s1, 4  ;;  %s102_s30 = int_to_ptr.vmem [resolvable:$true] %s101_s30  ;;  %s30_s18 = int_to_ptr.hbm [resolvable:$true] %s29_s18 }
   0xc   :  { %104 = dma.hbm_to_vmem [thread:$0]  %s100_s28, 832, %s102_s30, [#allocation14]  }
   0xd   :  { %s19120_s15 = smov [#allocation5]   ;;  %s60_s20 = sshll.u32 %s20594_s7, 4  ;;  %s61_s20 = int_to_ptr.hbm [resolvable:$true] %s60_s20 }
   0xe   :  { %s31_s17 = sshll.u32 %s19120_s15, 4  ;;  %s86_s25 = sshll.u32 %s20597_s10, 4  ;;  %s32_s17 = int_to_ptr.vmem [resolvable:$true] %s31_s17  ;;  %s87_s25 = int_to_ptr.hbm [resolvable:$true] %s86_s25 }
   0xf   :  { %37 = dma.hbm_to_vmem [thread:$0]  %s30_s18, 128, %s32_s17, [#allocation6], %s19114_s21, %s19114_s21, %s19115_s22  }
  0x10   :  { %s19121_s26 = smov [#allocation9]   ;;  %s19122_s1 = smov [#allocation12]  }
  0x11   :  { %s62_s27 = sshll.u32 %s19121_s26, 4  ;;  %s88_s6 = sshll.u32 %s19122_s1, 4  ;;  %s63_s27 = int_to_ptr.vmem [resolvable:$true] %s62_s27  ;;  %s89_s6 = int_to_ptr.vmem [resolvable:$true] %s88_s6 }
  0x12   :  { %65 = dma.hbm_to_vmem [thread:$0]  %s61_s20, 32, %s63_s27, [#allocation8]  }
  0x13   :  { %s110_s30 = sshll.u32 %s20600_s13, 4  ;;  %s19123_s7 = smov [#allocation15]   ;;  %s111_s30 = int_to_ptr.hbm [resolvable:$true] %s110_s30 }
  0x14   :  { %91 = dma.hbm_to_vmem [thread:$0]  %s87_s25, 32, %s89_s6, [#allocation11]  }
  0x15   :  { %s112_s21 = sshll.u32 %s19123_s7, 4  ;;  %s113_s21 = int_to_ptr.vmem [resolvable:$true] %s112_s21 }
  0x16   :  { %115 = dma.hbm_to_vmem [thread:$0]  %s111_s30, 32, %s113_s21, [#allocation14]  }
  0x17   :  { %19101 = dma.done.wait [#allocation6], 128  }
  0x18   :  { %19102 = vsyncadd [#allocation6], 4294967168 }
  0x19   :  { %19103 = dma.done.wait [#allocation8], 288  }
  0x1a   :  { %19104 = vsyncadd [#allocation8], 4294967008 }
  0x1b   :  { %19105 = dma.done.wait [#allocation11], 672  }
  0x1c   :  { %19106 = vsyncadd [#allocation11], 4294966624 }
  0x1d   :  { %19107 = dma.done.wait [#allocation14], 864  }
  0x1e   :  { %19108 = vsyncadd [#allocation14], 4294966432  ;;  %v17507_v0 = vld [vmem:[#allocation5] sm:$0xff]  ;;  %v177_v1 = vld [vmem:[%s20587_s0] sm:$0xff]  ;;  %vm187_vm0 = vcmask 130048   ;;  %vm217_vm1 = vcmask 1040384  }
  0x1f   :  { %v17515_v2 = vld [vmem:[%s20592_s5 + $0x38] sm:$0xff]  ;;  %v178_v3 = vpack.c.bf16 %v177_v1, %v177_v1  ;;  %198 = vmatpush.bf16.msra.mxu0 %v17507_v0  ;;  %v17514_v4 = vld [vmem:[%s20592_s5 + $0x30] sm:$0xff]  ;;  %v17513_v5 = vld [vmem:[%s20592_s5 + $0x28] sm:$0xff]  ;;  %vm344_vm5 = vcmask 261120   ;;  %vm713_vm7 = vcmask 523264   ;;  %s152_s7 = sshll.u32 %s20590_s3, 4  ;;  %s153_s7 = int_to_ptr.hbm [resolvable:$true] %s152_s7 }
  0x20   :  { %284 = vmatpush.bf16.msra.mxu1 %v17515_v2  ;;  %v17512_v6 = vld [vmem:[%s20592_s5 + $0x20] sm:$0xff]  ;;  %v17511_v7 = vld [vmem:[%s20592_s5 + $0x18] sm:$0xff]  ;;  %v17510_v8 = vld [vmem:[%s20592_s5 + $0x10] sm:$0xff]  ;;  %s19125_s21 = smov [#allocation2]   ;;  %s166_s16 = sshll.u32 %s20591_s4, 4  ;;  %s167_s16 = int_to_ptr.hbm [resolvable:$true] %s166_s16 }
  0x21   :  { %v17509_v9 = vld [vmem:[%s20592_s5 + $0x8] sm:$0xff]  ;;  %v17508_v10 = vld [vmem:[%s20592_s5] sm:$0xff]  ;;  %v17516_v34 = vld [vmem:[#allocation7] sm:$0xff]  ;;  %s154_s10 = sshll.u32 %s19125_s21, 4  ;;  %s19126_s9 = smov [#allocation3]   ;;  %s155_s10 = int_to_ptr.vmem [resolvable:$true] %s154_s10 }
  0x22   :  { %12091 = vmatmul.msk.bf16.vlgmr.msra.gmra.mxu0 %vm187_vm0, %v178_v3  ;;  %v17517_v31 = vld [vmem:[#allocation7 + $0x8] sm:$0xff]  ;;  %v12275_v38 = vld [vmem:[%s20589_s2 + $0x118] sm:$0xf]  ;;  %v17555_v39 = vld [vmem:[%s20589_s2 + $0x128] sm:$0xf0]  ;;  %s168_s18 = sshll.u32 %s19126_s9, 4  ;;  %s169_s18 = int_to_ptr.vmem [resolvable:$true] %s168_s18 }
  0x23   :  { %354 = vmatpush.bf16.msra.mxu2 %v17517_v31  ;;  %v12255_v40 = vld [vmem:[%s20589_s2 + $0xf0] sm:$0xf]  ;;  %v12276_v41 = vor.u32 %v17555_v39, %v12275_v38  ;;  %v17550_v42 = vld [vmem:[%s20589_s2 + $0x100] sm:$0xf0]  ;;  %v12235_v43 = vld [vmem:[%s20589_s2 + $0xc8] sm:$0xf] }
  0x24   :  { %285 = vmatpush.bf16.msra.mxu1 %v17514_v4  ;;  %v17553_v44 = vld [vmem:[%s20589_s2 + $0x11c] sm:$0xf]  ;;  %v12256_v45 = vor.u32 %v17550_v42, %v12255_v40  ;;  %v12277_v46 = vld [vmem:[%s20589_s2 + $0x12c] sm:$0xf0]  ;;  %v12283_v47 = vld [vmem:[%s20589_s2 + $0x120] sm:$0xf] }
  0x25   :  { %624 = vmatpush.bf16.msra.mxu3 %v12276_v41  ;;  %v17556_v48 = vld [vmem:[%s20589_s2 + $0x130] sm:$0xf0]  ;;  %v17545_v49 = vld [vmem:[%s20589_s2 + $0xd8] sm:$0xf0]  ;;  %v12280_v50 = vor.u32 %v17553_v44, %v12277_v46  ;;  %v17554_v52 = vld [vmem:[%s20589_s2 + $0x124] sm:$0xf] }
  0x26   :  { %v12284_v51 = vor.u32 %v17556_v48, %v12283_v47  ;;  %v12285_v53 = vld [vmem:[%s20589_s2 + $0x134] sm:$0xf0]  ;;  %v17548_v55 = vld [vmem:[%s20589_s2 + $0xf4] sm:$0xf]  ;;  %v12257_v56 = vld [vmem:[%s20589_s2 + $0x104] sm:$0xf0]  ;;  %v12236_v62 = vor.u32 %v17545_v49, %v12235_v43 }
  0x27   :  { %355 = vmatpush.bf16.msra.mxu2 %v17516_v34  ;;  %v12288_v54 = vor.u32 %v17554_v52, %v12285_v53  ;;  %637 = vmatpush.bf16.msrb.mxu0 %v12280_v50  ;;  %v12260_v57 = vor.u32 %v17548_v55, %v12257_v56  ;;  %v12263_v58 = vld [vmem:[%s20589_s2 + $0xf8] sm:$0xf]  ;;  %v17551_v59 = vld [vmem:[%s20589_s2 + $0x108] sm:$0xf0]  ;;  %v17549_v60 = vld [vmem:[%s20589_s2 + $0xfc] sm:$0xf] }
  0x28   :  { %286 = vmatpush.bf16.msra.mxu1 %v17513_v5  ;;  %v12215_v63 = vld [vmem:[%s20589_s2 + $0xa0] sm:$0xf]  ;;  %v17540_v0 = vld [vmem:[%s20589_s2 + $0xb0] sm:$0xf0]  ;;  %v12264_v1 = vor.u32 %v17551_v59, %v12263_v58  ;;  %v12265_v2 = vld [vmem:[%s20589_s2 + $0x10c] sm:$0xf0] }
  0x29   :  { %625 = vmatpush.bf16.msra.mxu3 %v12256_v45  ;;  %v12268_v4 = vor.u32 %v17549_v60, %v12265_v2  ;;  %v17543_v5 = vld [vmem:[%s20589_s2 + $0xcc] sm:$0xf]  ;;  %v17533_v31 = vld [vmem:[%s20589_s2 + $0x7c] sm:$0xf]  ;;  %v12197_v34 = vld [vmem:[%s20589_s2 + $0x8c] sm:$0xf0] }
  0x2a   :  { %v17530_v39 = vld [vmem:[%s20589_s2 + $0x60] sm:$0xf0]  ;;  %v12205_v41 = vld [vmem:[%s20589_s2 + $0x94] sm:$0xf0]  ;;  %v304_v42 = vld [vmem:[#allocation9] sm:$0x1]  ;;  %v12200_v44 = vor.u32 %v17533_v31, %v12197_v34 }
  0x2b   :  { %650 = vmatpush.bf16.msrb.mxu2 %v12284_v51  ;;  %638 = vmatpush.bf16.msrb.mxu0 %v12260_v57  ;;  %v17534_v40 = vld [vmem:[%s20589_s2 + $0x84] sm:$0xf]  ;;  %v12155_v48 = vld [vmem:[%s20589_s2 + $0x28] sm:$0xf]  ;;  %v17525_v49 = vld [vmem:[%s20589_s2 + $0x38] sm:$0xf0] }
  0x2c   :  { %287 = vmatpush.bf16.msra.mxu1 %v17512_v6  ;;  %v12237_v6 = vld [vmem:[%s20589_s2 + $0xdc] sm:$0xf0]  ;;  %v12208_v47 = vor.u32 %v17534_v40, %v12205_v41  ;;  %v305_v51 = vld [vmem:[#allocation9 + $0x1] sm:$0x1]  ;;  %v12156_v53 = vor.u32 %v17525_v49, %v12155_v48  ;;  %v17520_v55 = vld [vmem:[%s20589_s2 + $0x10] sm:$0xf0]  ;;  %v172_v49 = vlaneseq }
  0x2d   :  { %626 = vmatpush.bf16.msra.mxu3 %v12236_v62  ;;  %v12291_v57 = vld [vmem:[%s20589_s2 + $0x128] sm:$0xf]  ;;  %v12145_v31 = vld [vmem:[%s20589_s2 + $0x1c] sm:$0xf0]  ;;  %v12231_v34 = vld [vmem:[%s20589_s2 + $0xb0] sm:$0xf] }
  0x2e   :  { %v12191_v41 = vld [vmem:[%s20589_s2 + $0x60] sm:$0xf]  ;;  %157 = dma.hbm_to_vmem [thread:$0]  %s153_s7, 59904, %s155_s10, [#allocation4] }
  0x2f   :  { %651 = vmatpush.bf16.msrb.mxu2 %v12264_v1  ;;  %v12183_v1 = vld [vmem:[%s20589_s2 + $0x58] sm:$0xf]  ;;  %171 = dma.hbm_to_vmem [thread:$0]  %s167_s16, 87808, %s169_s18, [#allocation4 + $0x1] }
  0x30   :  { %288 = vmatpush.bf16.msra.mxu1 %v17511_v7  ;;  %v12243_v7 = vld [vmem:[%s20589_s2 + $0xd0] sm:$0xf] }
  0x34   :  { %289 = vmatpush.bf16.msra.mxu1 %v17510_v8  ;;  %v17546_v8 = vld [vmem:[%s20589_s2 + $0xe0] sm:$0xf0] }
  0x38   :  { %290 = vmatpush.bf16.msra.mxu1 %v17509_v9  ;;  %v17544_v9 = vld [vmem:[%s20589_s2 + $0xd4] sm:$0xf] }
  0x3c   :  { %291 = vmatpush.bf16.msra.mxu1 %v17508_v10 }
  0x40   :  { %663 = vmatpush.bf16.msrb.mxu1 %v12288_v54  ;;  %v12135_v54 = vld [vmem:[%s20589_s2] sm:$0xf] }
  0x41   :  { %v12136_v59 = vor.u32 %v17520_v55, %v12135_v54  ;;  %v17572_v54 = vld [vmem:[%s20595_s8 + $0x70] sm:$0xff] }
  0x44   :  { %664 = vmatpush.bf16.msrb.mxu1 %v12268_v4  ;;  %v17529_v4 = vld [vmem:[%s20589_s2 + $0x5c] sm:$0xf] }
  0x9f   :  { %v19251_v11 = vpop.f32.mrf.mxu0 }
  0xa0   :  { %v204_v12 = vrot.slane %v19251_v11, 4  ;;  %v210_v13 = vmul.f32 %v19251_v11, %v19251_v11 }
  0xa2   :  { %v205_v14 = vadd.f32 %v204_v12, %v19251_v11  ;;  %v211_v15 = vrot.slane %v210_v13, 4  ;;  %v12195_v12 = vld [vmem:[%s20589_s2 + $0x78] sm:$0xf] }
  0xa4   :  { %v206_v16 = vrot.slane %v205_v14, 2  ;;  %v212_v17 = vadd.f32 %v211_v15, %v210_v13  ;;  %v17535_v13 = vld [vmem:[%s20589_s2 + $0x88] sm:$0xf0]  ;;  %v12244_v15 = vor.u32 %v17546_v8, %v12243_v7  ;;  %v12271_v8 = vld [vmem:[%s20589_s2 + $0x100] sm:$0xf] }
  0xa6   :  { %v207_v18 = vadd.f32 %v206_v16, %v205_v14  ;;  %v213_v19 = vrot.slane %v212_v17, 2  ;;  %v12240_v14 = vor.u32 %v17543_v5, %v12237_v6  ;;  %v12245_v16 = vld [vmem:[%s20589_s2 + $0xe4] sm:$0xf0]  ;;  %652 = vmatpush.bf16.msrb.mxu2 %v12244_v15  ;;  %v12185_v5 = vld [vmem:[%s20589_s2 + $0x6c] sm:$0xf0] }
  0xa7   :  { %v202_v20 = vpop.f32.mrf.mxu0  ;;  %v12188_v7 = vor.u32 %v17529_v4, %v12185_v5  ;;  %v17589_v4 = vld [vmem:[%s20595_s8 + $0xf8] sm:$0xff]  ;;  %v17588_v5 = vld [vmem:[%s20595_s8 + $0xf0] sm:$0xff] }
  0xa8   :  { %v208_v21 = vrot.slane %v207_v18, 1  ;;  %v214_v22 = vadd.f32 %v213_v19, %v212_v17  ;;  %v12216_v17 = vor.u32 %v17540_v0, %v12215_v63  ;;  %v17538_v19 = vld [vmem:[%s20589_s2 + $0xa4] sm:$0xf]  ;;  %v12217_v20 = vld [vmem:[%s20589_s2 + $0xb4] sm:$0xf0]  ;;  %639 = vmatpush.bf16.msrb.mxu0 %v12240_v14 }
  0xa9   :  { %v17528_v63 = vld [vmem:[%s20589_s2 + $0x54] sm:$0xf]  ;;  %v12177_v0 = vld [vmem:[%s20589_s2 + $0x64] sm:$0xf0]  ;;  %v12163_v14 = vld [vmem:[%s20589_s2 + $0x30] sm:$0xf] }
  0xaa   :  { %v215_v23 = vrot.slane %v214_v22, 1  ;;  %v209_v24 = vadd.f32 %v208_v21, %v207_v18  ;;  %v12248_v18 = vor.u32 %v17544_v9, %v12245_v16  ;;  %v12223_v21 = vld [vmem:[%s20589_s2 + $0xa8] sm:$0xf]  ;;  %627 = vmatpush.bf16.msra.mxu3 %v12216_v17  ;;  %v12180_v2 = vor.u32 %v17528_v63, %v12177_v0  ;;  %v17552_v9 = vld [vmem:[%s20589_s2 + $0x110] sm:$0xf0] }
  0xab   :  { %v17526_v16 = vld [vmem:[%s20589_s2 + $0x40] sm:$0xf0]  ;;  %v17524_v17 = vld [vmem:[%s20589_s2 + $0x34] sm:$0xf] }
  0xac   :  { %v216_v25 = vadd.f32 %v215_v23, %v214_v22  ;;  %v17541_v23 = vld [vmem:[%s20589_s2 + $0xb8] sm:$0xf0]  ;;  %665 = vmatpush.bf16.msrb.mxu1 %v12248_v18  ;;  %v12165_v18 = vld [vmem:[%s20589_s2 + $0x44] sm:$0xf0] }
  0xae   :  { %v218_v26 = vsel %vm217_vm1, %v209_v24, %v216_v25  ;;  %v17539_v24 = vld [vmem:[%s20589_s2 + $0xac] sm:$0xf]  ;;  %v12225_v25 = vld [vmem:[%s20589_s2 + $0xbc] sm:$0xf0] }
  0xaf   :  { %v219_v27 = vpack.c.bf16 %v218_v26, %v218_v26 }
  0xb1   :  { %292 = vmatmul.bf16.vlgmr.msra.gmra.mxu1 %v219_v27  ;;  %v12175_v27 = vld [vmem:[%s20589_s2 + $0x50] sm:$0xf] }
  0xb2   :  { %v12176_v46 = vor.u32 %v17530_v39, %v12175_v27  ;;  %v17537_v39 = vld [vmem:[%s20589_s2 + $0x98] sm:$0xf0] }
 0x12e   :  { %v293_v28 = vpop.f32.mrf.mxu1 }
 0x12f   :  { %v19258_v29 = vmul.f32 0.125, %v293_v28  ;;  %v12220_v28 = vor.u32 %v17538_v19, %v12217_v20  ;;  %v12164_v19 = vor.u32 %v17526_v16, %v12163_v14  ;;  %v12168_v20 = vor.u32 %v17524_v17, %v12165_v18  ;;  %v17578_v14 = vld [vmem:[%s20595_s8 + $0xa0] sm:$0xff]  ;;  %v17584_v16 = vld [vmem:[%s20595_s8 + $0xd0] sm:$0xff]  ;;  %v17561_v17 = vld [vmem:[%s20595_s8 + $0x18] sm:$0xff] }
 0x130   :  { %v17577_v18 = vld [vmem:[%s20595_s8 + $0x98] sm:$0xff] }
 0x131   :  { %v298_v30 = vmul.f32 %v19258_v29, %v19258_v29  ;;  %640 = vmatpush.bf16.msrb.mxu0 %v12220_v28  ;;  %v17521_v28 = vld [vmem:[%s20589_s2 + $0x18] sm:$0xf0] }
 0x133   :  { %v300_v32 = vrot.slane %v298_v30, 7  ;;  %v12224_v30 = vor.u32 %v17541_v23, %v12223_v21  ;;  %v12251_v21 = vld [vmem:[%s20589_s2 + $0xd8] sm:$0xf] }
 0x135   :  { %v302_v33 = vsub.f32 %v19258_v29, %v300_v32  ;;  %v12196_v32 = vor.u32 %v17535_v13, %v12195_v12  ;;  %653 = vmatpush.bf16.msrb.mxu2 %v12224_v30  ;;  %641 = vmatpush.bf16.msrb.mxu0 %v12200_v44  ;;  %v17523_v12 = vld [vmem:[%s20589_s2 + $0x2c] sm:$0xf]  ;;  %v12157_v13 = vld [vmem:[%s20589_s2 + $0x3c] sm:$0xf0]  ;;  %v12171_v44 = vld [vmem:[%s20589_s2 + $0x38] sm:$0xf] }
 0x136   :  { %v295_v35 = vpop.f32.mrf.mxu1  ;;  %v12160_v15 = vor.u32 %v17523_v12, %v12157_v13  ;;  %v17519_v30 = vld [vmem:[%s20589_s2 + $0xc] sm:$0xf]  ;;  %v17585_v12 = vld [vmem:[%s20595_s8 + $0xd8] sm:$0xff]  ;;  %v17562_v13 = vld [vmem:[%s20595_s8 + $0x20] sm:$0xff] }
 0x137   :  { %v303_v36 = vmax.f32 %v302_v33, 0.0  ;;  %v12228_v33 = vor.u32 %v17539_v24, %v12225_v25  ;;  %v12203_v35 = vld [vmem:[%s20589_s2 + $0x80] sm:$0xf]  ;;  %628 = vmatpush.bf16.msra.mxu3 %v12196_v32  ;;  %v17518_v24 = vld [vmem:[%s20589_s2 + $0x4] sm:$0xf] }
 0x138   :  { %v12137_v25 = vld [vmem:[%s20589_s2 + $0x14] sm:$0xf0] }
 0x139   :  { %v19263_v37 = vadd.f32 1e-05, %v303_v36  ;;  %v17536_v36 = vld [vmem:[%s20589_s2 + $0x90] sm:$0xf0]  ;;  %666 = vmatpush.bf16.msrb.mxu1 %v12228_v33  ;;  %642 = vmatpush.bf16.msrb.mxu0 %v12180_v2  ;;  %v12140_v27 = vor.u32 %v17518_v24, %v12137_v25  ;;  %v12148_v33 = vor.u32 %v17519_v30, %v12145_v31  ;;  %v17582_v24 = vld [vmem:[%s20595_s8 + $0xc0] sm:$0xff]  ;;  %v17559_v25 = vld [vmem:[%s20595_s8 + $0x8] sm:$0xff] }
 0x13a   :  { %v17593_v30 = vld [vmem:[%s20595_s8 + $0x118] sm:$0xff]  ;;  %v17592_v31 = vld [vmem:[%s20595_s8 + $0x110] sm:$0xff] }
 0x13b   :  { %18865 = vrsqrt.f32 %v19263_v37  ;;  %vm313_vm3 = vweird.f32 %v19263_v37  ;;  %629 = vmatpush.bf16.msra.mxu3 %v12176_v46  ;;  %v12151_v46 = vld [vmem:[%s20589_s2 + $0x10] sm:$0xf] }
 0x13d   :  { %667 = vmatpush.bf16.msrb.mxu1 %v12208_v47  ;;  %643 = vmatpush.bf16.msrb.mxu0 %v12160_v15  ;;  %v17522_v47 = vld [vmem:[%s20589_s2 + $0x20] sm:$0xf0]  ;;  %v17568_v15 = vld [vmem:[%s20595_s8 + $0x50] sm:$0xff] }
 0x13e   :  { %v12152_v48 = vor.u32 %v17522_v47, %v12151_v46 }
 0x13f   :  { %630 = vmatpush.bf16.msra.mxu3 %v12156_v53  ;;  %v173_v53 = vshrl.u32 %v172_v49, 7 }
 0x141   :  { %v18866_v61 = vpop.eup %18865  ;;  %668 = vmatpush.bf16.msrb.mxu1 %v12188_v7  ;;  %644 = vmatpush.bf16.msrb.mxu0 %v12140_v27  ;;  %vm174_vm6 = vcmp.lt.s32.totalorder %v173_v53, 2  ;;  %v17586_v7 = vld [vmem:[%s20595_s8 + $0xe0] sm:$0xff] }
 0x142   :  { %v308_v3 = vmul.f32 %v18866_v61, %v19263_v37  ;;  %vm314_vm2 = vweird.f32 %v18866_v61  ;;  %v12204_v37 = vor.u32 %v17536_v36, %v12203_v35  ;;  %v17542_v35 = vld [vmem:[%s20589_s2 + $0xc0] sm:$0xf0] }
 0x143   :  { %vm315_vm4 = vmor %vm313_vm3, %vm314_vm2  ;;  %631 = vmatpush.bf16.msra.mxu3 %v12136_v59  ;;  %v12232_v36 = vor.u32 %v17542_v35, %v12231_v34  ;;  %v17558_v27 = vld [vmem:[%s20595_s8] sm:$0xff] }
 0x144   :  { %v309_v10 = vmul.f32 %v18866_v61, %v308_v3  ;;  %654 = vmatpush.bf16.msrb.mxu2 %v12204_v37  ;;  %v17531_v3 = vld [vmem:[%s20589_s2 + $0x68] sm:$0xf0] }
 0x145   :  { %v12184_v6 = vor.u32 %v17531_v3, %v12183_v1  ;;  %669 = vmatpush.bf16.msrb.mxu1 %v12168_v20  ;;  %v17527_v37 = vld [vmem:[%s20589_s2 + $0x48] sm:$0xf0]  ;;  %v17570_v1 = vld [vmem:[%s20595_s8 + $0x60] sm:$0xff] }
 0x146   :  { %v310_v22 = vmul.f32 0.5, %v309_v10  ;;  %v12272_v10 = vor.u32 %v17552_v9, %v12271_v8  ;;  %v17563_v8 = vld [vmem:[%s20595_s8 + $0x28] sm:$0xff] }
 0x147   :  { %v17579_v9 = vld [vmem:[%s20595_s8 + $0xa8] sm:$0xff] }
 0x148   :  { %v311_v26 = vsub.f32 1.5, %v310_v22  ;;  %655 = vmatpush.bf16.msrb.mxu2 %v12184_v6  ;;  %v17547_v22 = vld [vmem:[%s20589_s2 + $0xe8] sm:$0xf0] }
 0x149   :  { %v12252_v23 = vor.u32 %v17547_v22, %v12251_v21  ;;  %670 = vmatpush.bf16.msrb.mxu1 %v12148_v33  ;;  %v17587_v6 = vld [vmem:[%s20595_s8 + $0xe8] sm:$0xff]  ;;  %v17560_v21 = vld [vmem:[%s20595_s8 + $0x10] sm:$0xff] }
 0x14a   :  { %v312_v38 = vmul.f32 %v18866_v61, %v311_v26  ;;  %v12143_v26 = vld [vmem:[%s20589_s2 + $0x8] sm:$0xf]  ;;  %v17576_v22 = vld [vmem:[%s20595_s8 + $0x90] sm:$0xff] }
 0x14b   :  { %v12144_v32 = vor.u32 %v17521_v28, %v12143_v26  ;;  %v17583_v20 = vld [vmem:[%s20595_s8 + $0xc8] sm:$0xff]  ;;  %v17574_v28 = vld [vmem:[%s20595_s8 + $0x80] sm:$0xff] }
 0x14c   :  { %v316_v43 = vsel %vm315_vm4, %v18866_v61, %v312_v38  ;;  %656 = vmatpush.bf16.msrb.mxu2 %v12164_v19  ;;  %v12211_v38 = vld [vmem:[%s20589_s2 + $0x88] sm:$0xf] }
 0x14d   :  { %v318_v45 = vrot.slane %v316_v43, 1  ;;  %v12212_v40 = vor.u32 %v17537_v39, %v12211_v38  ;;  %v17567_v19 = vld [vmem:[%s20595_s8 + $0x48] sm:$0xff] }
 0x14e   :  { %v17575_v26 = vld [vmem:[%s20595_s8 + $0x88] sm:$0xff] }
 0x14f   :  { %v320_v50 = vmul.f32 %v318_v45, %v304_v42  ;;  %v17532_v42 = vld [vmem:[%s20589_s2 + $0x70] sm:$0xf0]  ;;  %v12172_v45 = vor.u32 %v17527_v37, %v12171_v44  ;;  %v17590_v44 = vld [vmem:[%s20595_s8 + $0x100] sm:$0xff] }
 0x150   :  { %657 = vmatpush.bf16.msrb.mxu2 %v12144_v32  ;;  %v12192_v43 = vor.u32 %v17532_v42, %v12191_v41 }
 0x151   :  { %v321_v52 = vmul.f32 %v320_v50, %v19258_v29  ;;  %v17557_v29 = vld [vmem:[%s20589_s2 + $0x138] sm:$0xf0] }
 0x152   :  { %v12292_v60 = vor.u32 %v17557_v29, %v12291_v57  ;;  %v17580_v57 = vld [vmem:[%s20595_s8 + $0xb0] sm:$0xff] }
 0x153   :  { %v322_v56 = vsub.f32 %v305_v51, %v321_v52  ;;  %v17565_v51 = vld [vmem:[%s20595_s8 + $0x38] sm:$0xff] }
 0x154   :  { %676 = vmatpush.bf16.msrb.mxu3 %v12292_v60  ;;  %v17581_v52 = vld [vmem:[%s20595_s8 + $0xb8] sm:$0xff]  ;;  %1058 = vmatpush.bf16.msra.mxu0 %v17565_v51  ;;  %v17571_v60 = vld [vmem:[%s20595_s8 + $0x68] sm:$0xff] }
 0x155   :  { %v324_v58 = vrot.slane %v322_v56, 7  ;;  %1084 = vmatpush.bf16.msra.mxu1 %v17581_v52  ;;  %v17564_v56 = vld [vmem:[%s20595_s8 + $0x30] sm:$0xff] }
 0x157   :  { %v326_v61 = vsel %vm217_vm1, %v320_v50, %v324_v58  ;;  %v17573_v50 = vld [vmem:[%s20595_s8 + $0x78] sm:$0xff] }
 0x158   :  { %v327_v62 = vpack.c.bf16 %v326_v61, %v326_v61  ;;  %677 = vmatpush.bf16.msrb.mxu3 %v12272_v10  ;;  %1059 = vmatpush.bf16.msra.mxu0 %v17564_v56  ;;  %v17569_v10 = vld [vmem:[%s20595_s8 + $0x58] sm:$0xff] }
 0x159   :  { %1085 = vmatpush.bf16.msra.mxu1 %v17580_v57 }
 0x15a   :  { %12132 = vmatmul.msk.bf16.vlgmr.msra.gmra.mxu2 %vm344_vm5, %v327_v62  ;;  %v19124_v62 = vmov 0.0  }
 0x15b   :  { %1071 = vmatpush.bf16.msra.mxu2 %v17573_v50  ;;  %v19534_v63 = vsel %vm174_vm6, 1.0, %v19124_v62 }
 0x15c   :  { %678 = vmatpush.bf16.msrb.mxu3 %v12252_v23  ;;  %1060 = vmatpush.bf16.msra.mxu0 %v17563_v8  ;;  %v17566_v23 = vld [vmem:[%s20595_s8 + $0x40] sm:$0xff] }
 0x15d   :  { %1086 = vmatpush.bf16.msra.mxu1 %v17579_v9 }
 0x15f   :  { %1072 = vmatpush.bf16.msra.mxu2 %v17572_v54 }
 0x160   :  { %679 = vmatpush.bf16.msrb.mxu3 %v12232_v36  ;;  %1061 = vmatpush.bf16.msra.mxu0 %v17562_v13  ;;  %v17591_v36 = vld [vmem:[%s20595_s8 + $0x108] sm:$0xff] }
 0x161   :  { %1087 = vmatpush.bf16.msra.mxu1 %v17578_v14 }
 0x163   :  { %1073 = vmatpush.bf16.msra.mxu2 %v17571_v60 }
 0x164   :  { %680 = vmatpush.bf16.msrb.mxu3 %v12212_v40  ;;  %1062 = vmatpush.bf16.msra.mxu0 %v17561_v17 }
 0x165   :  { %1088 = vmatpush.bf16.msra.mxu1 %v17577_v18 }
 0x167   :  { %1074 = vmatpush.bf16.msra.mxu2 %v17570_v1 }
 0x168   :  { %681 = vmatpush.bf16.msrb.mxu3 %v12192_v43  ;;  %1063 = vmatpush.bf16.msra.mxu0 %v17560_v21 }
 0x169   :  { %1089 = vmatpush.bf16.msra.mxu1 %v17576_v22 }
 0x16b   :  { %1075 = vmatpush.bf16.msra.mxu2 %v17569_v10 }
 0x16c   :  { %682 = vmatpush.bf16.msrb.mxu3 %v12172_v45  ;;  %1064 = vmatpush.bf16.msra.mxu0 %v17559_v25 }
 0x16d   :  { %1090 = vmatpush.bf16.msra.mxu1 %v17575_v26 }
 0x16f   :  { %1076 = vmatpush.bf16.msra.mxu2 %v17568_v15 }
 0x170   :  { %683 = vmatpush.bf16.msrb.mxu3 %v12152_v48  ;;  %1065 = vmatpush.bf16.msra.mxu0 %v17558_v27 }
 0x171   :  { %1091 = vmatpush.bf16.msra.mxu1 %v17574_v28 }
 0x173   :  { %1077 = vmatpush.bf16.msra.mxu2 %v17567_v19 }
 0x177   :  { %1078 = vmatpush.bf16.msra.mxu2 %v17566_v23 }
 0x1dd   :  { %v357_v55 = vpop.f32.mrf.mxu2 }
 0x1de   :  { %v361_v29 = vperm.slane %v357_v55, 0  ;;  %v363_v59 = vperm.slane %v357_v55, 1 }
 0x1e0   :  { %v362_v58 = vmul.f32 %v361_v29, %v19251_v11 }
 0x1e2   :  { %v364_v61 = vadd.f32 %v363_v59, %v362_v58 }
 0x1e4   :  { %v365_v0 = vmax.f32 %v364_v61, 0.0 }
 0x1e5   :  { %v359_v2 = vpop.f32.mrf.mxu2 }
 0x1e6   :  { %v366_v11 = vmul.f32 %v19534_v63, %v365_v0 }
 0x1e8   :  { %v367_v3 = vpack.c.bf16 %v366_v11, %v366_v11 }
 0x1ea   :  { %632 = vmatmul.bf16.vlgmr.msra.gmra.mxu3 %v367_v3  ;;  %645 = vmatmul.bf16.vlgmr.msrb.gmra.mxu0 %v367_v3 }
 0x1eb   :  { %658 = vmatmul.bf16.vlgmr.msrb.gmra.mxu2 %v367_v3  ;;  %671 = vmatmul.bf16.vlgmr.msrb.gmra.mxu1 %v367_v3 }
 0x1ec   :  { %1097 = vmatpush.bf16.msra.mxu3 %v17589_v4  ;;  %1114 = vmatpush.bf16.msrb.mxu0 %v17593_v30 }
 0x1f0   :  { %1098 = vmatpush.bf16.msra.mxu3 %v17588_v5  ;;  %1115 = vmatpush.bf16.msrb.mxu0 %v17592_v31 }
 0x1f4   :  { %1099 = vmatpush.bf16.msra.mxu3 %v17587_v6  ;;  %1116 = vmatpush.bf16.msrb.mxu0 %v17591_v36 }
 0x1f8   :  { %1100 = vmatpush.bf16.msra.mxu3 %v17586_v7  ;;  %1117 = vmatpush.bf16.msrb.mxu0 %v17590_v44 }
 0x1fa   :  { %684 = vmatmul.bf16.vlgmr.msrb.gmra.mxu3 %v367_v3 }
 0x1fc   :  { %1101 = vmatpush.bf16.msra.mxu3 %v17585_v12 }
 0x200   :  { %1102 = vmatpush.bf16.msra.mxu3 %v17584_v16 }
 0x204   :  { %1103 = vmatpush.bf16.msra.mxu3 %v17583_v20 }
 0x208   :  { %1104 = vmatpush.bf16.msra.mxu3 %v17582_v24 }
 0x267   :  { %v19618_v32 = vpop.f32.mrf.mxu0 }
 0x268   :  { %v695_v33 = vrot.slane %v19618_v32, 4  ;;  %v722_v34 = vmul.f32 %v19618_v32, %v19618_v32  ;;  %v19623_v35 = vpop.f32.mrf.mxu1 }
 0x269   :  { %v707_v38 = vrot.slane %v19623_v35, 4  ;;  %v724_v39 = vmul.f32 %v19623_v35, %v19623_v35 }
 0x26a   :  { %v696_v40 = vadd.f32 %v695_v33, %v19618_v32  ;;  %v732_v41 = vrot.slane %v722_v34, 4 }
 0x26b   :  { %v708_v42 = vadd.f32 %v707_v38, %v19623_v35  ;;  %v744_v43 = vrot.slane %v724_v39, 4 }
 0x26c   :  { %v697_v37 = vrot.slane %v696_v40, 2  ;;  %v733_v45 = vadd.f32 %v732_v41, %v722_v34 }
 0x26d   :  { %v709_v46 = vrot.slane %v708_v42, 2  ;;  %v745_v47 = vadd.f32 %v744_v43, %v724_v39  ;;  %v19636_v48 = vpop.f32.mrf.mxu3 }
 0x26e   :  { %v698_v49 = vadd.f32 %v697_v37, %v696_v40  ;;  %v734_v50 = vrot.slane %v733_v45, 2  ;;  %v689_v51 = vrot.slane %v19636_v48, 4  ;;  %v721_v52 = vmul.f32 %v19636_v48, %v19636_v48  ;;  %v19641_v53 = vpop.f32.mrf.mxu2 }
 0x26f   :  { %v710_v54 = vadd.f32 %v709_v46, %v708_v42  ;;  %v746_v55 = vrot.slane %v745_v47, 2  ;;  %v701_v56 = vrot.slane %v19641_v53, 4  ;;  %v723_v57 = vmul.f32 %v19641_v53, %v19641_v53  ;;  %v648_v29 = vpop.f32.mrf.mxu0 }
 0x270   :  { %v699_v58 = vrot.slane %v698_v49, 1  ;;  %v735_v59 = vadd.f32 %v734_v50, %v733_v45  ;;  %v690_v60 = vadd.f32 %v689_v51, %v19636_v48  ;;  %v726_v61 = vrot.slane %v721_v52, 4  ;;  %v674_v62 = vpop.f32.mrf.mxu1 }
 0x271   :  { %v711_v0 = vrot.slane %v710_v54, 1  ;;  %v747_v1 = vadd.f32 %v746_v55, %v745_v47  ;;  %v702_v2 = vadd.f32 %v701_v56, %v19641_v53  ;;  %v738_v11 = vrot.slane %v723_v57, 4 }
 0x272   :  { %v736_v3 = vrot.slane %v735_v59, 1  ;;  %v691_v4 = vrot.slane %v690_v60, 2  ;;  %v727_v5 = vadd.f32 %v726_v61, %v721_v52  ;;  %v700_v9 = vadd.f32 %v699_v58, %v698_v49 }
 0x273   :  { %v748_v6 = vrot.slane %v747_v1, 1  ;;  %v703_v7 = vrot.slane %v702_v2, 2  ;;  %v739_v8 = vadd.f32 %v738_v11, %v723_v57  ;;  %v712_v14 = vadd.f32 %v711_v0, %v710_v54 }
 0x274   :  { %v737_v10 = vadd.f32 %v736_v3, %v735_v59  ;;  %v692_v12 = vadd.f32 %v691_v4, %v690_v60  ;;  %v728_v13 = vrot.slane %v727_v5, 2 }
 0x275   :  { %v749_v15 = vadd.f32 %v748_v6, %v747_v1  ;;  %v704_v16 = vadd.f32 %v703_v7, %v702_v2  ;;  %v740_v17 = vrot.slane %v739_v8, 2  ;;  %v635_v18 = vpop.f32.mrf.mxu3 }
 0x276   :  { %v693_v19 = vrot.slane %v692_v12, 1  ;;  %v729_v20 = vadd.f32 %v728_v13, %v727_v5  ;;  %v661_v21 = vpop.f32.mrf.mxu2  ;;  %v758_v22 = vsel %vm217_vm1, %v700_v9, %v737_v10  ;;  %v17594_v18 = vld [vmem:[#allocation10 + $0x4] sm:$0xf] }
 0x277   :  { %v705_v23 = vrot.slane %v704_v16, 1  ;;  %v741_v24 = vadd.f32 %v740_v17, %v739_v8  ;;  %v763_v25 = vpack.c.bf16 %v758_v22, %v758_v22  ;;  %v760_v26 = vsel %vm217_vm1, %v712_v14, %v749_v15  ;;  %v17596_v17 = vld [vmem:[#allocation10 + $0x10] sm:$0xf0]  ;;  %v17595_v21 = vld [vmem:[#allocation10 + $0xc] sm:$0xf] }
 0x278   :  { %v730_v27 = vrot.slane %v729_v20, 1  ;;  %v765_v28 = vpack.c.bf16 %v760_v26, %v760_v26  ;;  %v694_v31 = vadd.f32 %v693_v19, %v692_v12  ;;  %v12450_v22 = vld [vmem:[#allocation10 + $0x1c] sm:$0xf0]  ;;  %v12456_v26 = vld [vmem:[#allocation10 + $0x10] sm:$0xf] }
 0x279   :  { %v742_v30 = vrot.slane %v741_v24, 1  ;;  %1079 = vmatmul.bf16.vlgmr.msra.gmra.mxu2 %v763_v25  ;;  %v706_v34 = vadd.f32 %v705_v23, %v704_v16  ;;  %v12440_v16 = vld [vmem:[#allocation10] sm:$0xf]  ;;  %v12453_v25 = vor.u32 %v17595_v21, %v12450_v22 }
 0x27a   :  { %v731_v33 = vadd.f32 %v730_v27, %v729_v20  ;;  %1105 = vmatmul.bf16.vlgmr.msra.gmra.mxu3 %v765_v28  ;;  %v12441_v19 = vor.u32 %v17596_v17, %v12440_v16  ;;  %v12442_v20 = vld [vmem:[#allocation10 + $0x14] sm:$0xf0]  ;;  %v17598_v27 = vld [vmem:[#allocation10 + $0x20] sm:$0xf0] }
 0x27b   :  { %v743_v36 = vadd.f32 %v742_v30, %v741_v24  ;;  %v12445_v24 = vor.u32 %v17594_v18, %v12442_v20  ;;  %v12457_v28 = vor.u32 %v17598_v27, %v12456_v26  ;;  %1235 = vmatpush.bf16.msrb.mxu1 %v12453_v25 }
 0x27c   :  { %v757_v38 = vsel %vm217_vm1, %v694_v31, %v731_v33  ;;  %1196 = vmatpush.bf16.msrb.mxu2 %v12441_v19  ;;  %v12448_v31 = vld [vmem:[#allocation10 + $0x8] sm:$0xf]  ;;  %v17597_v33 = vld [vmem:[#allocation10 + $0x18] sm:$0xf0] }
 0x27d   :  { %v19651_v39 = vpop.f32.mrf.mxu3  ;;  %v762_v40 = vpack.c.bf16 %v757_v38, %v757_v38  ;;  %v759_v41 = vsel %vm217_vm1, %v706_v34, %v743_v36  ;;  %1248 = vmatpush.bf16.msrb.mxu3 %v12457_v28  ;;  %v12449_v34 = vor.u32 %v17597_v33, %v12448_v31 }
 0x27e   :  { %v714_v42 = vsel %vm713_vm7, %v19651_v39, 0.0  ;;  %v725_v43 = vmul.f32 %v19651_v39, %v19651_v39  ;;  %v764_v44 = vpack.c.bf16 %v759_v41, %v759_v41 }
 0x27f   :  { %v715_v37 = vrot.slane %v714_v42, 4  ;;  %1066 = vmatmul.bf16.vlgmr.msra.gmra.mxu0 %v762_v40 }
 0x280   :  { %v750_v45 = vsel %vm713_vm7, %v725_v43, 0.0  ;;  %1092 = vmatmul.bf16.vlgmr.msra.gmra.mxu1 %v764_v44  ;;  %1209 = vmatpush.bf16.msra.mxu0 %v12445_v24  ;;  %v1130_v44 = vld [vmem:[#allocation12] sm:$0x1] }
 0x281   :  { %v716_v46 = vadd.f32 %v715_v37, %v714_v42  ;;  %v751_v47 = vrot.slane %v750_v45, 4  ;;  %1222 = vmatpush.bf16.msra.mxu2 %v12449_v34 }
 0x283   :  { %v717_v49 = vrot.slane %v716_v46, 2  ;;  %v752_v50 = vadd.f32 %v751_v47, %v750_v45  ;;  %v1131_v47 = vld [vmem:[#allocation12 + $0x1] sm:$0x1] }
 0x285   :  { %v718_v51 = vadd.f32 %v717_v49, %v716_v46  ;;  %v753_v52 = vrot.slane %v752_v50, 2  ;;  %v687_v54 = vpop.f32.mrf.mxu3 }
 0x287   :  { %v719_v55 = vrot.slane %v718_v51, 1  ;;  %v754_v56 = vadd.f32 %v753_v52, %v752_v50 }
 0x289   :  { %v755_v57 = vrot.slane %v754_v56, 1  ;;  %v720_v29 = vadd.f32 %v719_v55, %v718_v51 }
 0x28b   :  { %v756_v58 = vadd.f32 %v755_v57, %v754_v56 }
 0x28d   :  { %v761_v59 = vsel %vm217_vm1, %v720_v29, %v756_v58 }
 0x28e   :  { %v766_v60 = vpack.c.bf16 %v761_v59, %v761_v59 }
 0x290   :  { %12437 = vmatmul.msk.bf16.vlgmr.msrb.gmra.mxu0 %vm713_vm7, %v766_v60 }
 0x2fc   :  { %v1067_v61 = vpop.f32.mrf.mxu0  ;;  %v1080_v62 = vpop.f32.mrf.mxu2 }
 0x2fd   :  { %v1093_v0 = vpop.f32.mrf.mxu1  ;;  %v1106_v1 = vpop.f32.mrf.mxu3  ;;  %v1081_v2 = vadd.f32 %v1080_v62, %v1067_v61 }
 0x2ff   :  { %v1094_v6 = vadd.f32 %v1093_v0, %v1081_v2 }
 0x301   :  { %v1107_v7 = vadd.f32 %v1106_v1, %v1094_v6 }
 0x304   :  { %v1069_v11 = vpop.f32.mrf.mxu0  ;;  %v1082_v3 = vpop.f32.mrf.mxu2 }
 0x305   :  { %v1095_v4 = vpop.f32.mrf.mxu1  ;;  %v1108_v5 = vpop.f32.mrf.mxu3 }
 0x30d   :  { %v1119_v8 = vpop.f32.mrf.mxu0 }
 0x30e   :  { %v1120_v9 = vadd.f32 %v1119_v8, %v1107_v7 }
 0x310   :  { %v1123_v10 = vmul.f32 0.013888889, %v1120_v9 }
 0x312   :  { %v1124_v12 = vmul.f32 %v1123_v10, %v1123_v10 }
 0x314   :  { %v1126_v13 = vrot.slane %v1124_v12, 7 }
 0x315   :  { %v1121_v14 = vpop.f32.mrf.mxu0 }
 0x316   :  { %v1128_v15 = vsub.f32 %v1123_v10, %v1126_v13 }
 0x318   :  { %v1129_v23 = vmax.f32 %v1128_v15, 0.0 }
 0x31a   :  { %v1132_v30 = vadd.f32 1e-05, %v1129_v23 }
 0x31c   :  { %18867 = vrsqrt.f32 %v1132_v30  ;;  %vm1139_vm9 = vweird.f32 %v1132_v30 }
 0x322   :  { %v18868_v36 = vpop.eup %18867 }
 0x323   :  { %v1134_v38 = vmul.f32 %v18868_v36, %v1132_v30  ;;  %vm1140_vm8 = vweird.f32 %v18868_v36 }
 0x324   :  { %vm1141_vm10 = vmor %vm1139_vm9, %vm1140_vm8 }
 0x325   :  { %v1135_v40 = vmul.f32 %v18868_v36, %v1134_v38 }
 0x327   :  { %v1136_v41 = vmul.f32 0.5, %v1135_v40 }
 0x329   :  { %v1137_v42 = vsub.f32 1.5, %v1136_v41 }
 0x32b   :  { %v1138_v43 = vmul.f32 %v18868_v36, %v1137_v42 }
 0x32d   :  { %v1142_v37 = vsel %vm1141_vm10, %v18868_v36, %v1138_v43 }
 0x32e   :  { %v1144_v45 = vrot.slane %v1142_v37, 1 }
 0x330   :  { %v1146_v46 = vmul.f32 %v1144_v45, %v1130_v44 }
 0x332   :  { %v1147_v49 = vmul.f32 %v1146_v46, %v1123_v10 }
 0x334   :  { %v1148_v50 = vsub.f32 %v1131_v47, %v1147_v49 }
 0x336   :  { %v1150_v51 = vrot.slane %v1148_v50, 7 }
 0x338   :  { %v1152_v52 = vsel %vm217_vm1, %v1146_v46, %v1150_v51 }
 0x339   :  { %v1153_v54 = vpack.c.bf16 %v1152_v52, %v1152_v52 }
 0x33b   :  { %12458 = vmatmul.msk.bf16.vlgmr.msrb.gmra.mxu2 %vm187_vm0, %v1153_v54  ;;  %12459 = vmatmul.msk.bf16.vlgmr.msra.gmra.mxu0 %vm187_vm0, %v1153_v54 }
 0x33c   :  { %12461 = vmatmul.msk.bf16.vlgmr.msrb.gmra.mxu1 %vm187_vm0, %v1153_v54  ;;  %12462 = vmatmul.msk.bf16.vlgmr.msrb.gmra.mxu3 %vm187_vm0, %v1153_v54 }
 0x34b   :  { %12460 = vmatmul.msk.bf16.vlgmr.msra.gmra.mxu2 %vm187_vm0, %v1153_v54 }
 0x3b8   :  { %v1211_v55 = vpop.f32.mrf.mxu0 }
 0x3b9   :  { %v1255_v56 = vperm.slane %v1211_v55, 0  ;;  %v1237_v57 = vpop.f32.mrf.mxu1  ;;  %v1265_v59 = vperm.slane %v1211_v55, 1 }
 0x3ba   :  { %v1257_v29 = vperm.slane %v1237_v57, 0  ;;  %v1267_v61 = vperm.slane %v1237_v57, 1 }
 0x3bb   :  { %v1260_v58 = vmul.f32 %v1255_v56, %v19618_v32 }
 0x3bc   :  { %v1262_v60 = vmul.f32 %v1257_v29, %v19623_v35 }
 0x3bd   :  { %v1270_v62 = vadd.f32 %v1265_v59, %v1260_v58 }
 0x3be   :  { %v1272_v0 = vadd.f32 %v1267_v61, %v1262_v60  ;;  %v1198_v1 = vpop.f32.mrf.mxu2 }
 0x3bf   :  { %v1275_v2 = vmax.f32 %v1270_v62, 0.0  ;;  %v1254_v11 = vperm.slane %v1198_v1, 0  ;;  %v1250_v3 = vpop.f32.mrf.mxu3  ;;  %v1264_v9 = vperm.slane %v1198_v1, 1 }
 0x3c0   :  { %v1277_v4 = vmax.f32 %v1272_v0, 0.0  ;;  %v1258_v5 = vperm.slane %v1250_v3, 0  ;;  %v1213_v6 = vpop.f32.mrf.mxu0  ;;  %v1268_v12 = vperm.slane %v1250_v3, 1 }
 0x3c1   :  { %v19676_v7 = vmul.f32 %v19534_v63, %v1275_v2  ;;  %v1259_v8 = vmul.f32 %v1254_v11, %v19636_v48  ;;  %v1239_v32 = vpop.f32.mrf.mxu1 }
 0x3c2   :  { %v19680_v10 = vmul.f32 %v19534_v63, %v1277_v4  ;;  %v1263_v35 = vmul.f32 %v1258_v5, %v19651_v39 }
 0x3c3   :  { %v1269_v13 = vadd.f32 %v1264_v9, %v1259_v8 }
 0x3c4   :  { %v1273_v14 = vadd.f32 %v1268_v12, %v1263_v35 }
 0x3c5   :  { %v1274_v15 = vmax.f32 %v1269_v13, 0.0 }
 0x3c6   :  { %v1278_v16 = vmax.f32 %v1273_v14, 0.0  ;;  %v1200_v17 = vpop.f32.mrf.mxu2 }
 0x3c7   :  { %v19684_v18 = vmul.f32 %v19534_v63, %v1274_v15  ;;  %v1252_v19 = vpop.f32.mrf.mxu3 }
 0x3c8   :  { %v19687_v20 = vmul.f32 %v19534_v63, %v1278_v16 }
 0x3ce   :  { %v1224_v48 = vpop.f32.mrf.mxu2 }
 0x3cf   :  { %v1256_v21 = vperm.slane %v1224_v48, 0  ;;  %v1266_v23 = vperm.slane %v1224_v48, 1 }
 0x3d1   :  { %v1261_v22 = vmul.f32 %v1256_v21, %v19641_v53 }
 0x3d3   :  { %v1271_v24 = vadd.f32 %v1266_v23, %v1261_v22 }
 0x3d5   :  { %v1276_v39 = vmax.f32 %v1271_v24, 0.0 }
 0x3d6   :  { %v1226_v25 = vpop.f32.mrf.mxu2 }
 0x3d7   :  { %v19691_v26 = vmul.f32 %v19534_v63, %v1276_v39 }
 0x3d8   :  { %19109 = dma.done.wait [#allocation4], 59904 }
 0x3d9   :  { %19110 = vsyncadd [#allocation4], 4294907392  ;;  %v12829_v27 = vld [vmem:[#allocation2 + $0x2d8] sm:$0xf]  ;;  %v17696_v28 = vld [vmem:[#allocation2 + $0x308] sm:$0xf0] }
 0x3da   :  { %v13245_v30 = vld [vmem:[#allocation2 + $0x618] sm:$0xf]  ;;  %v12830_v31 = vor.u32 %v17696_v28, %v12829_v27  ;;  %v17800_v33 = vld [vmem:[#allocation2 + $0x648] sm:$0xf0]  ;;  %v12777_v42 = vld [vmem:[#allocation2 + $0x270] sm:$0xf] }
 0x3db   :  { %v13661_v34 = vld [vmem:[#allocation2 + $0x958] sm:$0xf]  ;;  %v17904_v36 = vld [vmem:[#allocation2 + $0x988] sm:$0xf0]  ;;  %v13246_v38 = vor.u32 %v17800_v33, %v13245_v30  ;;  %v17683_v44 = vld [vmem:[#allocation2 + $0x2a0] sm:$0xf0] }
 0x3dc   :  { %v13662_v40 = vor.u32 %v17904_v36, %v13661_v34  ;;  %v14077_v41 = vld [vmem:[#allocation2 + $0xc98] sm:$0xf]  ;;  %v18008_v53 = vld [vmem:[#allocation2 + $0xcc8] sm:$0xf0]  ;;  %4176 = vmatpush.bf16.msrb.mxu0 %v12830_v31  ;;  %v13193_v37 = vld [vmem:[#allocation2 + $0x5b0] sm:$0xf]  ;;  %v12778_v46 = vor.u32 %v17683_v44, %v12777_v42 }
 0x3dd   :  { %v14078_v43 = vor.u32 %v18008_v53, %v14077_v41  ;;  %v17787_v45 = vld [vmem:[#allocation2 + $0x5e0] sm:$0xf0]  ;;  %4189 = vmatpush.bf16.msrb.mxu2 %v13246_v38  ;;  %v13609_v49 = vld [vmem:[#allocation2 + $0x8f0] sm:$0xf]  ;;  %v12725_v55 = vld [vmem:[#allocation2 + $0x208] sm:$0xf] }
 0x3de   :  { %4202 = vmatpush.bf16.msra.mxu1 %v13662_v40  ;;  %v13194_v47 = vor.u32 %v17787_v45, %v13193_v37  ;;  %v17891_v50 = vld [vmem:[#allocation2 + $0x920] sm:$0xf0]  ;;  %v14025_v51 = vld [vmem:[#allocation2 + $0xc30] sm:$0xf]  ;;  %v17670_v56 = vld [vmem:[#allocation2 + $0x238] sm:$0xf0] }
 0x3df   :  { %4215 = vmatpush.bf16.msra.mxu3 %v14078_v43  ;;  %v13610_v52 = vor.u32 %v17891_v50, %v13609_v49  ;;  %v17995_v54 = vld [vmem:[#allocation2 + $0xc60] sm:$0xf0]  ;;  %v13141_v29 = vld [vmem:[#allocation2 + $0x548] sm:$0xf]  ;;  %v17774_v58 = vld [vmem:[#allocation2 + $0x578] sm:$0xf0]  ;;  %v12726_v60 = vor.u32 %v17670_v56, %v12725_v55 }
 0x3e0   :  { %v14026_v57 = vor.u32 %v17995_v54, %v14025_v51  ;;  %v13557_v59 = vld [vmem:[#allocation2 + $0x888] sm:$0xf]  ;;  %4177 = vmatpush.bf16.msrb.mxu0 %v12778_v46  ;;  %v17878_v61 = vld [vmem:[#allocation2 + $0x8b8] sm:$0xf0]  ;;  %v13142_v1 = vor.u32 %v17774_v58, %v13141_v29  ;;  %v12673_v11 = vld [vmem:[#allocation2 + $0x1a0] sm:$0xf] }
 0x3e1   :  { %v13973_v62 = vld [vmem:[#allocation2 + $0xbc8] sm:$0xf]  ;;  %v17982_v0 = vld [vmem:[#allocation2 + $0xbf8] sm:$0xf0]  ;;  %4190 = vmatpush.bf16.msrb.mxu2 %v13194_v47  ;;  %v13558_v2 = vor.u32 %v17878_v61, %v13557_v59  ;;  %v17657_v3 = vld [vmem:[#allocation2 + $0x1d0] sm:$0xf0] }
 0x3e2   :  { %4203 = vmatpush.bf16.msra.mxu1 %v13610_v52  ;;  %v13089_v4 = vld [vmem:[#allocation2 + $0x4e0] sm:$0xf]  ;;  %v13974_v5 = vor.u32 %v17982_v0, %v13973_v62  ;;  %v17761_v6 = vld [vmem:[#allocation2 + $0x510] sm:$0xf0]  ;;  %v12674_v12 = vor.u32 %v17657_v3, %v12673_v11  ;;  %v12621_v15 = vld [vmem:[#allocation2 + $0x138] sm:$0xf] }
 0x3e3   :  { %4216 = vmatpush.bf16.msra.mxu3 %v14026_v57  ;;  %v13505_v8 = vld [vmem:[#allocation2 + $0x820] sm:$0xf]  ;;  %v17865_v9 = vld [vmem:[#allocation2 + $0x850] sm:$0xf0]  ;;  %v13090_v13 = vor.u32 %v17761_v6, %v13089_v4  ;;  %v17644_v16 = vld [vmem:[#allocation2 + $0x168] sm:$0xf0] }
 0x3e4   :  { %v13921_v32 = vld [vmem:[#allocation2 + $0xb60] sm:$0xf]  ;;  %v17969_v35 = vld [vmem:[#allocation2 + $0xb90] sm:$0xf0]  ;;  %4178 = vmatpush.bf16.msrb.mxu0 %v12726_v60  ;;  %v13506_v14 = vor.u32 %v17865_v9, %v13505_v8  ;;  %v13037_v17 = vld [vmem:[#allocation2 + $0x478] sm:$0xf]  ;;  %v12622_v39 = vor.u32 %v17644_v16, %v12621_v15 }
 0x3e5   :  { %4191 = vmatpush.bf16.msrb.mxu2 %v13142_v1  ;;  %v13922_v19 = vor.u32 %v17969_v35, %v13921_v32  ;;  %v17748_v48 = vld [vmem:[#allocation2 + $0x4a8] sm:$0xf0]  ;;  %v13453_v21 = vld [vmem:[#allocation2 + $0x7b8] sm:$0xf]  ;;  %v12569_v28 = vld [vmem:[#allocation2 + $0xd0] sm:$0xf] }
 0x3e6   :  { %4204 = vmatpush.bf16.msra.mxu1 %v13558_v2  ;;  %v17852_v22 = vld [vmem:[#allocation2 + $0x7e8] sm:$0xf0]  ;;  %v13869_v23 = vld [vmem:[#allocation2 + $0xaf8] sm:$0xf]  ;;  %v13038_v25 = vor.u32 %v17748_v48, %v13037_v17  ;;  %v17631_v30 = vld [vmem:[#allocation2 + $0x100] sm:$0xf0] }
 0x3e7   :  { %4217 = vmatpush.bf16.msra.mxu3 %v13974_v5  ;;  %v17956_v24 = vld [vmem:[#allocation2 + $0xb28] sm:$0xf0]  ;;  %v13454_v27 = vor.u32 %v17852_v22, %v13453_v21  ;;  %v12985_v31 = vld [vmem:[#allocation2 + $0x410] sm:$0xf]  ;;  %v17735_v34 = vld [vmem:[#allocation2 + $0x440] sm:$0xf0]  ;;  %v12570_v53 = vor.u32 %v17631_v30, %v12569_v28  ;;  %v19695_v22 = vpack.c.bf16 %v19684_v18, %v19684_v18  ;;  %v19699_v28 = vpack.c.bf16 %v19676_v7, %v19676_v7 }
 0x3e8   :  { %4179 = vmatpush.bf16.msrb.mxu0 %v12674_v12  ;;  %v13870_v33 = vor.u32 %v17956_v24, %v13869_v23  ;;  %v13401_v36 = vld [vmem:[#allocation2 + $0x750] sm:$0xf]  ;;  %v17839_v38 = vld [vmem:[#allocation2 + $0x780] sm:$0xf0]  ;;  %v12986_v42 = vor.u32 %v17735_v34, %v12985_v31  ;;  %v12517_v44 = vld [vmem:[#allocation2 + $0x68] sm:$0xf]  ;;  %v19703_v30 = vpack.c.bf16 %v19680_v10, %v19680_v10  ;;  %v19707_v18 = vpack.c.bf16 %v19691_v26, %v19691_v26 }
 0x3e9   :  { %4192 = vmatpush.bf16.msrb.mxu2 %v13090_v13  ;;  %v13817_v40 = vld [vmem:[#allocation2 + $0xa90] sm:$0xf]  ;;  %v17943_v41 = vld [vmem:[#allocation2 + $0xac0] sm:$0xf0]  ;;  %v13402_v43 = vor.u32 %v17839_v38, %v13401_v36  ;;  %v17618_v37 = vld [vmem:[#allocation2 + $0x98] sm:$0xf0] }
 0x3ea   :  { %4205 = vmatpush.bf16.msra.mxu1 %v13506_v14  ;;  %v12933_v45 = vld [vmem:[#allocation2 + $0x3a8] sm:$0xf]  ;;  %v13818_v46 = vor.u32 %v17943_v41, %v13817_v40  ;;  %v17722_v47 = vld [vmem:[#allocation2 + $0x3d8] sm:$0xf0]  ;;  %v12518_v54 = vor.u32 %v17618_v37, %v12517_v44  ;;  %v12465_v55 = vld [vmem:[#allocation2] sm:$0xf] }
 0x3eb   :  { %4218 = vmatpush.bf16.msra.mxu3 %v13922_v19  ;;  %v13349_v49 = vld [vmem:[#allocation2 + $0x6e8] sm:$0xf]  ;;  %v17826_v50 = vld [vmem:[#allocation2 + $0x718] sm:$0xf0]  ;;  %v17605_v56 = vld [vmem:[#allocation2 + $0x30] sm:$0xf0]  ;;  %v12934_v57 = vor.u32 %v17722_v47, %v12933_v45 }
 0x3ec   :  { %4180 = vmatpush.bf16.msrb.mxu0 %v12622_v39  ;;  %v13765_v51 = vld [vmem:[#allocation2 + $0xa28] sm:$0xf]  ;;  %v17930_v52 = vld [vmem:[#allocation2 + $0xa58] sm:$0xf0]  ;;  %v13350_v29 = vor.u32 %v17826_v50, %v13349_v49  ;;  %v12881_v58 = vld [vmem:[#allocation2 + $0x340] sm:$0xf]  ;;  %v12466_v4 = vor.u32 %v17605_v56, %v12465_v55 }
 0x3ed   :  { %4193 = vmatpush.bf16.msrb.mxu2 %v13038_v25  ;;  %v17709_v59 = vld [vmem:[#allocation2 + $0x370] sm:$0xf0]  ;;  %v13297_v60 = vld [vmem:[#allocation2 + $0x680] sm:$0xf]  ;;  %v13766_v61 = vor.u32 %v17930_v52, %v13765_v51  ;;  %v14285_v2 = vld [vmem:[#allocation2 + $0xe38] sm:$0xf] }
 0x3ee   :  { %4206 = vmatpush.bf16.msra.mxu1 %v13454_v27  ;;  %v17813_v62 = vld [vmem:[#allocation2 + $0x6b0] sm:$0xf0]  ;;  %v13713_v0 = vld [vmem:[#allocation2 + $0x9c0] sm:$0xf]  ;;  %v18060_v11 = vld [vmem:[#allocation2 + $0xe68] sm:$0xf0]  ;;  %v12882_v9 = vor.u32 %v17709_v59, %v12881_v58 }
 0x3ef   :  { %4219 = vmatpush.bf16.msra.mxu3 %v13870_v33  ;;  %v17917_v1 = vld [vmem:[#allocation2 + $0x9f0] sm:$0xf0]  ;;  %v17690_v3 = vld [vmem:[#allocation2 + $0x2dc] sm:$0xf]  ;;  %v12831_v5 = vld [vmem:[#allocation2 + $0x30c] sm:$0xf0]  ;;  %v13298_v32 = vor.u32 %v17813_v62, %v13297_v60  ;;  %v14286_v14 = vor.u32 %v18060_v11, %v14285_v2 }
 0x3f0   :  { %4181 = vmatpush.bf16.msrb.mxu0 %v12570_v53  ;;  %v17794_v6 = vld [vmem:[#allocation2 + $0x61c] sm:$0xf]  ;;  %v13247_v8 = vld [vmem:[#allocation2 + $0x64c] sm:$0xf0]  ;;  %v13714_v13 = vor.u32 %v17917_v1, %v13713_v0  ;;  %v12834_v15 = vor.u32 %v17690_v3, %v12831_v5  ;;  %v18047_v19 = vld [vmem:[#allocation2 + $0xe00] sm:$0xf0] }
 0x3f1   :  { %4194 = vmatpush.bf16.msrb.mxu2 %v12986_v42  ;;  %v17898_v35 = vld [vmem:[#allocation2 + $0x95c] sm:$0xf]  ;;  %v13663_v12 = vld [vmem:[#allocation2 + $0x98c] sm:$0xf0]  ;;  %v13250_v16 = vor.u32 %v17794_v6, %v13247_v8  ;;  %v17677_v48 = vld [vmem:[#allocation2 + $0x274] sm:$0xf] }
 0x3f2   :  { %4207 = vmatpush.bf16.msra.mxu1 %v13402_v43  ;;  %v14233_v17 = vld [vmem:[#allocation2 + $0xdd0] sm:$0xf]  ;;  %v13666_v21 = vor.u32 %v17898_v35, %v13663_v12  ;;  %v12779_v23 = vld [vmem:[#allocation2 + $0x2a4] sm:$0xf0]  ;;  %v17781_v24 = vld [vmem:[#allocation2 + $0x5b4] sm:$0xf] }
 0x3f3   :  { %4220 = vmatpush.bf16.msra.mxu3 %v13818_v46  ;;  %v13195_v39 = vld [vmem:[#allocation2 + $0x5e4] sm:$0xf0]  ;;  %v17885_v25 = vld [vmem:[#allocation2 + $0x8f4] sm:$0xf]  ;;  %v14234_v31 = vor.u32 %v18047_v19, %v14233_v17  ;;  %v12782_v33 = vor.u32 %v17677_v48, %v12779_v23  ;;  %v18034_v38 = vld [vmem:[#allocation2 + $0xd98] sm:$0xf0] }
 0x3f4   :  { %4182 = vmatpush.bf16.msrb.mxu0 %v12518_v54  ;;  %v13611_v27 = vld [vmem:[#allocation2 + $0x924] sm:$0xf0]  ;;  %v13198_v34 = vor.u32 %v17781_v24, %v13195_v39  ;;  %v17664_v40 = vld [vmem:[#allocation2 + $0x20c] sm:$0xf]  ;;  %v12727_v10 = vld [vmem:[#allocation2 + $0x23c] sm:$0xf0] }
 0x3f5   :  { %4195 = vmatpush.bf16.msrb.mxu2 %v12934_v57  ;;  %v14181_v36 = vld [vmem:[#allocation2 + $0xd68] sm:$0xf]  ;;  %v13614_v7 = vor.u32 %v17885_v25, %v13611_v27  ;;  %v17768_v41 = vld [vmem:[#allocation2 + $0x54c] sm:$0xf]  ;;  %v13143_v53 = vld [vmem:[#allocation2 + $0x57c] sm:$0xf0]  ;;  %v12730_v37 = vor.u32 %v17664_v40, %v12727_v10 }
 0x3f6   :  { %4208 = vmatpush.bf16.msra.mxu1 %v13350_v29  ;;  %v17872_v42 = vld [vmem:[#allocation2 + $0x88c] sm:$0xf]  ;;  %v13559_v43 = vld [vmem:[#allocation2 + $0x8bc] sm:$0xf0]  ;;  %v14182_v26 = vor.u32 %v18034_v38, %v14181_v36  ;;  %v13146_v45 = vor.u32 %v17768_v41, %v13143_v53  ;;  %v18021_v46 = vld [vmem:[#allocation2 + $0xd30] sm:$0xf0] }
 0x3f7   :  { %4221 = vmatpush.bf16.msra.mxu3 %v13766_v61  ;;  %v14129_v44 = vld [vmem:[#allocation2 + $0xd00] sm:$0xf]  ;;  %v17651_v47 = vld [vmem:[#allocation2 + $0x1a4] sm:$0xf]  ;;  %v12675_v49 = vld [vmem:[#allocation2 + $0x1d4] sm:$0xf0]  ;;  %v13562_v50 = vor.u32 %v17872_v42, %v13559_v43 }
 0x3f8   :  { %4183 = vmatpush.bf16.msrb.mxu0 %v12466_v4  ;;  %v17755_v51 = vld [vmem:[#allocation2 + $0x4e4] sm:$0xf]  ;;  %v13091_v52 = vld [vmem:[#allocation2 + $0x514] sm:$0xf0]  ;;  %v18002_v56 = vld [vmem:[#allocation2 + $0xc9c] sm:$0xf]  ;;  %v14130_v29 = vor.u32 %v18021_v46, %v14129_v44  ;;  %v12678_v58 = vor.u32 %v17651_v47, %v12675_v49 }
 0x3f9   :  { %4196 = vmatpush.bf16.msrb.mxu2 %v12882_v9  ;;  %v17859_v54 = vld [vmem:[#allocation2 + $0x824] sm:$0xf]  ;;  %v13507_v55 = vld [vmem:[#allocation2 + $0x854] sm:$0xf0]  ;;  %v14079_v57 = vld [vmem:[#allocation2 + $0xccc] sm:$0xf0]  ;;  %v13094_v59 = vor.u32 %v17755_v51, %v13091_v52 }
 0x3fa   :  { %4209 = vmatpush.bf16.msra.mxu1 %v13298_v32  ;;  %v17638_v60 = vld [vmem:[#allocation2 + $0x13c] sm:$0xf]  ;;  %v12623_v61 = vld [vmem:[#allocation2 + $0x16c] sm:$0xf0]  ;;  %v13510_v62 = vor.u32 %v17859_v54, %v13507_v55  ;;  %v14082_v0 = vor.u32 %v18002_v56, %v14079_v57  ;;  %v17989_v4 = vld [vmem:[#allocation2 + $0xc34] sm:$0xf] }
 0x3fb   :  { %4222 = vmatpush.bf16.msra.mxu3 %v13714_v13  ;;  %4184 = vmatmul.bf16.vlgmr.msrb.gmra.mxu0 %v19695_v22  ;;  %v17742_v1 = vld [vmem:[#allocation2 + $0x47c] sm:$0xf]  ;;  %v13039_v2 = vld [vmem:[#allocation2 + $0x4ac] sm:$0xf0]  ;;  %v14027_v5 = vld [vmem:[#allocation2 + $0xc64] sm:$0xf0]  ;;  %v12626_v6 = vor.u32 %v17638_v60, %v12623_v61 }
 0x3fc   :  { %4232 = vmatpush.bf16.msra.mxu0 %v14286_v14  ;;  %4197 = vmatmul.bf16.vlgmr.msrb.gmra.mxu2 %v19699_v28  ;;  %v17846_v11 = vld [vmem:[#allocation2 + $0x7bc] sm:$0xf]  ;;  %v13455_v3 = vld [vmem:[#allocation2 + $0x7ec] sm:$0xf0]  ;;  %v13042_v8 = vor.u32 %v17742_v1, %v13039_v2  ;;  %v17625_v9 = vld [vmem:[#allocation2 + $0xd4] sm:$0xf]  ;;  %v14030_v12 = vor.u32 %v17989_v4, %v14027_v5 }
 0x3fd   :  { %4241 = vmatpush.bf16.msra.mxu2 %v12834_v15  ;;  %4210 = vmatmul.bf16.vlgmr.msra.gmra.mxu1 %v19707_v18  ;;  %v12571_v32 = vld [vmem:[#allocation2 + $0x104] sm:$0xf0]  ;;  %v13458_v35 = vor.u32 %v17846_v11, %v13455_v3  ;;  %v17729_v13 = vld [vmem:[#allocation2 + $0x414] sm:$0xf]  ;;  %v17976_v19 = vld [vmem:[#allocation2 + $0xbcc] sm:$0xf] }
 0x3fe   :  { %4254 = vmatpush.bf16.msrb.mxu1 %v13250_v16  ;;  %4223 = vmatmul.bf16.vlgmr.msra.gmra.mxu3 %v19703_v30  ;;  %v12987_v14 = vld [vmem:[#allocation2 + $0x444] sm:$0xf0]  ;;  %v17833_v15 = vld [vmem:[#allocation2 + $0x754] sm:$0xf]  ;;  %v19715_v16 = vpack.c.bf16 %v19687_v20, %v19687_v20  ;;  %v13975_v48 = vld [vmem:[#allocation2 + $0xbfc] sm:$0xf0] }
 0x3ff   :  { %4267 = vmatpush.bf16.msrb.mxu3 %v13666_v21  ;;  %v13403_v17 = vld [vmem:[#allocation2 + $0x784] sm:$0xf0]  ;;  %v12574_v21 = vor.u32 %v17625_v9, %v12571_v32  ;;  %v12990_v23 = vor.u32 %v17729_v13, %v12987_v14  ;;  %v17612_v24 = vld [vmem:[#allocation2 + $0x6c] sm:$0xf]  ;;  %v12519_v39 = vld [vmem:[#allocation2 + $0x9c] sm:$0xf0]  ;;  %v13978_v27 = vor.u32 %v17976_v19, %v13975_v48 }
 0x400   :  { %4233 = vmatpush.bf16.msra.mxu0 %v14234_v31  ;;  %v13406_v25 = vor.u32 %v17833_v15, %v13403_v17  ;;  %v17716_v31 = vld [vmem:[#allocation2 + $0x3ac] sm:$0xf]  ;;  %v13351_v20 = vld [vmem:[#allocation2 + $0x71c] sm:$0xf0]  ;;  %v17963_v36 = vld [vmem:[#allocation2 + $0xb64] sm:$0xf]  ;;  %v12522_v40 = vor.u32 %v17612_v24, %v12519_v39 }
 0x401   :  { %4242 = vmatpush.bf16.msra.mxu2 %v12782_v33  ;;  %v12935_v33 = vld [vmem:[#allocation2 + $0x3dc] sm:$0xf0]  ;;  %v13923_v38 = vld [vmem:[#allocation2 + $0xb94] sm:$0xf0]  ;;  %v17599_v10 = vld [vmem:[#allocation2 + $0x4] sm:$0xf] }
 0x402   :  { %4255 = vmatpush.bf16.msrb.mxu1 %v13198_v34  ;;  %v17820_v34 = vld [vmem:[#allocation2 + $0x6ec] sm:$0xf]  ;;  %v12467_v41 = vld [vmem:[#allocation2 + $0x34] sm:$0xf0]  ;;  %v17703_v53 = vld [vmem:[#allocation2 + $0x344] sm:$0xf]  ;;  %v13926_v43 = vor.u32 %v17963_v36, %v13923_v38 }
 0x403   :  { %4268 = vmatpush.bf16.msrb.mxu3 %v13614_v7  ;;  %v12938_v7 = vor.u32 %v17716_v31, %v12935_v33  ;;  %v13354_v42 = vor.u32 %v17820_v34, %v13351_v20  ;;  %v17807_v44 = vld [vmem:[#allocation2 + $0x684] sm:$0xf]  ;;  %v13871_v46 = vld [vmem:[#allocation2 + $0xb2c] sm:$0xf0]  ;;  %v18054_v47 = vld [vmem:[#allocation2 + $0xe3c] sm:$0xf]  ;;  %v12470_v52 = vor.u32 %v17599_v10, %v12467_v41 }
 0x404   :  { %4234 = vmatpush.bf16.msra.mxu0 %v14182_v26  ;;  %v12883_v26 = vld [vmem:[#allocation2 + $0x374] sm:$0xf0]  ;;  %v14287_v49 = vld [vmem:[#allocation2 + $0xe6c] sm:$0xf0]  ;;  %v17697_v51 = vld [vmem:[#allocation2 + $0x310] sm:$0xf0] }
 0x405   :  { %4243 = vmatpush.bf16.msra.mxu2 %v12730_v37  ;;  %v13299_v37 = vld [vmem:[#allocation2 + $0x6b4] sm:$0xf0]  ;;  %v12886_v54 = vor.u32 %v17703_v53, %v12883_v26  ;;  %v13253_v55 = vld [vmem:[#allocation2 + $0x620] sm:$0xf]  ;;  %v17801_v56 = vld [vmem:[#allocation2 + $0x650] sm:$0xf0] }
 0x406   :  { %4256 = vmatpush.bf16.msrb.mxu1 %v13146_v45  ;;  %v17950_v45 = vld [vmem:[#allocation2 + $0xafc] sm:$0xf]  ;;  %v13302_v57 = vor.u32 %v17807_v44, %v13299_v37  ;;  %v17937_v60 = vld [vmem:[#allocation2 + $0xa94] sm:$0xf]  ;;  %v13819_v61 = vld [vmem:[#allocation2 + $0xac4] sm:$0xf0] }
 0x407   :  { %4269 = vmatpush.bf16.msrb.mxu3 %v13562_v50  ;;  %v12837_v50 = vld [vmem:[#allocation2 + $0x2e0] sm:$0xf]  ;;  %v14235_v1 = vld [vmem:[#allocation2 + $0xe04] sm:$0xf0]  ;;  %v12785_v2 = vld [vmem:[#allocation2 + $0x278] sm:$0xf]  ;;  %v13822_v5 = vor.u32 %v17937_v60, %v13819_v61 }
 0x408   :  { %4235 = vmatpush.bf16.msra.mxu0 %v14130_v29  ;;  %v13874_v29 = vor.u32 %v17950_v45, %v13871_v46  ;;  %v17684_v11 = vld [vmem:[#allocation2 + $0x2a8] sm:$0xf0]  ;;  %v13201_v3 = vld [vmem:[#allocation2 + $0x5b8] sm:$0xf]  ;;  %v13767_v32 = vld [vmem:[#allocation2 + $0xa5c] sm:$0xf0] }
 0x409   :  { %4244 = vmatpush.bf16.msra.mxu2 %v12678_v58  ;;  %v14290_v58 = vor.u32 %v18054_v47, %v14287_v49  ;;  %v17788_v4 = vld [vmem:[#allocation2 + $0x5e8] sm:$0xf0]  ;;  %v14183_v13 = vld [vmem:[#allocation2 + $0xd9c] sm:$0xf0]  ;;  %v12733_v14 = vld [vmem:[#allocation2 + $0x210] sm:$0xf] }
 0x40a   :  { %4257 = vmatpush.bf16.msrb.mxu1 %v13094_v59  ;;  %v12838_v59 = vor.u32 %v17697_v51, %v12837_v50  ;;  %v17924_v9 = vld [vmem:[#allocation2 + $0xa2c] sm:$0xf]  ;;  %v17671_v15 = vld [vmem:[#allocation2 + $0x240] sm:$0xf0]  ;;  %v13149_v17 = vld [vmem:[#allocation2 + $0x550] sm:$0xf] }
 0x40b   :  { %4270 = vmatpush.bf16.msrb.mxu3 %v13510_v62  ;;  %14335 = vmatmul.msk.bf16.vlgmr.msra.gmra.mxu0 %vm713_vm7, %v19715_v16  ;;  %v18041_v62 = vld [vmem:[#allocation2 + $0xdd4] sm:$0xf]  ;;  %v17775_v19 = vld [vmem:[#allocation2 + $0x580] sm:$0xf0]  ;;  %v13770_v48 = vor.u32 %v17924_v9, %v13767_v32  ;;  %v12734_v24 = vor.u32 %v17671_v15, %v12733_v14  ;;  %v13715_v39 = vld [vmem:[#allocation2 + $0x9f4] sm:$0xf0] }
 0x40c   :  { %4280 = vmatpush.bf16.msrb.mxu0 %v14082_v0  ;;  %v13254_v0 = vor.u32 %v17801_v56, %v13253_v55  ;;  %v13150_v31 = vor.u32 %v17775_v19, %v13149_v17  ;;  %v12681_v33 = vld [vmem:[#allocation2 + $0x1a8] sm:$0xf]  ;;  %v17658_v34 = vld [vmem:[#allocation2 + $0x1d8] sm:$0xf0]  ;;  %v13669_v38 = vld [vmem:[#allocation2 + $0x960] sm:$0xf] }
 0x40d   :  { %4245 = vmatpush.bf16.msra.mxu2 %v12626_v6  ;;  %v14238_v6 = vor.u32 %v18041_v62, %v14235_v1  ;;  %v13097_v20 = vld [vmem:[#allocation2 + $0x4e8] sm:$0xf]  ;;  %v17762_v36 = vld [vmem:[#allocation2 + $0x518] sm:$0xf0]  ;;  %v14085_v10 = vld [vmem:[#allocation2 + $0xca0] sm:$0xf] }
 0x40e   :  { %4258 = vmatpush.bf16.msrb.mxu1 %v13042_v8  ;;  %v12786_v8 = vor.u32 %v17684_v11, %v12785_v2  ;;  %v18009_v41 = vld [vmem:[#allocation2 + $0xcd0] sm:$0xf0]  ;;  %v12629_v44 = vld [vmem:[#allocation2 + $0x140] sm:$0xf]  ;;  %v13617_v49 = vld [vmem:[#allocation2 + $0x8f8] sm:$0xf] }
 0x40f   :  { %4271 = vmatpush.bf16.msrb.mxu3 %v13458_v35  ;;  %v18028_v35 = vld [vmem:[#allocation2 + $0xd6c] sm:$0xf]  ;;  %v17645_v37 = vld [vmem:[#allocation2 + $0x170] sm:$0xf0]  ;;  %v13045_v45 = vld [vmem:[#allocation2 + $0x480] sm:$0xf]  ;;  %v14086_v46 = vor.u32 %v18009_v41, %v14085_v10 }
 0x410   :  { %4281 = vmatpush.bf16.msrb.mxu0 %v14030_v12  ;;  %v13202_v12 = vor.u32 %v17788_v4, %v13201_v3  ;;  %v17749_v47 = vld [vmem:[#allocation2 + $0x4b0] sm:$0xf0]  ;;  %v17892_v50 = vld [vmem:[#allocation2 + $0x928] sm:$0xf0]  ;;  %v14033_v51 = vld [vmem:[#allocation2 + $0xc38] sm:$0xf] }
 0x411   :  { %4246 = vmatpush.bf16.msra.mxu2 %v12574_v21  ;;  %v17911_v21 = vld [vmem:[#allocation2 + $0x9c4] sm:$0xf]  ;;  %v13046_v55 = vor.u32 %v17749_v47, %v13045_v45  ;;  %v13618_v56 = vor.u32 %v17892_v50, %v13617_v49  ;;  %v17736_v60 = vld [vmem:[#allocation2 + $0x448] sm:$0xf0]  ;;  %v13565_v61 = vld [vmem:[#allocation2 + $0x890] sm:$0xf] }
 0x412   :  { %4259 = vmatpush.bf16.msrb.mxu1 %v12990_v23  ;;  %v14186_v23 = vor.u32 %v18028_v35, %v14183_v13  ;;  %v17879_v62 = vld [vmem:[#allocation2 + $0x8c0] sm:$0xf0]  ;;  %v12525_v4 = vld [vmem:[#allocation2 + $0x70] sm:$0xf]  ;;  %v13513_v32 = vld [vmem:[#allocation2 + $0x828] sm:$0xf] }
 0x413   :  { %4272 = vmatpush.bf16.msrb.mxu3 %v13406_v25  ;;  %v18015_v25 = vld [vmem:[#allocation2 + $0xd04] sm:$0xf]  ;;  %v13566_v3 = vor.u32 %v17879_v62, %v13565_v61  ;;  %v17866_v35 = vld [vmem:[#allocation2 + $0x858] sm:$0xf0]  ;;  %v12473_v15 = vld [vmem:[#allocation2 + $0x8] sm:$0xf] }
 0x414   :  { %4282 = vmatpush.bf16.msrb.mxu0 %v13978_v27  ;;  %v14131_v27 = vld [vmem:[#allocation2 + $0xd34] sm:$0xf0]  ;;  %v17983_v1 = vld [vmem:[#allocation2 + $0xc00] sm:$0xf0]  ;;  %v17970_v13 = vld [vmem:[#allocation2 + $0xb98] sm:$0xf0]  ;;  %v13514_v19 = vor.u32 %v17866_v35, %v13513_v32 }
 0x415   :  { %4247 = vmatpush.bf16.msra.mxu2 %v12522_v40  ;;  %v17905_v40 = vld [vmem:[#allocation2 + $0x990] sm:$0xf0]  ;;  %v14134_v53 = vor.u32 %v18015_v25, %v14131_v27  ;;  %v17723_v9 = vld [vmem:[#allocation2 + $0x3e0] sm:$0xf0]  ;;  %v13877_v27 = vld [vmem:[#allocation2 + $0xb00] sm:$0xf] }
 0x416   :  { %4260 = vmatpush.bf16.msrb.mxu1 %v12938_v7  ;;  %v13718_v7 = vor.u32 %v17911_v21, %v13715_v39  ;;  %v13670_v26 = vor.u32 %v17905_v40, %v13669_v38  ;;  %v12889_v21 = vld [vmem:[#allocation2 + $0x348] sm:$0xf]  ;;  %v13461_v39 = vld [vmem:[#allocation2 + $0x7c0] sm:$0xf]  ;;  %v17853_v25 = vld [vmem:[#allocation2 + $0x7f0] sm:$0xf0] }
 0x417   :  { %4273 = vmatpush.bf16.msrb.mxu3 %v13354_v42  ;;  %v12682_v42 = vor.u32 %v17658_v34, %v12681_v33  ;;  %v14293_v33 = vld [vmem:[#allocation2 + $0xe40] sm:$0xf]  ;;  %v18061_v34 = vld [vmem:[#allocation2 + $0xe70] sm:$0xf0]  ;;  %v12839_v38 = vld [vmem:[#allocation2 + $0x314] sm:$0xf0] }
 0x418   :  { %4283 = vmatpush.bf16.msrb.mxu0 %v13926_v43  ;;  %v13098_v43 = vor.u32 %v17762_v36, %v13097_v20  ;;  %v17691_v36 = vld [vmem:[#allocation2 + $0x2e4] sm:$0xf]  ;;  %v14294_v41 = vor.u32 %v18061_v34, %v14293_v33  ;;  %v18048_v45 = vld [vmem:[#allocation2 + $0xe08] sm:$0xf0]  ;;  %v12787_v47 = vld [vmem:[#allocation2 + $0x2ac] sm:$0xf0] }
 0x419   :  { %4248 = vmatpush.bf16.msra.mxu2 %v12470_v52  ;;  %v17996_v52 = vld [vmem:[#allocation2 + $0xc68] sm:$0xf0]  ;;  %v13305_v62 = vld [vmem:[#allocation2 + $0x688] sm:$0xf]  ;;  %v17795_v32 = vld [vmem:[#allocation2 + $0x624] sm:$0xf] }
 0x41a   :  { %4261 = vmatpush.bf16.msrb.mxu1 %v12886_v54  ;;  %v12630_v54 = vor.u32 %v17645_v37, %v12629_v44  ;;  %v17944_v44 = vld [vmem:[#allocation2 + $0xac8] sm:$0xf0]  ;;  %v14241_v37 = vld [vmem:[#allocation2 + $0xdd8] sm:$0xf]  ;;  %v13203_v33 = vld [vmem:[#allocation2 + $0x5ec] sm:$0xf0] }
 0x41b   :  { %4274 = vmatpush.bf16.msrb.mxu3 %v13302_v57  ;;  %v12577_v57 = vld [vmem:[#allocation2 + $0xd8] sm:$0xf]  ;;  %v17886_v34 = vld [vmem:[#allocation2 + $0x8fc] sm:$0xf]  ;;  %vm6249_vm11 = vcmask 1043456   ;;  %vm6245_vm15 = vcmask 64512  }
 0x41c   :  { %4284 = vmatpush.bf16.msrb.mxu0 %v13874_v29  ;;  %4249 = vmatmul.bf16.vlgmr.msra.gmra.mxu2 %v19695_v22  ;;  %v17632_v29 = vld [vmem:[#allocation2 + $0x108] sm:$0xf0]  ;;  %v13255_v35 = vld [vmem:[#allocation2 + $0x654] sm:$0xf0] }
 0x41d   :  { %4297 = vmatpush.bf16.msrb.mxu2 %v14290_v58  ;;  %4262 = vmatmul.bf16.vlgmr.msrb.gmra.mxu1 %v19699_v28  ;;  %v12993_v58 = vld [vmem:[#allocation2 + $0x418] sm:$0xf]  ;;  %v12578_v2 = vor.u32 %v17632_v29, %v12577_v57  ;;  %v17931_v57 = vld [vmem:[#allocation2 + $0xa60] sm:$0xf0]  ;;  %v14189_v29 = vld [vmem:[#allocation2 + $0xd70] sm:$0xf] }
 0x41e   :  { %4306 = vmatpush.bf16.msra.mxu1 %v12838_v59  ;;  %4275 = vmatmul.bf16.vlgmr.msrb.gmra.mxu3 %v19707_v18  ;;  %v14034_v59 = vor.u32 %v17996_v52, %v14033_v51  ;;  %v12994_v11 = vor.u32 %v17736_v60, %v12993_v58  ;;  %v14242_v51 = vor.u32 %v18048_v45, %v14241_v37  ;;  %v13357_v52 = vld [vmem:[#allocation2 + $0x6f0] sm:$0xf]  ;;  %v18035_v58 = vld [vmem:[#allocation2 + $0xda0] sm:$0xf0]  ;;  %v12735_v60 = vld [vmem:[#allocation2 + $0x244] sm:$0xf0] }
 0x41f   :  { %4319 = vmatpush.bf16.msra.mxu3 %v13254_v0  ;;  %v13981_v0 = vld [vmem:[#allocation2 + $0xbd0] sm:$0xf]  ;;  %v13567_v37 = vld [vmem:[#allocation2 + $0x8c4] sm:$0xf0]  ;;  %v17977_v45 = vld [vmem:[#allocation2 + $0xbd4] sm:$0xf] }
 0x420   :  { %4285 = vmatpush.bf16.msrb.mxu0 %v13822_v5  ;;  %v17619_v5 = vld [vmem:[#allocation2 + $0xa0] sm:$0xf0] }
 0x421   :  { %4298 = vmatpush.bf16.msrb.mxu2 %v14238_v6  ;;  %v12941_v6 = vld [vmem:[#allocation2 + $0x3b0] sm:$0xf]  ;;  %v12526_v14 = vor.u32 %v17619_v5, %v12525_v4  ;;  %v14137_v4 = vld [vmem:[#allocation2 + $0xd08] sm:$0xf] }
 0x422   :  { %4307 = vmatpush.bf16.msra.mxu1 %v12786_v8  ;;  %v13982_v8 = vor.u32 %v17983_v1, %v13981_v0  ;;  %v12942_v17 = vor.u32 %v17723_v9, %v12941_v6  ;;  %v17814_v0 = vld [vmem:[#allocation2 + $0x6b8] sm:$0xf0]  ;;  %v12683_v9 = vld [vmem:[#allocation2 + $0x1dc] sm:$0xf0] }
 0x423   :  { %4320 = vmatpush.bf16.msra.mxu3 %v13202_v12  ;;  %v13929_v12 = vld [vmem:[#allocation2 + $0xb68] sm:$0xf]  ;;  %v18022_v6 = vld [vmem:[#allocation2 + $0xd38] sm:$0xf0] }
 0x424   :  { %4286 = vmatpush.bf16.msrb.mxu0 %v13770_v48  ;;  %v17606_v48 = vld [vmem:[#allocation2 + $0x38] sm:$0xf0] }
 0x425   :  { %4299 = vmatpush.bf16.msrb.mxu2 %v14186_v23  ;;  %v17710_v23 = vld [vmem:[#allocation2 + $0x378] sm:$0xf0]  ;;  %v12474_v20 = vor.u32 %v17606_v48, %v12473_v15  ;;  %v18003_v15 = vld [vmem:[#allocation2 + $0xca4] sm:$0xf]  ;;  %v14138_v48 = vor.u32 %v18022_v6, %v14137_v4 }
 0x426   :  { %4308 = vmatpush.bf16.msra.mxu1 %v12734_v24  ;;  %v13930_v24 = vor.u32 %v17970_v13, %v13929_v12  ;;  %v12890_v40 = vor.u32 %v17710_v23, %v12889_v21  ;;  %v17899_v12 = vld [vmem:[#allocation2 + $0x964] sm:$0xf]  ;;  %v13306_v13 = vor.u32 %v17814_v0, %v13305_v62  ;;  %v13258_v23 = vor.u32 %v17795_v32, %v13255_v35  ;;  %v17600_v62 = vld [vmem:[#allocation2 + $0xc] sm:$0xf]  ;;  %v12475_v0 = vld [vmem:[#allocation2 + $0x3c] sm:$0xf0] }
 0x427   :  { %4321 = vmatpush.bf16.msra.mxu3 %v13150_v31  ;;  %v17957_v31 = vld [vmem:[#allocation2 + $0xb30] sm:$0xf0]  ;;  %v17847_v4 = vld [vmem:[#allocation2 + $0x7c4] sm:$0xf]  ;;  %v14295_v32 = vld [vmem:[#allocation2 + $0xe74] sm:$0xf0]  ;;  %v12478_v35 = vor.u32 %v17600_v62, %v12475_v0 }
 0x428   :  { %4287 = vmatpush.bf16.msrb.mxu0 %v13718_v7  ;;  %v13462_v7 = vor.u32 %v17853_v25, %v13461_v39  ;;  %v13878_v10 = vor.u32 %v17957_v31, %v13877_v27  ;;  %v12631_v39 = vld [vmem:[#allocation2 + $0x174] sm:$0xf0]  ;;  %v17782_v31 = vld [vmem:[#allocation2 + $0x5bc] sm:$0xf]  ;;  %v17951_v6 = vld [vmem:[#allocation2 + $0xb04] sm:$0xf] }
 0x429   :  { %4300 = vmatpush.bf16.msrb.mxu2 %v14134_v53  ;;  %v13409_v53 = vld [vmem:[#allocation2 + $0x758] sm:$0xf]  ;;  %v14093_v62 = vld [vmem:[#allocation2 + $0xca8] sm:$0xf]  ;;  %v18010_v0 = vld [vmem:[#allocation2 + $0xcd8] sm:$0xf0] }
 0x42a   :  { %4309 = vmatpush.bf16.msra.mxu1 %v12682_v42  ;;  %v17840_v42 = vld [vmem:[#allocation2 + $0x788] sm:$0xf0] }
 0x42b   :  { %4322 = vmatpush.bf16.msra.mxu3 %v13098_v43  ;;  %4288 = vmatmul.bf16.vlgmr.msrb.gmra.mxu0 %v19703_v30  ;;  %v13825_v43 = vld [vmem:[#allocation2 + $0xa98] sm:$0xf]  ;;  %v13410_v49 = vor.u32 %v17840_v42, %v13409_v53 }
 0x42c   :  { %4332 = vmatpush.bf16.msra.mxu0 %v13670_v26  ;;  %14336 = vmatmul.msk.bf16.vlgmr.msrb.gmra.mxu2 %vm713_vm7, %v19715_v16  ;;  %v12842_v26 = vor.u32 %v17691_v36, %v12839_v38  ;;  %v13826_v50 = vor.u32 %v17944_v44, %v13825_v43  ;;  %v17990_v36 = vld [vmem:[#allocation2 + $0xc3c] sm:$0xf]  ;;  %v14035_v38 = vld [vmem:[#allocation2 + $0xc6c] sm:$0xf0]  ;;  %v17769_v43 = vld [vmem:[#allocation2 + $0x554] sm:$0xf] }
 0x42d   :  { %4345 = vmatpush.bf16.msra.mxu2 %v14086_v46  ;;  %v17678_v46 = vld [vmem:[#allocation2 + $0x27c] sm:$0xf]  ;;  %v14038_v42 = vor.u32 %v17990_v36, %v14035_v38  ;;  %v17873_v44 = vld [vmem:[#allocation2 + $0x894] sm:$0xf] }
 0x42e   :  { %4310 = vmatpush.bf16.msra.mxu1 %v12630_v54  ;;  %v17827_v54 = vld [vmem:[#allocation2 + $0x720] sm:$0xf0]  ;;  %v17821_v36 = vld [vmem:[#allocation2 + $0x6f4] sm:$0xf] }
 0x42f   :  { %4323 = vmatpush.bf16.msra.mxu3 %v13046_v55  ;;  %v13773_v55 = vld [vmem:[#allocation2 + $0xa30] sm:$0xf]  ;;  %v13358_v61 = vor.u32 %v17827_v54, %v13357_v52  ;;  %v13570_v52 = vor.u32 %v17873_v44, %v13567_v37 }
 0x430   :  { %4333 = vmatpush.bf16.msra.mxu0 %v13618_v56  ;;  %v12790_v56 = vor.u32 %v17678_v46, %v12787_v47  ;;  %v13774_v1 = vor.u32 %v17931_v57, %v13773_v55  ;;  %v13983_v46 = vld [vmem:[#allocation2 + $0xc04] sm:$0xf0]  ;;  %v17756_v55 = vld [vmem:[#allocation2 + $0x4ec] sm:$0xf] }
 0x431   :  { %4346 = vmatpush.bf16.msra.mxu2 %v14034_v59  ;;  %v17665_v59 = vld [vmem:[#allocation2 + $0x214] sm:$0xf]  ;;  %v13986_v54 = vor.u32 %v17977_v45, %v13983_v46  ;;  %v17860_v57 = vld [vmem:[#allocation2 + $0x82c] sm:$0xf]  ;;  %v13307_v46 = vld [vmem:[#allocation2 + $0x6bc] sm:$0xf0] }
 0x432   :  { %4311 = vmatpush.bf16.msra.mxu1 %v12578_v2  ;;  %v14190_v2 = vor.u32 %v18035_v58, %v14189_v29  ;;  %v12738_v5 = vor.u32 %v17665_v59, %v12735_v60  ;;  %v13515_v29 = vld [vmem:[#allocation2 + $0x85c] sm:$0xf0]  ;;  %v17964_v58 = vld [vmem:[#allocation2 + $0xb6c] sm:$0xf] }
 0x433   :  { %4324 = vmatpush.bf16.msra.mxu3 %v12994_v11  ;;  %v13721_v11 = vld [vmem:[#allocation2 + $0x9c8] sm:$0xf]  ;;  %v13931_v59 = vld [vmem:[#allocation2 + $0xb9c] sm:$0xf0]  ;;  %v17808_v45 = vld [vmem:[#allocation2 + $0x68c] sm:$0xf] }
 0x434   :  { %4334 = vmatpush.bf16.msra.mxu0 %v13566_v3  ;;  %v17918_v3 = vld [vmem:[#allocation2 + $0x9f8] sm:$0xf0] }
 0x435   :  { %4347 = vmatpush.bf16.msra.mxu2 %v13982_v8  ;;  %v17652_v8 = vld [vmem:[#allocation2 + $0x1ac] sm:$0xf] }
 0x436   :  { %4312 = vmatpush.bf16.msra.mxu1 %v12526_v14  ;;  %v13671_v14 = vld [vmem:[#allocation2 + $0x994] sm:$0xf0]  ;;  %v12686_v21 = vor.u32 %v17652_v8, %v12683_v9  ;;  %v18055_v9 = vld [vmem:[#allocation2 + $0xe44] sm:$0xf] }
 0x437   :  { %4325 = vmatpush.bf16.msra.mxu3 %v12942_v17  ;;  %v14087_v17 = vld [vmem:[#allocation2 + $0xcd4] sm:$0xf0]  ;;  %v13674_v25 = vor.u32 %v17899_v12, %v13671_v14 }
 0x438   :  { %4335 = vmatpush.bf16.msra.mxu0 %v13514_v19  ;;  %v13722_v19 = vor.u32 %v17918_v3, %v13721_v11  ;;  %v14090_v27 = vor.u32 %v18003_v15, %v14087_v17  ;;  %v17743_v11 = vld [vmem:[#allocation2 + $0x484] sm:$0xf]  ;;  %v13047_v3 = vld [vmem:[#allocation2 + $0x4b4] sm:$0xf0]  ;;  %v17730_v15 = vld [vmem:[#allocation2 + $0x41c] sm:$0xf] }
 0x439   :  { %4348 = vmatpush.bf16.msra.mxu2 %v13930_v24  ;;  %v17639_v24 = vld [vmem:[#allocation2 + $0x144] sm:$0xf]  ;;  %v13879_v8 = vld [vmem:[#allocation2 + $0xb34] sm:$0xf0]  ;;  %v13050_v12 = vor.u32 %v17743_v11, %v13047_v3  ;;  %v12995_v17 = vld [vmem:[#allocation2 + $0x44c] sm:$0xf0] }
 0x43a   :  { %4313 = vmatpush.bf16.msra.mxu1 %v12474_v20  ;;  %v13619_v20 = vld [vmem:[#allocation2 + $0x92c] sm:$0xf0]  ;;  %v13882_v14 = vor.u32 %v17951_v6, %v13879_v8  ;;  %v13209_v6 = vld [vmem:[#allocation2 + $0x5c0] sm:$0xf]  ;;  %v14094_v8 = vor.u32 %v18010_v0, %v14093_v62  ;;  %v17737_v62 = vld [vmem:[#allocation2 + $0x450] sm:$0xf0] }
 0x43b   :  { %4326 = vmatpush.bf16.msra.mxu3 %v12890_v40  ;;  %v12634_v40 = vor.u32 %v17639_v24, %v12631_v39  ;;  %v13622_v53 = vor.u32 %v17886_v34, %v13619_v20  ;;  %v13827_v24 = vld [vmem:[#allocation2 + $0xacc] sm:$0xf0]  ;;  %v18042_v39 = vld [vmem:[#allocation2 + $0xddc] sm:$0xf]  ;;  %v17717_v34 = vld [vmem:[#allocation2 + $0x3b4] sm:$0xf] }
 0x43c   :  { %4336 = vmatpush.bf16.msra.mxu0 %v13462_v7  ;;  %v13206_v7 = vor.u32 %v17782_v31, %v13203_v33  ;;  %v12943_v20 = vld [vmem:[#allocation2 + $0x3e4] sm:$0xf0]  ;;  %v13417_v0 = vld [vmem:[#allocation2 + $0x760] sm:$0xf] }
 0x43d   :  { %4349 = vmatpush.bf16.msra.mxu2 %v13878_v10  ;;  %4314 = vmatmul.bf16.vlgmr.msra.gmra.mxu1 %v19695_v22  ;;  %v17626_v10 = vld [vmem:[#allocation2 + $0xdc] sm:$0xf] }
 0x43e   :  { %4362 = vmatpush.bf16.msrb.mxu1 %v14294_v41  ;;  %4327 = vmatmul.bf16.vlgmr.msra.gmra.mxu3 %v19699_v28  ;;  %v12579_v41 = vld [vmem:[#allocation2 + $0x10c] sm:$0xf0] }
 0x43f   :  { %4371 = vmatpush.bf16.msrb.mxu3 %v12842_v26  ;;  %v13151_v26 = vld [vmem:[#allocation2 + $0x584] sm:$0xf0]  ;;  %v12582_v47 = vor.u32 %v17626_v10, %v12579_v41  ;;  %v18029_v41 = vld [vmem:[#allocation2 + $0xd74] sm:$0xf] }
 0x440   :  { %4337 = vmatpush.bf16.msra.mxu0 %v13410_v49  ;;  %v13154_v49 = vor.u32 %v17769_v43, %v13151_v26  ;;  %v13775_v10 = vld [vmem:[#allocation2 + $0xa64] sm:$0xf0]  ;;  %v17704_v43 = vld [vmem:[#allocation2 + $0x34c] sm:$0xf]  ;;  %v12891_v26 = vld [vmem:[#allocation2 + $0x37c] sm:$0xf0] }
 0x441   :  { %4350 = vmatpush.bf16.msra.mxu2 %v13826_v50  ;;  %v17613_v50 = vld [vmem:[#allocation2 + $0x74] sm:$0xf] }
 0x442   :  { %4363 = vmatpush.bf16.msrb.mxu1 %v14242_v51  ;;  %v12527_v51 = vld [vmem:[#allocation2 + $0xa4] sm:$0xf0] }
 0x443   :  { %4372 = vmatpush.bf16.msrb.mxu3 %v12790_v56  ;;  %v13099_v56 = vld [vmem:[#allocation2 + $0x51c] sm:$0xf0]  ;;  %v12530_v60 = vor.u32 %v17613_v50, %v12527_v51  ;;  %v18016_v51 = vld [vmem:[#allocation2 + $0xd0c] sm:$0xf] }
 0x444   :  { %4338 = vmatpush.bf16.msra.mxu0 %v13358_v61  ;;  %v13102_v61 = vor.u32 %v17756_v55, %v13099_v56  ;;  %v13723_v50 = vld [vmem:[#allocation2 + $0x9fc] sm:$0xf0]  ;;  %v17698_v55 = vld [vmem:[#allocation2 + $0x318] sm:$0xf0]  ;;  %v13261_v56 = vld [vmem:[#allocation2 + $0x628] sm:$0xf] }
 0x445   :  { %4351 = vmatpush.bf16.msra.mxu2 %v13774_v1  ;;  %v13518_v1 = vor.u32 %v17860_v57, %v13515_v29  ;;  %v12894_v57 = vor.u32 %v17704_v43, %v12891_v26  ;;  %v17802_v29 = vld [vmem:[#allocation2 + $0x658] sm:$0xf0]  ;;  %v17971_v43 = vld [vmem:[#allocation2 + $0xba0] sm:$0xf0] }
 0x446   :  { %4364 = vmatpush.bf16.msrb.mxu1 %v14190_v2  ;;  %v13934_v2 = vor.u32 %v17964_v58, %v13931_v59  ;;  %v13677_v58 = vld [vmem:[#allocation2 + $0x968] sm:$0xf]  ;;  %v17906_v59 = vld [vmem:[#allocation2 + $0x998] sm:$0xf0]  ;;  %v13262_v11 = vor.u32 %v17802_v29, %v13261_v56 }
 0x447   :  { %4373 = vmatpush.bf16.msrb.mxu3 %v12738_v5  ;;  %v13463_v5 = vld [vmem:[#allocation2 + $0x7f4] sm:$0xf0]  ;;  %v13678_v3 = vor.u32 %v17906_v59, %v13677_v58  ;;  %v12585_v58 = vld [vmem:[#allocation2 + $0xe0] sm:$0xf]  ;;  %v17633_v59 = vld [vmem:[#allocation2 + $0x110] sm:$0xf0] }
 0x448   :  { %4339 = vmatpush.bf16.msra.mxu0 %v13306_v13  ;;  %v13466_v13 = vor.u32 %v17847_v4, %v13463_v5  ;;  %v12793_v4 = vld [vmem:[#allocation2 + $0x280] sm:$0xf]  ;;  %v17685_v5 = vld [vmem:[#allocation2 + $0x2b0] sm:$0xf0] }
 0x449   :  { %4352 = vmatpush.bf16.msra.mxu2 %v13722_v19  ;;  %v17834_v19 = vld [vmem:[#allocation2 + $0x75c] sm:$0xf] }
 0x44a   :  { %4365 = vmatpush.bf16.msrb.mxu1 %v14138_v48  ;;  %v14298_v48 = vor.u32 %v18055_v9, %v14295_v32  ;;  %v17789_v9 = vld [vmem:[#allocation2 + $0x5f0] sm:$0xf0]  ;;  %v13625_v32 = vld [vmem:[#allocation2 + $0x900] sm:$0xf] }
 0x44b   :  { %4374 = vmatpush.bf16.msrb.mxu3 %v12686_v21  ;;  %4340 = vmatmul.bf16.vlgmr.msra.gmra.mxu0 %v19707_v18  ;;  %v13411_v21 = vld [vmem:[#allocation2 + $0x78c] sm:$0xf0] }
 0x44c   :  { %4384 = vmatpush.bf16.msrb.mxu0 %v13258_v23  ;;  %4353 = vmatmul.bf16.vlgmr.msra.gmra.mxu2 %v19703_v30  ;;  %v17938_v23 = vld [vmem:[#allocation2 + $0xa9c] sm:$0xf]  ;;  %v13414_v31 = vor.u32 %v17834_v19, %v13411_v21  ;;  %v12741_v19 = vld [vmem:[#allocation2 + $0x218] sm:$0xf] }
 0x44d   :  { %4397 = vmatpush.bf16.msrb.mxu2 %v13674_v25  ;;  %14337 = vmatmul.msk.bf16.vlgmr.msrb.gmra.mxu1 %vm713_vm7, %v19715_v16  ;;  %v14243_v25 = vld [vmem:[#allocation2 + $0xe0c] sm:$0xf0]  ;;  %v13830_v33 = vor.u32 %v17938_v23, %v13827_v24  ;;  %v13157_v21 = vld [vmem:[#allocation2 + $0x558] sm:$0xf]  ;;  %v17776_v24 = vld [vmem:[#allocation2 + $0x588] sm:$0xf0] }
 0x44e   :  { %4410 = vmatpush.bf16.msra.mxu1 %v14090_v27  ;;  %v12998_v27 = vor.u32 %v17730_v15, %v12995_v17  ;;  %v14246_v38 = vor.u32 %v18042_v39, %v14243_v25  ;;  %v13210_v15 = vor.u32 %v17789_v9, %v13209_v6  ;;  %v13573_v39 = vld [vmem:[#allocation2 + $0x898] sm:$0xf]  ;;  %v17880_v25 = vld [vmem:[#allocation2 + $0x8c8] sm:$0xf0] }
 0x44f   :  { %4375 = vmatpush.bf16.msrb.mxu3 %v12634_v40  ;;  %v13359_v40 = vld [vmem:[#allocation2 + $0x724] sm:$0xf0]  ;;  %v12533_v6 = vld [vmem:[#allocation2 + $0x78] sm:$0xf] }
 0x450   :  { %4385 = vmatpush.bf16.msrb.mxu0 %v13206_v7  ;;  %v17925_v7 = vld [vmem:[#allocation2 + $0xa34] sm:$0xf]  ;;  %v13362_v44 = vor.u32 %v17821_v36, %v13359_v40  ;;  %v12689_v36 = vld [vmem:[#allocation2 + $0x1b0] sm:$0xf]  ;;  %v12949_v9 = vld [vmem:[#allocation2 + $0x3b8] sm:$0xf] }
 0x451   :  { %4398 = vmatpush.bf16.msrb.mxu2 %v13622_v53  ;;  %v14191_v53 = vld [vmem:[#allocation2 + $0xda4] sm:$0xf0]  ;;  %v13778_v37 = vor.u32 %v17925_v7, %v13775_v10  ;;  %v13105_v40 = vld [vmem:[#allocation2 + $0x4f0] sm:$0xf]  ;;  %v17763_v10 = vld [vmem:[#allocation2 + $0x520] sm:$0xf0] }
 0x452   :  { %4411 = vmatpush.bf16.msra.mxu1 %v14038_v42  ;;  %v12946_v42 = vor.u32 %v17717_v34, %v12943_v20  ;;  %v13158_v34 = vor.u32 %v17776_v24, %v13157_v21  ;;  %v13574_v20 = vor.u32 %v17880_v25, %v13573_v39  ;;  %v12897_v24 = vld [vmem:[#allocation2 + $0x350] sm:$0xf]  ;;  %v17711_v39 = vld [vmem:[#allocation2 + $0x380] sm:$0xf0] }
 0x453   :  { %4376 = vmatpush.bf16.msrb.mxu3 %v12582_v47  ;;  %v17912_v47 = vld [vmem:[#allocation2 + $0x9cc] sm:$0xf]  ;;  %v13313_v25 = vld [vmem:[#allocation2 + $0x690] sm:$0xf] }
 0x454   :  { %4386 = vmatpush.bf16.msrb.mxu0 %v13154_v49  ;;  %v14194_v49 = vor.u32 %v18029_v41, %v14191_v53  ;;  %v13521_v41 = vld [vmem:[#allocation2 + $0x830] sm:$0xf]  ;;  %v17867_v53 = vld [vmem:[#allocation2 + $0x860] sm:$0xf0] }
 0x455   :  { %4399 = vmatpush.bf16.msrb.mxu2 %v13570_v52  ;;  %v14139_v52 = vld [vmem:[#allocation2 + $0xd3c] sm:$0xf0] }
 0x456   :  { %4412 = vmatpush.bf16.msra.mxu1 %v13986_v54  ;;  %v12845_v54 = vld [vmem:[#allocation2 + $0x2e8] sm:$0xf] }
 0x457   :  { %4377 = vmatpush.bf16.msrb.mxu3 %v12530_v60  ;;  %v13310_v60 = vor.u32 %v17808_v45, %v13307_v46  ;;  %v12637_v45 = vld [vmem:[#allocation2 + $0x148] sm:$0xf]  ;;  %v17646_v46 = vld [vmem:[#allocation2 + $0x178] sm:$0xf0] }
 0x458   :  { %4387 = vmatpush.bf16.msrb.mxu0 %v13102_v61  ;;  %v13726_v61 = vor.u32 %v17912_v47, %v13723_v50  ;;  %v13053_v47 = vld [vmem:[#allocation2 + $0x488] sm:$0xf]  ;;  %v17750_v50 = vld [vmem:[#allocation2 + $0x4b8] sm:$0xf0]  ;;  %v12638_v56 = vor.u32 %v17646_v46, %v12637_v45 }
 0x459   :  { %4400 = vmatpush.bf16.msrb.mxu2 %v13518_v1  ;;  %v14142_v1 = vor.u32 %v18016_v51, %v14139_v52  ;;  %v13469_v51 = vld [vmem:[#allocation2 + $0x7c8] sm:$0xf]  ;;  %v17854_v52 = vld [vmem:[#allocation2 + $0x7f8] sm:$0xf0] }
 0x45a   :  { %4413 = vmatpush.bf16.msra.mxu1 %v13934_v2  ;;  %v12846_v2 = vor.u32 %v17698_v55, %v12845_v54  ;;  %v13885_v54 = vld [vmem:[#allocation2 + $0xb08] sm:$0xf]  ;;  %v17958_v55 = vld [vmem:[#allocation2 + $0xb38] sm:$0xf0]  ;;  %v13470_v29 = vor.u32 %v17854_v52, %v13469_v51  ;;  %v18049_v51 = vld [vmem:[#allocation2 + $0xe10] sm:$0xf0] }
 0x45b   :  { %4378 = vmatpush.bf16.msrb.mxu3 %v12478_v35  ;;  %v17893_v35 = vld [vmem:[#allocation2 + $0x930] sm:$0xf0]  ;;  %v17679_v52 = vld [vmem:[#allocation2 + $0x284] sm:$0xf] }
 0x45c   :  { %4388 = vmatpush.bf16.msrb.mxu0 %v13050_v12  ;;  %v14041_v12 = vld [vmem:[#allocation2 + $0xc40] sm:$0xf]  ;;  %v13626_v17 = vor.u32 %v17893_v35, %v13625_v32  ;;  %v17724_v35 = vld [vmem:[#allocation2 + $0x3e8] sm:$0xf0] }
 0x45d   :  { %4401 = vmatpush.bf16.msrb.mxu2 %v13466_v13  ;;  %v17997_v13 = vld [vmem:[#allocation2 + $0xc70] sm:$0xf0]  ;;  %v12950_v21 = vor.u32 %v17724_v35, %v12949_v9  ;;  %v13159_v9 = vld [vmem:[#allocation2 + $0x58c] sm:$0xf0] }
 0x45e   :  { %4414 = vmatpush.bf16.msra.mxu1 %v13882_v14  ;;  %4379 = vmatmul.bf16.vlgmr.msrb.gmra.mxu3 %v19695_v22  ;;  %v12794_v14 = vor.u32 %v17685_v5, %v12793_v4  ;;  %v14042_v23 = vor.u32 %v17997_v13, %v14041_v12  ;;  %v13365_v12 = vld [vmem:[#allocation2 + $0x6f8] sm:$0xf]  ;;  %v17828_v13 = vld [vmem:[#allocation2 + $0x728] sm:$0xf0]  ;;  %v13575_v35 = vld [vmem:[#allocation2 + $0x8cc] sm:$0xf0] }
 0x45f   :  { %4427 = vmatpush.bf16.msra.mxu3 %v14298_v48  ;;  %v17672_v48 = vld [vmem:[#allocation2 + $0x248] sm:$0xf0] }
 0x460   :  { %4389 = vmatpush.bf16.msrb.mxu0 %v12998_v27  ;;  %v13989_v27 = vld [vmem:[#allocation2 + $0xbd8] sm:$0xf] }
 0x461   :  { %4402 = vmatpush.bf16.msrb.mxu2 %v13414_v31  ;;  %v17984_v31 = vld [vmem:[#allocation2 + $0xc08] sm:$0xf0] }
 0x462   :  { %4415 = vmatpush.bf16.msra.mxu1 %v13830_v33  ;;  %v12742_v33 = vor.u32 %v17672_v48, %v12741_v19  ;;  %v13990_v7 = vor.u32 %v17984_v31, %v13989_v27  ;;  %v12481_v19 = vld [vmem:[#allocation2 + $0x10] sm:$0xf]  ;;  %v17607_v48 = vld [vmem:[#allocation2 + $0x40] sm:$0xf0] }
 0x463   :  { %4428 = vmatpush.bf16.msra.mxu3 %v14246_v38  ;;  %v17659_v38 = vld [vmem:[#allocation2 + $0x1e0] sm:$0xf0] }
 0x464   :  { %4390 = vmatpush.bf16.msrb.mxu0 %v12946_v42  ;;  %v13937_v42 = vld [vmem:[#allocation2 + $0xb70] sm:$0xf]  ;;  %v12690_v26 = vor.u32 %v17659_v38, %v12689_v36  ;;  %v17815_v31 = vld [vmem:[#allocation2 + $0x6c0] sm:$0xf0]  ;;  %v14301_v36 = vld [vmem:[#allocation2 + $0xe48] sm:$0xf] }
 0x465   :  { %4403 = vmatpush.bf16.msrb.mxu2 %v13362_v44  ;;  %v13106_v44 = vor.u32 %v17763_v10, %v13105_v40  ;;  %v18062_v38 = vld [vmem:[#allocation2 + $0xe78] sm:$0xf0]  ;;  %v17692_v40 = vld [vmem:[#allocation2 + $0x2ec] sm:$0xf]  ;;  %v12847_v10 = vld [vmem:[#allocation2 + $0x31c] sm:$0xf0] }
 0x466   :  { %4416 = vmatpush.bf16.msra.mxu1 %v13778_v37  ;;  %v13522_v37 = vor.u32 %v17867_v53, %v13521_v41  ;;  %v17796_v41 = vld [vmem:[#allocation2 + $0x62c] sm:$0xf]  ;;  %v13263_v53 = vld [vmem:[#allocation2 + $0x65c] sm:$0xf0]  ;;  %v14302_v46 = vor.u32 %v18062_v38, %v14301_v36 }
 0x467   :  { %4429 = vmatpush.bf16.msra.mxu3 %v14194_v49  ;;  %v13938_v49 = vor.u32 %v17971_v43, %v13937_v42  ;;  %v12898_v42 = vor.u32 %v17711_v39, %v12897_v24  ;;  %v13314_v43 = vor.u32 %v17815_v31, %v13313_v25  ;;  %v12691_v24 = vld [vmem:[#allocation2 + $0x1e4] sm:$0xf0]  ;;  %v17757_v25 = vld [vmem:[#allocation2 + $0x4f4] sm:$0xf] }
 0x468   :  { %4391 = vmatpush.bf16.msrb.mxu0 %v12894_v57  ;;  %v13054_v57 = vor.u32 %v17750_v50, %v13053_v47  ;;  %v12850_v47 = vor.u32 %v17692_v40, %v12847_v10  ;;  %v14249_v50 = vld [vmem:[#allocation2 + $0xde0] sm:$0xf]  ;;  %v17861_v31 = vld [vmem:[#allocation2 + $0x834] sm:$0xf] }
 0x469   :  { %4404 = vmatpush.bf16.msrb.mxu2 %v13310_v60  ;;  %v13001_v60 = vld [vmem:[#allocation2 + $0x420] sm:$0xf] }
 0x46a   :  { %4417 = vmatpush.bf16.msra.mxu1 %v13726_v61  ;;  %v13886_v61 = vor.u32 %v17958_v55, %v13885_v54  ;;  %v13002_v4 = vor.u32 %v17737_v62, %v13001_v60  ;;  %v12795_v55 = vld [vmem:[#allocation2 + $0x2b4] sm:$0xf0] }
 0x46b   :  { %4430 = vmatpush.bf16.msra.mxu3 %v14142_v1  ;;  %4392 = vmatmul.bf16.vlgmr.msrb.gmra.mxu0 %v19699_v28  ;;  %v17841_v1 = vld [vmem:[#allocation2 + $0x790] sm:$0xf0]  ;;  %v12798_v62 = vor.u32 %v17679_v52, %v12795_v55  ;;  %v12587_v55 = vld [vmem:[#allocation2 + $0x114] sm:$0xf0] }
 0x46c   :  { %4436 = vmatpush.bf16.msra.mxu0 %v12846_v2  ;;  %4405 = vmatmul.bf16.vlgmr.msrb.gmra.mxu2 %v19707_v18  ;;  %v13833_v2 = vld [vmem:[#allocation2 + $0xaa0] sm:$0xf]  ;;  %v13418_v5 = vor.u32 %v17841_v1, %v13417_v0 }
 0x46d   :  { %4449 = vmatpush.bf16.msra.mxu2 %v13262_v11  ;;  %4418 = vmatmul.bf16.vlgmr.msra.gmra.mxu1 %v19703_v30  ;;  %v17945_v11 = vld [vmem:[#allocation2 + $0xad0] sm:$0xf0] }
 0x46e   :  { %4462 = vmatpush.bf16.msrb.mxu1 %v13678_v3  ;;  %14338 = vmatmul.msk.bf16.vlgmr.msra.gmra.mxu3 %vm713_vm7, %v19715_v16  ;;  %v12586_v3 = vor.u32 %v17633_v59, %v12585_v58  ;;  %v13834_v32 = vor.u32 %v17945_v11, %v13833_v2  ;;  %v13627_v58 = vld [vmem:[#allocation2 + $0x934] sm:$0xf0]  ;;  %v14250_v59 = vor.u32 %v18049_v51, %v14249_v50 }
 0x46f   :  { %4475 = vmatpush.bf16.msrb.mxu3 %v14094_v8  ;;  %v17620_v8 = vld [vmem:[#allocation2 + $0xa8] sm:$0xf0]  ;;  %v14197_v11 = vld [vmem:[#allocation2 + $0xd78] sm:$0xf] }
 0x470   :  { %4437 = vmatpush.bf16.msra.mxu0 %v12794_v14  ;;  %v13781_v14 = vld [vmem:[#allocation2 + $0xa38] sm:$0xf] }
 0x471   :  { %4450 = vmatpush.bf16.msra.mxu2 %v13210_v15  ;;  %v17932_v15 = vld [vmem:[#allocation2 + $0xa68] sm:$0xf0]  ;;  %v14043_v50 = vld [vmem:[#allocation2 + $0xc74] sm:$0xf0] }
 0x472   :  { %4463 = vmatpush.bf16.msrb.mxu1 %v13626_v17  ;;  %v12534_v17 = vor.u32 %v17620_v8, %v12533_v6  ;;  %v13782_v27 = vor.u32 %v17932_v15, %v13781_v14  ;;  %v12743_v6 = vld [vmem:[#allocation2 + $0x24c] sm:$0xf0]  ;;  %v17770_v8 = vld [vmem:[#allocation2 + $0x55c] sm:$0xf] }
 0x473   :  { %4476 = vmatpush.bf16.msrb.mxu3 %v14042_v23  ;;  %v13366_v23 = vor.u32 %v17828_v13, %v13365_v12  ;;  %v14145_v15 = vld [vmem:[#allocation2 + $0xd10] sm:$0xf] }
 0x474   :  { %4438 = vmatpush.bf16.msra.mxu0 %v12742_v33  ;;  %v13729_v33 = vld [vmem:[#allocation2 + $0x9d0] sm:$0xf] }
 0x475   :  { %4451 = vmatpush.bf16.msra.mxu2 %v13158_v34  ;;  %v17919_v34 = vld [vmem:[#allocation2 + $0xa00] sm:$0xf0] }
 0x476   :  { %4464 = vmatpush.bf16.msrb.mxu1 %v13574_v20  ;;  %v13730_v45 = vor.u32 %v17919_v34, %v13729_v33  ;;  %v13523_v33 = vld [vmem:[#allocation2 + $0x864] sm:$0xf0]  ;;  %v18004_v34 = vld [vmem:[#allocation2 + $0xcac] sm:$0xf] }
 0x477   :  { %4477 = vmatpush.bf16.msrb.mxu3 %v13990_v7  ;;  %v12482_v7 = vor.u32 %v17607_v48, %v12481_v19  ;;  %v13162_v19 = vor.u32 %v17770_v8, %v13159_v9  ;;  %v17822_v8 = vld [vmem:[#allocation2 + $0x6fc] sm:$0xf] }
 0x478   :  { %4439 = vmatpush.bf16.msra.mxu0 %v12690_v26  ;;  %v4185_v20 = vpop.f32.mrf.mxu0  ;;  %v17900_v26 = vld [vmem:[#allocation2 + $0x96c] sm:$0xf] }
 0x479   :  { %4452 = vmatpush.bf16.msra.mxu2 %v13106_v44  ;;  %v13679_v44 = vld [vmem:[#allocation2 + $0x99c] sm:$0xf0] }
 0x47a   :  { %4465 = vmatpush.bf16.msrb.mxu1 %v13522_v37  ;;  %v4211_v37 = vpop.f32.mrf.mxu1  ;;  %v13682_v54 = vor.u32 %v17900_v26, %v13679_v44  ;;  %v17744_v44 = vld [vmem:[#allocation2 + $0x48c] sm:$0xf] }
 0x47b   :  { %4478 = vmatpush.bf16.msrb.mxu3 %v13938_v49  ;;  %v13266_v49 = vor.u32 %v17796_v41, %v13263_v53  ;;  %v17640_v41 = vld [vmem:[#allocation2 + $0x14c] sm:$0xf]  ;;  %v12639_v53 = vld [vmem:[#allocation2 + $0x17c] sm:$0xf0] }
 0x47c   :  { %4440 = vmatpush.bf16.msra.mxu0 %v12638_v56  ;;  %v17783_v56 = vld [vmem:[#allocation2 + $0x5c4] sm:$0xf]  ;;  %v12642_v51 = vor.u32 %v17640_v41, %v12639_v53 }
 0x47d   :  { %4453 = vmatpush.bf16.msra.mxu2 %v13054_v57  ;;  %v13211_v57 = vld [vmem:[#allocation2 + $0x5f4] sm:$0xf0] }
 0x47e   :  { %4466 = vmatpush.bf16.msrb.mxu1 %v13470_v29  ;;  %v17887_v29 = vld [vmem:[#allocation2 + $0x904] sm:$0xf]  ;;  %v13214_v0 = vor.u32 %v17783_v56, %v13211_v57 }
 0x47f   :  { %4479 = vmatpush.bf16.msrb.mxu3 %v13886_v61  ;;  %v4198_v60 = vpop.f32.mrf.mxu2 }
 0x480   :  { %4441 = vmatpush.bf16.msra.mxu0 %v12586_v3  ;;  %v4187_v1 = vpop.f32.mrf.mxu0  ;;  %v4199_v2 = vadd.f32 %v4198_v60, %v4185_v20  ;;  %v18036_v3 = vld [vmem:[#allocation2 + $0xda8] sm:$0xf0]  ;;  %v14095_v20 = vld [vmem:[#allocation2 + $0xcdc] sm:$0xf0]  ;;  %v13419_v60 = vld [vmem:[#allocation2 + $0x794] sm:$0xf0] }
 0x481   :  { %4454 = vmatpush.bf16.msra.mxu2 %v13002_v4  ;;  %v4224_v61 = vpop.f32.mrf.mxu3  ;;  %v17666_v4 = vld [vmem:[#allocation2 + $0x21c] sm:$0xf]  ;;  %v14198_v14 = vor.u32 %v18036_v3, %v14197_v11  ;;  %v12535_v11 = vld [vmem:[#allocation2 + $0xac] sm:$0xf0] }
 0x482   :  { %4467 = vmatpush.bf16.msrb.mxu1 %v13418_v5  ;;  %v13630_v5 = vor.u32 %v17887_v29, %v13627_v58  ;;  %v4212_v12 = vadd.f32 %v4211_v37, %v4199_v2  ;;  %v4213_v13 = vpop.f32.mrf.mxu1  ;;  %v13055_v37 = vld [vmem:[#allocation2 + $0x4bc] sm:$0xf0]  ;;  %v17731_v29 = vld [vmem:[#allocation2 + $0x424] sm:$0xf]  ;;  %v13003_v58 = vld [vmem:[#allocation2 + $0x454] sm:$0xf0] }
 0x483   :  { %4480 = vmatpush.bf16.msrb.mxu3 %v13834_v32  ;;  %v17874_v32 = vld [vmem:[#allocation2 + $0x89c] sm:$0xf]  ;;  %v13058_v52 = vor.u32 %v17744_v44, %v13055_v37  ;;  %v13006_v1 = vor.u32 %v17731_v29, %v13003_v58  ;;  %v13835_v44 = vld [vmem:[#allocation2 + $0xad4] sm:$0xf0]  ;;  %v18043_v37 = vld [vmem:[#allocation2 + $0xde4] sm:$0xf] }
 0x484   :  { %4442 = vmatpush.bf16.msra.mxu0 %v12534_v17  ;;  %v12746_v17 = vor.u32 %v17666_v4, %v12743_v6  ;;  %v4225_v48 = vadd.f32 %v4224_v61, %v4212_v12  ;;  %v13578_v39 = vor.u32 %v17874_v32, %v13575_v35  ;;  %v17978_v61 = vld [vmem:[#allocation2 + $0xbdc] sm:$0xf]  ;;  %v12951_v6 = vld [vmem:[#allocation2 + $0x3ec] sm:$0xf0]  ;;  %v17965_v35 = vld [vmem:[#allocation2 + $0xb74] sm:$0xf] }
 0x485   :  { %4455 = vmatpush.bf16.msra.mxu2 %v12950_v21  ;;  %v18023_v21 = vld [vmem:[#allocation2 + $0xd40] sm:$0xf0]  ;;  %v17614_v2 = vld [vmem:[#allocation2 + $0x7c] sm:$0xf]  ;;  %v13367_v32 = vld [vmem:[#allocation2 + $0x72c] sm:$0xf0] }
 0x486   :  { %4468 = vmatpush.bf16.msrb.mxu1 %v13366_v23  ;;  %v17653_v23 = vld [vmem:[#allocation2 + $0x1b4] sm:$0xf]  ;;  %v14146_v36 = vor.u32 %v18023_v21, %v14145_v15  ;;  %v13939_v12 = vld [vmem:[#allocation2 + $0xba4] sm:$0xf0]  ;;  %v12538_v13 = vor.u32 %v17614_v2, %v12535_v11 }
 0x487   :  { %4481 = vmatpush.bf16.msrb.mxu3 %v13782_v27  ;;  %v13107_v27 = vld [vmem:[#allocation2 + $0x524] sm:$0xf0]  ;;  %v4200_v38 = vpop.f32.mrf.mxu2  ;;  %v17601_v15 = vld [vmem:[#allocation2 + $0x14] sm:$0xf]  ;;  %v13942_v21 = vor.u32 %v17965_v35, %v13939_v12 }
 0x488   :  { %4443 = vmatpush.bf16.msra.mxu0 %v12482_v7  ;;  %v12694_v7 = vor.u32 %v17653_v23, %v12691_v24  ;;  %v13110_v10 = vor.u32 %v17757_v25, %v13107_v27  ;;  %v4237_v26 = vpop.f32.mrf.mxu0  ;;  %v12899_v23 = vld [vmem:[#allocation2 + $0x384] sm:$0xf0]  ;;  %v17809_v24 = vld [vmem:[#allocation2 + $0x694] sm:$0xf]  ;;  %v17952_v25 = vld [vmem:[#allocation2 + $0xb0c] sm:$0xf] }
 0x489   :  { %4456 = vmatpush.bf16.msra.mxu2 %v12898_v42  ;;  %v4226_v40 = vpop.f32.mrf.mxu3  ;;  %v13526_v42 = vor.u32 %v17861_v31, %v13523_v33  ;;  %v13887_v27 = vld [vmem:[#allocation2 + $0xb3c] sm:$0xf0]  ;;  %v18056_v31 = vld [vmem:[#allocation2 + $0xe4c] sm:$0xf]  ;;  %v17673_v2 = vld [vmem:[#allocation2 + $0x250] sm:$0xf0] }
 0x48a   :  { %4469 = vmatpush.bf16.msrb.mxu1 %v13314_v43  ;;  %v14098_v43 = vor.u32 %v18004_v34, %v14095_v20  ;;  %v14303_v33 = vld [vmem:[#allocation2 + $0xe7c] sm:$0xf0]  ;;  %v12853_v34 = vld [vmem:[#allocation2 + $0x2f0] sm:$0xf]  ;;  %v17699_v20 = vld [vmem:[#allocation2 + $0x320] sm:$0xf0]  ;;  %v13890_v53 = vor.u32 %v17952_v25, %v13887_v27 }
 0x48b   :  { %4482 = vmatpush.bf16.msrb.mxu3 %v13730_v45  ;;  %4444 = vmatmul.bf16.vlgmr.msra.gmra.mxu0 %v19695_v22  ;;  %v17848_v45 = vld [vmem:[#allocation2 + $0x7cc] sm:$0xf]  ;;  %v13731_v35 = vld [vmem:[#allocation2 + $0xa04] sm:$0xf0]  ;;  %v18017_v12 = vld [vmem:[#allocation2 + $0xd14] sm:$0xf] }
 0x48c   :  { %4492 = vmatpush.bf16.msrb.mxu0 %v14302_v46  ;;  %4457 = vmatmul.bf16.vlgmr.msra.gmra.mxu2 %v19699_v28  ;;  %v19741_v46 = vadd.f32 %v4237_v26, %v4225_v48  ;;  %v13370_v48 = vor.u32 %v17822_v8, %v13367_v32  ;;  %v17939_v26 = vld [vmem:[#allocation2 + $0xaa4] sm:$0xf]  ;;  %v17913_v8 = vld [vmem:[#allocation2 + $0x9d4] sm:$0xf] }
 0x48d   :  { %4501 = vmatpush.bf16.msrb.mxu2 %v12850_v47  ;;  %4470 = vmatmul.bf16.vlgmr.msrb.gmra.mxu1 %v19707_v18  ;;  %v13471_v47 = vld [vmem:[#allocation2 + $0x7fc] sm:$0xf0]  ;;  %v13734_v27 = vor.u32 %v17913_v8, %v13731_v35  ;;  %v17868_v8 = vld [vmem:[#allocation2 + $0x868] sm:$0xf0] }
 0x48e   :  { %4514 = vmatpush.bf16.msra.mxu1 %v13266_v49  ;;  %4483 = vmatmul.bf16.vlgmr.msrb.gmra.mxu3 %v19703_v30  ;;  %v17991_v49 = vld [vmem:[#allocation2 + $0xc44] sm:$0xf]  ;;  %v13474_v56 = vor.u32 %v17848_v45, %v13471_v47  ;;  %v14251_v47 = vld [vmem:[#allocation2 + $0xe14] sm:$0xf0] }
 0x48f   :  { %4527 = vmatpush.bf16.msra.mxu3 %v13682_v54  ;;  %v17627_v54 = vld [vmem:[#allocation2 + $0xe4] sm:$0xf]  ;;  %v14046_v57 = vor.u32 %v17991_v49, %v14043_v50  ;;  %v12801_v49 = vld [vmem:[#allocation2 + $0x288] sm:$0xf]  ;;  %v17686_v50 = vld [vmem:[#allocation2 + $0x2b8] sm:$0xf0]  ;;  %v14254_v29 = vor.u32 %v18043_v37, %v14251_v47 }
 0x490   :  { %4493 = vmatpush.bf16.msrb.mxu0 %v14250_v59  ;;  %v17835_v59 = vld [vmem:[#allocation2 + $0x764] sm:$0xf]  ;;  %v4239_v9 = vpop.f32.mrf.mxu0  ;;  %v12802_v58 = vor.u32 %v17686_v50, %v12801_v49  ;;  %v17998_v37 = vld [vmem:[#allocation2 + $0xc78] sm:$0xf0]  ;;  %v12593_v50 = vld [vmem:[#allocation2 + $0xe8] sm:$0xf] }
 0x491   :  { %4502 = vmatpush.bf16.msrb.mxu2 %v12798_v62  ;;  %v13991_v62 = vld [vmem:[#allocation2 + $0xc0c] sm:$0xf0]  ;;  %v13422_v3 = vor.u32 %v17835_v59, %v13419_v60  ;;  %v17926_v59 = vld [vmem:[#allocation2 + $0xa3c] sm:$0xf] }
 0x492   :  { %4515 = vmatpush.bf16.msra.mxu1 %v13214_v0  ;;  %v12590_v0 = vor.u32 %v17627_v54, %v12587_v55  ;;  %v13994_v4 = vor.u32 %v17978_v61, %v13991_v62  ;;  %v17790_v54 = vld [vmem:[#allocation2 + $0x5f8] sm:$0xf0]  ;;  %v13838_v55 = vor.u32 %v17939_v26, %v13835_v44  ;;  %v13783_v60 = vld [vmem:[#allocation2 + $0xa6c] sm:$0xf0]  ;;  %v14049_v44 = vld [vmem:[#allocation2 + $0xc48] sm:$0xf] }
 0x493   :  { %4528 = vmatpush.bf16.msra.mxu3 %v13630_v5  ;;  %v17718_v5 = vld [vmem:[#allocation2 + $0x3bc] sm:$0xf] }
 0x494   :  { %4494 = vmatpush.bf16.msrb.mxu0 %v14198_v14  ;;  %v12954_v14 = vor.u32 %v17718_v5, %v12951_v6  ;;  %v18030_v61 = vld [vmem:[#allocation2 + $0xd7c] sm:$0xf]  ;;  %v17777_v5 = vld [vmem:[#allocation2 + $0x590] sm:$0xf0]  ;;  %v13786_v6 = vor.u32 %v17926_v59, %v13783_v60 }
 0x495   :  { %4503 = vmatpush.bf16.msrb.mxu2 %v12746_v17  ;;  %v12483_v17 = vld [vmem:[#allocation2 + $0x44] sm:$0xf0]  ;;  %v17894_v26 = vld [vmem:[#allocation2 + $0x938] sm:$0xf0]  ;;  %v17985_v59 = vld [vmem:[#allocation2 + $0xc10] sm:$0xf0] }
 0x496   :  { %4516 = vmatpush.bf16.msra.mxu1 %v13162_v19  ;;  %v17705_v19 = vld [vmem:[#allocation2 + $0x354] sm:$0xf]  ;;  %v12486_v38 = vor.u32 %v17601_v15, %v12483_v17  ;;  %v12697_v15 = vld [vmem:[#allocation2 + $0x1b8] sm:$0xf]  ;;  %v17660_v17 = vld [vmem:[#allocation2 + $0x1e8] sm:$0xf0] }
 0x497   :  { %4529 = vmatpush.bf16.msra.mxu3 %v13578_v39  ;;  %v13315_v39 = vld [vmem:[#allocation2 + $0x6c4] sm:$0xf0]  ;;  %v12902_v40 = vor.u32 %v17705_v19, %v12899_v23  ;;  %v13113_v19 = vld [vmem:[#allocation2 + $0x4f8] sm:$0xf]  ;;  %v17764_v23 = vld [vmem:[#allocation2 + $0x528] sm:$0xf0] }
 0x498   :  { %4495 = vmatpush.bf16.msrb.mxu0 %v14146_v36  ;;  %v13318_v41 = vor.u32 %v17809_v24, %v13315_v39  ;;  %v13685_v24 = vld [vmem:[#allocation2 + $0x970] sm:$0xf]  ;;  %v17907_v39 = vld [vmem:[#allocation2 + $0x9a0] sm:$0xf0] }
 0x499   :  { %4504 = vmatpush.bf16.msrb.mxu2 %v12694_v7  ;;  %v13269_v7 = vld [vmem:[#allocation2 + $0x630] sm:$0xf] }
 0x49a   :  { %4517 = vmatpush.bf16.msra.mxu1 %v13110_v10  ;;  %v4263_v36 = vpop.f32.mrf.mxu1  ;;  %v17803_v10 = vld [vmem:[#allocation2 + $0x660] sm:$0xf0] }
 0x49b   :  { %4530 = vmatpush.bf16.msra.mxu3 %v13526_v42  ;;  %14339 = vmatmul.msk.bf16.vlgmr.msrb.gmra.mxu0 %vm713_vm7, %v19715_v16  ;;  %v14306_v42 = vor.u32 %v18056_v31, %v14303_v33  ;;  %v13270_v45 = vor.u32 %v17803_v10, %v13269_v7  ;;  %v14101_v31 = vld [vmem:[#allocation2 + $0xcb0] sm:$0xf]  ;;  %v18011_v33 = vld [vmem:[#allocation2 + $0xce0] sm:$0xf0] }
 0x49c   :  { %4540 = vmatpush.bf16.msra.mxu0 %v14098_v43  ;;  %v12854_v43 = vor.u32 %v17699_v20, %v12853_v34  ;;  %v12645_v7 = vld [vmem:[#allocation2 + $0x150] sm:$0xf]  ;;  %v17647_v10 = vld [vmem:[#allocation2 + $0x180] sm:$0xf0] }
 0x49d   :  { %4505 = vmatpush.bf16.msrb.mxu2 %v12642_v51 }
 0x49e   :  { %4518 = vmatpush.bf16.msra.mxu1 %v13058_v52  ;;  %v13217_v52 = vld [vmem:[#allocation2 + $0x5c8] sm:$0xf] }
 0x49f   :  { %4531 = vmatpush.bf16.msra.mxu3 %v13474_v56  ;;  %v4250_v51 = vpop.f32.mrf.mxu2  ;;  %v13218_v62 = vor.u32 %v17790_v54, %v13217_v52  ;;  %v13009_v52 = vld [vmem:[#allocation2 + $0x428] sm:$0xf] }
 0x4a0   :  { %4541 = vmatpush.bf16.msra.mxu0 %v14046_v57  ;;  %v4264_v56 = vadd.f32 %v4263_v36, %v4250_v51  ;;  %v12698_v36 = vor.u32 %v17660_v17, %v12697_v15  ;;  %v17634_v51 = vld [vmem:[#allocation2 + $0x118] sm:$0xf0]  ;;  %v17608_v15 = vld [vmem:[#allocation2 + $0x48] sm:$0xf0]  ;;  %v12905_v17 = vld [vmem:[#allocation2 + $0x358] sm:$0xf] }
 0x4a1   :  { %4506 = vmatpush.bf16.msrb.mxu2 %v12590_v0  ;;  %v4276_v57 = vpop.f32.mrf.mxu3  ;;  %v14199_v0 = vld [vmem:[#allocation2 + $0xdac] sm:$0xf0] }
 0x4a2   :  { %4519 = vmatpush.bf16.msra.mxu1 %v13006_v1  ;;  %v12749_v1 = vld [vmem:[#allocation2 + $0x220] sm:$0xf]  ;;  %v4277_v11 = vadd.f32 %v4276_v57, %v4264_v56  ;;  %v14202_v9 = vor.u32 %v18030_v61, %v14199_v0  ;;  %v17738_v56 = vld [vmem:[#allocation2 + $0x458] sm:$0xf0]  ;;  %v12594_v61 = vor.u32 %v17634_v51, %v12593_v50 }
 0x4a3   :  { %4532 = vmatpush.bf16.msra.mxu3 %v13422_v3  ;;  %v4265_v3 = vpop.f32.mrf.mxu1  ;;  %v12750_v32 = vor.u32 %v17673_v2, %v12749_v1  ;;  %v13581_v57 = vld [vmem:[#allocation2 + $0x8a0] sm:$0xf]  ;;  %v13010_v0 = vor.u32 %v17738_v56, %v13009_v52 }
 0x4a4   :  { %4542 = vmatpush.bf16.msra.mxu0 %v13994_v4  ;;  %v13165_v4 = vld [vmem:[#allocation2 + $0x560] sm:$0xf] }
 0x4a5   :  { %4507 = vmatpush.bf16.msrb.mxu2 %v12538_v13  ;;  %v14147_v13 = vld [vmem:[#allocation2 + $0xd44] sm:$0xf0]  ;;  %v12541_v2 = vld [vmem:[#allocation2 + $0x80] sm:$0xf] }
 0x4a6   :  { %4520 = vmatpush.bf16.msra.mxu1 %v12954_v14  ;;  %v13166_v14 = vor.u32 %v17777_v5, %v13165_v4  ;;  %v14150_v20 = vor.u32 %v18017_v12, %v14147_v13  ;;  %v12957_v3 = vld [vmem:[#allocation2 + $0x3c0] sm:$0xf]  ;;  %v17725_v5 = vld [vmem:[#allocation2 + $0x3f0] sm:$0xf0]  ;;  %v12489_v12 = vld [vmem:[#allocation2 + $0x18] sm:$0xf] }
 0x4a7   :  { %4533 = vmatpush.bf16.msra.mxu3 %v13370_v48  ;;  %v12958_v13 = vor.u32 %v17725_v5, %v12957_v3  ;;  %v13789_v56 = vld [vmem:[#allocation2 + $0xa40] sm:$0xf]  ;;  %v17816_v3 = vld [vmem:[#allocation2 + $0x6c8] sm:$0xf0] }
 0x4a8   :  { %4543 = vmatpush.bf16.msra.mxu0 %v13942_v21  ;;  %v4289_v48 = vpop.f32.mrf.mxu0  ;;  %v4252_v21 = vpop.f32.mrf.mxu2 }
 0x4a9   :  { %4508 = vmatpush.bf16.msrb.mxu2 %v12486_v38  ;;  %v4290_v25 = vadd.f32 %v4289_v48, %v4277_v11  ;;  %v4278_v34 = vpop.f32.mrf.mxu3  ;;  %v13114_v38 = vor.u32 %v17764_v23, %v13113_v19  ;;  %v17621_v11 = vld [vmem:[#allocation2 + $0xb0] sm:$0xf0]  ;;  %v17712_v19 = vld [vmem:[#allocation2 + $0x388] sm:$0xf0]  ;;  %v13477_v21 = vld [vmem:[#allocation2 + $0x7d0] sm:$0xf] }
 0x4aa   :  { %4521 = vmatpush.bf16.msra.mxu1 %v12902_v40  ;;  %v13686_v40 = vor.u32 %v17907_v39, %v13685_v24  ;;  %v12542_v35 = vor.u32 %v17621_v11, %v12541_v2  ;;  %v17855_v23 = vld [vmem:[#allocation2 + $0x800] sm:$0xf0]  ;;  %v13893_v24 = vld [vmem:[#allocation2 + $0xb10] sm:$0xf]  ;;  %v17693_v34 = vld [vmem:[#allocation2 + $0x2f4] sm:$0xf] }
 0x4ab   :  { %4534 = vmatpush.bf16.msra.mxu3 %v13318_v41  ;;  %v13061_v41 = vld [vmem:[#allocation2 + $0x490] sm:$0xf]  ;;  %v13321_v11 = vld [vmem:[#allocation2 + $0x698] sm:$0xf] }
 0x4ac   :  { %4544 = vmatpush.bf16.msra.mxu0 %v13890_v53  ;;  %4509 = vmatmul.bf16.vlgmr.msrb.gmra.mxu2 %v19695_v22  ;;  %v14102_v53 = vor.u32 %v18011_v33, %v14101_v31  ;;  %v18063_v31 = vld [vmem:[#allocation2 + $0xe80] sm:$0xf0]  ;;  %v12490_v33 = vor.u32 %v17608_v15, %v12489_v12  ;;  %v17654_v12 = vld [vmem:[#allocation2 + $0x1bc] sm:$0xf]  ;;  %v13271_v15 = vld [vmem:[#allocation2 + $0x664] sm:$0xf0] }
 0x4ad   :  { %4557 = vmatpush.bf16.msra.mxu2 %v14306_v42  ;;  %4522 = vmatmul.bf16.vlgmr.msra.gmra.mxu1 %v19699_v28  ;;  %v17751_v42 = vld [vmem:[#allocation2 + $0x4c0] sm:$0xf0] }
 0x4ae   :  { %4566 = vmatpush.bf16.msrb.mxu1 %v12854_v43  ;;  %4535 = vmatmul.bf16.vlgmr.msra.gmra.mxu3 %v19707_v18  ;;  %v13633_v43 = vld [vmem:[#allocation2 + $0x908] sm:$0xf]  ;;  %v13062_v47 = vor.u32 %v17751_v42, %v13061_v41 }
 0x4af   :  { %4579 = vmatpush.bf16.msrb.mxu3 %v13270_v45  ;;  %v12646_v45 = vor.u32 %v17647_v10, %v12645_v7  ;;  %v13634_v49 = vor.u32 %v17894_v26, %v13633_v43  ;;  %v13425_v41 = vld [vmem:[#allocation2 + $0x768] sm:$0xf]  ;;  %v17946_v26 = vld [vmem:[#allocation2 + $0xad8] sm:$0xf0] }
 0x4b0   :  { %4545 = vmatpush.bf16.msra.mxu0 %v13838_v55  ;;  %v4291_v54 = vpop.f32.mrf.mxu0  ;;  %v14050_v55 = vor.u32 %v17998_v37, %v14049_v44  ;;  %v4302_v60 = vpop.f32.mrf.mxu2  ;;  %v13841_v42 = vld [vmem:[#allocation2 + $0xaa8] sm:$0xf]  ;;  %v18050_v37 = vld [vmem:[#allocation2 + $0xe18] sm:$0xf0] }
 0x4b1   :  { %4558 = vmatpush.bf16.msra.mxu2 %v14254_v29  ;;  %v17881_v29 = vld [vmem:[#allocation2 + $0x8d0] sm:$0xf0]  ;;  %v14257_v44 = vld [vmem:[#allocation2 + $0xde8] sm:$0xf]  ;;  %v13842_v51 = vor.u32 %v17946_v26, %v13841_v42  ;;  %v13373_v54 = vld [vmem:[#allocation2 + $0x700] sm:$0xf] }
 0x4b2   :  { %4567 = vmatpush.bf16.msrb.mxu1 %v12802_v58  ;;  %v13997_v58 = vld [vmem:[#allocation2 + $0xbe0] sm:$0xf]  ;;  %v13582_v1 = vor.u32 %v17881_v29, %v13581_v57  ;;  %v14258_v52 = vor.u32 %v18050_v37, %v14257_v44 }
 0x4b3   :  { %4580 = vmatpush.bf16.msrb.mxu3 %v13218_v62  ;;  %v19749_v62 = vadd.f32 %v4302_v60, %v4290_v25  ;;  %v13998_v4 = vor.u32 %v17985_v59, %v13997_v58  ;;  %v17959_v25 = vld [vmem:[#allocation2 + $0xb40] sm:$0xf0]  ;;  %v17933_v59 = vld [vmem:[#allocation2 + $0xa70] sm:$0xf0]  ;;  %v14205_v60 = vld [vmem:[#allocation2 + $0xd80] sm:$0xf] }
 0x4b4   :  { %4546 = vmatpush.bf16.msra.mxu0 %v13786_v6  ;;  %v13529_v6 = vld [vmem:[#allocation2 + $0x838] sm:$0xf]  ;;  %v13894_v7 = vor.u32 %v17959_v25, %v13893_v24  ;;  %v14103_v24 = vld [vmem:[#allocation2 + $0xce4] sm:$0xf0]  ;;  %v13635_v42 = vld [vmem:[#allocation2 + $0x93c] sm:$0xf0] }
 0x4b5   :  { %4559 = vmatpush.bf16.msra.mxu2 %v14202_v9  ;;  %v13945_v9 = vld [vmem:[#allocation2 + $0xb78] sm:$0xf]  ;;  %v14051_v26 = vld [vmem:[#allocation2 + $0xc7c] sm:$0xf0] }
 0x4b6   :  { %4568 = vmatpush.bf16.msrb.mxu1 %v12750_v32  ;;  %v17972_v32 = vld [vmem:[#allocation2 + $0xba8] sm:$0xf0] }
 0x4b7   :  { %4581 = vmatpush.bf16.msrb.mxu3 %v13166_v14  ;;  %v13530_v14 = vor.u32 %v17868_v8, %v13529_v6  ;;  %v13946_v48 = vor.u32 %v17972_v32, %v13945_v9  ;;  %v13737_v6 = vld [vmem:[#allocation2 + $0x9d8] sm:$0xf]  ;;  %v17920_v8 = vld [vmem:[#allocation2 + $0xa08] sm:$0xf0] }
 0x4b8   :  { %4547 = vmatpush.bf16.msra.mxu0 %v13734_v27  ;;  %v14309_v27 = vld [vmem:[#allocation2 + $0xe50] sm:$0xf]  ;;  %v14153_v9 = vld [vmem:[#allocation2 + $0xd18] sm:$0xf] }
 0x4b9   :  { %4560 = vmatpush.bf16.msra.mxu2 %v14150_v20  ;;  %v12855_v20 = vld [vmem:[#allocation2 + $0x324] sm:$0xf0]  ;;  %v14310_v10 = vor.u32 %v18063_v31, %v14309_v27  ;;  %v13738_v27 = vor.u32 %v17920_v8, %v13737_v6  ;;  %v17862_v6 = vld [vmem:[#allocation2 + $0x83c] sm:$0xf] }
 0x4ba   :  { %4569 = vmatpush.bf16.msrb.mxu1 %v12698_v36  ;;  %v4315_v39 = vpop.f32.mrf.mxu1  ;;  %v4304_v36 = vpop.f32.mrf.mxu2  ;;  %v12858_v43 = vor.u32 %v17693_v34, %v12855_v20  ;;  %v17641_v20 = vld [vmem:[#allocation2 + $0x154] sm:$0xf] }
 0x4bb   :  { %4582 = vmatpush.bf16.msrb.mxu3 %v13114_v38  ;;  %4548 = vmatmul.bf16.vlgmr.msra.gmra.mxu0 %v19703_v30  ;;  %v12906_v38 = vor.u32 %v17712_v19, %v12905_v17  ;;  %v17901_v17 = vld [vmem:[#allocation2 + $0x974] sm:$0xf]  ;;  %v12647_v36 = vld [vmem:[#allocation2 + $0x184] sm:$0xf0] }
 0x4bc   :  { %4592 = vmatpush.bf16.msrb.mxu0 %v13686_v40  ;;  %14340 = vmatmul.msk.bf16.vlgmr.msra.gmra.mxu2 %vm713_vm7, %v19715_v16  ;;  %v13478_v40 = vor.u32 %v17855_v23, %v13477_v21  ;;  %v13687_v21 = vld [vmem:[#allocation2 + $0x9a4] sm:$0xf0]  ;;  %v18005_v23 = vld [vmem:[#allocation2 + $0xcb4] sm:$0xf]  ;;  %v12650_v37 = vor.u32 %v17641_v20, %v12647_v36 }
 0x4bd   :  { %4605 = vmatpush.bf16.msrb.mxu2 %v14102_v53  ;;  %v17842_v53 = vld [vmem:[#allocation2 + $0x798] sm:$0xf0] }
 0x4be   :  { %4570 = vmatpush.bf16.msrb.mxu1 %v12646_v45  ;;  %v17680_v45 = vld [vmem:[#allocation2 + $0x28c] sm:$0xf] }
 0x4bf   :  { %4583 = vmatpush.bf16.msrb.mxu3 %v13062_v47  ;;  %v12803_v47 = vld [vmem:[#allocation2 + $0x2bc] sm:$0xf0] }
 0x4c0   :  { %4593 = vmatpush.bf16.msrb.mxu0 %v13634_v49  ;;  %v13426_v49 = vor.u32 %v17842_v53, %v13425_v41  ;;  %v12806_v58 = vor.u32 %v17680_v45, %v12803_v47  ;;  %v17888_v41 = vld [vmem:[#allocation2 + $0x90c] sm:$0xf] }
 0x4c1   :  { %4606 = vmatpush.bf16.msrb.mxu2 %v14050_v55  ;;  %v4328_v50 = vpop.f32.mrf.mxu3  ;;  %v17829_v55 = vld [vmem:[#allocation2 + $0x730] sm:$0xf0] }
 0x4c2   :  { %4571 = vmatpush.bf16.msrb.mxu1 %v12594_v61  ;;  %v4317_v57 = vpop.f32.mrf.mxu1  ;;  %v4329_v29 = vadd.f32 %v4328_v50, %v4315_v39  ;;  %v18037_v61 = vld [vmem:[#allocation2 + $0xdb0] sm:$0xf0]  ;;  %v13374_v2 = vor.u32 %v17829_v55, %v13373_v54  ;;  %v12595_v50 = vld [vmem:[#allocation2 + $0x11c] sm:$0xf0]  ;;  %v17771_v54 = vld [vmem:[#allocation2 + $0x564] sm:$0xf] }
 0x4c3   :  { %4584 = vmatpush.bf16.msrb.mxu3 %v13010_v0  ;;  %v17667_v0 = vld [vmem:[#allocation2 + $0x224] sm:$0xf]  ;;  %v14206_v5 = vor.u32 %v18037_v61, %v14205_v60  ;;  %v13167_v55 = vld [vmem:[#allocation2 + $0x594] sm:$0xf0] }
 0x4c4   :  { %4594 = vmatpush.bf16.msrb.mxu0 %v13582_v1  ;;  %v12751_v1 = vld [vmem:[#allocation2 + $0x254] sm:$0xf0] }
 0x4c5   :  { %4607 = vmatpush.bf16.msrb.mxu2 %v13998_v4  ;;  %v13790_v4 = vor.u32 %v17933_v59, %v13789_v56  ;;  %v12754_v32 = vor.u32 %v17667_v0, %v12751_v1  ;;  %v17875_v56 = vld [vmem:[#allocation2 + $0x8a4] sm:$0xf]  ;;  %v13999_v60 = vld [vmem:[#allocation2 + $0xc14] sm:$0xf0]  ;;  %v13170_v0 = vor.u32 %v17771_v54, %v13167_v55 }
 0x4c6   :  { %4572 = vmatpush.bf16.msrb.mxu1 %v12542_v35  ;;  %v18024_v35 = vld [vmem:[#allocation2 + $0xd48] sm:$0xf0]  ;;  %v17979_v59 = vld [vmem:[#allocation2 + $0xbe4] sm:$0xf]  ;;  %v13375_v55 = vld [vmem:[#allocation2 + $0x734] sm:$0xf0] }
 0x4c7   :  { %4585 = vmatpush.bf16.msrb.mxu3 %v12958_v13  ;;  %v12699_v13 = vld [vmem:[#allocation2 + $0x1ec] sm:$0xf0]  ;;  %v14154_v31 = vor.u32 %v18024_v35, %v14153_v9  ;;  %v17615_v1 = vld [vmem:[#allocation2 + $0x84] sm:$0xf] }
 0x4c8   :  { %4595 = vmatpush.bf16.msrb.mxu0 %v13530_v14  ;;  %v17797_v14 = vld [vmem:[#allocation2 + $0x634] sm:$0xf]  ;;  %v4341_v19 = vpop.f32.mrf.mxu0  ;;  %v13531_v9 = vld [vmem:[#allocation2 + $0x86c] sm:$0xf0] }
 0x4c9   :  { %4608 = vmatpush.bf16.msrb.mxu2 %v13946_v48  ;;  %v13322_v48 = vor.u32 %v17816_v3, %v13321_v11  ;;  %v4342_v39 = vadd.f32 %v4341_v19, %v4329_v29  ;;  %v4330_v25 = vpop.f32.mrf.mxu3  ;;  %v13274_v34 = vor.u32 %v17797_v14, %v13271_v15  ;;  %v14002_v3 = vor.u32 %v17979_v59, %v13999_v60  ;;  %v13947_v35 = vld [vmem:[#allocation2 + $0xbac] sm:$0xf0]  ;;  %v17602_v15 = vld [vmem:[#allocation2 + $0x1c] sm:$0xf]  ;;  %v14207_v59 = vld [vmem:[#allocation2 + $0xdb4] sm:$0xf0] }
 0x4ca   :  { %4573 = vmatpush.bf16.msrb.mxu1 %v12490_v33  ;;  %v12702_v33 = vor.u32 %v17654_v12, %v12699_v13  ;;  %v4367_v53 = vpop.f32.mrf.mxu1  ;;  %v13534_v19 = vor.u32 %v17862_v6, %v13531_v9  ;;  %v17953_v25 = vld [vmem:[#allocation2 + $0xb14] sm:$0xf]  ;;  %v13739_v6 = vld [vmem:[#allocation2 + $0xa0c] sm:$0xf0] }
 0x4cb   :  { %4586 = vmatpush.bf16.msrb.mxu3 %v12906_v38  ;;  %v13690_v38 = vor.u32 %v17901_v17, %v13687_v21  ;;  %v12491_v17 = vld [vmem:[#allocation2 + $0x4c] sm:$0xf0]  ;;  %v17745_v21 = vld [vmem:[#allocation2 + $0x494] sm:$0xf] }
 0x4cc   :  { %4596 = vmatpush.bf16.msrb.mxu0 %v13478_v40  ;;  %v14106_v40 = vor.u32 %v18005_v23, %v14103_v24  ;;  %v13063_v23 = vld [vmem:[#allocation2 + $0x4c4] sm:$0xf0]  ;;  %v17849_v24 = vld [vmem:[#allocation2 + $0x7d4] sm:$0xf]  ;;  %v14155_v9 = vld [vmem:[#allocation2 + $0xd4c] sm:$0xf0] }
 0x4cd   :  { %4609 = vmatpush.bf16.msrb.mxu2 %v13894_v7  ;;  %4574 = vmatmul.bf16.vlgmr.msrb.gmra.mxu1 %v19695_v22  ;;  %v17784_v7 = vld [vmem:[#allocation2 + $0x5cc] sm:$0xf]  ;;  %v13066_v20 = vor.u32 %v17745_v21, %v13063_v23 }
 0x4ce   :  { %4622 = vmatpush.bf16.msra.mxu1 %v14310_v10  ;;  %4587 = vmatmul.bf16.vlgmr.msrb.gmra.mxu3 %v19699_v28  ;;  %v13219_v10 = vld [vmem:[#allocation2 + $0x5fc] sm:$0xf0] }
 0x4cf   :  { %4631 = vmatpush.bf16.msra.mxu3 %v12858_v43  ;;  %v17992_v43 = vld [vmem:[#allocation2 + $0xc4c] sm:$0xf]  ;;  %v4354_v44 = vpop.f32.mrf.mxu2  ;;  %v13222_v47 = vor.u32 %v17784_v7, %v13219_v10  ;;  %v13011_v7 = vld [vmem:[#allocation2 + $0x45c] sm:$0xf0] }
 0x4d0   :  { %4597 = vmatpush.bf16.msrb.mxu0 %v13426_v49  ;;  %v4355_v45 = vadd.f32 %v4354_v44, %v4342_v39  ;;  %v17628_v49 = vld [vmem:[#allocation2 + $0xec] sm:$0xf]  ;;  %v4343_v57 = vpop.f32.mrf.mxu0  ;;  %v13479_v39 = vld [vmem:[#allocation2 + $0x804] sm:$0xf0]  ;;  %v14259_v44 = vld [vmem:[#allocation2 + $0xe1c] sm:$0xf0] }
 0x4d1   :  { %4610 = vmatpush.bf16.msrb.mxu2 %v13842_v51  ;;  %v13638_v51 = vor.u32 %v17888_v41, %v13635_v42  ;;  %v12598_v61 = vor.u32 %v17628_v49, %v12595_v50  ;;  %v13482_v36 = vor.u32 %v17849_v24, %v13479_v39  ;;  %v17836_v10 = vld [vmem:[#allocation2 + $0x76c] sm:$0xf]  ;;  %v17719_v50 = vld [vmem:[#allocation2 + $0x3c4] sm:$0xf]  ;;  %v13791_v57 = vld [vmem:[#allocation2 + $0xa74] sm:$0xf0] }
 0x4d2   :  { %4623 = vmatpush.bf16.msra.mxu1 %v14258_v52  ;;  %v14054_v52 = vor.u32 %v17992_v43, %v14051_v26  ;;  %v19756_v29 = vadd.f32 %v4367_v53, %v4355_v45  ;;  %v4369_v8 = vpop.f32.mrf.mxu1  ;;  %v13427_v53 = vld [vmem:[#allocation2 + $0x79c] sm:$0xf0]  ;;  %v17940_v42 = vld [vmem:[#allocation2 + $0xaac] sm:$0xf]  ;;  %v14109_v24 = vld [vmem:[#allocation2 + $0xcb8] sm:$0xf] }
 0x4d3   :  { %4632 = vmatpush.bf16.msra.mxu3 %v12806_v58  ;;  %v13583_v58 = vld [vmem:[#allocation2 + $0x8d4] sm:$0xf0]  ;;  %v13843_v43 = vld [vmem:[#allocation2 + $0xadc] sm:$0xf0]  ;;  %v18044_v26 = vld [vmem:[#allocation2 + $0xdec] sm:$0xf] }
 0x4d4   :  { %4598 = vmatpush.bf16.msrb.mxu0 %v13374_v2  ;;  %v12543_v2 = vld [vmem:[#allocation2 + $0xb4] sm:$0xf0]  ;;  %v13586_v11 = vor.u32 %v17875_v56, %v13583_v58  ;;  %v13846_v49 = vor.u32 %v17940_v42, %v13843_v43  ;;  %v14262_v54 = vor.u32 %v18044_v26, %v14259_v44  ;;  %v17927_v56 = vld [vmem:[#allocation2 + $0xa44] sm:$0xf]  ;;  %v18018_v8 = vld [vmem:[#allocation2 + $0xd1c] sm:$0xf] }
 0x4d5   :  { %4611 = vmatpush.bf16.msrb.mxu2 %v13790_v4  ;;  %v17758_v4 = vld [vmem:[#allocation2 + $0x4fc] sm:$0xf]  ;;  %v12546_v13 = vor.u32 %v17615_v1, %v12543_v2  ;;  %v18031_v58 = vld [vmem:[#allocation2 + $0xd84] sm:$0xf]  ;;  %v13794_v2 = vor.u32 %v17927_v56, %v13791_v57  ;;  %v18012_v39 = vld [vmem:[#allocation2 + $0xce8] sm:$0xf0] }
 0x4d6   :  { %4624 = vmatpush.bf16.msra.mxu1 %v14206_v5  ;;  %v13115_v5 = vld [vmem:[#allocation2 + $0x52c] sm:$0xf0]  ;;  %v17999_v26 = vld [vmem:[#allocation2 + $0xc80] sm:$0xf0]  ;;  %v13589_v56 = vld [vmem:[#allocation2 + $0x8a8] sm:$0xf] }
 0x4d7   :  { %4633 = vmatpush.bf16.msra.mxu3 %v12754_v32  ;;  %v17966_v32 = vld [vmem:[#allocation2 + $0xb7c] sm:$0xf]  ;;  %v4356_v12 = vpop.f32.mrf.mxu2  ;;  %v13118_v14 = vor.u32 %v17758_v4, %v13115_v5  ;;  %v14210_v5 = vor.u32 %v18031_v58, %v14207_v59  ;;  %v14057_v43 = vld [vmem:[#allocation2 + $0xc50] sm:$0xf]  ;;  %v14005_v59 = vld [vmem:[#allocation2 + $0xbe8] sm:$0xf] }
 0x4d8   :  { %4599 = vmatpush.bf16.msrb.mxu0 %v13322_v48  ;;  %v13950_v48 = vor.u32 %v17966_v32, %v13947_v35  ;;  %v17914_v4 = vld [vmem:[#allocation2 + $0x9dc] sm:$0xf]  ;;  %v12861_v32 = vld [vmem:[#allocation2 + $0x2f8] sm:$0xf]  ;;  %v17700_v35 = vld [vmem:[#allocation2 + $0x328] sm:$0xf0] }
 0x4d9   :  { %4612 = vmatpush.bf16.msrb.mxu2 %v13738_v27  ;;  %v13895_v27 = vld [vmem:[#allocation2 + $0xb44] sm:$0xf0]  ;;  %v13277_v12 = vld [vmem:[#allocation2 + $0x638] sm:$0xf]  ;;  %v13742_v23 = vor.u32 %v17914_v4, %v13739_v6  ;;  %v17882_v57 = vld [vmem:[#allocation2 + $0x8d8] sm:$0xf0] }
 0x4da   :  { %4625 = vmatpush.bf16.msra.mxu1 %v14154_v31  ;;  %v18057_v31 = vld [vmem:[#allocation2 + $0xe54] sm:$0xf]  ;;  %v12705_v4 = vld [vmem:[#allocation2 + $0x1c0] sm:$0xf] }
 0x4db   :  { %4634 = vmatpush.bf16.msra.mxu3 %v12702_v33  ;;  %4600 = vmatmul.bf16.vlgmr.msrb.gmra.mxu0 %v19707_v18  ;;  %v14311_v33 = vld [vmem:[#allocation2 + $0xe84] sm:$0xf0]  ;;  %v13121_v6 = vld [vmem:[#allocation2 + $0x500] sm:$0xf] }
 0x4dc   :  { %4644 = vmatpush.bf16.msra.mxu0 %v13274_v34  ;;  %4613 = vmatmul.bf16.vlgmr.msrb.gmra.mxu2 %v19703_v30  ;;  %v12494_v34 = vor.u32 %v17602_v15, %v12491_v17  ;;  %v14314_v41 = vor.u32 %v18057_v31, %v14311_v33  ;;  %v17804_v15 = vld [vmem:[#allocation2 + $0x668] sm:$0xf0]  ;;  %v13693_v17 = vld [vmem:[#allocation2 + $0x978] sm:$0xf]  ;;  %v14158_v31 = vor.u32 %v18018_v8, %v14155_v9  ;;  %v17765_v9 = vld [vmem:[#allocation2 + $0x530] sm:$0xf0] }
 0x4dd   :  { %4657 = vmatpush.bf16.msra.mxu2 %v13690_v38  ;;  %14341 = vmatmul.msk.bf16.vlgmr.msra.gmra.mxu1 %vm713_vm7, %v19715_v16  ;;  %v13898_v38 = vor.u32 %v17953_v25, %v13895_v27  ;;  %v12862_v33 = vor.u32 %v17700_v35, %v12861_v32  ;;  %v13537_v32 = vld [vmem:[#allocation2 + $0x840] sm:$0xf]  ;;  %v17869_v35 = vld [vmem:[#allocation2 + $0x870] sm:$0xf0] }
 0x4de   :  { %4670 = vmatpush.bf16.msrb.mxu1 %v14106_v40  ;;  %v17732_v40 = vld [vmem:[#allocation2 + $0x42c] sm:$0xf] }
 0x4df   :  { %4635 = vmatpush.bf16.msra.mxu3 %v12650_v37  ;;  %v13014_v37 = vor.u32 %v17732_v40, %v13011_v7  ;;  %v13225_v40 = vld [vmem:[#allocation2 + $0x5d0] sm:$0xf]  ;;  %v14110_v7 = vor.u32 %v18012_v39, %v14109_v24  ;;  %v17752_v39 = vld [vmem:[#allocation2 + $0x4c8] sm:$0xf0] }
 0x4e0   :  { %4645 = vmatpush.bf16.msra.mxu0 %v13222_v47  ;;  %v13430_v47 = vor.u32 %v17836_v10, %v13427_v53  ;;  %v17791_v10 = vld [vmem:[#allocation2 + $0x600] sm:$0xf0] }
 0x4e1   :  { %4658 = vmatpush.bf16.msra.mxu2 %v13638_v51  ;;  %v4380_v45 = vpop.f32.mrf.mxu3  ;;  %v12959_v51 = vld [vmem:[#allocation2 + $0x3f4] sm:$0xf0]  ;;  %v17895_v53 = vld [vmem:[#allocation2 + $0x940] sm:$0xf0] }
 0x4e2   :  { %4671 = vmatpush.bf16.msrb.mxu1 %v14054_v52  ;;  %v17823_v52 = vld [vmem:[#allocation2 + $0x704] sm:$0xf]  ;;  %v12962_v60 = vor.u32 %v17719_v50, %v12959_v51  ;;  %v17674_v50 = vld [vmem:[#allocation2 + $0x258] sm:$0xf0]  ;;  %v13173_v51 = vld [vmem:[#allocation2 + $0x568] sm:$0xf] }
 0x4e3   :  { %4636 = vmatpush.bf16.msra.mxu3 %v12598_v61  ;;  %v17706_v61 = vld [vmem:[#allocation2 + $0x35c] sm:$0xf]  ;;  %v13378_v1 = vor.u32 %v17823_v52, %v13375_v55  ;;  %v14058_v52 = vor.u32 %v17999_v26, %v14057_v43  ;;  %v17843_v43 = vld [vmem:[#allocation2 + $0x7a0] sm:$0xf0]  ;;  %v13849_v26 = vld [vmem:[#allocation2 + $0xab0] sm:$0xf] }
 0x4e4   :  { %4646 = vmatpush.bf16.msra.mxu0 %v13170_v0  ;;  %v12907_v0 = vld [vmem:[#allocation2 + $0x38c] sm:$0xf0]  ;;  %v17778_v55 = vld [vmem:[#allocation2 + $0x598] sm:$0xf0] }
 0x4e5   :  { %4659 = vmatpush.bf16.msra.mxu2 %v13586_v11  ;;  %v17810_v11 = vld [vmem:[#allocation2 + $0x69c] sm:$0xf] }
 0x4e6   :  { %4672 = vmatpush.bf16.msrb.mxu1 %v14002_v3  ;;  %v13323_v3 = vld [vmem:[#allocation2 + $0x6cc] sm:$0xf0] }
 0x4e7   :  { %4637 = vmatpush.bf16.msra.mxu3 %v12546_v13  ;;  %v12910_v13 = vor.u32 %v17706_v61, %v12907_v0  ;;  %v13326_v21 = vor.u32 %v17810_v11, %v13323_v3  ;;  %v13174_v11 = vor.u32 %v17778_v55, %v13173_v51  ;;  %v13590_v3 = vor.u32 %v17882_v57, %v13589_v56  ;;  %v12965_v51 = vld [vmem:[#allocation2 + $0x3c8] sm:$0xf]  ;;  %v17830_v56 = vld [vmem:[#allocation2 + $0x738] sm:$0xf0] }
 0x4e8   :  { %4647 = vmatpush.bf16.msra.mxu0 %v13118_v14  ;;  %v13381_v55 = vld [vmem:[#allocation2 + $0x708] sm:$0xf] }
 0x4e9   :  { %4660 = vmatpush.bf16.msra.mxu2 %v13534_v19  ;;  %v4382_v14 = vpop.f32.mrf.mxu3  ;;  %v17908_v19 = vld [vmem:[#allocation2 + $0x9a8] sm:$0xf0]  ;;  %v13797_v57 = vld [vmem:[#allocation2 + $0xa48] sm:$0xf] }
 0x4ea   :  { %4673 = vmatpush.bf16.msrb.mxu1 %v13950_v48  ;;  %v4393_v48 = vpop.f32.mrf.mxu0  ;;  %v4419_v27 = vpop.f32.mrf.mxu1 }
 0x4eb   :  { %4638 = vmatpush.bf16.msra.mxu3 %v12494_v34  ;;  %v4394_v25 = vadd.f32 %v4393_v48, %v4380_v45  ;;  %v13278_v34 = vor.u32 %v17804_v15, %v13277_v12  ;;  %v13226_v45 = vor.u32 %v17791_v10, %v13225_v40  ;;  %v13953_v12 = vld [vmem:[#allocation2 + $0xb80] sm:$0xf]  ;;  %v12653_v48 = vld [vmem:[#allocation2 + $0x158] sm:$0xf]  ;;  %v12601_v40 = vld [vmem:[#allocation2 + $0xf0] sm:$0xf] }
 0x4ec   :  { %4648 = vmatpush.bf16.msra.mxu0 %v13066_v20  ;;  %v13694_v20 = vor.u32 %v17908_v19, %v13693_v17  ;;  %v13122_v17 = vor.u32 %v17765_v9, %v13121_v6  ;;  %v13538_v19 = vor.u32 %v17869_v35, %v13537_v32  ;;  %v13017_v10 = vld [vmem:[#allocation2 + $0x430] sm:$0xf]  ;;  %v17817_v6 = vld [vmem:[#allocation2 + $0x6d0] sm:$0xf0]  ;;  %v14317_v35 = vld [vmem:[#allocation2 + $0xe58] sm:$0xf] }
 0x4ed   :  { %4661 = vmatpush.bf16.msra.mxu2 %v13482_v36  ;;  %v12809_v36 = vld [vmem:[#allocation2 + $0x290] sm:$0xf]  ;;  %v17921_v9 = vld [vmem:[#allocation2 + $0xa10] sm:$0xf0] }
 0x4ee   :  { %4674 = vmatpush.bf16.msrb.mxu1 %v13898_v38  ;;  %4639 = vmatmul.bf16.vlgmr.msra.gmra.mxu3 %v19695_v22  ;;  %v17687_v38 = vld [vmem:[#allocation2 + $0x2c0] sm:$0xf0] }
 0x4ef   :  { %4687 = vmatpush.bf16.msrb.mxu3 %v14314_v41  ;;  %v13641_v41 = vld [vmem:[#allocation2 + $0x910] sm:$0xf]  ;;  %v4406_v42 = vpop.f32.mrf.mxu2 }
 0x4f0   :  { %4649 = vmatpush.bf16.msra.mxu0 %v13014_v37  ;;  %v4407_v44 = vadd.f32 %v4406_v42, %v4394_v25  ;;  %v12810_v37 = vor.u32 %v17687_v38, %v12809_v36  ;;  %v13485_v25 = vld [vmem:[#allocation2 + $0x7d8] sm:$0xf]  ;;  %v13433_v42 = vld [vmem:[#allocation2 + $0x770] sm:$0xf] }
 0x4f1   :  { %4662 = vmatpush.bf16.msra.mxu2 %v13430_v47  ;;  %v13642_v47 = vor.u32 %v17895_v53, %v13641_v41  ;;  %v4432_v0 = vpop.f32.mrf.mxu3  ;;  %v17739_v53 = vld [vmem:[#allocation2 + $0x460] sm:$0xf0] }
 0x4f2   :  { %4675 = vmatpush.bf16.msrb.mxu1 %v13846_v49  ;;  %v12757_v49 = vld [vmem:[#allocation2 + $0x228] sm:$0xf]  ;;  %v4395_v58 = vpop.f32.mrf.mxu0  ;;  %v4421_v61 = vpop.f32.mrf.mxu1 }
 0x4f3   :  { %4688 = vmatpush.bf16.msrb.mxu3 %v14262_v54  ;;  %v4420_v54 = vadd.f32 %v4419_v27, %v4407_v44  ;;  %v17856_v27 = vld [vmem:[#allocation2 + $0x808] sm:$0xf0]  ;;  %v17947_v44 = vld [vmem:[#allocation2 + $0xae0] sm:$0xf0]  ;;  %v17934_v58 = vld [vmem:[#allocation2 + $0xa78] sm:$0xf0] }
 0x4f4   :  { %4650 = vmatpush.bf16.msra.mxu0 %v12962_v60  ;;  %v17986_v60 = vld [vmem:[#allocation2 + $0xc18] sm:$0xf0]  ;;  %v13486_v38 = vor.u32 %v17856_v27, %v13485_v25  ;;  %v17609_v61 = vld [vmem:[#allocation2 + $0x50] sm:$0xf0] }
 0x4f5   :  { %4663 = vmatpush.bf16.msra.mxu2 %v13378_v1  ;;  %v12758_v1 = vor.u32 %v17674_v50, %v12757_v49  ;;  %v14006_v8 = vor.u32 %v17986_v60, %v14005_v59  ;;  %v12549_v49 = vld [vmem:[#allocation2 + $0x88] sm:$0xf]  ;;  %v17622_v50 = vld [vmem:[#allocation2 + $0xb8] sm:$0xf0]  ;;  %v12497_v60 = vld [vmem:[#allocation2 + $0x20] sm:$0xf] }
 0x4f6   :  { %4676 = vmatpush.bf16.msrb.mxu1 %v13794_v2  ;;  %v19765_v2 = vadd.f32 %v4432_v0, %v4420_v54  ;;  %v17726_v54 = vld [vmem:[#allocation2 + $0x3f8] sm:$0xf0]  ;;  %v12550_v59 = vor.u32 %v17622_v50, %v12549_v49  ;;  %v14213_v49 = vld [vmem:[#allocation2 + $0xd88] sm:$0xf] }
 0x4f7   :  { %4689 = vmatpush.bf16.msrb.mxu3 %v14210_v5  ;;  %v17661_v5 = vld [vmem:[#allocation2 + $0x1f0] sm:$0xf0]  ;;  %v4408_v14 = vpop.f32.mrf.mxu2  ;;  %v12966_v0 = vor.u32 %v17726_v54, %v12965_v51  ;;  %v18038_v50 = vld [vmem:[#allocation2 + $0xdb8] sm:$0xf0]  ;;  %v17668_v51 = vld [vmem:[#allocation2 + $0x22c] sm:$0xf] }
 0x4f8   :  { %4651 = vmatpush.bf16.msra.mxu0 %v12910_v13  ;;  %v17973_v13 = vld [vmem:[#allocation2 + $0xbb0] sm:$0xf0]  ;;  %v12706_v15 = vor.u32 %v17661_v5, %v12705_v4  ;;  %v13329_v4 = vld [vmem:[#allocation2 + $0x6a0] sm:$0xf]  ;;  %v13798_v5 = vor.u32 %v17934_v58, %v13797_v57  ;;  %v12498_v14 = vor.u32 %v17609_v61, %v12497_v60  ;;  %v17876_v57 = vld [vmem:[#allocation2 + $0x8ac] sm:$0xf]  ;;  %v14214_v61 = vor.u32 %v18038_v50, %v14213_v49 }
 0x4f9   :  { %4664 = vmatpush.bf16.msra.mxu2 %v13326_v21  ;;  %v17648_v21 = vld [vmem:[#allocation2 + $0x188] sm:$0xf0]  ;;  %v13954_v24 = vor.u32 %v17973_v13, %v13953_v12  ;;  %v17694_v13 = vld [vmem:[#allocation2 + $0x2fc] sm:$0xf]  ;;  %v12759_v54 = vld [vmem:[#allocation2 + $0x25c] sm:$0xf0] }
 0x4fa   :  { %4677 = vmatpush.bf16.msrb.mxu1 %v13742_v23  ;;  %v13069_v23 = vld [vmem:[#allocation2 + $0x498] sm:$0xf]  ;;  %v18064_v12 = vld [vmem:[#allocation2 + $0xe88] sm:$0xf0]  ;;  %v13591_v58 = vld [vmem:[#allocation2 + $0x8dc] sm:$0xf0] }
 0x4fb   :  { %4690 = vmatpush.bf16.msrb.mxu3 %v14158_v31  ;;  %4652 = vmatmul.bf16.vlgmr.msra.gmra.mxu0 %v19699_v28  ;;  %v13901_v31 = vld [vmem:[#allocation2 + $0xb18] sm:$0xf]  ;;  %v13070_v36 = vor.u32 %v17752_v39, %v13069_v23  ;;  %v17902_v23 = vld [vmem:[#allocation2 + $0x97c] sm:$0xf]  ;;  %v14318_v27 = vor.u32 %v18064_v12, %v14317_v35  ;;  %v17863_v35 = vld [vmem:[#allocation2 + $0x844] sm:$0xf] }
 0x4fc   :  { %4696 = vmatpush.bf16.msrb.mxu0 %v12862_v33  ;;  %4665 = vmatmul.bf16.vlgmr.msra.gmra.mxu2 %v19707_v18  ;;  %v17960_v33 = vld [vmem:[#allocation2 + $0xb48] sm:$0xf0]  ;;  %v13539_v12 = vld [vmem:[#allocation2 + $0x874] sm:$0xf0]  ;;  %v14007_v49 = vld [vmem:[#allocation2 + $0xc1c] sm:$0xf0] }
 0x4fd   :  { %4709 = vmatpush.bf16.msrb.mxu2 %v13278_v34  ;;  %4678 = vmatmul.bf16.vlgmr.msrb.gmra.mxu1 %v19703_v30  ;;  %v12654_v34 = vor.u32 %v17648_v21, %v12653_v48  ;;  %v13902_v41 = vor.u32 %v17960_v33, %v13901_v31  ;;  %v13330_v21 = vor.u32 %v17817_v6, %v13329_v4  ;;  %v18025_v4 = vld [vmem:[#allocation2 + $0xd50] sm:$0xf0]  ;;  %v12707_v6 = vld [vmem:[#allocation2 + $0x1f4] sm:$0xf0] }
 0x4fe   :  { %4722 = vmatpush.bf16.msra.mxu1 %v13694_v20  ;;  %14342 = vmatmul.msk.bf16.vlgmr.msrb.gmra.mxu3 %vm713_vm7, %v19715_v16  ;;  %v4434_v20 = vpop.f32.mrf.mxu3 }
 0x4ff   :  { %4735 = vmatpush.bf16.msra.mxu3 %v14110_v7  ;;  %v17635_v7 = vld [vmem:[#allocation2 + $0x120] sm:$0xf0] }
 0x500   :  { %4697 = vmatpush.bf16.msrb.mxu0 %v12810_v37  ;;  %v12602_v37 = vor.u32 %v17635_v7, %v12601_v40  ;;  %v18051_v20 = vld [vmem:[#allocation2 + $0xe20] sm:$0xf0]  ;;  %v12811_v40 = vld [vmem:[#allocation2 + $0x2c4] sm:$0xf0]  ;;  %v17785_v7 = vld [vmem:[#allocation2 + $0x5d4] sm:$0xf] }
 0x501   :  { %4710 = vmatpush.bf16.msrb.mxu2 %v13226_v45  ;;  %v13018_v45 = vor.u32 %v17739_v53, %v13017_v10  ;;  %v13227_v10 = vld [vmem:[#allocation2 + $0x604] sm:$0xf0] }
 0x502   :  { %4723 = vmatpush.bf16.msra.mxu1 %v13642_v47  ;;  %v13434_v47 = vor.u32 %v17843_v43, %v13433_v42  ;;  %v13643_v53 = vld [vmem:[#allocation2 + $0x944] sm:$0xf0] }
 0x503   :  { %4736 = vmatpush.bf16.msra.mxu3 %v14058_v52  ;;  %v13850_v52 = vor.u32 %v17947_v44, %v13849_v26 }
 0x504   :  { %4698 = vmatpush.bf16.msrb.mxu0 %v12758_v1  ;;  %v13382_v1 = vor.u32 %v17830_v56, %v13381_v55  ;;  %v17772_v55 = vld [vmem:[#allocation2 + $0x56c] sm:$0xf]  ;;  %v13175_v56 = vld [vmem:[#allocation2 + $0x59c] sm:$0xf0] }
 0x505   :  { %4711 = vmatpush.bf16.msrb.mxu2 %v13174_v11  ;;  %v12913_v11 = vld [vmem:[#allocation2 + $0x360] sm:$0xf] }
 0x506   :  { %4724 = vmatpush.bf16.msra.mxu1 %v13590_v3  ;;  %v17713_v3 = vld [vmem:[#allocation2 + $0x390] sm:$0xf0] }
 0x507   :  { %4737 = vmatpush.bf16.msra.mxu3 %v14006_v8  ;;  %v13745_v8 = vld [vmem:[#allocation2 + $0x9e0] sm:$0xf]  ;;  %v12914_v48 = vor.u32 %v17713_v3, %v12913_v11  ;;  %v13178_v11 = vor.u32 %v17772_v55, %v13175_v56 }
 0x508   :  { %4699 = vmatpush.bf16.msrb.mxu0 %v12706_v15  ;;  %v4445_v32 = vpop.f32.mrf.mxu0  ;;  %v12863_v15 = vld [vmem:[#allocation2 + $0x32c] sm:$0xf0]  ;;  %v13746_v25 = vor.u32 %v17921_v9, %v13745_v8  ;;  %v13594_v8 = vor.u32 %v17876_v57, %v13591_v58  ;;  %v17759_v9 = vld [vmem:[#allocation2 + $0x504] sm:$0xf]  ;;  %v17720_v57 = vld [vmem:[#allocation2 + $0x3cc] sm:$0xf] }
 0x509   :  { %4712 = vmatpush.bf16.msrb.mxu2 %v13122_v17  ;;  %v17798_v17 = vld [vmem:[#allocation2 + $0x63c] sm:$0xf]  ;;  %v12866_v31 = vor.u32 %v17694_v13, %v12863_v15  ;;  %v12967_v58 = vld [vmem:[#allocation2 + $0x3fc] sm:$0xf0] }
 0x50a   :  { %4725 = vmatpush.bf16.msra.mxu1 %v13538_v19  ;;  %v13279_v19 = vld [vmem:[#allocation2 + $0x66c] sm:$0xf0]  ;;  %v4471_v39 = vpop.f32.mrf.mxu1  ;;  %v18006_v13 = vld [vmem:[#allocation2 + $0xcbc] sm:$0xf] }
 0x50b   :  { %4738 = vmatpush.bf16.msra.mxu3 %v13954_v24  ;;  %v13695_v24 = vld [vmem:[#allocation2 + $0x9ac] sm:$0xf0]  ;;  %v13282_v33 = vor.u32 %v17798_v17, %v13279_v19 }
 0x50c   :  { %4700 = vmatpush.bf16.msrb.mxu0 %v12654_v34  ;;  %v14265_v34 = vld [vmem:[#allocation2 + $0xdf0] sm:$0xf] }
 0x50d   :  { %4713 = vmatpush.bf16.msrb.mxu2 %v13070_v36  ;;  %v17681_v36 = vld [vmem:[#allocation2 + $0x294] sm:$0xf]  ;;  %v14266_v42 = vor.u32 %v18051_v20, %v14265_v34  ;;  %v17850_v34 = vld [vmem:[#allocation2 + $0x7dc] sm:$0xf] }
 0x50e   :  { %4726 = vmatpush.bf16.msra.mxu1 %v13486_v38  ;;  %v13698_v38 = vor.u32 %v17902_v23, %v13695_v24  ;;  %v12814_v44 = vor.u32 %v17681_v36, %v12811_v40  ;;  %v17642_v23 = vld [vmem:[#allocation2 + $0x15c] sm:$0xf]  ;;  %v12655_v24 = vld [vmem:[#allocation2 + $0x18c] sm:$0xf0]  ;;  %v14059_v40 = vld [vmem:[#allocation2 + $0xc84] sm:$0xf0] }
 0x50f   :  { %4739 = vmatpush.bf16.msra.mxu3 %v13902_v41  ;;  %v17889_v41 = vld [vmem:[#allocation2 + $0x914] sm:$0xf]  ;;  %v4458_v43 = vpop.f32.mrf.mxu2  ;;  %v13487_v36 = vld [vmem:[#allocation2 + $0x80c] sm:$0xf0] }
 0x510   :  { %4701 = vmatpush.bf16.msrb.mxu0 %v12602_v37  ;;  %v13230_v37 = vor.u32 %v17785_v7, %v13227_v10  ;;  %v12658_v7 = vor.u32 %v17642_v23, %v12655_v24 }
 0x511   :  { %4714 = vmatpush.bf16.msrb.mxu2 %v13018_v45  ;;  %v4484_v26 = vpop.f32.mrf.mxu3  ;;  %v4447_v45 = vpop.f32.mrf.mxu0 }
 0x512   :  { %4727 = vmatpush.bf16.msra.mxu1 %v13434_v47  ;;  %v4459_v47 = vadd.f32 %v4458_v43, %v4445_v32  ;;  %v4473_v60 = vpop.f32.mrf.mxu1  ;;  %v13123_v32 = vld [vmem:[#allocation2 + $0x534] sm:$0xf0]  ;;  %v13435_v45 = vld [vmem:[#allocation2 + $0x7a4] sm:$0xf0] }
 0x513   :  { %4740 = vmatpush.bf16.msra.mxu3 %v13850_v52  ;;  %v13646_v52 = vor.u32 %v17889_v41, %v13643_v53  ;;  %v17629_v41 = vld [vmem:[#allocation2 + $0xf4] sm:$0xf]  ;;  %v12603_v53 = vld [vmem:[#allocation2 + $0x124] sm:$0xf0] }
 0x514   :  { %4702 = vmatpush.bf16.msrb.mxu0 %v12550_v59  ;;  %v4472_v59 = vadd.f32 %v4471_v39, %v4459_v47  ;;  %v13542_v39 = vor.u32 %v17863_v35, %v13539_v12  ;;  %v17980_v47 = vld [vmem:[#allocation2 + $0xbec] sm:$0xf]  ;;  %v12606_v50 = vor.u32 %v17629_v41, %v12603_v53  ;;  %v17811_v35 = vld [vmem:[#allocation2 + $0x6a4] sm:$0xf]  ;;  %v13331_v12 = vld [vmem:[#allocation2 + $0x6d4] sm:$0xf0] }
 0x515   :  { %4715 = vmatpush.bf16.msrb.mxu2 %v12966_v0  ;;  %v14161_v0 = vld [vmem:[#allocation2 + $0xd20] sm:$0xf]  ;;  %v14010_v56 = vor.u32 %v17980_v47, %v14007_v49  ;;  %v12817_v41 = vld [vmem:[#allocation2 + $0x298] sm:$0xf]  ;;  %v17688_v53 = vld [vmem:[#allocation2 + $0x2c8] sm:$0xf0] }
 0x516   :  { %4728 = vmatpush.bf16.msra.mxu1 %v13382_v1  ;;  %v12762_v1 = vor.u32 %v17668_v51, %v12759_v54  ;;  %v4485_v3 = vadd.f32 %v4484_v26, %v4472_v59  ;;  %v14162_v15 = vor.u32 %v18025_v4, %v14161_v0  ;;  %v17733_v26 = vld [vmem:[#allocation2 + $0x434] sm:$0xf]  ;;  %v12551_v54 = vld [vmem:[#allocation2 + $0xbc] sm:$0xf0]  ;;  %v17824_v59 = vld [vmem:[#allocation2 + $0x70c] sm:$0xf]  ;;  %v12818_v49 = vor.u32 %v17688_v53, %v12817_v41 }
 0x517   :  { %4741 = vmatpush.bf16.msra.mxu3 %v13798_v5  ;;  %v17655_v5 = vld [vmem:[#allocation2 + $0x1c4] sm:$0xf]  ;;  %v4460_v17 = vpop.f32.mrf.mxu2  ;;  %v14065_v41 = vld [vmem:[#allocation2 + $0xc58] sm:$0xf]  ;;  %v18000_v53 = vld [vmem:[#allocation2 + $0xc88] sm:$0xf0] }
 0x518   :  { %4703 = vmatpush.bf16.msrb.mxu0 %v12498_v14  ;;  %v14111_v14 = vld [vmem:[#allocation2 + $0xcec] sm:$0xf0]  ;;  %v17967_v0 = vld [vmem:[#allocation2 + $0xb84] sm:$0xf] }
 0x519   :  { %4716 = vmatpush.bf16.msrb.mxu2 %v12914_v48  ;;  %v4486_v19 = vpop.f32.mrf.mxu3  ;;  %v12710_v48 = vor.u32 %v17655_v5, %v12707_v6  ;;  %v17603_v4 = vld [vmem:[#allocation2 + $0x24] sm:$0xf]  ;;  %v12499_v5 = vld [vmem:[#allocation2 + $0x54] sm:$0xf0]  ;;  %v14319_v17 = vld [vmem:[#allocation2 + $0xe8c] sm:$0xf0] }
 0x51a   :  { %4729 = vmatpush.bf16.msra.mxu1 %v13330_v21  ;;  %v13126_v21 = vor.u32 %v17759_v9, %v13123_v32  ;;  %v17707_v6 = vld [vmem:[#allocation2 + $0x364] sm:$0xf]  ;;  %v12915_v32 = vld [vmem:[#allocation2 + $0x394] sm:$0xf0]  ;;  %v12869_v19 = vld [vmem:[#allocation2 + $0x300] sm:$0xf]  ;;  %v12502_v23 = vor.u32 %v17603_v4, %v12499_v5 }
 0x51b   :  { %4742 = vmatpush.bf16.msra.mxu3 %v13746_v25  ;;  %4704 = vmatmul.bf16.vlgmr.msrb.gmra.mxu0 %v19695_v22  ;;  %v14114_v25 = vor.u32 %v18006_v13, %v14111_v14  ;;  %v17954_v13 = vld [vmem:[#allocation2 + $0xb1c] sm:$0xf]  ;;  %v13903_v14 = vld [vmem:[#allocation2 + $0xb4c] sm:$0xf0]  ;;  %v12918_v24 = vor.u32 %v17707_v6, %v12915_v32  ;;  %v13747_v4 = vld [vmem:[#allocation2 + $0xa14] sm:$0xf0] }
 0x51c   :  { %4752 = vmatpush.bf16.msra.mxu0 %v14318_v27  ;;  %4717 = vmatmul.bf16.vlgmr.msrb.gmra.mxu2 %v19699_v28  ;;  %v4497_v27 = vpop.f32.mrf.mxu0  ;;  %v18019_v5 = vld [vmem:[#allocation2 + $0xd24] sm:$0xf]  ;;  %v14163_v6 = vld [vmem:[#allocation2 + $0xd54] sm:$0xf0]  ;;  %v17662_v32 = vld [vmem:[#allocation2 + $0x1f8] sm:$0xf0] }
 0x51d   :  { %4761 = vmatpush.bf16.msra.mxu2 %v12866_v31  ;;  %4730 = vmatmul.bf16.vlgmr.msra.gmra.mxu1 %v19707_v18  ;;  %v17746_v31 = vld [vmem:[#allocation2 + $0x49c] sm:$0xf]  ;;  %v19773_v20 = vadd.f32 %v4497_v27, %v4485_v3  ;;  %v12970_v3 = vor.u32 %v17720_v57, %v12967_v58  ;;  %v13334_v27 = vor.u32 %v17811_v35, %v13331_v12  ;;  %v17675_v57 = vld [vmem:[#allocation2 + $0x260] sm:$0xf0]  ;;  %v13129_v35 = vld [vmem:[#allocation2 + $0x508] sm:$0xf] }
 0x51e   :  { %4774 = vmatpush.bf16.msrb.mxu1 %v13282_v33  ;;  %4743 = vmatmul.bf16.vlgmr.msra.gmra.mxu3 %v19703_v30  ;;  %v13071_v33 = vld [vmem:[#allocation2 + $0x4cc] sm:$0xf0] }
 0x51f   :  { %4787 = vmatpush.bf16.msrb.mxu3 %v13698_v38  ;;  %v17993_v38 = vld [vmem:[#allocation2 + $0xc54] sm:$0xf]  ;;  %v13074_v10 = vor.u32 %v17746_v31, %v13071_v33  ;;  %v13906_v31 = vor.u32 %v17954_v13, %v13903_v14  ;;  %v17766_v14 = vld [vmem:[#allocation2 + $0x538] sm:$0xf0] }
 0x520   :  { %4753 = vmatpush.bf16.msra.mxu0 %v14266_v42  ;;  %v13490_v42 = vor.u32 %v17850_v34, %v13487_v36  ;;  %v14062_v43 = vor.u32 %v17993_v38, %v14059_v40  ;;  %v17941_v36 = vld [vmem:[#allocation2 + $0xab4] sm:$0xf]  ;;  %v13851_v38 = vld [vmem:[#allocation2 + $0xae4] sm:$0xf0] }
 0x521   :  { %4762 = vmatpush.bf16.msra.mxu2 %v12814_v44  ;;  %v13019_v44 = vld [vmem:[#allocation2 + $0x464] sm:$0xf0]  ;;  %v18045_v40 = vld [vmem:[#allocation2 + $0xdf4] sm:$0xf] }
 0x522   :  { %4775 = vmatpush.bf16.msrb.mxu1 %v13230_v37  ;;  %v17837_v37 = vld [vmem:[#allocation2 + $0x774] sm:$0xf]  ;;  %v13022_v51 = vor.u32 %v17733_v26, %v13019_v44  ;;  %v17792_v26 = vld [vmem:[#allocation2 + $0x608] sm:$0xf0]  ;;  %v13854_v44 = vor.u32 %v17941_v36, %v13851_v38  ;;  %v13077_v36 = vld [vmem:[#allocation2 + $0x4a0] sm:$0xf] }
 0x523   :  { %4788 = vmatpush.bf16.msrb.mxu3 %v13646_v52  ;;  %v17616_v52 = vld [vmem:[#allocation2 + $0x8c] sm:$0xf]  ;;  %v13438_v55 = vor.u32 %v17837_v37, %v13435_v45 }
 0x524   :  { %4754 = vmatpush.bf16.msra.mxu0 %v14214_v61  ;;  %v4499_v60 = vpop.f32.mrf.mxu0  ;;  %v13383_v61 = vld [vmem:[#allocation2 + $0x73c] sm:$0xf0] }
 0x525   :  { %4763 = vmatpush.bf16.msra.mxu2 %v12762_v1  ;;  %v13955_v1 = vld [vmem:[#allocation2 + $0xbb4] sm:$0xf0]  ;;  %v13181_v60 = vld [vmem:[#allocation2 + $0x570] sm:$0xf] }
 0x526   :  { %4776 = vmatpush.bf16.msrb.mxu1 %v13178_v11  ;;  %v12554_v11 = vor.u32 %v17616_v52, %v12551_v54  ;;  %v13958_v9 = vor.u32 %v17967_v0, %v13955_v1  ;;  %v18032_v52 = vld [vmem:[#allocation2 + $0xd8c] sm:$0xf]  ;;  %v17915_v1 = vld [vmem:[#allocation2 + $0x9e4] sm:$0xf] }
 0x527   :  { %4789 = vmatpush.bf16.msrb.mxu3 %v13594_v8  ;;  %v13386_v8 = vor.u32 %v17824_v59, %v13383_v61  ;;  %v17779_v61 = vld [vmem:[#allocation2 + $0x5a0] sm:$0xf0] }
 0x528   :  { %4755 = vmatpush.bf16.msra.mxu0 %v14162_v15  ;;  %v18058_v15 = vld [vmem:[#allocation2 + $0xe5c] sm:$0xf] }
 0x529   :  { %4764 = vmatpush.bf16.msra.mxu2 %v12710_v48  ;;  %v17701_v48 = vld [vmem:[#allocation2 + $0x330] sm:$0xf0]  ;;  %v14322_v33 = vor.u32 %v18058_v15, %v14319_v17  ;;  %v13701_v15 = vld [vmem:[#allocation2 + $0x980] sm:$0xf] }
 0x52a   :  { %4777 = vmatpush.bf16.msrb.mxu1 %v13126_v21  ;;  %v4523_v21 = vpop.f32.mrf.mxu1  ;;  %v12870_v34 = vor.u32 %v17701_v48, %v12869_v19  ;;  %v17909_v17 = vld [vmem:[#allocation2 + $0x9b0] sm:$0xf0]  ;;  %v13750_v48 = vor.u32 %v17915_v1, %v13747_v4  ;;  %v12973_v1 = vld [vmem:[#allocation2 + $0x3d0] sm:$0xf]  ;;  %v13545_v4 = vld [vmem:[#allocation2 + $0x848] sm:$0xf] }
 0x52b   :  { %4790 = vmatpush.bf16.msrb.mxu3 %v13542_v39  ;;  %14343 = vmatmul.msk.bf16.vlgmr.msra.gmra.mxu0 %vm713_vm7, %v19715_v16  ;;  %v13285_v39 = vld [vmem:[#allocation2 + $0x640] sm:$0xf] }
 0x52c   :  { %4800 = vmatpush.bf16.msrb.mxu0 %v14114_v25  ;;  %v17805_v25 = vld [vmem:[#allocation2 + $0x670] sm:$0xf0] }
 0x52d   :  { %4765 = vmatpush.bf16.msra.mxu2 %v12658_v7  ;;  %v13286_v7 = vor.u32 %v17805_v25, %v13285_v39  ;;  %v14166_v39 = vor.u32 %v18019_v5, %v14163_v6  ;;  %v17870_v5 = vld [vmem:[#allocation2 + $0x878] sm:$0xf0]  ;;  %v13961_v6 = vld [vmem:[#allocation2 + $0xb88] sm:$0xf] }
 0x52e   :  { %4778 = vmatpush.bf16.msrb.mxu1 %v13074_v10  ;;  %v14267_v10 = vld [vmem:[#allocation2 + $0xe24] sm:$0xf0] }
 0x52f   :  { %4791 = vmatpush.bf16.msrb.mxu3 %v13490_v42  ;;  %v4510_v42 = vpop.f32.mrf.mxu2  ;;  %v14270_v47 = vor.u32 %v18045_v40, %v14267_v10  ;;  %v17753_v40 = vld [vmem:[#allocation2 + $0x4d0] sm:$0xf0]  ;;  %v17896_v10 = vld [vmem:[#allocation2 + $0x948] sm:$0xf0] }
 0x530   :  { %4801 = vmatpush.bf16.msrb.mxu0 %v14062_v43  ;;  %v13233_v43 = vld [vmem:[#allocation2 + $0x5d8] sm:$0xf]  ;;  %v4524_v37 = vadd.f32 %v4523_v21, %v4510_v42  ;;  %v14117_v21 = vld [vmem:[#allocation2 + $0xcc0] sm:$0xf] }
 0x531   :  { %4766 = vmatpush.bf16.msra.mxu2 %v12606_v50  ;;  %v4536_v45 = vpop.f32.mrf.mxu3  ;;  %v17928_v50 = vld [vmem:[#allocation2 + $0xa4c] sm:$0xf]  ;;  %v13234_v54 = vor.u32 %v17792_v26, %v13233_v43  ;;  %v13078_v43 = vor.u32 %v17753_v40, %v13077_v36 }
 0x532   :  { %4779 = vmatpush.bf16.msrb.mxu1 %v13022_v51  ;;  %v13799_v51 = vld [vmem:[#allocation2 + $0xa7c] sm:$0xf0]  ;;  %v4537_v58 = vadd.f32 %v4536_v45, %v4524_v37  ;;  %v4525_v59 = vpop.f32.mrf.mxu1  ;;  %v17636_v37 = vld [vmem:[#allocation2 + $0x128] sm:$0xf0]  ;;  %v13025_v45 = vld [vmem:[#allocation2 + $0x438] sm:$0xf] }
 0x533   :  { %4792 = vmatpush.bf16.msrb.mxu3 %v13438_v55  ;;  %v14215_v55 = vld [vmem:[#allocation2 + $0xdbc] sm:$0xf0]  ;;  %v13802_v0 = vor.u32 %v17928_v50, %v13799_v51  ;;  %v17740_v50 = vld [vmem:[#allocation2 + $0x468] sm:$0xf0]  ;;  %v13597_v51 = vld [vmem:[#allocation2 + $0x8b0] sm:$0xf] }
 0x534   :  { %4802 = vmatpush.bf16.msrb.mxu0 %v14010_v56  ;;  %v12765_v56 = vld [vmem:[#allocation2 + $0x230] sm:$0xf]  ;;  %v13026_v59 = vor.u32 %v17740_v50, %v13025_v45 }
 0x535   :  { %4767 = vmatpush.bf16.msra.mxu2 %v12554_v11  ;;  %v14218_v11 = vor.u32 %v18032_v52, %v14215_v55  ;;  %v17883_v52 = vld [vmem:[#allocation2 + $0x8e0] sm:$0xf0]  ;;  %v12819_v45 = vld [vmem:[#allocation2 + $0x2cc] sm:$0xf0] }
 0x536   :  { %4780 = vmatpush.bf16.msrb.mxu1 %v12970_v3  ;;  %v12766_v3 = vor.u32 %v17675_v57, %v12765_v56  ;;  %v17987_v55 = vld [vmem:[#allocation2 + $0xc20] sm:$0xf0] }
 0x537   :  { %4793 = vmatpush.bf16.msrb.mxu3 %v13386_v8  ;;  %v13182_v8 = vor.u32 %v17779_v61, %v13181_v60  ;;  %v4512_v13 = vpop.f32.mrf.mxu2  ;;  %v13598_v60 = vor.u32 %v17883_v52, %v13597_v51  ;;  %v12557_v61 = vld [vmem:[#allocation2 + $0x90] sm:$0xf] }
 0x538   :  { %4803 = vmatpush.bf16.msrb.mxu0 %v13958_v9  ;;  %v12713_v9 = vld [vmem:[#allocation2 + $0x1c8] sm:$0xf]  ;;  %v4549_v12 = vpop.f32.mrf.mxu0  ;;  %v17610_v13 = vld [vmem:[#allocation2 + $0x58] sm:$0xf0]  ;;  %v13389_v52 = vld [vmem:[#allocation2 + $0x710] sm:$0xf] }
 0x539   :  { %4768 = vmatpush.bf16.msra.mxu2 %v12502_v23  ;;  %v4550_v19 = vadd.f32 %v4549_v12, %v4537_v58  ;;  %v18013_v23 = vld [vmem:[#allocation2 + $0xcf0] sm:$0xf0]  ;;  %v12714_v25 = vor.u32 %v17662_v32, %v12713_v9  ;;  %v12505_v32 = vld [vmem:[#allocation2 + $0x28] sm:$0xf]  ;;  %v13546_v12 = vor.u32 %v17870_v5, %v13545_v4  ;;  %v17818_v5 = vld [vmem:[#allocation2 + $0x6d8] sm:$0xf0] }
 0x53a   :  { %4781 = vmatpush.bf16.msrb.mxu1 %v12918_v24  ;;  %v4538_v24 = vpop.f32.mrf.mxu3  ;;  %v14118_v38 = vor.u32 %v18013_v23, %v14117_v21  ;;  %v13909_v21 = vld [vmem:[#allocation2 + $0xb20] sm:$0xf]  ;;  %v13337_v4 = vld [vmem:[#allocation2 + $0x6a8] sm:$0xf] }
 0x53b   :  { %4794 = vmatpush.bf16.msrb.mxu3 %v13334_v27  ;;  %v13130_v27 = vor.u32 %v17766_v14, %v13129_v35  ;;  %v12921_v14 = vld [vmem:[#allocation2 + $0x368] sm:$0xf]  ;;  %v17961_v24 = vld [vmem:[#allocation2 + $0xb50] sm:$0xf0] }
 0x53c   :  { %4804 = vmatpush.bf16.msrb.mxu0 %v13906_v31  ;;  %4769 = vmatmul.bf16.vlgmr.msra.gmra.mxu2 %v19695_v22  ;;  %v13702_v31 = vor.u32 %v17909_v17, %v13701_v15  ;;  %v17714_v15 = vld [vmem:[#allocation2 + $0x398] sm:$0xf0]  ;;  %v13910_v40 = vor.u32 %v17961_v24, %v13909_v21  ;;  %v13703_v24 = vld [vmem:[#allocation2 + $0x9b4] sm:$0xf0] }
 0x53d   :  { %4817 = vmatpush.bf16.msrb.mxu2 %v14322_v33  ;;  %4782 = vmatmul.bf16.vlgmr.msrb.gmra.mxu1 %v19699_v28  ;;  %v12661_v33 = vld [vmem:[#allocation2 + $0x160] sm:$0xf]  ;;  %v12922_v36 = vor.u32 %v17714_v15, %v12921_v14  ;;  %v17656_v14 = vld [vmem:[#allocation2 + $0x1cc] sm:$0xf] }
 0x53e   :  { %4826 = vmatpush.bf16.msra.mxu1 %v12870_v34  ;;  %4795 = vmatmul.bf16.vlgmr.msrb.gmra.mxu3 %v19707_v18  ;;  %v17649_v34 = vld [vmem:[#allocation2 + $0x190] sm:$0xf0]  ;;  %v12715_v15 = vld [vmem:[#allocation2 + $0x1fc] sm:$0xf0] }
 0x53f   :  { %4839 = vmatpush.bf16.msra.mxu3 %v13286_v7  ;;  %v13649_v7 = vld [vmem:[#allocation2 + $0x918] sm:$0xf]  ;;  %v12662_v42 = vor.u32 %v17649_v34, %v12661_v33  ;;  %v4562_v56 = vpop.f32.mrf.mxu2 }
 0x540   :  { %4805 = vmatpush.bf16.msrb.mxu0 %v13854_v44  ;;  %v13650_v26 = vor.u32 %v17896_v10, %v13649_v7  ;;  %v12609_v44 = vld [vmem:[#allocation2 + $0xf8] sm:$0xf]  ;;  %v19781_v58 = vadd.f32 %v4562_v56, %v4550_v19  ;;  %v13493_v19 = vld [vmem:[#allocation2 + $0x7e0] sm:$0xf] }
 0x541   :  { %4818 = vmatpush.bf16.msrb.mxu2 %v14270_v47  ;;  %v4551_v47 = vpop.f32.mrf.mxu0  ;;  %v12610_v57 = vor.u32 %v17636_v37, %v12609_v44  ;;  %v12871_v33 = vld [vmem:[#allocation2 + $0x334] sm:$0xf0]  ;;  %v18052_v44 = vld [vmem:[#allocation2 + $0xe28] sm:$0xf0]  ;;  %v17682_v37 = vld [vmem:[#allocation2 + $0x29c] sm:$0xf] }
 0x542   :  { %4827 = vmatpush.bf16.msra.mxu1 %v12818_v49  ;;  %v14066_v49 = vor.u32 %v18000_v53, %v14065_v41  ;;  %v13441_v10 = vld [vmem:[#allocation2 + $0x778] sm:$0xf]  ;;  %v17844_v41 = vld [vmem:[#allocation2 + $0x7a8] sm:$0xf0] }
 0x543   :  { %4840 = vmatpush.bf16.msra.mxu3 %v13234_v54  ;;  %v14013_v54 = vld [vmem:[#allocation2 + $0xbf0] sm:$0xf]  ;;  %v13857_v53 = vld [vmem:[#allocation2 + $0xab8] sm:$0xf]  ;;  %v13442_v47 = vor.u32 %v17844_v41, %v13441_v10 }
 0x544   :  { %4806 = vmatpush.bf16.msrb.mxu0 %v13802_v0  ;;  %v17623_v0 = vld [vmem:[#allocation2 + $0xc0] sm:$0xf0] }
 0x545   :  { %4819 = vmatpush.bf16.msrb.mxu2 %v14218_v11  ;;  %v14014_v11 = vor.u32 %v17987_v55, %v14013_v54  ;;  %v12558_v9 = vor.u32 %v17623_v0, %v12557_v61  ;;  %v17831_v54 = vld [vmem:[#allocation2 + $0x740] sm:$0xf0]  ;;  %v13805_v55 = vld [vmem:[#allocation2 + $0xa50] sm:$0xf] }
 0x546   :  { %4828 = vmatpush.bf16.msra.mxu1 %v12766_v3  ;;  %v17727_v3 = vld [vmem:[#allocation2 + $0x400] sm:$0xf0]  ;;  %v14221_v61 = vld [vmem:[#allocation2 + $0xd90] sm:$0xf] }
 0x547   :  { %4841 = vmatpush.bf16.msra.mxu3 %v13182_v8  ;;  %v17974_v8 = vld [vmem:[#allocation2 + $0xbb8] sm:$0xf0]  ;;  %v12974_v35 = vor.u32 %v17727_v3, %v12973_v1  ;;  %v4564_v34 = vpop.f32.mrf.mxu2  ;;  %v18039_v0 = vld [vmem:[#allocation2 + $0xdc0] sm:$0xf0]  ;;  %v17669_v1 = vld [vmem:[#allocation2 + $0x234] sm:$0xf]  ;;  %v13390_v3 = vor.u32 %v17831_v54, %v13389_v52 }
 0x548   :  { %4807 = vmatpush.bf16.msrb.mxu0 %v13750_v48  ;;  %v13962_v17 = vor.u32 %v17974_v8, %v13961_v6  ;;  %v17857_v48 = vld [vmem:[#allocation2 + $0x810] sm:$0xf0]  ;;  %v14222_v8 = vor.u32 %v18039_v0, %v14221_v61  ;;  %v17630_v52 = vld [vmem:[#allocation2 + $0xfc] sm:$0xf]  ;;  %v12611_v54 = vld [vmem:[#allocation2 + $0x12c] sm:$0xf0] }
 0x549   :  { %4820 = vmatpush.bf16.msrb.mxu2 %v14166_v39  ;;  %v14325_v39 = vld [vmem:[#allocation2 + $0xe60] sm:$0xf] }
 0x54a   :  { %4829 = vmatpush.bf16.msra.mxu1 %v12714_v25  ;;  %v4575_v23 = vpop.f32.mrf.mxu1  ;;  %v18065_v25 = vld [vmem:[#allocation2 + $0xe90] sm:$0xf0] }
 0x54b   :  { %4842 = vmatpush.bf16.msra.mxu3 %v13130_v27  ;;  %4808 = vmatmul.bf16.vlgmr.msrb.gmra.mxu0 %v19703_v30  ;;  %v12506_v27 = vor.u32 %v17610_v13, %v12505_v32  ;;  %v14326_v7 = vor.u32 %v18065_v25, %v14325_v39  ;;  %v17922_v32 = vld [vmem:[#allocation2 + $0xa18] sm:$0xf0]  ;;  %v18007_v39 = vld [vmem:[#allocation2 + $0xcc4] sm:$0xf]  ;;  %v14119_v25 = vld [vmem:[#allocation2 + $0xcf4] sm:$0xf0] }
 0x54c   :  { %4852 = vmatpush.bf16.msra.mxu0 %v13702_v31  ;;  %14344 = vmatmul.msk.bf16.vlgmr.msrb.gmra.mxu2 %vm713_vm7, %v19715_v16  ;;  %v17695_v31 = vld [vmem:[#allocation2 + $0x304] sm:$0xf]  ;;  %v18026_v13 = vld [vmem:[#allocation2 + $0xd58] sm:$0xf0]  ;;  %v14122_v41 = vor.u32 %v18007_v39, %v14119_v25  ;;  %v12507_v39 = vld [vmem:[#allocation2 + $0x5c] sm:$0xf0] }
 0x54d   :  { %4865 = vmatpush.bf16.msra.mxu2 %v14118_v38  ;;  %v13494_v38 = vor.u32 %v17857_v48, %v13493_v19  ;;  %v13287_v19 = vld [vmem:[#allocation2 + $0x674] sm:$0xf0]  ;;  %v17903_v48 = vld [vmem:[#allocation2 + $0x984] sm:$0xf] }
 0x54e   :  { %4830 = vmatpush.bf16.msra.mxu1 %v12662_v42  ;;  %v12874_v42 = vor.u32 %v17695_v31, %v12871_v33  ;;  %v13706_v10 = vor.u32 %v17903_v48, %v13703_v24  ;;  %v17604_v24 = vld [vmem:[#allocation2 + $0x2c] sm:$0xf] }
 0x54f   :  { %4843 = vmatpush.bf16.msra.mxu3 %v13078_v43  ;;  %v17948_v43 = vld [vmem:[#allocation2 + $0xae8] sm:$0xf0] }
 0x550   :  { %4853 = vmatpush.bf16.msra.mxu0 %v13650_v26  ;;  %v14273_v26 = vld [vmem:[#allocation2 + $0xdf8] sm:$0xf]  ;;  %v13858_v50 = vor.u32 %v17948_v43, %v13857_v53  ;;  %v17786_v53 = vld [vmem:[#allocation2 + $0x5dc] sm:$0xf] }
 0x551   :  { %4866 = vmatpush.bf16.msra.mxu2 %v14066_v49  ;;  %v4588_v49 = vpop.f32.mrf.mxu3  ;;  %v14274_v51 = vor.u32 %v18052_v44, %v14273_v26  ;;  %v17890_v43 = vld [vmem:[#allocation2 + $0x91c] sm:$0xf]  ;;  %v13651_v44 = vld [vmem:[#allocation2 + $0x94c] sm:$0xf0] }
 0x552   :  { %4831 = vmatpush.bf16.msra.mxu1 %v12610_v57  ;;  %v4577_v56 = vpop.f32.mrf.mxu1  ;;  %v4589_v57 = vadd.f32 %v4588_v49, %v4575_v23  ;;  %v13338_v23 = vor.u32 %v17818_v5, %v13337_v4  ;;  %v12614_v4 = vor.u32 %v17630_v52, %v12611_v54  ;;  %v14275_v52 = vld [vmem:[#allocation2 + $0xe2c] sm:$0xf0] }
 0x553   :  { %4844 = vmatpush.bf16.msra.mxu3 %v13026_v59  ;;  %v12822_v59 = vor.u32 %v17682_v37, %v12819_v45  ;;  %v17994_v37 = vld [vmem:[#allocation2 + $0xc5c] sm:$0xf]  ;;  %v14067_v45 = vld [vmem:[#allocation2 + $0xc8c] sm:$0xf0] }
 0x554   :  { %4854 = vmatpush.bf16.msra.mxu0 %v13598_v60  ;;  %v17935_v60 = vld [vmem:[#allocation2 + $0xa80] sm:$0xf0]  ;;  %v14070_v56 = vor.u32 %v17994_v37, %v14067_v45  ;;  %v17838_v37 = vld [vmem:[#allocation2 + $0x77c] sm:$0xf] }
 0x555   :  { %4867 = vmatpush.bf16.msra.mxu2 %v14014_v11  ;;  %v12767_v11 = vld [vmem:[#allocation2 + $0x264] sm:$0xf0]  ;;  %v13806_v6 = vor.u32 %v17935_v60, %v13805_v55  ;;  %v13654_v55 = vor.u32 %v17890_v43, %v13651_v44  ;;  %v17877_v60 = vld [vmem:[#allocation2 + $0x8b4] sm:$0xf]  ;;  %v13027_v44 = vld [vmem:[#allocation2 + $0x46c] sm:$0xf0] }
 0x556   :  { %4832 = vmatpush.bf16.msra.mxu1 %v12558_v9  ;;  %v13753_v9 = vld [vmem:[#allocation2 + $0x9e8] sm:$0xf] }
 0x557   :  { %4845 = vmatpush.bf16.msra.mxu3 %v12974_v35  ;;  %v14169_v35 = vld [vmem:[#allocation2 + $0xd28] sm:$0xf]  ;;  %v13754_v33 = vor.u32 %v17922_v32, %v13753_v9 }
 0x558   :  { %4855 = vmatpush.bf16.msra.mxu0 %v13546_v12  ;;  %v12770_v12 = vor.u32 %v17669_v1, %v12767_v11  ;;  %v4601_v21 = vpop.f32.mrf.mxu0  ;;  %v14170_v34 = vor.u32 %v18026_v13, %v14169_v35  ;;  %v13599_v1 = vld [vmem:[#allocation2 + $0x8e4] sm:$0xf0]  ;;  %v17981_v11 = vld [vmem:[#allocation2 + $0xbf4] sm:$0xf]  ;;  %v17760_v35 = vld [vmem:[#allocation2 + $0x50c] sm:$0xf] }
 0x559   :  { %4868 = vmatpush.bf16.msra.mxu2 %v13962_v17  ;;  %v17799_v17 = vld [vmem:[#allocation2 + $0x644] sm:$0xf]  ;;  %v4590_v31 = vpop.f32.mrf.mxu3  ;;  %v13602_v9 = vor.u32 %v17877_v60, %v13599_v1  ;;  %v17864_v13 = vld [vmem:[#allocation2 + $0x84c] sm:$0xf]  ;;  %v12975_v60 = vld [vmem:[#allocation2 + $0x404] sm:$0xf0] }
 0x55a   :  { %4833 = vmatpush.bf16.msra.mxu1 %v12506_v27  ;;  %v4602_v27 = vadd.f32 %v4601_v21, %v4589_v57  ;;  %v4627_v26 = vpop.f32.mrf.mxu1  ;;  %v17773_v57 = vld [vmem:[#allocation2 + $0x574] sm:$0xf]  ;;  %v17747_v31 = vld [vmem:[#allocation2 + $0x4a4] sm:$0xf] }
 0x55b   :  { %4846 = vmatpush.bf16.msra.mxu3 %v12922_v36  ;;  %v12718_v36 = vor.u32 %v17656_v14, %v12715_v15  ;;  %v13547_v15 = vld [vmem:[#allocation2 + $0x87c] sm:$0xf0] }
 0x55c   :  { %4856 = vmatpush.bf16.msra.mxu0 %v13494_v38  ;;  %v13290_v38 = vor.u32 %v17799_v17, %v13287_v19  ;;  %v17968_v17 = vld [vmem:[#allocation2 + $0xb8c] sm:$0xf]  ;;  %v13963_v19 = vld [vmem:[#allocation2 + $0xbbc] sm:$0xf0]  ;;  %v13550_v25 = vor.u32 %v17864_v13, %v13547_v15 }
 0x55d   :  { %4869 = vmatpush.bf16.msra.mxu2 %v13910_v40  ;;  %4834 = vmatmul.bf16.vlgmr.msra.gmra.mxu1 %v19695_v22  ;;  %v17643_v40 = vld [vmem:[#allocation2 + $0x164] sm:$0xf]  ;;  %v17812_v13 = vld [vmem:[#allocation2 + $0x6ac] sm:$0xf] }
 0x55e   :  { %4882 = vmatpush.bf16.msrb.mxu1 %v14326_v7  ;;  %4847 = vmatmul.bf16.vlgmr.msra.gmra.mxu3 %v19699_v28  ;;  %v12663_v7 = vld [vmem:[#allocation2 + $0x194] sm:$0xf0]  ;;  %v17916_v15 = vld [vmem:[#allocation2 + $0x9ec] sm:$0xf] }
 0x55f   :  { %4891 = vmatpush.bf16.msrb.mxu3 %v12874_v42  ;;  %v13235_v42 = vld [vmem:[#allocation2 + $0x60c] sm:$0xf0]  ;;  %v12666_v49 = vor.u32 %v17643_v40, %v12663_v7  ;;  %v13911_v40 = vld [vmem:[#allocation2 + $0xb54] sm:$0xf0]  ;;  %v18059_v7 = vld [vmem:[#allocation2 + $0xe64] sm:$0xf] }
 0x560   :  { %4857 = vmatpush.bf16.msra.mxu0 %v13442_v47  ;;  %v4614_v47 = vpop.f32.mrf.mxu2  ;;  %v4603_v61 = vpop.f32.mrf.mxu0 }
 0x561   :  { %4870 = vmatpush.bf16.msra.mxu2 %v13858_v50  ;;  %v4615_v50 = vadd.f32 %v4614_v47, %v4602_v27  ;;  %v13966_v27 = vor.u32 %v17968_v17, %v13963_v19  ;;  %v13443_v47 = vld [vmem:[#allocation2 + $0x7ac] sm:$0xf0]  ;;  %v17825_v61 = vld [vmem:[#allocation2 + $0x714] sm:$0xf]  ;;  %v13755_v19 = vld [vmem:[#allocation2 + $0xa1c] sm:$0xf0] }
 0x562   :  { %4883 = vmatpush.bf16.msrb.mxu1 %v14274_v51  ;;  %v13238_v51 = vor.u32 %v17786_v53, %v13235_v42  ;;  %v4629_v14 = vpop.f32.mrf.mxu1 }
 0x563   :  { %4892 = vmatpush.bf16.msrb.mxu3 %v12822_v59  ;;  %v13183_v59 = vld [vmem:[#allocation2 + $0x5a4] sm:$0xf0]  ;;  %v19788_v0 = vadd.f32 %v4627_v26, %v4615_v50  ;;  %v17734_v26 = vld [vmem:[#allocation2 + $0x43c] sm:$0xf]  ;;  %v13859_v50 = vld [vmem:[#allocation2 + $0xaec] sm:$0xf0] }
 0x564   :  { %4858 = vmatpush.bf16.msra.mxu0 %v13390_v3  ;;  %v14015_v3 = vld [vmem:[#allocation2 + $0xc24] sm:$0xf0]  ;;  %v13186_v5 = vor.u32 %v17773_v57, %v13183_v59  ;;  %v13030_v54 = vor.u32 %v17734_v26, %v13027_v44  ;;  %v17721_v59 = vld [vmem:[#allocation2 + $0x3d4] sm:$0xf]  ;;  %v13339_v14 = vld [vmem:[#allocation2 + $0x6dc] sm:$0xf0] }
 0x565   :  { %4871 = vmatpush.bf16.msra.mxu2 %v13806_v6  ;;  %v17617_v6 = vld [vmem:[#allocation2 + $0x94] sm:$0xf]  ;;  %v14018_v32 = vor.u32 %v17981_v11, %v14015_v3  ;;  %v13391_v11 = vld [vmem:[#allocation2 + $0x744] sm:$0xf0] }
 0x566   :  { %4884 = vmatpush.bf16.msrb.mxu1 %v14222_v8  ;;  %v12559_v8 = vld [vmem:[#allocation2 + $0xc4] sm:$0xf0]  ;;  %v17929_v3 = vld [vmem:[#allocation2 + $0xa54] sm:$0xf] }
 0x567   :  { %4893 = vmatpush.bf16.msrb.mxu3 %v12770_v12  ;;  %v13131_v12 = vld [vmem:[#allocation2 + $0x53c] sm:$0xf0]  ;;  %v12562_v21 = vor.u32 %v17617_v6, %v12559_v8  ;;  %v14223_v6 = vld [vmem:[#allocation2 + $0xdc4] sm:$0xf0]  ;;  %v12978_v8 = vor.u32 %v17721_v59, %v12975_v60 }
 0x568   :  { %4859 = vmatpush.bf16.msra.mxu0 %v13338_v23  ;;  %v4616_v48 = vpop.f32.mrf.mxu2  ;;  %v13134_v23 = vor.u32 %v17760_v35, %v13131_v12  ;;  %v13394_v35 = vor.u32 %v17825_v61, %v13391_v11  ;;  %v17676_v11 = vld [vmem:[#allocation2 + $0x268] sm:$0xf0] }
 0x569   :  { %4872 = vmatpush.bf16.msra.mxu2 %v13754_v33  ;;  %v13079_v33 = vld [vmem:[#allocation2 + $0x4d4] sm:$0xf0]  ;;  %v18020_v48 = vld [vmem:[#allocation2 + $0xd2c] sm:$0xf] }
 0x56a   :  { %4885 = vmatpush.bf16.msrb.mxu1 %v14170_v34  ;;  %v17851_v34 = vld [vmem:[#allocation2 + $0x7e4] sm:$0xf]  ;;  %v13082_v53 = vor.u32 %v17747_v31, %v13079_v33  ;;  %v17806_v31 = vld [vmem:[#allocation2 + $0x678] sm:$0xf0]  ;;  %v13709_v33 = vld [vmem:[#allocation2 + $0x988] sm:$0xf] }
 0x56b   :  { %4894 = vmatpush.bf16.msrb.mxu3 %v12718_v36  ;;  %4860 = vmatmul.bf16.vlgmr.msra.gmra.mxu0 %v19707_v18  ;;  %v13495_v36 = vld [vmem:[#allocation2 + $0x814] sm:$0xf0] }
 0x56c   :  { %4904 = vmatpush.bf16.msrb.mxu0 %v13290_v38  ;;  %4873 = vmatmul.bf16.vlgmr.msra.gmra.mxu2 %v19703_v30  ;;  %v17955_v38 = vld [vmem:[#allocation2 + $0xb24] sm:$0xf]  ;;  %v13498_v42 = vor.u32 %v17851_v34, %v13495_v36  ;;  %v17910_v34 = vld [vmem:[#allocation2 + $0x9b8] sm:$0xf0] }
 0x56d   :  { %4917 = vmatpush.bf16.msrb.mxu2 %v13706_v10  ;;  %14345 = vmatmul.msk.bf16.vlgmr.msrb.gmra.mxu1 %vm713_vm7, %v19715_v16  ;;  %v14327_v10 = vld [vmem:[#allocation2 + $0xe94] sm:$0xf0]  ;;  %v13914_v43 = vor.u32 %v17955_v38, %v13911_v40  ;;  %v13342_v38 = vor.u32 %v17812_v13, %v13339_v14  ;;  %v13758_v40 = vor.u32 %v17916_v15, %v13755_v19 }
 0x56e   :  { %4930 = vmatpush.bf16.msra.mxu1 %v14122_v41  ;;  %v12510_v41 = vor.u32 %v17604_v24, %v12507_v39  ;;  %v14330_v45 = vor.u32 %v18059_v7, %v14327_v10  ;;  %v17702_v24 = vld [vmem:[#allocation2 + $0x338] sm:$0xf0]  ;;  %v13293_v39 = vld [vmem:[#allocation2 + $0x648] sm:$0xf]  ;;  %v13710_v44 = vor.u32 %v17910_v34, %v13709_v33  ;;  %v13969_v33 = vld [vmem:[#allocation2 + $0xb90] sm:$0xf] }
 0x56f   :  { %4895 = vmatpush.bf16.msrb.mxu3 %v12666_v49  ;;  %v17942_v49 = vld [vmem:[#allocation2 + $0xabc] sm:$0xf]  ;;  %v14125_v7 = vld [vmem:[#allocation2 + $0xcc8] sm:$0xf]  ;;  %v13294_v26 = vor.u32 %v17806_v31, %v13293_v39  ;;  %v17871_v31 = vld [vmem:[#allocation2 + $0x880] sm:$0xf0] }
 0x570   :  { %4905 = vmatpush.bf16.msrb.mxu0 %v13238_v51  ;;  %v18046_v51 = vld [vmem:[#allocation2 + $0xdfc] sm:$0xf]  ;;  %v13862_v57 = vor.u32 %v17942_v49, %v13859_v50  ;;  %v17793_v50 = vld [vmem:[#allocation2 + $0x610] sm:$0xf0]  ;;  %v17975_v34 = vld [vmem:[#allocation2 + $0xbc0] sm:$0xf0] }
 0x571   :  { %4918 = vmatpush.bf16.msrb.mxu2 %v13654_v55  ;;  %v4640_v55 = vpop.f32.mrf.mxu3  ;;  %v14278_v1 = vor.u32 %v18046_v51, %v14275_v52  ;;  %v18014_v10 = vld [vmem:[#allocation2 + $0xcf8] sm:$0xf0]  ;;  %v13657_v51 = vld [vmem:[#allocation2 + $0x920] sm:$0xf]  ;;  %v17897_v52 = vld [vmem:[#allocation2 + $0x950] sm:$0xf0] }
 0x572   :  { %4931 = vmatpush.bf16.msra.mxu1 %v14070_v56  ;;  %v13446_v56 = vor.u32 %v17838_v37, %v13443_v47  ;;  %v12825_v37 = vld [vmem:[#allocation2 + $0x2a0] sm:$0xf]  ;;  %v14126_v49 = vor.u32 %v18014_v10, %v14125_v7  ;;  %v13658_v61 = vor.u32 %v17897_v52, %v13657_v51  ;;  %v12669_v10 = vld [vmem:[#allocation2 + $0x168] sm:$0xf] }
 0x573   :  { %4896 = vmatpush.bf16.msrb.mxu3 %v12614_v4  ;;  %v13807_v4 = vld [vmem:[#allocation2 + $0xa84] sm:$0xf0]  ;;  %v13241_v47 = vld [vmem:[#allocation2 + $0x5e0] sm:$0xf] }
 0x574   :  { %4906 = vmatpush.bf16.msrb.mxu0 %v13186_v5  ;;  %v18033_v5 = vld [vmem:[#allocation2 + $0xd94] sm:$0xf]  ;;  %v13810_v12 = vor.u32 %v17929_v3, %v13807_v4  ;;  %v13242_v60 = vor.u32 %v17793_v50, %v13241_v47  ;;  %v13189_v3 = vld [vmem:[#allocation2 + $0x578] sm:$0xf]  ;;  %v12617_v52 = vld [vmem:[#allocation2 + $0x100] sm:$0xf] }
 0x575   :  { %4919 = vmatpush.bf16.msrb.mxu2 %v13602_v9  ;;  %v17708_v9 = vld [vmem:[#allocation2 + $0x36c] sm:$0xf]  ;;  %v14226_v17 = vor.u32 %v18033_v5, %v14223_v6 }
 0x576   :  { %4932 = vmatpush.bf16.msra.mxu1 %v14018_v32  ;;  %v12923_v32 = vld [vmem:[#allocation2 + $0x39c] sm:$0xf0]  ;;  %v17780_v6 = vld [vmem:[#allocation2 + $0x5a8] sm:$0xf0] }
 0x577   :  { %4897 = vmatpush.bf16.msrb.mxu3 %v12562_v21  ;;  %v14171_v21 = vld [vmem:[#allocation2 + $0xd5c] sm:$0xf0]  ;;  %v13190_v19 = vor.u32 %v17780_v6, %v13189_v3  ;;  %v17624_v6 = vld [vmem:[#allocation2 + $0xc8] sm:$0xf0] }
 0x578   :  { %4907 = vmatpush.bf16.msrb.mxu0 %v13134_v23  ;;  %v12877_v23 = vld [vmem:[#allocation2 + $0x308] sm:$0xf]  ;;  %v4653_v36 = vpop.f32.mrf.mxu0 }
 0x579   :  { %4920 = vmatpush.bf16.msrb.mxu2 %v13550_v25  ;;  %v12926_v25 = vor.u32 %v17708_v9, %v12923_v32  ;;  %v17884_v9 = vld [vmem:[#allocation2 + $0x8e8] sm:$0xf0] }
 0x57a   :  { %4933 = vmatpush.bf16.msra.mxu1 %v13966_v27  ;;  %v4642_v27 = vpop.f32.mrf.mxu3 }
 0x57b   :  { %4898 = vmatpush.bf16.msrb.mxu3 %v12510_v41  ;;  %v4654_v41 = vadd.f32 %v4653_v36, %v4640_v55  ;;  %v13553_v27 = vld [vmem:[#allocation2 + $0x850] sm:$0xf] }
 0x57c   :  { %4908 = vmatpush.bf16.msrb.mxu0 %v13082_v53  ;;  %v4679_v53 = vpop.f32.mrf.mxu1  ;;  %v13554_v7 = vor.u32 %v17871_v31, %v13553_v27  ;;  %v13345_v27 = vld [vmem:[#allocation2 + $0x6b0] sm:$0xf]  ;;  %v17819_v31 = vld [vmem:[#allocation2 + $0x6e0] sm:$0xf0] }
 0x57d   :  { %4921 = vmatpush.bf16.msrb.mxu2 %v13498_v42  ;;  %v14174_v42 = vor.u32 %v18020_v48, %v14171_v21  ;;  %v12721_v21 = vld [vmem:[#allocation2 + $0x1d0] sm:$0xf] }
 0x57e   :  { %4934 = vmatpush.bf16.msra.mxu1 %v13914_v43  ;;  %4899 = vmatmul.bf16.vlgmr.msrb.gmra.mxu3 %v19695_v22  ;;  %v12878_v43 = vor.u32 %v17702_v24, %v12877_v23  ;;  %v17663_v23 = vld [vmem:[#allocation2 + $0x200] sm:$0xf0]  ;;  %v13137_v24 = vld [vmem:[#allocation2 + $0x510] sm:$0xf] }
 0x57f   :  { %4947 = vmatpush.bf16.msra.mxu3 %v14330_v45  ;;  %v17689_v45 = vld [vmem:[#allocation2 + $0x2d0] sm:$0xf0] }
 0x580   :  { %4909 = vmatpush.bf16.msrb.mxu0 %v13030_v54  ;;  %v4666_v54 = vpop.f32.mrf.mxu2  ;;  %v12826_v59 = vor.u32 %v17689_v45, %v12825_v37  ;;  %v4655_v32 = vpop.f32.mrf.mxu0  ;;  %v13917_v37 = vld [vmem:[#allocation2 + $0xb28] sm:$0xf]  ;;  %v17962_v45 = vld [vmem:[#allocation2 + $0xb58] sm:$0xf0] }
 0x581   :  { %4922 = vmatpush.bf16.msrb.mxu2 %v13446_v56  ;;  %v14073_v56 = vld [vmem:[#allocation2 + $0xc60] sm:$0xf]  ;;  %v4667_v55 = vadd.f32 %v4666_v54, %v4654_v41  ;;  %v17650_v41 = vld [vmem:[#allocation2 + $0x198] sm:$0xf0]  ;;  %v17637_v54 = vld [vmem:[#allocation2 + $0x130] sm:$0xf0] }
 0x582   :  { %4935 = vmatpush.bf16.msra.mxu1 %v13862_v57  ;;  %v18001_v57 = vld [vmem:[#allocation2 + $0xc90] sm:$0xf0]  ;;  %v4692_v14 = vpop.f32.mrf.mxu3  ;;  %v12670_v47 = vor.u32 %v17650_v41, %v12669_v10  ;;  %v17728_v32 = vld [vmem:[#allocation2 + $0x408] sm:$0xf0]  ;;  %v13346_v41 = vor.u32 %v17819_v31, %v13345_v27  ;;  %v18071_v27 = vld [vmem:[%s20598_s11 + $0x20] sm:$0xff] }
 0x583   :  { %4948 = vmatpush.bf16.msra.mxu3 %v14278_v1  ;;  %v12773_v1 = vld [vmem:[#allocation2 + $0x238] sm:$0xf]  ;;  %v14074_v4 = vor.u32 %v18001_v57, %v14073_v56  ;;  %v4680_v5 = vadd.f32 %v4679_v53, %v4667_v55  ;;  %v13085_v53 = vld [vmem:[#allocation2 + $0x4a8] sm:$0xf]  ;;  %v13033_v56 = vld [vmem:[#allocation2 + $0x440] sm:$0xf]  ;;  %v13918_v57 = vor.u32 %v17962_v45, %v13917_v37 }
 0x584   :  { %4910 = vmatpush.bf16.msrb.mxu0 %v12978_v8  ;;  %v13605_v8 = vld [vmem:[#allocation2 + $0x8b8] sm:$0xf]  ;;  %v4681_v13 = vpop.f32.mrf.mxu1  ;;  %v12774_v15 = vor.u32 %v17676_v11, %v12773_v1  ;;  %v17741_v55 = vld [vmem:[#allocation2 + $0x470] sm:$0xf0]  ;;  %v12618_v11 = vor.u32 %v17637_v54, %v12617_v52  ;;  %v14281_v37 = vld [vmem:[#allocation2 + $0xe00] sm:$0xf] }
 0x585   :  { %4923 = vmatpush.bf16.msrb.mxu2 %v13394_v35  ;;  %v14021_v35 = vld [vmem:[#allocation2 + $0xbf8] sm:$0xf]  ;;  %v13606_v48 = vor.u32 %v17884_v9, %v13605_v8  ;;  %v17949_v1 = vld [vmem:[#allocation2 + $0xaf0] sm:$0xf0]  ;;  %v13034_v3 = vor.u32 %v17741_v55, %v13033_v56  ;;  %v18079_v31 = vld [vmem:[%s20598_s11 + $0x60] sm:$0xff] }
 0x586   :  { %4936 = vmatpush.bf16.msra.mxu1 %v13810_v12  ;;  %v17988_v12 = vld [vmem:[#allocation2 + $0xc28] sm:$0xf0]  ;;  %v12981_v8 = vld [vmem:[#allocation2 + $0x3d8] sm:$0xf]  ;;  %v18053_v45 = vld [vmem:[#allocation2 + $0xe30] sm:$0xf0] }
 0x587   :  { %4949 = vmatpush.bf16.msra.mxu3 %v14226_v17  ;;  %v19797_v17 = vadd.f32 %v4692_v14, %v4680_v5  ;;  %v14022_v39 = vor.u32 %v17988_v12, %v14021_v35  ;;  %v12565_v5 = vld [vmem:[#allocation2 + $0x98] sm:$0xf]  ;;  %v17832_v12 = vld [vmem:[#allocation2 + $0x748] sm:$0xf0]  ;;  %v14282_v52 = vor.u32 %v18053_v45, %v14281_v37  ;;  %v18073_v54 = vld [vmem:[%s20598_s11 + $0x30] sm:$0xff] }
 0x588   :  { %4911 = vmatpush.bf16.msrb.mxu0 %v12926_v25  ;;  %v17767_v25 = vld [vmem:[#allocation2 + $0x540] sm:$0xf0]  ;;  %v4668_v36 = vpop.f32.mrf.mxu2  ;;  %v13397_v35 = vld [vmem:[#allocation2 + $0x718] sm:$0xf]  ;;  %v17936_v14 = vld [vmem:[#allocation2 + $0xa88] sm:$0xf0] }
 0x589   :  { %4924 = vmatpush.bf16.msrb.mxu2 %v13342_v38  ;;  %v12722_v38 = vor.u32 %v17663_v23, %v12721_v21  ;;  %v13813_v13 = vld [vmem:[#allocation2 + $0xa58] sm:$0xf]  ;;  %v13398_v21 = vor.u32 %v17832_v12, %v13397_v35  ;;  %v17611_v23 = vld [vmem:[#allocation2 + $0x60] sm:$0xf0]  ;;  %v18081_v55 = vld [vmem:[%s20598_s11 + $0x70] sm:$0xff]  ;;  %v5021_v35 = vrot.slane %v19741_v46, 4 }
 0x58a   :  { %4937 = vmatpush.bf16.msra.mxu1 %v13758_v40  ;;  %v13138_v40 = vor.u32 %v17767_v25, %v13137_v24  ;;  %v12929_v24 = vld [vmem:[#allocation2 + $0x370] sm:$0xf]  ;;  %v13814_v25 = vor.u32 %v17936_v14, %v13813_v13  ;;  %v17923_v36 = vld [vmem:[#allocation2 + $0xa20] sm:$0xf0]  ;;  %v5027_v14 = vrot.slane %v19749_v62, 4  ;;  %v18086_v37 = vld [vmem:[%s20598_s11 + $0x98] sm:$0xff] }
 0x58b   :  { %4950 = vmatpush.bf16.msra.mxu3 %v14174_v42  ;;  %4912 = vmatmul.bf16.vlgmr.msrb.gmra.mxu0 %v19699_v28  ;;  %v13970_v42 = vor.u32 %v17975_v34, %v13969_v33  ;;  %v13761_v33 = vld [vmem:[#allocation2 + $0x9f0] sm:$0xf]  ;;  %v18027_v13 = vld [vmem:[#allocation2 + $0xd60] sm:$0xf0] }
 0x58c   :  { %4956 = vmatpush.bf16.msra.mxu0 %v12878_v43  ;;  %4925 = vmatmul.bf16.vlgmr.msrb.gmra.mxu2 %v19707_v18  ;;  %v17754_v43 = vld [vmem:[#allocation2 + $0x4d8] sm:$0xf0]  ;;  %v14177_v12 = vld [vmem:[#allocation2 + $0xd30] sm:$0xf] }
 0x58d   :  { %4969 = vmatpush.bf16.msra.mxu2 %v13294_v26  ;;  %4938 = vmatmul.bf16.vlgmr.msra.gmra.mxu1 %v19703_v30  ;;  %v13501_v26 = vld [vmem:[#allocation2 + $0x7e8] sm:$0xf]  ;;  %v13086_v50 = vor.u32 %v17754_v43, %v13085_v53  ;;  %v18097_v45 = vld [vmem:[%s20598_s11 + $0xf0] sm:$0xff] }
 0x58e   :  { %4982 = vmatpush.bf16.msrb.mxu1 %v13710_v44  ;;  %14346 = vmatmul.msk.bf16.vlgmr.msra.gmra.mxu3 %vm713_vm7, %v19715_v16  ;;  %v17858_v44 = vld [vmem:[#allocation2 + $0x818] sm:$0xf0] }
 0x58f   :  { %4995 = vmatpush.bf16.msrb.mxu3 %v14126_v49  ;;  %v4694_v49 = vpop.f32.mrf.mxu3  ;;  %v13502_v51 = vor.u32 %v17858_v44, %v13501_v26  ;;  %v18074_v26 = vld [vmem:[%s20598_s11 + $0x38] sm:$0xff] }
 0x590   :  { %4957 = vmatpush.bf16.msra.mxu0 %v12826_v59  ;;  %v13449_v59 = vld [vmem:[#allocation2 + $0x780] sm:$0xf]  ;;  %v18082_v44 = vld [vmem:[%s20598_s11 + $0x78] sm:$0xff]  ;;  %v5100_v49 = vmul.f32 %v19741_v46, %v19741_v46 }
 0x591   :  { %4970 = vmatpush.bf16.msra.mxu2 %v13242_v60  ;;  %v17845_v60 = vld [vmem:[#allocation2 + $0x7b0] sm:$0xf0] }
 0x592   :  { %4983 = vmatpush.bf16.msrb.mxu1 %v13658_v61  ;;  %v13865_v61 = vld [vmem:[#allocation2 + $0xac0] sm:$0xf] }
 0x593   :  { %4996 = vmatpush.bf16.msrb.mxu3 %v14074_v4  ;;  %v13450_v4 = vor.u32 %v17845_v60, %v13449_v59  ;;  %v13866_v9 = vor.u32 %v17949_v1, %v13865_v61  ;;  %v14229_v61 = vld [vmem:[#allocation2 + $0xd98] sm:$0xf]  ;;  %v18040_v1 = vld [vmem:[#allocation2 + $0xdc8] sm:$0xf0] }
 0x594   :  { %4958 = vmatpush.bf16.msra.mxu0 %v12774_v15  ;;  %v12566_v15 = vor.u32 %v17624_v6, %v12565_v5 }
 0x595   :  { %4971 = vmatpush.bf16.msra.mxu2 %v13190_v19  ;;  %v12513_v19 = vld [vmem:[#allocation2 + $0x30] sm:$0xf] }
 0x596   :  { %4984 = vmatpush.bf16.msrb.mxu1 %v13606_v48  ;;  %v12982_v48 = vor.u32 %v17728_v32, %v12981_v8  ;;  %v5033_v8 = vrot.slane %v19756_v29, 4  ;;  %v14230_v32 = vor.u32 %v18040_v1, %v14229_v61  ;;  %v18096_v61 = vld [vmem:[%s20598_s11 + $0xe8] sm:$0xff] }
 0x597   :  { %4997 = vmatpush.bf16.msrb.mxu3 %v14022_v39  ;;  %v17715_v39 = vld [vmem:[#allocation2 + $0x3a0] sm:$0xf0] }
 0x598   :  { %4959 = vmatpush.bf16.msra.mxu0 %v12722_v38  ;;  %v4705_v34 = vpop.f32.mrf.mxu0  ;;  %v14333_v38 = vld [vmem:[#allocation2 + $0xe68] sm:$0xf]  ;;  %v12930_v10 = vor.u32 %v17715_v39, %v12929_v24 }
 0x599   :  { %4972 = vmatpush.bf16.msra.mxu2 %v13138_v40  ;;  %v18066_v40 = vld [vmem:[#allocation2 + $0xe98] sm:$0xf0] }
 0x59a   :  { %4985 = vmatpush.bf16.msrb.mxu1 %v13554_v7  ;;  %v12514_v7 = vor.u32 %v17611_v23, %v12513_v19  ;;  %v4731_v53 = vpop.f32.mrf.mxu1  ;;  %v14334_v43 = vor.u32 %v18066_v40, %v14333_v38  ;;  %v14178_v23 = vor.u32 %v18027_v13, %v14177_v12 }
 0x59b   :  { %4998 = vmatpush.bf16.msrb.mxu3 %v13970_v42  ;;  %v13762_v42 = vor.u32 %v17923_v36, %v13761_v33  ;;  %v5028_v33 = vadd.f32 %v5027_v14, %v19749_v62  ;;  %v18098_v36 = vld [vmem:[%s20598_s11 + $0xf8] sm:$0xff] }
 0x59c   :  { %4960 = vmatpush.bf16.msra.mxu0 %v12670_v47  ;;  %v18090_v47 = vld [vmem:[%s20598_s11 + $0xb8] sm:$0xff] }
 0x59d   :  { %4973 = vmatpush.bf16.msra.mxu2 %v13086_v50  ;;  %v5101_v50 = vmul.f32 %v19749_v62, %v19749_v62 }
 0x59e   :  { %4986 = vmatpush.bf16.msrb.mxu1 %v13502_v51  ;;  %v5102_v51 = vmul.f32 %v19756_v29, %v19756_v29 }
 0x59f   :  { %4999 = vmatpush.bf16.msrb.mxu3 %v13918_v57  ;;  %v4718_v56 = vpop.f32.mrf.mxu2 }
 0x5a0   :  { %4961 = vmatpush.bf16.msra.mxu0 %v12618_v11  ;;  %v4707_v59 = vpop.f32.mrf.mxu0  ;;  %v4719_v60 = vadd.f32 %v4718_v56, %v4705_v34  ;;  %v18089_v11 = vld [vmem:[%s20598_s11 + $0xb0] sm:$0xff]  ;;  %v18087_v34 = vld [vmem:[%s20598_s11 + $0xa0] sm:$0xff] }
 0x5a1   :  { %4974 = vmatpush.bf16.msra.mxu2 %v13034_v3  ;;  %v4744_v57 = vpop.f32.mrf.mxu3  ;;  %v5113_v3 = vrot.slane %v5100_v49, 4 }
 0x5a2   :  { %4987 = vmatpush.bf16.msrb.mxu1 %v13450_v4  ;;  %v5119_v4 = vrot.slane %v5101_v50, 4  ;;  %v4732_v5 = vadd.f32 %v4731_v53, %v4719_v60  ;;  %v4733_v6 = vpop.f32.mrf.mxu1  ;;  %v5103_v53 = vmul.f32 %v19765_v2, %v19765_v2  ;;  %v18085_v60 = vld [vmem:[%s20598_s11 + $0x90] sm:$0xff] }
 0x5a3   :  { %5000 = vmatpush.bf16.msrb.mxu3 %v13866_v9  ;;  %v5125_v9 = vrot.slane %v5102_v51, 4 }
 0x5a4   :  { %4962 = vmatpush.bf16.msra.mxu0 %v12566_v15  ;;  %v5114_v15 = vadd.f32 %v5113_v3, %v5100_v49  ;;  %v5120_v19 = vadd.f32 %v5119_v4, %v5101_v50 }
 0x5a5   :  { %4975 = vmatpush.bf16.msra.mxu2 %v12982_v48  ;;  %v5034_v48 = vadd.f32 %v5033_v8, %v19756_v29 }
 0x5a6   :  { %4988 = vmatpush.bf16.msrb.mxu1 %v13398_v21  ;;  %v5126_v21 = vadd.f32 %v5125_v9, %v5102_v51  ;;  %v5115_v40 = vrot.slane %v5114_v15, 2 }
 0x5a7   :  { %5001 = vmatpush.bf16.msrb.mxu3 %v13814_v25  ;;  %v4720_v24 = vpop.f32.mrf.mxu2  ;;  %v5022_v25 = vadd.f32 %v5021_v35, %v19741_v46 }
 0x5a8   :  { %4963 = vmatpush.bf16.msra.mxu0 %v12514_v7  ;;  %v19858_v38 = vpop.f32.mrf.mxu0  ;;  %v5121_v7 = vrot.slane %v5120_v19, 2  ;;  %v18075_v24 = vld [vmem:[%s20598_s11 + $0x40] sm:$0xff] }
 0x5a9   :  { %4976 = vmatpush.bf16.msra.mxu2 %v12930_v10  ;;  %v4746_v39 = vpop.f32.mrf.mxu3  ;;  %v5035_v10 = vrot.slane %v5034_v48, 2 }
 0x5aa   :  { %4989 = vmatpush.bf16.msrb.mxu1 %v13346_v41  ;;  %v5127_v41 = vrot.slane %v5126_v21, 2  ;;  %v5122_v49 = vadd.f32 %v5121_v7, %v5120_v19  ;;  %v18122_v7 = vld [vmem:[%s20598_s11 + $0x1b8] sm:$0xff] }
 0x5ab   :  { %5002 = vmatpush.bf16.msrb.mxu3 %v13762_v42  ;;  %4964 = vmatmul.bf16.vlgmr.msra.gmra.mxu0 %v19695_v22  ;;  %v18072_v22 = vld [vmem:[%s20598_s11 + $0x28] sm:$0xff]  ;;  %v5023_v42 = vrot.slane %v5022_v25, 2  ;;  %v5036_v50 = vadd.f32 %v5035_v10, %v5034_v48 }
 0x5ac   :  { %5012 = vmatpush.bf16.msrb.mxu0 %v14334_v43  ;;  %4977 = vmatmul.bf16.vlgmr.msra.gmra.mxu2 %v19699_v28  ;;  %v18080_v28 = vld [vmem:[%s20598_s11 + $0x68] sm:$0xff]  ;;  %v18070_v43 = vld [vmem:[%s20598_s11 + $0x18] sm:$0xff]  ;;  %v5128_v51 = vadd.f32 %v5127_v41, %v5126_v21  ;;  %v5123_v3 = vrot.slane %v5122_v49, 1 }
 0x5ad   :  { %6005 = vmatpush.bf16.msrb.mxu2 %v18074_v26  ;;  %4990 = vmatmul.bf16.vlgmr.msrb.gmra.mxu1 %v19707_v18  ;;  %v18088_v18 = vld [vmem:[%s20598_s11 + $0xa8] sm:$0xff]  ;;  %v18078_v26 = vld [vmem:[%s20598_s11 + $0x58] sm:$0xff]  ;;  %v5024_v56 = vadd.f32 %v5023_v42, %v5022_v25  ;;  %v5037_v4 = vrot.slane %v5036_v50, 1  ;;  %v18083_v25 = vld [vmem:[%s20598_s11 + $0x80] sm:$0xff]  ;;  %v5105_v42 = vmul.f32 %v19781_v58, %v19781_v58 }
 0x5ae   :  { %6018 = vmatpush.bf16.msra.mxu1 %v18082_v44  ;;  %5003 = vmatmul.bf16.vlgmr.msrb.gmra.mxu3 %v19703_v30  ;;  %v19837_v30 = vadd.f32 %v4744_v57, %v4732_v5  ;;  %v5029_v44 = vrot.slane %v5028_v33, 2  ;;  %v18069_v57 = vld [vmem:[%s20598_s11 + $0x10] sm:$0xff]  ;;  %v5129_v5 = vrot.slane %v5128_v51, 1  ;;  %v5124_v13 = vadd.f32 %v5123_v3, %v5122_v49 }
 0x5af   :  { %6031 = vmatpush.bf16.msra.mxu3 %v18090_v47  ;;  %v5116_v47 = vadd.f32 %v5115_v40, %v5114_v15  ;;  %v5025_v9 = vrot.slane %v5024_v56, 1  ;;  %v5038_v14 = vadd.f32 %v5037_v4, %v5036_v50  ;;  %v18105_v50 = vld [vmem:[%s20598_s11 + $0x130] sm:$0xff]  ;;  %v5051_v3 = vrot.slane %v19781_v58, 4  ;;  %v18104_v4 = vld [vmem:[%s20598_s11 + $0x128] sm:$0xff] }
 0x5b0   :  { %5013 = vmatpush.bf16.msrb.mxu0 %v14282_v52  ;;  %v5039_v52 = vrot.slane %v19765_v2, 4  ;;  %v5030_v59 = vadd.f32 %v5029_v44, %v5028_v33  ;;  %v4759_v1 = vpop.f32.mrf.mxu0  ;;  %v5130_v19 = vadd.f32 %v5129_v5, %v5128_v51  ;;  %v18114_v33 = vld [vmem:[%s20598_s11 + $0x178] sm:$0xff]  ;;  %v18113_v51 = vld [vmem:[%s20598_s11 + $0x170] sm:$0xff]  ;;  %v18112_v5 = vld [vmem:[%s20598_s11 + $0x168] sm:$0xff] }
 0x5b1   :  { %6006 = vmatpush.bf16.msrb.mxu2 %v18073_v54  ;;  %v5131_v54 = vrot.slane %v5103_v53, 4  ;;  %v5026_v21 = vadd.f32 %v5025_v9, %v5024_v56  ;;  %v18121_v56 = vld [vmem:[%s20598_s11 + $0x1b0] sm:$0xff] }
 0x5b2   :  { %6019 = vmatpush.bf16.msra.mxu1 %v18081_v55  ;;  %v18077_v55 = vld [vmem:[%s20598_s11 + $0x50] sm:$0xff]  ;;  %v5040_v6 = vadd.f32 %v5039_v52, %v19765_v2  ;;  %v5031_v35 = vrot.slane %v5030_v59, 1  ;;  %v5194_v41 = vsel %vm217_vm1, %v5038_v14, %v5130_v19  ;;  %v18091_v14 = vld [vmem:[%s20598_s11 + $0xc0] sm:$0xff] }
 0x5b3   :  { %6032 = vmatpush.bf16.msra.mxu3 %v18089_v11  ;;  %v5117_v11 = vrot.slane %v5116_v47, 1  ;;  %v5132_v8 = vadd.f32 %v5131_v54, %v5103_v53  ;;  %v5104_v53 = vmul.f32 %v19773_v20, %v19773_v20  ;;  %v5207_v49 = vpack.c.bf16 %v5194_v41, %v5194_v41  ;;  %v18103_v19 = vld [vmem:[%s20598_s11 + $0x120] sm:$0xff]  ;;  %v18102_v41 = vld [vmem:[%s20598_s11 + $0x118] sm:$0xff] }
 0x5b4   :  { %5014 = vmatpush.bf16.msrb.mxu0 %v14230_v32  ;;  %v18068_v32 = vld [vmem:[%s20598_s11 + $0x8] sm:$0xff]  ;;  %v5032_v39 = vadd.f32 %v5031_v35, %v5030_v59 }
 0x5b5   :  { %6007 = vmatpush.bf16.msrb.mxu2 %v18072_v22  ;;  %v18076_v22 = vld [vmem:[%s20598_s11 + $0x48] sm:$0xff]  ;;  %v5118_v12 = vadd.f32 %v5117_v11, %v5116_v47  ;;  %v5133_v15 = vrot.slane %v5132_v8, 2  ;;  %v5137_v59 = vrot.slane %v5104_v53, 4 }
 0x5b6   :  { %6020 = vmatpush.bf16.msra.mxu1 %v18080_v28  ;;  %v18095_v28 = vld [vmem:[%s20598_s11 + $0xe0] sm:$0xff]  ;;  %v5193_v10 = vsel %vm217_vm1, %v5032_v39, %v5124_v13  ;;  %v18092_v11 = vld [vmem:[%s20598_s11 + $0xc8] sm:$0xff] }
 0x5b7   :  { %6033 = vmatpush.bf16.msra.mxu3 %v18088_v18  ;;  %v5041_v18 = vrot.slane %v5040_v6, 2  ;;  %v5134_v40 = vadd.f32 %v5133_v15, %v5132_v8  ;;  %v5206_v47 = vpack.c.bf16 %v5193_v10, %v5193_v10  ;;  %v18120_v8 = vld [vmem:[%s20598_s11 + $0x1a8] sm:$0xff]  ;;  %v5138_v35 = vadd.f32 %v5137_v59, %v5104_v53  ;;  %v18110_v53 = vld [vmem:[%s20598_s11 + $0x158] sm:$0xff]  ;;  %v18117_v59 = vld [vmem:[%s20598_s11 + $0x190] sm:$0xff] }
 0x5b8   :  { %5015 = vmatpush.bf16.msrb.mxu0 %v14178_v23  ;;  %v18067_v23 = vld [vmem:[%s20598_s11] sm:$0xff]  ;;  %v5052_v15 = vadd.f32 %v5051_v3, %v19781_v58 }
 0x5b9   :  { %6008 = vmatpush.bf16.msrb.mxu2 %v18071_v27  ;;  %v18094_v27 = vld [vmem:[%s20598_s11 + $0xd8] sm:$0xff]  ;;  %v5135_v54 = vrot.slane %v5134_v40, 1 }
 0x5ba   :  { %6021 = vmatpush.bf16.msra.mxu1 %v18079_v31  ;;  %v19902_v48 = vpop.f32.mrf.mxu1  ;;  %v18106_v31 = vld [vmem:[%s20598_s11 + $0x138] sm:$0xff] }
 0x5bb   :  { %6034 = vmatpush.bf16.msra.mxu3 %v18087_v34  ;;  %14347 = vmatmul.msk.bf16.vlgmr.msrb.gmra.mxu0 %vm713_vm7, %v19715_v16  ;;  %v18084_v16 = vld [vmem:[%s20598_s11 + $0x88] sm:$0xff]  ;;  %v5192_v34 = vsel %vm217_vm1, %v5026_v21, %v5118_v12  ;;  %v5136_v9 = vadd.f32 %v5135_v54, %v5134_v40  ;;  %v18111_v21 = vld [vmem:[%s20598_s11 + $0x160] sm:$0xff]  ;;  %v5053_v40 = vrot.slane %v5052_v15, 2 }
 0x5bc   :  { %6044 = vmatpush.bf16.msra.mxu0 %v18098_v36  ;;  %v5042_v36 = vadd.f32 %v5041_v18, %v5040_v6  ;;  %v5205_v44 = vpack.c.bf16 %v5192_v34, %v5192_v34 }
 0x5bd   :  { %6009 = vmatpush.bf16.msrb.mxu2 %v18070_v43 }
 0x5be   :  { %6022 = vmatpush.bf16.msra.mxu1 %v18078_v26  ;;  %v5106_v26 = vmul.f32 %v19788_v0, %v19788_v0  ;;  %v5043_v52 = vrot.slane %v5042_v36, 1 }
 0x5bf   :  { %6035 = vmatpush.bf16.msra.mxu3 %v18086_v37  ;;  %v19932_v43 = vpop.f32.mrf.mxu2  ;;  %v18093_v37 = vld [vmem:[%s20598_s11 + $0xd0] sm:$0xff] }
 0x5c0   :  { %6045 = vmatpush.bf16.msra.mxu0 %v18097_v45  ;;  %v5149_v1 = vrot.slane %v5106_v26, 4  ;;  %v5044_v6 = vadd.f32 %v5043_v52, %v5042_v36  ;;  %v5107_v36 = vmul.f32 %v19797_v17, %v19797_v17  ;;  %v5054_v52 = vadd.f32 %v5053_v40, %v5052_v15 }
 0x5c1   :  { %6010 = vmatpush.bf16.msrb.mxu2 %v18069_v57  ;;  %v19939_v45 = vpop.f32.mrf.mxu3 }
 0x5c2   :  { %6023 = vmatpush.bf16.msra.mxu1 %v18077_v55  ;;  %v4785_v57 = vpop.f32.mrf.mxu1  ;;  %v5045_v55 = vrot.slane %v19773_v20, 4  ;;  %v5150_v13 = vadd.f32 %v5149_v1, %v5106_v26  ;;  %v5195_v39 = vsel %vm217_vm1, %v5044_v6, %v5136_v9  ;;  %v18129_v26 = vld [vmem:[%s20598_s11 + $0x1f0] sm:$0xff]  ;;  %v5055_v6 = vrot.slane %v5054_v52, 1  ;;  %v18100_v9 = vld [vmem:[%s20598_s11 + $0x108] sm:$0xff] }
 0x5c3   :  { %6036 = vmatpush.bf16.msra.mxu3 %v18085_v60  ;;  %v5143_v60 = vrot.slane %v5105_v42, 4  ;;  %v5208_v10 = vpack.c.bf16 %v5195_v39, %v5195_v39  ;;  %v18101_v57 = vld [vmem:[%s20598_s11 + $0x110] sm:$0xff]  ;;  %v18099_v39 = vld [vmem:[%s20598_s11 + $0x100] sm:$0xff] }
 0x5c4   :  { %6046 = vmatpush.bf16.msra.mxu0 %v18096_v61  ;;  %v5057_v61 = vrot.slane %v19788_v0, 4  ;;  %v5151_v34 = vrot.slane %v5150_v13, 2 }
 0x5c5   :  { %6011 = vmatpush.bf16.msrb.mxu2 %v18068_v32 }
 0x5c6   :  { %6024 = vmatpush.bf16.msra.mxu1 %v18076_v22  ;;  %v5046_v22 = vadd.f32 %v5045_v55, %v19773_v20  ;;  %v5058_v12 = vadd.f32 %v5057_v61, %v19788_v0  ;;  %v18109_v55 = vld [vmem:[%s20598_s11 + $0x150] sm:$0xff] }
 0x5c7   :  { %6037 = vmatpush.bf16.msra.mxu3 %v18084_v16  ;;  %v5144_v16 = vadd.f32 %v5143_v60, %v5105_v42  ;;  %v18118_v42 = vld [vmem:[%s20598_s11 + $0x198] sm:$0xff] }
 0x5c8   :  { %6047 = vmatpush.bf16.msra.mxu0 %v18095_v28  ;;  %v19965_v32 = vpop.f32.mrf.mxu0  ;;  %v4772_v28 = vpop.f32.mrf.mxu2 }
 0x5c9   :  { %6012 = vmatpush.bf16.msrb.mxu2 %v18067_v23  ;;  %v4798_v18 = vpop.f32.mrf.mxu3  ;;  %v18119_v23 = vld [vmem:[%s20598_s11 + $0x1a0] sm:$0xff] }
 0x5ca   :  { %6025 = vmatpush.bf16.msra.mxu1 %v18075_v24  ;;  %v18130_v24 = vld [vmem:[%s20598_s11 + $0x1f8] sm:$0xff] }
 0x5cb   :  { %6038 = vmatpush.bf16.msra.mxu3 %v18083_v25  ;;  %v5047_v25 = vrot.slane %v5046_v22, 2 }
 0x5cc   :  { %6048 = vmatpush.bf16.msra.mxu0 %v18094_v27  ;;  %6013 = vmatmul.bf16.vlgmr.msrb.gmra.mxu2 %v5205_v44  ;;  %v5139_v27 = vrot.slane %v5138_v35, 2 }
 0x5cd   :  { %6057 = vmatpush.bf16.msra.mxu2 %v18106_v31  ;;  %6026 = vmatmul.bf16.vlgmr.msra.gmra.mxu1 %v5206_v47  ;;  %v5145_v31 = vrot.slane %v5144_v16, 2 }
 0x5ce   :  { %6070 = vmatpush.bf16.msrb.mxu1 %v18114_v33  ;;  %6039 = vmatmul.bf16.vlgmr.msra.gmra.mxu3 %v5207_v49  ;;  %v5059_v33 = vrot.slane %v5058_v12, 2  ;;  %v5140_v44 = vadd.f32 %v5139_v27, %v5138_v35  ;;  %v5152_v49 = vadd.f32 %v5151_v34, %v5150_v13  ;;  %v18116_v35 = vld [vmem:[%s20598_s11 + $0x188] sm:$0xff] }
 0x5cf   :  { %6083 = vmatpush.bf16.msrb.mxu3 %v18122_v7  ;;  %v4784_v7 = vadd.f32 %v19902_v48, %v19932_v43  ;;  %v5048_v43 = vadd.f32 %v5047_v25, %v5046_v22  ;;  %v18108_v22 = vld [vmem:[%s20598_s11 + $0x148] sm:$0xff]  ;;  %v18107_v25 = vld [vmem:[%s20598_s11 + $0x140] sm:$0xff] }
 0x5d0   :  { %6049 = vmatpush.bf16.msra.mxu0 %v18093_v37  ;;  %v4811_v48 = vpop.f32.mrf.mxu0  ;;  %v5146_v37 = vadd.f32 %v5145_v31, %v5144_v16  ;;  %v5060_v47 = vadd.f32 %v5059_v33, %v5058_v12  ;;  %v5141_v61 = vrot.slane %v5140_v44, 1  ;;  %v5153_v3 = vrot.slane %v5152_v49, 1  ;;  %v18138_v31 = vld [vmem:[%s20598_s11 + $0x238] sm:$0xff] }
 0x5d1   :  { %6058 = vmatpush.bf16.msra.mxu2 %v18105_v50  ;;  %v5063_v50 = vrot.slane %v19797_v17, 4  ;;  %v4797_v54 = vadd.f32 %v19939_v45, %v4784_v7  ;;  %v18128_v45 = vld [vmem:[%s20598_s11 + $0x1e8] sm:$0xff]  ;;  %v5049_v60 = vrot.slane %v5048_v43, 1  ;;  %v18146_v33 = vld [vmem:[%s20598_s11 + $0x278] sm:$0xff]  ;;  %v18125_v48 = vld [vmem:[%s20598_s11 + $0x1d0] sm:$0xff] }
 0x5d2   :  { %6071 = vmatpush.bf16.msrb.mxu1 %v18113_v51  ;;  %v5155_v51 = vrot.slane %v5107_v36, 4  ;;  %v5147_v1 = vrot.slane %v5146_v37, 1  ;;  %v5142_v28 = vadd.f32 %v5141_v61, %v5140_v44  ;;  %v18144_v61 = vld [vmem:[%s20598_s11 + $0x268] sm:$0xff] }
 0x5d3   :  { %6084 = vmatpush.bf16.msrb.mxu3 %v18121_v56  ;;  %v4822_v56 = vpop.f32.mrf.mxu2  ;;  %v5050_v16 = vadd.f32 %v5049_v60, %v5048_v43  ;;  %v18154_v43 = vld [vmem:[%s20598_s11 + $0x2b8] sm:$0xff]  ;;  %v18136_v60 = vld [vmem:[%s20598_s11 + $0x228] sm:$0xff] }
 0x5d4   :  { %6050 = vmatpush.bf16.msra.mxu0 %v18092_v11  ;;  %v5061_v11 = vrot.slane %v5060_v47, 1  ;;  %v5148_v12 = vadd.f32 %v5147_v1, %v5146_v37 }
 0x5d5   :  { %6059 = vmatpush.bf16.msra.mxu2 %v18104_v4  ;;  %v5064_v4 = vadd.f32 %v5063_v50, %v19797_v17  ;;  %v5196_v34 = vsel %vm217_vm1, %v5050_v16, %v5142_v28  ;;  %v18135_v16 = vld [vmem:[%s20598_s11 + $0x220] sm:$0xff] }
 0x5d6   :  { %6072 = vmatpush.bf16.msrb.mxu1 %v18112_v5  ;;  %v5156_v5 = vadd.f32 %v5155_v51, %v5107_v36  ;;  %v18143_v28 = vld [vmem:[%s20598_s11 + $0x260] sm:$0xff] }
 0x5d7   :  { %6085 = vmatpush.bf16.msrb.mxu3 %v18120_v8  ;;  %v4810_v8 = vadd.f32 %v19965_v32, %v4797_v54  ;;  %v18127_v32 = vld [vmem:[%s20598_s11 + $0x1e0] sm:$0xff]  ;;  %v5065_v18 = vrot.slane %v5064_v4, 2 }
 0x5d8   :  { %6051 = vmatpush.bf16.msra.mxu0 %v18091_v14  ;;  %v5062_v14 = vadd.f32 %v5061_v11, %v5060_v47  ;;  %v5157_v15 = vrot.slane %v5156_v5, 2  ;;  %v18137_v47 = vld [vmem:[%s20598_s11 + $0x230] sm:$0xff] }
 0x5d9   :  { %6060 = vmatpush.bf16.msra.mxu2 %v18103_v19  ;;  %v5154_v19 = vadd.f32 %v5153_v3, %v5152_v49  ;;  %v5066_v40 = vadd.f32 %v5065_v18, %v5064_v4  ;;  %v18145_v49 = vld [vmem:[%s20598_s11 + $0x270] sm:$0xff] }
 0x5da   :  { %6073 = vmatpush.bf16.msrb.mxu1 %v18111_v21  ;;  %v4835_v13 = vpop.f32.mrf.mxu1  ;;  %v5056_v21 = vadd.f32 %v5055_v6, %v5054_v52  ;;  %v5158_v7 = vadd.f32 %v5157_v15, %v5156_v5 }
 0x5db   :  { %6086 = vmatpush.bf16.msrb.mxu3 %v18119_v23  ;;  %6052 = vmatmul.bf16.vlgmr.msra.gmra.mxu0 %v5208_v10  ;;  %v20032_v23 = vadd.f32 %v19858_v38, %v19837_v30  ;;  %v4824_v27 = vpop.f32.mrf.mxu2  ;;  %v18115_v30 = vld [vmem:[%s20598_s11 + $0x180] sm:$0xff]  ;;  %v18126_v38 = vld [vmem:[%s20598_s11 + $0x1d8] sm:$0xff]  ;;  %v5198_v10 = vsel %vm217_vm1, %v5062_v14, %v5154_v19  ;;  %v5067_v51 = vrot.slane %v5066_v40, 1 }
 0x5dc   :  { %6096 = vmatpush.bf16.msrb.mxu0 %v18130_v24  ;;  %v20034_v24 = vadd.f32 %v4822_v56, %v4810_v8  ;;  %v5197_v36 = vsel %vm217_vm1, %v5056_v21, %v5148_v12  ;;  %v5211_v37 = vpack.c.bf16 %v5198_v10, %v5198_v10  ;;  %v5159_v52 = vrot.slane %v5158_v7, 1  ;;  %v18123_v8 = vld [vmem:[%s20598_s11 + $0x1c0] sm:$0xff]  ;;  %v18162_v14 = vld [vmem:[%s20598_s11 + $0x2f8] sm:$0xff] }
 0x5dd   :  { %6061 = vmatpush.bf16.msra.mxu2 %v18102_v41  ;;  %v5108_v41 = vmul.f32 %v20032_v23, %v20032_v23  ;;  %v5068_v1 = vadd.f32 %v5067_v51, %v5066_v40  ;;  %v18151_v21 = vld [vmem:[%s20598_s11 + $0x2a0] sm:$0xff] }
 0x5de   :  { %6074 = vmatpush.bf16.msrb.mxu1 %v18110_v53  ;;  %v5109_v53 = vmul.f32 %v20034_v24, %v20034_v24  ;;  %v5160_v3 = vadd.f32 %v5159_v52, %v5158_v7 }
 0x5df   :  { %6087 = vmatpush.bf16.msrb.mxu3 %v18118_v42  ;;  %v5209_v42 = vpack.c.bf16 %v5196_v34, %v5196_v34  ;;  %v5161_v54 = vrot.slane %v5108_v41, 4  ;;  %v18161_v34 = vld [vmem:[%s20598_s11 + $0x2f0] sm:$0xff] }
 0x5e0   :  { %6097 = vmatpush.bf16.msrb.mxu0 %v18129_v26  ;;  %v5210_v26 = vpack.c.bf16 %v5197_v36, %v5197_v36  ;;  %v5167_v56 = vrot.slane %v5109_v53, 4 }
 0x5e1   :  { %6062 = vmatpush.bf16.msra.mxu2 %v18101_v57  ;;  %v4848_v44 = vpop.f32.mrf.mxu3  ;;  %v18124_v57 = vld [vmem:[%s20598_s11 + $0x1c8] sm:$0xff]  ;;  %v5162_v4 = vadd.f32 %v5161_v54, %v5108_v41  ;;  %v18150_v41 = vld [vmem:[%s20598_s11 + $0x298] sm:$0xff]  ;;  %v18149_v54 = vld [vmem:[%s20598_s11 + $0x290] sm:$0xff] }
 0x5e2   :  { %6075 = vmatpush.bf16.msrb.mxu1 %v18109_v55  ;;  %v4837_v50 = vpop.f32.mrf.mxu1  ;;  %v18153_v55 = vld [vmem:[%s20598_s11 + $0x2b0] sm:$0xff]  ;;  %v4849_v11 = vadd.f32 %v4848_v44, %v4835_v13  ;;  %v5168_v5 = vadd.f32 %v5167_v56, %v5109_v53  ;;  %v5199_v13 = vsel %vm217_vm1, %v5068_v1, %v5160_v3  ;;  %v18159_v1 = vld [vmem:[%s20598_s11 + $0x2e0] sm:$0xff] }
 0x5e3   :  { %6088 = vmatpush.bf16.msrb.mxu3 %v18117_v59  ;;  %v5069_v59 = vrot.slane %v20032_v23, 4  ;;  %v5163_v18 = vrot.slane %v5162_v4, 2  ;;  %v5212_v27 = vpack.c.bf16 %v5199_v13, %v5199_v13 }
 0x5e4   :  { %6098 = vmatpush.bf16.msrb.mxu0 %v18128_v45  ;;  %v5075_v45 = vrot.slane %v20034_v24, 4  ;;  %v5169_v15 = vrot.slane %v5168_v5, 2 }
 0x5e5   :  { %6063 = vmatpush.bf16.msra.mxu2 %v18100_v9  ;;  %v18152_v9 = vld [vmem:[%s20598_s11 + $0x2a8] sm:$0xff]  ;;  %v5164_v36 = vadd.f32 %v5163_v18, %v5162_v4 }
 0x5e6   :  { %6076 = vmatpush.bf16.msrb.mxu1 %v18108_v22  ;;  %v5170_v40 = vadd.f32 %v5169_v15, %v5168_v5  ;;  %v18147_v15 = vld [vmem:[%s20598_s11 + $0x280] sm:$0xff] }
 0x5e7   :  { %6089 = vmatpush.bf16.msrb.mxu3 %v18116_v35  ;;  %v5070_v35 = vadd.f32 %v5069_v59, %v20032_v23  ;;  %v18140_v59 = vld [vmem:[%s20598_s11 + $0x248] sm:$0xff] }
 0x5e8   :  { %6099 = vmatpush.bf16.msrb.mxu0 %v18127_v32  ;;  %v4861_v6 = vpop.f32.mrf.mxu0  ;;  %v5076_v32 = vadd.f32 %v5075_v45, %v20034_v24 }
 0x5e9   :  { %6064 = vmatpush.bf16.msra.mxu2 %v18099_v39  ;;  %v4850_v22 = vpop.f32.mrf.mxu3  ;;  %v4862_v12 = vadd.f32 %v4861_v6, %v4849_v11  ;;  %v5071_v39 = vrot.slane %v5070_v35, 2  ;;  %v18148_v6 = vld [vmem:[%s20598_s11 + $0x288] sm:$0xff] }
 0x5ea   :  { %6077 = vmatpush.bf16.msrb.mxu1 %v18107_v25  ;;  %v4887_v19 = vpop.f32.mrf.mxu1  ;;  %v5077_v25 = vrot.slane %v5076_v32, 2  ;;  %v18131_v22 = vld [vmem:[%s20598_s11 + $0x200] sm:$0xff] }
 0x5eb   :  { %6090 = vmatpush.bf16.msrb.mxu3 %v18115_v30  ;;  %v18134_v30 = vld [vmem:[%s20598_s11 + $0x218] sm:$0xff]  ;;  %v5072_v53 = vadd.f32 %v5071_v39, %v5070_v35  ;;  %v18139_v35 = vld [vmem:[%s20598_s11 + $0x240] sm:$0xff] }
 0x5ec   :  { %6100 = vmatpush.bf16.msrb.mxu0 %v18126_v38  ;;  %6065 = vmatmul.bf16.vlgmr.msra.gmra.mxu2 %v5209_v42  ;;  %v18142_v38 = vld [vmem:[%s20598_s11 + $0x258] sm:$0xff]  ;;  %v5078_v42 = vadd.f32 %v5077_v25, %v5076_v32 }
 0x5ed   :  { %6109 = vmatpush.bf16.msrb.mxu2 %v18138_v31  ;;  %6078 = vmatmul.bf16.vlgmr.msrb.gmra.mxu1 %v5210_v26  ;;  %v18133_v26 = vld [vmem:[%s20598_s11 + $0x210] sm:$0xff]  ;;  %v5073_v56 = vrot.slane %v5072_v53, 1 }
 0x5ee   :  { %6122 = vmatpush.bf16.msra.mxu1 %v18146_v33  ;;  %6091 = vmatmul.bf16.vlgmr.msrb.gmra.mxu3 %v5211_v37  ;;  %v18160_v37 = vld [vmem:[%s20598_s11 + $0x2e8] sm:$0xff] }
 0x5ef   :  { %6135 = vmatpush.bf16.msra.mxu3 %v18154_v43  ;;  %v4874_v31 = vpop.f32.mrf.mxu2 }
 0x5f0   :  { %6101 = vmatpush.bf16.msrb.mxu0 %v18125_v48  ;;  %v4875_v33 = vadd.f32 %v4874_v31, %v4862_v12  ;;  %v4863_v7 = vpop.f32.mrf.mxu0  ;;  %v18141_v48 = vld [vmem:[%s20598_s11 + $0x250] sm:$0xff]  ;;  %v18156_v31 = vld [vmem:[%s20598_s11 + $0x2c8] sm:$0xff] }
 0x5f1   :  { %6110 = vmatpush.bf16.msrb.mxu2 %v18137_v47  ;;  %v5165_v47 = vrot.slane %v5164_v36, 1 }
 0x5f2   :  { %6123 = vmatpush.bf16.msra.mxu1 %v18145_v49  ;;  %v20117_v10 = vadd.f32 %v4887_v19, %v4875_v33  ;;  %v5171_v49 = vrot.slane %v5170_v40, 1  ;;  %v4889_v50 = vpop.f32.mrf.mxu1 }
 0x5f3   :  { %6136 = vmatpush.bf16.msra.mxu3 %v18153_v55  ;;  %v18132_v55 = vld [vmem:[%s20598_s11 + $0x208] sm:$0xff]  ;;  %v5166_v11 = vadd.f32 %v5165_v47, %v5164_v36  ;;  %v18155_v36 = vld [vmem:[%s20598_s11 + $0x2c0] sm:$0xff] }
 0x5f4   :  { %6102 = vmatpush.bf16.msrb.mxu0 %v18124_v57  ;;  %v5081_v43 = vrot.slane %v20117_v10, 4  ;;  %v5110_v44 = vmul.f32 %v20117_v10, %v20117_v10  ;;  %v5079_v57 = vrot.slane %v5078_v42, 1  ;;  %v5172_v3 = vadd.f32 %v5171_v49, %v5170_v40 }
 0x5f5   :  { %6111 = vmatpush.bf16.msrb.mxu2 %v18136_v60 }
 0x5f6   :  { %6124 = vmatpush.bf16.msra.mxu1 %v18144_v61  ;;  %v5082_v51 = vadd.f32 %v5081_v43, %v20117_v10  ;;  %v5173_v52 = vrot.slane %v5110_v44, 4 }
 0x5f7   :  { %6137 = vmatpush.bf16.msra.mxu3 %v18152_v9  ;;  %v4876_v45 = vpop.f32.mrf.mxu2  ;;  %v5080_v9 = vadd.f32 %v5079_v57, %v5078_v42 }
 0x5f8   :  { %6103 = vmatpush.bf16.msrb.mxu0 %v18123_v8  ;;  %v5083_v60 = vrot.slane %v5082_v51, 2  ;;  %v5174_v61 = vadd.f32 %v5173_v52, %v5110_v44  ;;  %v5074_v8 = vadd.f32 %v5073_v56, %v5072_v53 }
 0x5f9   :  { %6112 = vmatpush.bf16.msrb.mxu2 %v18135_v16  ;;  %v5201_v13 = vsel %vm217_vm1, %v5080_v9, %v5172_v3 }
 0x5fa   :  { %6125 = vmatpush.bf16.msra.mxu1 %v18143_v28  ;;  %v5084_v4 = vadd.f32 %v5083_v60, %v5082_v51  ;;  %v5175_v5 = vrot.slane %v5174_v61, 2  ;;  %v18158_v28 = vld [vmem:[%s20598_s11 + $0x2d8] sm:$0xff]  ;;  %v5200_v12 = vsel %vm217_vm1, %v5074_v8, %v5166_v11  ;;  %v18163_v8 = vld [vmem:[%s20598_s11 + $0x300] sm:$0xff] }
 0x5fb   :  { %6104 = vmatmul.bf16.vlgmr.msrb.gmra.mxu0 %v5212_v27  ;;  %6138 = vmatpush.bf16.msra.mxu3 %v18151_v21  ;;  %v5213_v19 = vpack.c.bf16 %v5200_v12, %v5200_v12  ;;  %v5214_v21 = vpack.c.bf16 %v5201_v13, %v5201_v13  ;;  %v18157_v27 = vld [vmem:[%s20598_s11 + $0x2d0] sm:$0xff] }
 0x5fc   :  { %6148 = vmatpush.bf16.msra.mxu0 %v18162_v14  ;;  %v5085_v32 = vrot.slane %v5084_v4, 1  ;;  %v5176_v16 = vadd.f32 %v5175_v5, %v5174_v61 }
 0x5fd   :  { %6113 = vmatpush.bf16.msrb.mxu2 %v18134_v30 }
 0x5fe   :  { %6126 = vmatpush.bf16.msra.mxu1 %v18142_v38  ;;  %v5086_v14 = vadd.f32 %v5085_v32, %v5084_v4  ;;  %v5177_v18 = vrot.slane %v5176_v16, 1  ;;  %v18164_v4 = vld [vmem:[%s20598_s11 + $0x308] sm:$0xff] }
 0x5ff   :  { %6139 = vmatpush.bf16.msra.mxu3 %v18150_v41 }
 0x600   :  { %6149 = vmatpush.bf16.msra.mxu0 %v18161_v34  ;;  %v5178_v25 = vadd.f32 %v5177_v18, %v5176_v16 }
 0x601   :  { %6114 = vmatpush.bf16.msrb.mxu2 %v18133_v26  ;;  %v4900_v39 = vpop.f32.mrf.mxu3 }
 0x602   :  { %6127 = vmatpush.bf16.msra.mxu1 %v18141_v48  ;;  %v5202_v30 = vsel %vm217_vm1, %v5086_v14, %v5178_v25 }
 0x603   :  { %6140 = vmatpush.bf16.msra.mxu3 %v18149_v54  ;;  %v5215_v38 = vpack.c.bf16 %v5202_v30, %v5202_v30 }
 0x604   :  { %6150 = vmatpush.bf16.msra.mxu0 %v18160_v37 }
 0x605   :  { %6115 = vmatpush.bf16.msrb.mxu2 %v18132_v55 }
 0x606   :  { %6128 = vmatpush.bf16.msra.mxu1 %v18140_v59 }
 0x607   :  { %6141 = vmatpush.bf16.msra.mxu3 %v18148_v6 }
 0x608   :  { %6151 = vmatpush.bf16.msra.mxu0 %v18159_v1  ;;  %v4913_v34 = vpop.f32.mrf.mxu0 }
 0x609   :  { %6116 = vmatpush.bf16.msrb.mxu2 %v18131_v22  ;;  %v4902_v33 = vpop.f32.mrf.mxu3  ;;  %v4914_v7 = vadd.f32 %v4913_v34, %v4900_v39 }
 0x60a   :  { %6129 = vmatpush.bf16.msra.mxu1 %v18139_v35  ;;  %v4939_v40 = vpop.f32.mrf.mxu1 }
 0x60b   :  { %6142 = vmatpush.bf16.msra.mxu3 %v18147_v15 }
 0x60c   :  { %6152 = vmatpush.bf16.msra.mxu0 %v18158_v28  ;;  %6117 = vmatmul.bf16.vlgmr.msrb.gmra.mxu2 %v5213_v19 }
 0x60d   :  { %6130 = vmatmul.bf16.vlgmr.msra.gmra.mxu1 %v5214_v21  ;;  %6167 = vmatpush.bf16.msra.mxu2 %v18164_v4 }
 0x60e   :  { %6143 = vmatmul.bf16.vlgmr.msra.gmra.mxu3 %v5215_v38 }
 0x60f   :  { %v4926_v41 = vpop.f32.mrf.mxu2 }
 0x610   :  { %6153 = vmatpush.bf16.msra.mxu0 %v18157_v27  ;;  %v4927_v53 = vadd.f32 %v4926_v41, %v4914_v7  ;;  %v4915_v26 = vpop.f32.mrf.mxu0 }
 0x611   :  { %v4952_v43 = vpop.f32.mrf.mxu3  ;;  %6168 = vmatpush.bf16.msra.mxu2 %v18163_v8 }
 0x612   :  { %v4940_v42 = vadd.f32 %v4939_v40, %v4927_v53  ;;  %v4941_v48 = vpop.f32.mrf.mxu1 }
 0x614   :  { %6154 = vmatpush.bf16.msra.mxu0 %v18156_v31  ;;  %v20174_v44 = vadd.f32 %v4952_v43, %v4940_v42 }
 0x616   :  { %v5087_v37 = vrot.slane %v20174_v44, 4  ;;  %v5111_v47 = vmul.f32 %v20174_v44, %v20174_v44 }
 0x617   :  { %v4928_v49 = vpop.f32.mrf.mxu2 }
 0x618   :  { %6155 = vmatpush.bf16.msra.mxu0 %v18155_v36  ;;  %v5088_v50 = vadd.f32 %v5087_v37, %v20174_v44  ;;  %v5179_v51 = vrot.slane %v5111_v47, 4 }
 0x619   :  { %v4954_v56 = vpop.f32.mrf.mxu3 }
 0x61a   :  { %v5089_v52 = vrot.slane %v5088_v50, 2  ;;  %v5180_v54 = vadd.f32 %v5179_v51, %v5111_v47 }
 0x61c   :  { %v5090_v57 = vadd.f32 %v5089_v52, %v5088_v50  ;;  %v5181_v55 = vrot.slane %v5180_v54, 2 }
 0x61e   :  { %v5091_v59 = vrot.slane %v5090_v57, 1  ;;  %v5182_v45 = vadd.f32 %v5181_v55, %v5180_v54 }
 0x620   :  { %v5092_v60 = vadd.f32 %v5091_v59, %v5090_v57  ;;  %v5183_v61 = vrot.slane %v5182_v45, 1 }
 0x622   :  { %v5184_v1 = vadd.f32 %v5183_v61, %v5182_v45 }
 0x624   :  { %v5203_v11 = vsel %vm217_vm1, %v5092_v60, %v5184_v1 }
 0x625   :  { %v5216_v3 = vpack.c.bf16 %v5203_v11, %v5203_v11 }
 0x627   :  { %6156 = vmatmul.bf16.vlgmr.msra.gmra.mxu0 %v5216_v3 }
 0x628   :  { %v4965_v5 = vpop.f32.mrf.mxu0 }
 0x62a   :  { %v4991_v6 = vpop.f32.mrf.mxu1 }
 0x62f   :  { %v4978_v9 = vpop.f32.mrf.mxu2 }
 0x630   :  { %v4979_v35 = vadd.f32 %v4978_v9, %v4965_v5  ;;  %v4967_v32 = vpop.f32.mrf.mxu0 }
 0x631   :  { %v5004_v22 = vpop.f32.mrf.mxu3 }
 0x632   :  { %v4993_v16 = vpop.f32.mrf.mxu1  ;;  %v4992_v28 = vadd.f32 %v4991_v6, %v4979_v35 }
 0x634   :  { %v5005_v14 = vadd.f32 %v5004_v22, %v4992_v28 }
 0x637   :  { %v4980_v12 = vpop.f32.mrf.mxu2 }
 0x638   :  { %v5017_v18 = vpop.f32.mrf.mxu0 }
 0x639   :  { %v5006_v13 = vpop.f32.mrf.mxu3  ;;  %v20187_v15 = vadd.f32 %v5017_v18, %v5005_v14 }
 0x63b   :  { %v5093_v19 = vsel %vm344_vm5, %v20187_v15, 0.0  ;;  %v5112_v21 = vmul.f32 %v20187_v15, %v20187_v15 }
 0x63c   :  { %v5094_v39 = vrot.slane %v5093_v19, 4 }
 0x63d   :  { %v5185_v25 = vsel %vm344_vm5, %v5112_v21, 0.0 }
 0x63e   :  { %v5095_v27 = vadd.f32 %v5094_v39, %v5093_v19  ;;  %v5186_v30 = vrot.slane %v5185_v25, 4 }
 0x640   :  { %v5096_v38 = vrot.slane %v5095_v27, 2  ;;  %v5187_v31 = vadd.f32 %v5186_v30, %v5185_v25  ;;  %v5019_v33 = vpop.f32.mrf.mxu0 }
 0x641   :  { %v6205_v33 = vld [vmem:[#allocation13] sm:$0xff] }
 0x642   :  { %v5097_v34 = vadd.f32 %v5096_v38, %v5095_v27  ;;  %v5188_v36 = vrot.slane %v5187_v31, 2 }
 0x644   :  { %v5098_v40 = vrot.slane %v5097_v34, 1  ;;  %v5189_v7 = vadd.f32 %v5188_v36, %v5187_v31 }
 0x646   :  { %v5190_v41 = vrot.slane %v5189_v7, 1  ;;  %v5099_v42 = vadd.f32 %v5098_v40, %v5097_v34  ;;  %v6206_v34 = vld [vmem:[#allocation13 + $0x8] sm:$0xff]  ;;  %v6219_v40 = vunpack.c.l.b16 %v6205_v33 }
 0x648   :  { %v5191_v26 = vadd.f32 %v5190_v41, %v5189_v7  ;;  %v6220_v7 = vunpack.c.h.b16 %v6205_v33  ;;  %v6222_v41 = vunpack.c.h.b16 %v6206_v34 }
 0x64a   :  { %v6027_v53 = vpop.f32.mrf.mxu1  ;;  %v5204_v48 = vsel %vm217_vm1, %v5099_v42, %v5191_v26  ;;  %v6232_v26 = vpack.c.b16 %v6219_v40, %v6219_v40 }
 0x64b   :  { %v5217_v37 = vpack.c.bf16 %v5204_v48, %v5204_v48  ;;  %v6233_v48 = vpack.c.b16 %v6220_v7, %v6220_v7 }
 0x64d   :  { %14740 = vmatmul.msk.bf16.vlgmr.msra.gmra.mxu2 %vm344_vm5, %v5217_v37 }
 0x64f   :  { %v6014_v43 = vpop.f32.mrf.mxu2 }
 0x650   :  { %v6028_v47 = vadd.f32 %v6027_v53, %v6014_v43  ;;  %v6221_v53 = vunpack.c.l.b16 %v6206_v34  ;;  %v6235_v43 = vpack.c.b16 %v6222_v41, %v6222_v41 }
 0x651   :  { %v6040_v49 = vpop.f32.mrf.mxu3 }
 0x652   :  { %v6041_v50 = vadd.f32 %v6040_v49, %v6028_v47  ;;  %v6029_v51 = vpop.f32.mrf.mxu1  ;;  %v6234_v37 = vpack.c.b16 %v6221_v53, %v6221_v53  ;;  %v6251_v49 = vsel %vm6249_vm11, %v6232_v26, 0 }
 0x653   :  { %v6260_v51 = vsel %vm6249_vm11, %v6235_v43, 0  ;;  %6296 = vmatpush.bf16.msrb.mxu1 %v6251_v49 }
 0x654   :  { %6335 = vmatpush.bf16.msrb.mxu2 %v6260_v51 }
 0x657   :  { %v6016_v56 = vpop.f32.mrf.mxu2 }
 0x658   :  { %v6053_v52 = vpop.f32.mrf.mxu0  ;;  %v6207_v56 = vld [vmem:[#allocation13 + $0x10] sm:$0xff] }
 0x659   :  { %v6054_v54 = vadd.f32 %v6053_v52, %v6041_v50  ;;  %v6042_v57 = vpop.f32.mrf.mxu3  ;;  %v6254_v50 = vsel %vm6249_vm11, %v6233_v48, 0  ;;  %v6257_v52 = vsel %vm6249_vm11, %v6234_v37, 0 }
 0x65a   :  { %6309 = vmatpush.bf16.msrb.mxu3 %v6254_v50  ;;  %6322 = vmatpush.bf16.msrb.mxu0 %v6257_v52  ;;  %v6208_v57 = vld [vmem:[#allocation13 + $0x18] sm:$0xff] }
 0x660   :  { %v6055_v55 = vpop.f32.mrf.mxu0 }
 0x661   :  { %v6223_v55 = vunpack.c.l.b16 %v6207_v56 }
 0x66a   :  { %v6079_v59 = vpop.f32.mrf.mxu1 }
 0x66f   :  { %v6066_v45 = vpop.f32.mrf.mxu2 }
 0x670   :  { %v6067_v60 = vadd.f32 %v6066_v45, %v6054_v54  ;;  %v6226_v45 = vunpack.c.h.b16 %v6208_v57 }
 0x671   :  { %v6092_v61 = vpop.f32.mrf.mxu3 }
 0x672   :  { %v6081_v1 = vpop.f32.mrf.mxu1  ;;  %v6080_v11 = vadd.f32 %v6079_v59, %v6067_v60  ;;  %v6224_v59 = vunpack.c.h.b16 %v6207_v56  ;;  %v6225_v60 = vunpack.c.l.b16 %v6208_v57 }
 0x674   :  { %v6093_v3 = vadd.f32 %v6092_v61, %v6080_v11  ;;  %v6236_v61 = vpack.c.b16 %v6223_v55, %v6223_v55  ;;  %v6237_v1 = vpack.c.b16 %v6224_v59, %v6224_v59  ;;  %v6239_v11 = vpack.c.b16 %v6226_v45, %v6226_v45 }
 0x677   :  { %v6068_v6 = vpop.f32.mrf.mxu2 }
 0x678   :  { %v6105_v4 = vpop.f32.mrf.mxu0  ;;  %v6272_v6 = vsel %vm6249_vm11, %v6239_v11, 0 }
 0x679   :  { %v6106_v5 = vadd.f32 %v6105_v4, %v6093_v3  ;;  %v6094_v8 = vpop.f32.mrf.mxu3  ;;  %v6238_v3 = vpack.c.b16 %v6225_v60, %v6225_v60  ;;  %v6263_v4 = vsel %vm6249_vm11, %v6236_v61, 0  ;;  %6387 = vmatpush.bf16.msra.mxu2 %v6272_v6 }
 0x67a   :  { %6348 = vmatpush.bf16.msra.mxu1 %v6263_v4 }
 0x67b   :  { %v6269_v8 = vsel %vm6249_vm11, %v6238_v3, 0 }
 0x67c   :  { %6374 = vmatpush.bf16.msra.mxu0 %v6269_v8 }
 0x680   :  { %v6107_v9 = vpop.f32.mrf.mxu0 }
 0x68a   :  { %v6131_v22 = vpop.f32.mrf.mxu1 }
 0x68f   :  { %v6118_v35 = vpop.f32.mrf.mxu2 }
 0x690   :  { %v6119_v32 = vadd.f32 %v6118_v35, %v6106_v5  ;;  %v6266_v5 = vsel %vm6249_vm11, %v6237_v1, 0 }
 0x691   :  { %v6144_v12 = vpop.f32.mrf.mxu3  ;;  %6361 = vmatpush.bf16.msra.mxu3 %v6266_v5 }
 0x692   :  { %v6133_v16 = vpop.f32.mrf.mxu1  ;;  %v6132_v28 = vadd.f32 %v6131_v22, %v6119_v32 }
 0x694   :  { %v6145_v13 = vadd.f32 %v6144_v12, %v6132_v28  ;;  %v6181_v12 = vld [vmem:[#allocation15] sm:$0x1] }
 0x697   :  { %v6120_v14 = vpop.f32.mrf.mxu2 }
 0x699   :  { %v6146_v18 = vpop.f32.mrf.mxu3 }
 0x69a   :  { %v6209_v18 = vld [vmem:[#allocation13 + $0x20] sm:$0xff] }
 0x6a4   :  { %v6157_v19 = vpop.f32.mrf.mxu0 }
 0x6a5   :  { %v6158_v39 = vadd.f32 %v6157_v19, %v6145_v13 }
 0x6ac   :  { %v6159_v21 = vpop.f32.mrf.mxu0 }
 0x6ad   :  { %v6210_v21 = vld [vmem:[#allocation13 + $0x28] sm:$0xff] }
 0x6ae   :  { %v6229_v33 = vunpack.c.l.b16 %v6210_v21 }
 0x6b0   :  { %v6242_v53 = vpack.c.b16 %v6229_v33, %v6229_v33 }
 0x6b2   :  { %v6281_v37 = vsel %vm6249_vm11, %v6242_v53, 0 }
 0x6d0   :  { %v6170_v25 = vpop.f32.mrf.mxu2 }
 0x6d1   :  { %v6171_v27 = vadd.f32 %v6170_v25, %v6158_v39  ;;  %v6182_v39 = vld [vmem:[#allocation15 + $0x1] sm:$0x1] }
 0x6d3   :  { %v6174_v30 = vmul.f32 0.0025510204, %v6171_v27  ;;  %v6227_v27 = vunpack.c.l.b16 %v6209_v18 }
 0x6d5   :  { %v6175_v38 = vmul.f32 %v6174_v30, %v6174_v30  ;;  %v6240_v40 = vpack.c.b16 %v6227_v27, %v6227_v27 }
 0x6d7   :  { %v6177_v31 = vrot.slane %v6175_v38, 7  ;;  %v6228_v38 = vunpack.c.h.b16 %v6209_v18  ;;  %v6275_v48 = vsel %vm6249_vm11, %v6240_v40, 0 }
 0x6d8   :  { %v6172_v36 = vpop.f32.mrf.mxu2 }
 0x6d9   :  { %v6179_v42 = vsub.f32 %v6174_v30, %v6177_v31  ;;  %v6230_v31 = vunpack.c.h.b16 %v6210_v21  ;;  %v6241_v7 = vpack.c.b16 %v6228_v38, %v6228_v38 }
 0x6db   :  { %v6180_v47 = vmax.f32 %v6179_v42, 0.0  ;;  %v6243_v41 = vpack.c.b16 %v6230_v31, %v6230_v31  ;;  %v6278_v43 = vsel %vm6249_vm11, %v6241_v7, 0 }
 0x6dd   :  { %v6183_v54 = vadd.f32 1e-05, %v6180_v47  ;;  %v6211_v47 = vld [vmem:[#allocation13 + $0x30] sm:$0xf] }
 0x6de   :  { %v6231_v49 = vunpack.c.l.b16 %v6211_v47 }
 0x6df   :  { %18869 = vrsqrt.f32 %v6183_v54  ;;  %vm6190_vm13 = vweird.f32 %v6183_v54 }
 0x6e0   :  { %v6244_v50 = vpack.c.b16 %v6231_v49, %v6231_v49 }
 0x6e2   :  { %v6287_v51 = vsel %vm6249_vm11, %v6244_v50, 0 }
 0x6e5   :  { %v18870_v9 = vpop.eup %18869 }
 0x6e6   :  { %v6185_v22 = vmul.f32 %v18870_v9, %v6183_v54  ;;  %vm6191_vm12 = vweird.f32 %v18870_v9 }
 0x6e7   :  { %vm6192_vm14 = vmor %vm6190_vm13, %vm6191_vm12 }
 0x6e8   :  { %v6186_v35 = vmul.f32 %v18870_v9, %v6185_v22 }
 0x6ea   :  { %v6187_v32 = vmul.f32 0.5, %v6186_v35 }
 0x6ec   :  { %v6188_v16 = vsub.f32 1.5, %v6187_v32 }
 0x6ee   :  { %v6189_v28 = vmul.f32 %v18870_v9, %v6188_v16 }
 0x6f0   :  { %v6193_v13 = vsel %vm6192_vm14, %v18870_v9, %v6189_v28 }
 0x6f1   :  { %v6195_v14 = vrot.slane %v6193_v13, 1 }
 0x6f3   :  { %v6197_v19 = vmul.f32 %v6195_v14, %v6181_v12 }
 0x6f5   :  { %v6198_v25 = vmul.f32 %v6197_v19, %v6174_v30  ;;  %v6284_v30 = vsel %vm6249_vm11, %v6243_v41, 0 }
 0x6f7   :  { %v6199_v34 = vsub.f32 %v6182_v39, %v6198_v25 }
 0x6f9   :  { %v6201_v36 = vrot.slane %v6199_v34, 7 }
 0x6fb   :  { %v6203_v42 = vsel %vm217_vm1, %v6197_v19, %v6201_v36 }
 0x6fc   :  { %v6204_v26 = vpack.c.bf16 %v6203_v42, %v6203_v42 }
 0x6fe   :  { %14741 = vmatmul.msk.bf16.vlgmr.msrb.gmra.mxu1 %vm6245_vm15, %v6204_v26  ;;  %14742 = vmatmul.msk.bf16.vlgmr.msrb.gmra.mxu3 %vm6245_vm15, %v6204_v26 }
 0x6ff   :  { %14743 = vmatmul.msk.bf16.vlgmr.msrb.gmra.mxu0 %vm6245_vm15, %v6204_v26  ;;  %14744 = vmatmul.msk.bf16.vlgmr.msrb.gmra.mxu2 %vm6245_vm15, %v6204_v26 }
 0x700   :  { %6400 = vmatpush.bf16.msrb.mxu1 %v6275_v48  ;;  %6413 = vmatpush.bf16.msrb.mxu3 %v6278_v43 }
 0x701   :  { %6439 = vmatpush.bf16.msrb.mxu2 %v6284_v30  ;;  %6426 = vmatpush.bf16.msrb.mxu0 %v6281_v37 }
 0x70e   :  { %14745 = vmatmul.msk.bf16.vlgmr.msra.gmra.mxu1 %vm6245_vm15, %v6204_v26  ;;  %14746 = vmatmul.msk.bf16.vlgmr.msra.gmra.mxu3 %vm6245_vm15, %v6204_v26 }
 0x70f   :  { %14747 = vmatmul.msk.bf16.vlgmr.msra.gmra.mxu0 %vm6245_vm15, %v6204_v26  ;;  %14748 = vmatmul.msk.bf16.vlgmr.msra.gmra.mxu2 %vm6245_vm15, %v6204_v26 }
 0x710   :  { %6452 = vmatpush.bf16.msra.mxu1 %v6287_v51 }
 0x71e   :  { %14749 = vmatmul.msk.bf16.vlgmr.msrb.gmra.mxu1 %vm6245_vm15, %v6204_v26  ;;  %14750 = vmatmul.msk.bf16.vlgmr.msrb.gmra.mxu3 %vm6245_vm15, %v6204_v26 }
 0x71f   :  { %14751 = vmatmul.msk.bf16.vlgmr.msrb.gmra.mxu0 %vm6245_vm15, %v6204_v26  ;;  %14752 = vmatmul.msk.bf16.vlgmr.msrb.gmra.mxu2 %vm6245_vm15, %v6204_v26 }
 0x72e   :  { %14753 = vmatmul.msk.bf16.vlgmr.msra.gmra.mxu1 %vm6245_vm15, %v6204_v26 }
 0x77b   :  { %v6298_v52 = vpop.f32.mrf.mxu1 }
 0x77c   :  { %v6458_v54 = vperm.slane %v6298_v52, 0  ;;  %v6324_v56 = vpop.f32.mrf.mxu0  ;;  %v6484_v59 = vperm.slane %v6298_v52, 1 }
 0x77d   :  { %v6460_v57 = vperm.slane %v6324_v56, 0  ;;  %v6486_v60 = vperm.slane %v6324_v56, 1 }
 0x77e   :  { %v6471_v55 = vmul.f32 %v6458_v54, %v19741_v46 }
 0x77f   :  { %v6473_v45 = vmul.f32 %v6460_v57, %v19756_v29 }
 0x780   :  { %v6497_v61 = vadd.f32 %v6484_v59, %v6471_v55 }
 0x781   :  { %v6499_v1 = vadd.f32 %v6486_v60, %v6473_v45  ;;  %v6311_v11 = vpop.f32.mrf.mxu3 }
 0x782   :  { %v6510_v3 = vmax.f32 %v6497_v61, 0.0  ;;  %v6459_v4 = vperm.slane %v6311_v11, 0  ;;  %v6337_v5 = vpop.f32.mrf.mxu2  ;;  %v6485_v32 = vperm.slane %v6311_v11, 1 }
 0x783   :  { %v6512_v6 = vmax.f32 %v6499_v1, 0.0  ;;  %v6461_v8 = vperm.slane %v6337_v5, 0  ;;  %v6300_v9 = vpop.f32.mrf.mxu1  ;;  %v6487_v28 = vperm.slane %v6337_v5, 1 }
 0x784   :  { %v20226_v22 = vmul.f32 %v19534_v63, %v6510_v3  ;;  %v6472_v35 = vmul.f32 %v6459_v4, %v19749_v62  ;;  %v6326_v46 = vpop.f32.mrf.mxu0 }
 0x785   :  { %v20230_v16 = vmul.f32 %v19534_v63, %v6512_v6  ;;  %v6474_v29 = vmul.f32 %v6461_v8, %v19765_v2 }
 0x786   :  { %v6498_v12 = vadd.f32 %v6485_v32, %v6472_v35 }
 0x787   :  { %v6500_v13 = vadd.f32 %v6487_v28, %v6474_v29 }
 0x788   :  { %v6511_v14 = vmax.f32 %v6498_v12, 0.0 }
 0x789   :  { %v6513_v18 = vmax.f32 %v6500_v13, 0.0  ;;  %v6313_v19 = vpop.f32.mrf.mxu3 }
 0x78a   :  { %v20234_v21 = vmul.f32 %v19534_v63, %v6511_v14  ;;  %v6339_v39 = vpop.f32.mrf.mxu2 }
 0x78b   :  { %v20237_v25 = vmul.f32 %v19534_v63, %v6513_v18  ;;  %v6350_v62 = vpop.f32.mrf.mxu1 }
 0x78c   :  { %v6462_v27 = vperm.slane %v6350_v62, 0  ;;  %v6376_v38 = vpop.f32.mrf.mxu0  ;;  %v6488_v2 = vperm.slane %v6350_v62, 1 }
 0x78d   :  { %v6464_v31 = vperm.slane %v6376_v38, 0  ;;  %v6490_v36 = vperm.slane %v6376_v38, 1 }
 0x78e   :  { %v6475_v33 = vmul.f32 %v6462_v27, %v19773_v20 }
 0x78f   :  { %v6477_v34 = vmul.f32 %v6464_v31, %v19788_v0 }
 0x790   :  { %v6501_v40 = vadd.f32 %v6488_v2, %v6475_v33 }
 0x791   :  { %v6503_v7 = vadd.f32 %v6490_v36, %v6477_v34  ;;  %v6363_v41 = vpop.f32.mrf.mxu3 }
 0x792   :  { %v6514_v53 = vmax.f32 %v6501_v40, 0.0  ;;  %v6463_v42 = vperm.slane %v6363_v41, 0  ;;  %v6389_v26 = vpop.f32.mrf.mxu2  ;;  %v6489_v49 = vperm.slane %v6363_v41, 1 }
 0x793   :  { %v6516_v48 = vmax.f32 %v6503_v7, 0.0  ;;  %v6465_v43 = vperm.slane %v6389_v26, 0  ;;  %v6352_v30 = vpop.f32.mrf.mxu1  ;;  %v6491_v51 = vperm.slane %v6389_v26, 1 }
 0x794   :  { %v20242_v37 = vmul.f32 %v19534_v63, %v6514_v53  ;;  %v6476_v47 = vmul.f32 %v6463_v42, %v19781_v58  ;;  %v6378_v20 = vpop.f32.mrf.mxu0 }
 0x795   :  { %v20246_v50 = vmul.f32 %v19534_v63, %v6516_v48  ;;  %v6478_v0 = vmul.f32 %v6465_v43, %v19797_v17 }
 0x796   :  { %v6502_v52 = vadd.f32 %v6489_v49, %v6476_v47 }
 0x797   :  { %v6504_v54 = vadd.f32 %v6491_v51, %v6478_v0 }
 0x798   :  { %v6515_v56 = vmax.f32 %v6502_v52, 0.0 }
 0x799   :  { %v6517_v57 = vmax.f32 %v6504_v54, 0.0  ;;  %v6365_v55 = vpop.f32.mrf.mxu3 }
 0x79a   :  { %v20250_v59 = vmul.f32 %v19534_v63, %v6515_v56  ;;  %v6391_v45 = vpop.f32.mrf.mxu2 }
 0x79b   :  { %v20253_v60 = vmul.f32 %v19534_v63, %v6517_v57  ;;  %v6402_v58 = vpop.f32.mrf.mxu1 }
 0x79c   :  { %v6466_v61 = vperm.slane %v6402_v58, 0  ;;  %v6428_v1 = vpop.f32.mrf.mxu0  ;;  %v6492_v17 = vperm.slane %v6402_v58, 1 }
 0x79d   :  { %v6468_v11 = vperm.slane %v6428_v1, 0  ;;  %v6494_v5 = vperm.slane %v6428_v1, 1 }
 0x79e   :  { %v6479_v3 = vmul.f32 %v6466_v61, %v20032_v23 }
 0x79f   :  { %v6481_v4 = vmul.f32 %v6468_v11, %v20117_v10 }
 0x7a0   :  { %v6505_v6 = vadd.f32 %v6492_v17, %v6479_v3 }
 0x7a1   :  { %v6507_v8 = vadd.f32 %v6494_v5, %v6481_v4  ;;  %v6415_v9 = vpop.f32.mrf.mxu3 }
 0x7a2   :  { %v6518_v35 = vmax.f32 %v6505_v6, 0.0  ;;  %v6467_v32 = vperm.slane %v6415_v9, 0  ;;  %v6441_v46 = vpop.f32.mrf.mxu2  ;;  %v6493_v18 = vperm.slane %v6415_v9, 1 }
 0x7a3   :  { %v6520_v29 = vmax.f32 %v6507_v8, 0.0  ;;  %v6469_v28 = vperm.slane %v6441_v46, 0  ;;  %v6404_v12 = vpop.f32.mrf.mxu1  ;;  %v6495_v39 = vperm.slane %v6441_v46, 1 }
 0x7a4   :  { %v20258_v13 = vmul.f32 %v19534_v63, %v6518_v35  ;;  %v6480_v14 = vmul.f32 %v6467_v32, %v20034_v24  ;;  %v6430_v23 = vpop.f32.mrf.mxu0 }
 0x7a5   :  { %v20262_v19 = vmul.f32 %v19534_v63, %v6520_v29  ;;  %v6482_v10 = vmul.f32 %v6469_v28, %v20174_v44 }
 0x7a6   :  { %v6506_v62 = vadd.f32 %v6493_v18, %v6480_v14 }
 0x7a7   :  { %v6508_v27 = vadd.f32 %v6495_v39, %v6482_v10 }
 0x7a8   :  { %v6519_v38 = vmax.f32 %v6506_v62, 0.0 }
 0x7a9   :  { %v6521_v31 = vmax.f32 %v6508_v27, 0.0  ;;  %v6417_v33 = vpop.f32.mrf.mxu3 }
 0x7aa   :  { %v20266_v2 = vmul.f32 %v19534_v63, %v6519_v38  ;;  %v6443_v34 = vpop.f32.mrf.mxu2 }
 0x7ab   :  { %v20269_v36 = vmul.f32 %v19534_v63, %v6521_v31  ;;  %v6454_v24 = vpop.f32.mrf.mxu1 }
 0x7ac   :  { %v6470_v40 = vperm.slane %v6454_v24, 0  ;;  %v6496_v41 = vperm.slane %v6454_v24, 1 }
 0x7ae   :  { %v6483_v7 = vmul.f32 %v6470_v40, %v20187_v15 }
 0x7b0   :  { %v6509_v53 = vadd.f32 %v6496_v41, %v6483_v7 }
 0x7b2   :  { %v6522_v44 = vmax.f32 %v6509_v53, 0.0 }
 0x7b3   :  { %v6456_v42 = vpop.f32.mrf.mxu1 }
 0x7b4   :  { %v20273_v26 = vmul.f32 %v19534_v63, %v6522_v44 }
 0x7b5   :  { %19111 = dma.done.wait [#allocation4 + $0x1], 87808 }
 0x7b6   :  { %19112 = vsyncadd [#allocation4 + $0x1], 4294879488  ;;  %v14952_v48 = vld [vmem:[#allocation3 + $0x188] sm:$0xf]  ;;  %v18217_v43 = vld [vmem:[#allocation3 + $0x1a0] sm:$0xf0] }
 0x7b7   :  { %v15176_v30 = vld [vmem:[#allocation3 + $0x348] sm:$0xf]  ;;  %v14953_v47 = vor.u32 %v18217_v43, %v14952_v48  ;;  %v18273_v49 = vld [vmem:[#allocation3 + $0x360] sm:$0xf0]  ;;  %v14924_v56 = vld [vmem:[#allocation3 + $0x150] sm:$0xf] }
 0x7b8   :  { %v15400_v20 = vld [vmem:[#allocation3 + $0x508] sm:$0xf]  ;;  %v18329_v0 = vld [vmem:[#allocation3 + $0x520] sm:$0xf0]  ;;  %v15177_v51 = vor.u32 %v18273_v49, %v15176_v30  ;;  %v18210_v55 = vld [vmem:[#allocation3 + $0x168] sm:$0xf0] }
 0x7b9   :  { %v15401_v52 = vor.u32 %v18329_v0, %v15400_v20  ;;  %v15624_v54 = vld [vmem:[#allocation3 + $0x6c8] sm:$0xf]  ;;  %v18385_v15 = vld [vmem:[#allocation3 + $0x6e0] sm:$0xf0]  ;;  %10868 = vmatpush.bf16.msra.mxu3 %v14953_v47  ;;  %v15148_v45 = vld [vmem:[#allocation3 + $0x310] sm:$0xf]  ;;  %v14925_v58 = vor.u32 %v18210_v55, %v14924_v56 }
 0x7ba   :  { %v15625_v57 = vor.u32 %v18385_v15, %v15624_v54  ;;  %v18266_v63 = vld [vmem:[#allocation3 + $0x328] sm:$0xf0]  ;;  %10881 = vmatpush.bf16.msra.mxu0 %v15177_v51  ;;  %v15372_v1 = vld [vmem:[#allocation3 + $0x4d0] sm:$0xf]  ;;  %v14896_v5 = vld [vmem:[#allocation3 + $0x118] sm:$0xf] }
 0x7bb   :  { %10894 = vmatpush.bf16.msra.mxu2 %v15401_v52  ;;  %v15149_v61 = vor.u32 %v18266_v63, %v15148_v45  ;;  %v18322_v11 = vld [vmem:[#allocation3 + $0x4e8] sm:$0xf0]  ;;  %v15596_v3 = vld [vmem:[#allocation3 + $0x690] sm:$0xf]  ;;  %v18203_v6 = vld [vmem:[#allocation3 + $0x130] sm:$0xf0] }
 0x7bc   :  { %10907 = vmatpush.bf16.msrb.mxu1 %v15625_v57  ;;  %v15373_v17 = vor.u32 %v18322_v11, %v15372_v1  ;;  %v18378_v4 = vld [vmem:[#allocation3 + $0x6a8] sm:$0xf0]  ;;  %v15120_v9 = vld [vmem:[#allocation3 + $0x2d8] sm:$0xf]  ;;  %v18259_v35 = vld [vmem:[#allocation3 + $0x2f0] sm:$0xf0]  ;;  %v14897_v46 = vor.u32 %v18203_v6, %v14896_v5 }
 0x7bd   :  { %v15597_v8 = vor.u32 %v18378_v4, %v15596_v3  ;;  %v15344_v32 = vld [vmem:[#allocation3 + $0x498] sm:$0xf]  ;;  %10869 = vmatpush.bf16.msra.mxu3 %v14925_v58  ;;  %v18315_v29 = vld [vmem:[#allocation3 + $0x4b0] sm:$0xf0]  ;;  %v15121_v14 = vor.u32 %v18259_v35, %v15120_v9  ;;  %v14868_v23 = vld [vmem:[#allocation3 + $0xe0] sm:$0xf] }
 0x7be   :  { %v15568_v28 = vld [vmem:[#allocation3 + $0x658] sm:$0xf]  ;;  %v18371_v12 = vld [vmem:[#allocation3 + $0x670] sm:$0xf0]  ;;  %10882 = vmatpush.bf16.msra.mxu0 %v15149_v61  ;;  %v15345_v18 = vor.u32 %v18315_v29, %v15344_v32  ;;  %v18196_v10 = vld [vmem:[#allocation3 + $0xf8] sm:$0xf0] }
 0x7bf   :  { %10895 = vmatpush.bf16.msra.mxu2 %v15373_v17  ;;  %v15092_v39 = vld [vmem:[#allocation3 + $0x2a0] sm:$0xf]  ;;  %v15569_v62 = vor.u32 %v18371_v12, %v15568_v28  ;;  %v18252_v27 = vld [vmem:[#allocation3 + $0x2b8] sm:$0xf0]  ;;  %v14869_v24 = vor.u32 %v18196_v10, %v14868_v23  ;;  %v14840_v41 = vld [vmem:[#allocation3 + $0xa8] sm:$0xf] }
 0x7c0   :  { %10908 = vmatpush.bf16.msrb.mxu1 %v15597_v8  ;;  %v15316_v38 = vld [vmem:[#allocation3 + $0x460] sm:$0xf]  ;;  %v18308_v31 = vld [vmem:[#allocation3 + $0x478] sm:$0xf0]  ;;  %v15093_v40 = vor.u32 %v18252_v27, %v15092_v39  ;;  %v18189_v53 = vld [vmem:[#allocation3 + $0xc0] sm:$0xf0] }
 0x7c1   :  { %v15540_v33 = vld [vmem:[#allocation3 + $0x620] sm:$0xf]  ;;  %v18364_v34 = vld [vmem:[#allocation3 + $0x638] sm:$0xf0]  ;;  %10870 = vmatpush.bf16.msra.mxu3 %v14897_v46  ;;  %v15317_v7 = vor.u32 %v18308_v31, %v15316_v38  ;;  %v15064_v44 = vld [vmem:[#allocation3 + $0x268] sm:$0xf]  ;;  %v14841_v20 = vor.u32 %v18189_v53, %v14840_v41 }
 0x7c2   :  { %10883 = vmatpush.bf16.msra.mxu0 %v15121_v14  ;;  %v15541_v42 = vor.u32 %v18364_v34, %v15540_v33  ;;  %v18245_v48 = vld [vmem:[#allocation3 + $0x280] sm:$0xf0]  ;;  %v15288_v43 = vld [vmem:[#allocation3 + $0x428] sm:$0xf]  ;;  %v14812_v52 = vld [vmem:[#allocation3 + $0x70] sm:$0xf] }
 0x7c3   :  { %10896 = vmatpush.bf16.msra.mxu2 %v15345_v18  ;;  %v18301_v30 = vld [vmem:[#allocation3 + $0x440] sm:$0xf0]  ;;  %v15512_v47 = vld [vmem:[#allocation3 + $0x5e8] sm:$0xf]  ;;  %v15065_v0 = vor.u32 %v18245_v48, %v15064_v44  ;;  %v18182_v54 = vld [vmem:[#allocation3 + $0x88] sm:$0xf0] }
 0x7c4   :  { %10909 = vmatpush.bf16.msrb.mxu1 %v15569_v62  ;;  %v18357_v49 = vld [vmem:[#allocation3 + $0x600] sm:$0xf0]  ;;  %v15289_v51 = vor.u32 %v18301_v30, %v15288_v43  ;;  %v15036_v15 = vld [vmem:[#allocation3 + $0x230] sm:$0xf]  ;;  %v18238_v57 = vld [vmem:[#allocation3 + $0x248] sm:$0xf0]  ;;  %v14813_v61 = vor.u32 %v18182_v54, %v14812_v52 }
 0x7c5   :  { %10871 = vmatpush.bf16.msra.mxu3 %v14869_v24  ;;  %v15513_v56 = vor.u32 %v18357_v49, %v15512_v47  ;;  %v15260_v55 = vld [vmem:[#allocation3 + $0x3f0] sm:$0xf]  ;;  %v18294_v45 = vld [vmem:[#allocation3 + $0x408] sm:$0xf0]  ;;  %v15037_v1 = vor.u32 %v18238_v57, %v15036_v15  ;;  %v14784_v3 = vld [vmem:[#allocation3 + $0x38] sm:$0xf]  ;;  %v20277_v57 = vpack.c.bf16 %v20226_v22, %v20226_v22 }
 0x7c6   :  { %10884 = vmatpush.bf16.msra.mxu0 %v15093_v40  ;;  %v15484_v63 = vld [vmem:[#allocation3 + $0x5b0] sm:$0xf]  ;;  %v18350_v58 = vld [vmem:[#allocation3 + $0x5c8] sm:$0xf0]  ;;  %v15261_v11 = vor.u32 %v18294_v45, %v15260_v55  ;;  %v18175_v17 = vld [vmem:[#allocation3 + $0x50] sm:$0xf0] }
 0x7c7   :  { %10897 = vmatpush.bf16.msra.mxu2 %v15317_v7  ;;  %v15008_v4 = vld [vmem:[#allocation3 + $0x1f8] sm:$0xf]  ;;  %v15485_v5 = vor.u32 %v18350_v58, %v15484_v63  ;;  %v18231_v6 = vld [vmem:[#allocation3 + $0x210] sm:$0xf0]  ;;  %v14785_v46 = vor.u32 %v18175_v17, %v14784_v3  ;;  %v14756_v29 = vld [vmem:[#allocation3] sm:$0xf]  ;;  %v20281_v63 = vpack.c.bf16 %v20230_v16, %v20230_v16  ;;  %v20285_v58 = vpack.c.bf16 %v20234_v21, %v20234_v21 }
 0x7c8   :  { %10910 = vmatpush.bf16.msrb.mxu1 %v15541_v42  ;;  %v15232_v8 = vld [vmem:[#allocation3 + $0x3b8] sm:$0xf]  ;;  %v18287_v9 = vld [vmem:[#allocation3 + $0x3d0] sm:$0xf0]  ;;  %v18168_v28 = vld [vmem:[#allocation3 + $0x18] sm:$0xf0]  ;;  %v15009_v12 = vor.u32 %v18231_v6, %v15008_v4 }
 0x7c9   :  { %10872 = vmatpush.bf16.msra.mxu3 %v14841_v20  ;;  %v15456_v35 = vld [vmem:[#allocation3 + $0x578] sm:$0xf]  ;;  %v18343_v32 = vld [vmem:[#allocation3 + $0x590] sm:$0xf0]  ;;  %v15233_v14 = vor.u32 %v18287_v9, %v15232_v8  ;;  %v14980_v18 = vld [vmem:[#allocation3 + $0x1c0] sm:$0xf]  ;;  %v14757_v24 = vor.u32 %v18168_v28, %v14756_v29 }
 0x7ca   :  { %10885 = vmatpush.bf16.msra.mxu0 %v15065_v0  ;;  %v18224_v23 = vld [vmem:[#allocation3 + $0x1d8] sm:$0xf0]  ;;  %v15204_v10 = vld [vmem:[#allocation3 + $0x380] sm:$0xf]  ;;  %v15457_v39 = vor.u32 %v18343_v32, %v15456_v35  ;;  %v15848_v31 = vld [vmem:[#allocation3 + $0x888] sm:$0xf] }
 0x7cb   :  { %10898 = vmatpush.bf16.msra.mxu2 %v15289_v51  ;;  %v18280_v62 = vld [vmem:[#allocation3 + $0x398] sm:$0xf0]  ;;  %v15428_v27 = vld [vmem:[#allocation3 + $0x540] sm:$0xf]  ;;  %v18441_v33 = vld [vmem:[#allocation3 + $0x8a0] sm:$0xf0]  ;;  %v14981_v53 = vor.u32 %v18224_v23, %v14980_v18 }
 0x7cc   :  { %10911 = vmatpush.bf16.msrb.mxu1 %v15513_v56  ;;  %v18336_v38 = vld [vmem:[#allocation3 + $0x558] sm:$0xf0]  ;;  %v16072_v34 = vld [vmem:[#allocation3 + $0xa48] sm:$0xf]  ;;  %v18497_v40 = vld [vmem:[#allocation3 + $0xa60] sm:$0xf0]  ;;  %v15205_v44 = vor.u32 %v18280_v62, %v15204_v10  ;;  %v15849_v30 = vor.u32 %v18441_v33, %v15848_v31 }
 0x7cd   :  { %10873 = vmatpush.bf16.msra.mxu3 %v14813_v61  ;;  %v16296_v7 = vld [vmem:[#allocation3 + $0xc08] sm:$0xf]  ;;  %v18553_v41 = vld [vmem:[#allocation3 + $0xc20] sm:$0xf0]  ;;  %v15429_v43 = vor.u32 %v18336_v38, %v15428_v27  ;;  %v16073_v47 = vor.u32 %v18497_v40, %v16072_v34  ;;  %v15820_v20 = vld [vmem:[#allocation3 + $0x850] sm:$0xf] }
 0x7ce   :  { %10886 = vmatpush.bf16.msra.mxu0 %v15037_v1  ;;  %v16520_v42 = vld [vmem:[#allocation3 + $0xdc8] sm:$0xf]  ;;  %v18609_v48 = vld [vmem:[#allocation3 + $0xde0] sm:$0xf0]  ;;  %v16297_v49 = vor.u32 %v18553_v41, %v16296_v7  ;;  %v18434_v0 = vld [vmem:[#allocation3 + $0x868] sm:$0xf0]  ;;  %v20289_v1 = vpack.c.bf16 %v20237_v25, %v20237_v25 }
 0x7cf   :  { %10899 = vmatpush.bf16.msra.mxu2 %v15261_v11  ;;  %v16044_v51 = vld [vmem:[#allocation3 + $0xa10] sm:$0xf]  ;;  %v16521_v52 = vor.u32 %v18609_v48, %v16520_v42  ;;  %v18490_v54 = vld [vmem:[#allocation3 + $0xa28] sm:$0xf0]  ;;  %v15821_v61 = vor.u32 %v18434_v0, %v15820_v20  ;;  %v15792_v3 = vld [vmem:[#allocation3 + $0x818] sm:$0xf] }
 0x7d0   :  { %10912 = vmatpush.bf16.msrb.mxu1 %v15485_v5  ;;  %v16268_v15 = vld [vmem:[#allocation3 + $0xbd0] sm:$0xf]  ;;  %v18546_v56 = vld [vmem:[#allocation3 + $0xbe8] sm:$0xf0]  ;;  %v16045_v22 = vor.u32 %v18490_v54, %v16044_v51  ;;  %v18427_v17 = vld [vmem:[#allocation3 + $0x830] sm:$0xf0] }
 0x7d1   :  { %10874 = vmatpush.bf16.msra.mxu3 %v14785_v46  ;;  %v16492_v55 = vld [vmem:[#allocation3 + $0xd90] sm:$0xf]  ;;  %v18602_v45 = vld [vmem:[#allocation3 + $0xda8] sm:$0xf0]  ;;  %v16269_v11 = vor.u32 %v18546_v56, %v16268_v15  ;;  %v16016_v4 = vld [vmem:[#allocation3 + $0x9d8] sm:$0xf]  ;;  %v15793_v25 = vor.u32 %v18427_v17, %v15792_v3 }
 0x7d2   :  { %10887 = vmatpush.bf16.msra.mxu0 %v15009_v12  ;;  %v16493_v16 = vor.u32 %v18602_v45, %v16492_v55  ;;  %v18483_v5 = vld [vmem:[#allocation3 + $0x9f0] sm:$0xf0]  ;;  %v16240_v6 = vld [vmem:[#allocation3 + $0xb98] sm:$0xf]  ;;  %v15764_v46 = vld [vmem:[#allocation3 + $0x7e0] sm:$0xf] }
 0x7d3   :  { %10900 = vmatpush.bf16.msra.mxu2 %v15233_v14  ;;  %v18539_v21 = vld [vmem:[#allocation3 + $0xbb0] sm:$0xf0]  ;;  %v16464_v8 = vld [vmem:[#allocation3 + $0xd58] sm:$0xf]  ;;  %v16017_v35 = vor.u32 %v18483_v5, %v16016_v4  ;;  %v18420_v29 = vld [vmem:[#allocation3 + $0x7f8] sm:$0xf0] }
 0x7d4   :  { %10913 = vmatpush.bf16.msrb.mxu1 %v15457_v39  ;;  %v18595_v9 = vld [vmem:[#allocation3 + $0xd70] sm:$0xf0]  ;;  %v16241_v32 = vor.u32 %v18539_v21, %v16240_v6  ;;  %v15988_v28 = vld [vmem:[#allocation3 + $0x9a0] sm:$0xf]  ;;  %v18476_v14 = vld [vmem:[#allocation3 + $0x9b8] sm:$0xf0]  ;;  %v15765_v62 = vor.u32 %v18420_v29, %v15764_v46 }
 0x7d5   :  { %10875 = vmatpush.bf16.msra.mxu3 %v14757_v24  ;;  %v16465_v12 = vor.u32 %v18595_v9, %v16464_v8  ;;  %v16212_v18 = vld [vmem:[#allocation3 + $0xb60] sm:$0xf]  ;;  %v18532_v23 = vld [vmem:[#allocation3 + $0xb78] sm:$0xf0]  ;;  %v15989_v27 = vor.u32 %v18476_v14, %v15988_v28  ;;  %v15736_v31 = vld [vmem:[#allocation3 + $0x7a8] sm:$0xf] }
 0x7d6   :  { %10888 = vmatpush.bf16.msra.mxu0 %v14981_v53  ;;  %v16436_v10 = vld [vmem:[#allocation3 + $0xd20] sm:$0xf]  ;;  %v18588_v39 = vld [vmem:[#allocation3 + $0xd38] sm:$0xf0]  ;;  %v16213_v38 = vor.u32 %v18532_v23, %v16212_v18  ;;  %v18413_v33 = vld [vmem:[#allocation3 + $0x7c0] sm:$0xf0] }
 0x7d7   :  { %10901 = vmatpush.bf16.msra.mxu2 %v15205_v44  ;;  %v15960_v34 = vld [vmem:[#allocation3 + $0x968] sm:$0xf]  ;;  %v16437_v24 = vor.u32 %v18588_v39, %v16436_v10  ;;  %v18469_v40 = vld [vmem:[#allocation3 + $0x980] sm:$0xf0]  ;;  %v15737_v42 = vor.u32 %v18413_v33, %v15736_v31  ;;  %v18462_v0 = vld [vmem:[#allocation3 + $0x948] sm:$0xf0] }
 0x7d8   :  { %10914 = vmatpush.bf16.msrb.mxu1 %v15429_v43  ;;  %10876 = vmatmul.bf16.vlgmr.msra.gmra.mxu3 %v20277_v57  ;;  %v16184_v7 = vld [vmem:[#allocation3 + $0xb28] sm:$0xf]  ;;  %v18525_v41 = vld [vmem:[#allocation3 + $0xb40] sm:$0xf0]  ;;  %v15961_v48 = vor.u32 %v18469_v40, %v15960_v34  ;;  %v16156_v51 = vld [vmem:[#allocation3 + $0xaf0] sm:$0xf] }
 0x7d9   :  { %10920 = vmatpush.bf16.msrb.mxu3 %v15849_v30  ;;  %10889 = vmatmul.bf16.vlgmr.msra.gmra.mxu0 %v20285_v58  ;;  %v16408_v53 = vld [vmem:[#allocation3 + $0xce8] sm:$0xf]  ;;  %v18581_v44 = vld [vmem:[#allocation3 + $0xd00] sm:$0xf0]  ;;  %v16185_v43 = vor.u32 %v18525_v41, %v16184_v7  ;;  %v15708_v30 = vld [vmem:[#allocation3 + $0x770] sm:$0xf] }
 0x7da   :  { %10933 = vmatpush.bf16.msrb.mxu0 %v16073_v47  ;;  %10902 = vmatmul.bf16.vlgmr.msra.gmra.mxu2 %v20281_v63  ;;  %v18406_v47 = vld [vmem:[#allocation3 + $0x788] sm:$0xf0]  ;;  %v16409_v20 = vor.u32 %v18581_v44, %v16408_v53  ;;  %v16380_v54 = vld [vmem:[#allocation3 + $0xcb0] sm:$0xf]  ;;  %v18455_v17 = vld [vmem:[#allocation3 + $0x910] sm:$0xf0] }
 0x7db   :  { %10946 = vmatpush.bf16.msrb.mxu2 %v16297_v49  ;;  %10915 = vmatmul.bf16.vlgmr.msrb.gmra.mxu1 %v20289_v1  ;;  %v15932_v49 = vld [vmem:[#allocation3 + $0x930] sm:$0xf]  ;;  %v18574_v15 = vld [vmem:[#allocation3 + $0xcc8] sm:$0xf0]  ;;  %v15709_v56 = vor.u32 %v18406_v47, %v15708_v30  ;;  %v16128_v4 = vld [vmem:[#allocation3 + $0xab8] sm:$0xf]  ;;  %v20297_v47 = vpack.c.bf16 %v20242_v37, %v20242_v37  ;;  %v20309_v37 = vpack.c.bf16 %v20253_v60, %v20253_v60 }
 0x7dc   :  { %10959 = vmatpush.bf16.msra.mxu1 %v16521_v52  ;;  %v18518_v52 = vld [vmem:[#allocation3 + $0xb08] sm:$0xf0]  ;;  %v15933_v55 = vor.u32 %v18462_v0, %v15932_v49  ;;  %v16381_v3 = vor.u32 %v18574_v15, %v16380_v54  ;;  %v16352_v5 = vld [vmem:[#allocation3 + $0xc78] sm:$0xf]  ;;  %v18567_v6 = vld [vmem:[#allocation3 + $0xc90] sm:$0xf0]  ;;  %v20301_v54 = vpack.c.bf16 %v20246_v50, %v20246_v50  ;;  %v20305_v15 = vpack.c.bf16 %v20250_v59, %v20250_v59 }
 0x7dd   :  { %10921 = vmatpush.bf16.msrb.mxu3 %v15821_v61  ;;  %v16157_v45 = vor.u32 %v18518_v52, %v16156_v51  ;;  %v15680_v61 = vld [vmem:[#allocation3 + $0x738] sm:$0xf]  ;;  %v15652_v8 = vld [vmem:[#allocation3 + $0x700] sm:$0xf]  ;;  %v18392_v9 = vld [vmem:[#allocation3 + $0x718] sm:$0xf0]  ;;  %v16353_v28 = vor.u32 %v18567_v6, %v16352_v5 }
 0x7de   :  { %10934 = vmatpush.bf16.msrb.mxu0 %v16045_v22  ;;  %v18399_v22 = vld [vmem:[#allocation3 + $0x750] sm:$0xf0]  ;;  %v18448_v46 = vld [vmem:[#allocation3 + $0x8d8] sm:$0xf0]  ;;  %v16100_v29 = vld [vmem:[#allocation3 + $0xa80] sm:$0xf] }
 0x7df   :  { %10947 = vmatpush.bf16.msrb.mxu2 %v16269_v11  ;;  %v15904_v11 = vld [vmem:[#allocation3 + $0x8f8] sm:$0xf]  ;;  %v15681_v21 = vor.u32 %v18399_v22, %v15680_v61  ;;  %v16324_v14 = vld [vmem:[#allocation3 + $0xc40] sm:$0xf]  ;;  %v18560_v18 = vld [vmem:[#allocation3 + $0xc58] sm:$0xf0] }
 0x7e0   :  { %10960 = vmatpush.bf16.msra.mxu1 %v16493_v16  ;;  %v18511_v16 = vld [vmem:[#allocation3 + $0xad0] sm:$0xf0]  ;;  %v16744_v23 = vld [vmem:[#allocation3 + $0xf88] sm:$0xf]  ;;  %v18665_v10 = vld [vmem:[#allocation3 + $0xfa0] sm:$0xf0]  ;;  %v16325_v7 = vor.u32 %v18560_v18, %v16324_v14 }
 0x7e1   :  { %10922 = vmatpush.bf16.msrb.mxu3 %v15793_v25  ;;  %v15905_v25 = vor.u32 %v18455_v17, %v15904_v11  ;;  %v16968_v39 = vld [vmem:[#allocation3 + $0x1148] sm:$0xf]  ;;  %v18777_v31 = vld [vmem:[#allocation3 + $0x1320] sm:$0xf0]  ;;  %v16745_v41 = vor.u32 %v18665_v10, %v16744_v23  ;;  %v18714_v49 = vld [vmem:[#allocation3 + $0x1128] sm:$0xf0] }
 0x7e2   :  { %10935 = vmatpush.bf16.msrb.mxu0 %v16017_v35  ;;  %v16129_v35 = vor.u32 %v18511_v16, %v16128_v4  ;;  %v18833_v40 = vld [vmem:[#allocation3 + $0x14e0] sm:$0xf0]  ;;  %v18770_v0 = vld [vmem:[#allocation3 + $0x12e8] sm:$0xf0]  ;;  %v17388_v51 = vld [vmem:[#allocation3 + $0x1490] sm:$0xf] }
 0x7e3   :  { %10948 = vmatpush.bf16.msrb.mxu2 %v16241_v32  ;;  %v15876_v32 = vld [vmem:[#allocation3 + $0x8c0] sm:$0xf]  ;;  %v18826_v52 = vld [vmem:[#allocation3 + $0x14a8] sm:$0xf0]  ;;  %v16688_v61 = vld [vmem:[#allocation3 + $0xf18] sm:$0xf] }
 0x7e4   :  { %10961 = vmatpush.bf16.msra.mxu1 %v16465_v12  ;;  %v18504_v12 = vld [vmem:[#allocation3 + $0xa98] sm:$0xf0]  ;;  %v15877_v33 = vor.u32 %v18448_v46, %v15876_v32  ;;  %v18651_v22 = vld [vmem:[#allocation3 + $0xf30] sm:$0xf0]  ;;  %v16912_v11 = vld [vmem:[#allocation3 + $0x10d8] sm:$0xf]  ;;  %v17389_v50 = vor.u32 %v18826_v52, %v17388_v51 }
 0x7e5   :  { %10923 = vmatpush.bf16.msrb.mxu3 %v15765_v62  ;;  %v15653_v62 = vor.u32 %v18392_v9, %v15652_v8  ;;  %v16101_v34 = vor.u32 %v18504_v12, %v16100_v29  ;;  %v18707_v59 = vld [vmem:[#allocation3 + $0x10f0] sm:$0xf0]  ;;  %v17360_v4 = vld [vmem:[#allocation3 + $0x1458] sm:$0xf]  ;;  %v16689_v60 = vor.u32 %v18651_v22, %v16688_v61  ;;  %v18644_v8 = vld [vmem:[#allocation3 + $0xef8] sm:$0xf0] }
 0x7e6   :  { %10936 = vmatpush.bf16.msrb.mxu0 %v15989_v27  ;;  %v18721_v27 = vld [vmem:[#allocation3 + $0x1160] sm:$0xf0]  ;;  %v18763_v17 = vld [vmem:[#allocation3 + $0x12b0] sm:$0xf0]  ;;  %v16913_v5 = vor.u32 %v18707_v59, %v16912_v11  ;;  %v16884_v9 = vld [vmem:[#allocation3 + $0x10a0] sm:$0xf] }
 0x7e7   :  { %10949 = vmatpush.bf16.msrb.mxu2 %v16213_v38  ;;  %v17192_v38 = vld [vmem:[#allocation3 + $0x1308] sm:$0xf]  ;;  %v16969_v53 = vor.u32 %v18721_v27, %v16968_v39  ;;  %v18819_v16 = vld [vmem:[#allocation3 + $0x1470] sm:$0xf0]  ;;  %v17108_v32 = vld [vmem:[#allocation3 + $0x1260] sm:$0xf] }
 0x7e8   :  { %10962 = vmatpush.bf16.msra.mxu1 %v16437_v24  ;;  %v17416_v24 = vld [vmem:[#allocation3 + $0x14c8] sm:$0xf]  ;;  %v17193_v44 = vor.u32 %v18777_v31, %v17192_v38  ;;  %v18756_v46 = vld [vmem:[#allocation3 + $0x1278] sm:$0xf0]  ;;  %v17332_v29 = vld [vmem:[#allocation3 + $0x1420] sm:$0xf] }
 0x7e9   :  { %10924 = vmatpush.bf16.msrb.mxu3 %v15737_v42  ;;  %v16716_v42 = vld [vmem:[#allocation3 + $0xf50] sm:$0xf]  ;;  %v17417_v30 = vor.u32 %v18833_v40, %v17416_v24  ;;  %v17109_v18 = vor.u32 %v18756_v46, %v17108_v32  ;;  %v16632_v23 = vld [vmem:[#allocation3 + $0xea8] sm:$0xf]  ;;  %v18637_v10 = vld [vmem:[#allocation3 + $0xec0] sm:$0xf0] }
 0x7ea   :  { %10937 = vmatpush.bf16.msrb.mxu0 %v15961_v48  ;;  %v18658_v48 = vld [vmem:[#allocation3 + $0xf68] sm:$0xf0]  ;;  %v16856_v39 = vld [vmem:[#allocation3 + $0x1068] sm:$0xf]  ;;  %v18693_v27 = vld [vmem:[#allocation3 + $0x1080] sm:$0xf0]  ;;  %v16633_v24 = vor.u32 %v18637_v10, %v16632_v23 }
 0x7eb   :  { %10950 = vmatpush.bf16.msrb.mxu2 %v16185_v43  ;;  %v16940_v43 = vld [vmem:[#allocation3 + $0x1110] sm:$0xf]  ;;  %v17080_v38 = vld [vmem:[#allocation3 + $0x1228] sm:$0xf]  ;;  %v18749_v31 = vld [vmem:[#allocation3 + $0x1240] sm:$0xf0]  ;;  %v16857_v40 = vor.u32 %v18693_v27, %v16856_v39 }
 0x7ec   :  { %10963 = vmatpush.bf16.msra.mxu1 %v16409_v20  ;;  %v17164_v20 = vld [vmem:[#allocation3 + $0x12d0] sm:$0xf]  ;;  %v18679_v22 = vld [vmem:[#allocation3 + $0x1010] sm:$0xf0]  ;;  %v17024_v11 = vld [vmem:[#allocation3 + $0x11b8] sm:$0xf] }
 0x7ed   :  { %10925 = vmatpush.bf16.msrb.mxu3 %v15709_v56  ;;  %v16717_v56 = vor.u32 %v18658_v48, %v16716_v42  ;;  %v18686_v48 = vld [vmem:[#allocation3 + $0x1048] sm:$0xf0]  ;;  %v17248_v59 = vld [vmem:[#allocation3 + $0x1378] sm:$0xf]  ;;  %v18784_v32 = vld [vmem:[#allocation3 + $0x1358] sm:$0xf0] }
 0x7ee   :  { %10938 = vmatpush.bf16.msrb.mxu0 %v15933_v55  ;;  %v16941_v55 = vor.u32 %v18714_v49, %v16940_v43  ;;  %v17052_v43 = vld [vmem:[#allocation3 + $0x11f0] sm:$0xf]  ;;  %v17472_v46 = vld [vmem:[#allocation3 + $0x1538] sm:$0xf]  ;;  %v15178_v23 = vld [vmem:[#allocation3 + $0x364] sm:$0xf0] }
 0x7ef   :  { %10951 = vmatpush.bf16.msrb.mxu2 %v16157_v45  ;;  %v17165_v45 = vor.u32 %v18770_v0, %v17164_v20  ;;  %v17276_v49 = vld [vmem:[#allocation3 + $0x13b0] sm:$0xf]  ;;  %v18798_v20 = vld [vmem:[#allocation3 + $0x13c8] sm:$0xf0]  ;;  %v15402_v27 = vld [vmem:[#allocation3 + $0x524] sm:$0xf0] }
 0x7f0   :  { %10964 = vmatpush.bf16.msra.mxu1 %v16381_v3  ;;  %v17136_v3 = vld [vmem:[#allocation3 + $0x1298] sm:$0xf]  ;;  %v17277_v61 = vor.u32 %v18798_v20, %v17276_v49  ;;  %v18382_v49 = vld [vmem:[#allocation3 + $0x6cc] sm:$0xf]  ;;  %v15626_v20 = vld [vmem:[#allocation3 + $0x6e4] sm:$0xf0] }
 0x7f1   :  { %10926 = vmatpush.bf16.msrb.mxu3 %v15681_v21  ;;  %v17137_v6 = vor.u32 %v18763_v17, %v17136_v3  ;;  %v16660_v21 = vld [vmem:[#allocation3 + $0xee0] sm:$0xf]  ;;  %v18791_v3 = vld [vmem:[#allocation3 + $0x1390] sm:$0xf0] }
 0x7f2   :  { %10939 = vmatpush.bf16.msrb.mxu0 %v15905_v25  ;;  %v17361_v25 = vor.u32 %v18819_v16, %v17360_v4  ;;  %v16661_v12 = vor.u32 %v18644_v8, %v16660_v21  ;;  %v16548_v4 = vld [vmem:[#allocation3 + $0xe00] sm:$0xf]  ;;  %v18616_v16 = vld [vmem:[#allocation3 + $0xe18] sm:$0xf0] }
 0x7f3   :  { %10952 = vmatpush.bf16.msrb.mxu2 %v16129_v35  ;;  %v18700_v35 = vld [vmem:[#allocation3 + $0x10b8] sm:$0xf0]  ;;  %v16996_v8 = vld [vmem:[#allocation3 + $0x1180] sm:$0xf] }
 0x7f4   :  { %10965 = vmatpush.bf16.msra.mxu1 %v16353_v28  ;;  %v18812_v28 = vld [vmem:[#allocation3 + $0x1438] sm:$0xf0]  ;;  %v16885_v14 = vor.u32 %v18700_v35, %v16884_v9  ;;  %v17249_v9 = vor.u32 %v18791_v3, %v17248_v59  ;;  %v17220_v35 = vld [vmem:[#allocation3 + $0x1340] sm:$0xf]  ;;  %v15346_v59 = vld [vmem:[#allocation3 + $0x4b4] sm:$0xf0] }
 0x7f5   :  { %10927 = vmatpush.bf16.msrb.mxu3 %v15653_v62  ;;  %v17333_v62 = vor.u32 %v18812_v28, %v17332_v29  ;;  %v18672_v21 = vld [vmem:[#allocation3 + $0xfd8] sm:$0xf0]  ;;  %v18847_v29 = vld [vmem:[#allocation3 + $0x1550] sm:$0xf0]  ;;  %v18214_v28 = vld [vmem:[#allocation3 + $0x18c] sm:$0xf] }
 0x7f6   :  { %10940 = vmatpush.bf16.msrb.mxu0 %v15877_v33  ;;  %v17304_v33 = vld [vmem:[#allocation3 + $0x13e8] sm:$0xf]  ;;  %v18375_v3 = vld [vmem:[#allocation3 + $0x694] sm:$0xf] }
 0x7f7   :  { %10953 = vmatpush.bf16.msrb.mxu2 %v16101_v34  ;;  %v18805_v34 = vld [vmem:[#allocation3 + $0x1400] sm:$0xf0] }
 0x7f8   :  { %10966 = vmatpush.bf16.msra.mxu1 %v16325_v7  ;;  %10928 = vmatmul.bf16.vlgmr.msrb.gmra.mxu3 %v20297_v47  ;;  %v17081_v7 = vor.u32 %v18749_v31, %v17080_v38  ;;  %v17305_v42 = vor.u32 %v18805_v34, %v17304_v33  ;;  %v17221_v38 = vor.u32 %v18784_v32, %v17220_v35  ;;  %v17444_v33 = vld [vmem:[#allocation3 + $0x1500] sm:$0xf]  ;;  %v18368_v35 = vld [vmem:[#allocation3 + $0x65c] sm:$0xf]  ;;  %v15570_v32 = vld [vmem:[#allocation3 + $0x674] sm:$0xf0] }
 0x7f9   :  { %10972 = vmatpush.bf16.msra.mxu3 %v16745_v41  ;;  %10941 = vmatmul.bf16.vlgmr.msrb.gmra.mxu0 %v20305_v15  ;;  %v16604_v41 = vld [vmem:[#allocation3 + $0xe70] sm:$0xf]  ;;  %v17473_v31 = vor.u32 %v18847_v29, %v17472_v46 }
 0x7fa   :  { %10985 = vmatpush.bf16.msra.mxu0 %v16969_v53  ;;  %10954 = vmatmul.bf16.vlgmr.msrb.gmra.mxu2 %v20301_v54  ;;  %v18630_v53 = vld [vmem:[#allocation3 + $0xe88] sm:$0xf0] }
 0x7fb   :  { %10998 = vmatpush.bf16.msra.mxu2 %v17193_v44  ;;  %10967 = vmatmul.bf16.vlgmr.msra.gmra.mxu1 %v20309_v37  ;;  %v16828_v44 = vld [vmem:[#allocation3 + $0x1030] sm:$0xf]  ;;  %v16605_v0 = vor.u32 %v18630_v53, %v16604_v41 }
 0x7fc   :  { %11011 = vmatpush.bf16.msrb.mxu1 %v17417_v30  ;;  %v18742_v30 = vld [vmem:[#allocation3 + $0x1208] sm:$0xf0]  ;;  %v16829_v51 = vor.u32 %v18686_v48, %v16828_v44  ;;  %v14926_v41 = vld [vmem:[#allocation3 + $0x16c] sm:$0xf0]  ;;  %v20317_v44 = vpack.c.bf16 %v20258_v13, %v20258_v13 }
 0x7fd   :  { %10973 = vmatpush.bf16.msra.mxu3 %v16717_v56  ;;  %v17053_v52 = vor.u32 %v18742_v30, %v17052_v43  ;;  %v16576_v56 = vld [vmem:[#allocation3 + $0xe38] sm:$0xf]  ;;  %v15150_v48 = vld [vmem:[#allocation3 + $0x32c] sm:$0xf0]  ;;  %v18319_v43 = vld [vmem:[#allocation3 + $0x4d4] sm:$0xf] }
 0x7fe   :  { %10986 = vmatpush.bf16.msra.mxu0 %v16941_v55  ;;  %v18623_v55 = vld [vmem:[#allocation3 + $0xe50] sm:$0xf0]  ;;  %v15374_v30 = vld [vmem:[#allocation3 + $0x4ec] sm:$0xf0] }
 0x7ff   :  { %10999 = vmatpush.bf16.msra.mxu2 %v17165_v45  ;;  %v16800_v45 = vld [vmem:[#allocation3 + $0xff8] sm:$0xf]  ;;  %v16577_v17 = vor.u32 %v18623_v55, %v16576_v56 }
 0x800   :  { %11012 = vmatpush.bf16.msrb.mxu1 %v17389_v50  ;;  %v18735_v50 = vld [vmem:[#allocation3 + $0x11d0] sm:$0xf0] }
 0x801   :  { %10974 = vmatpush.bf16.msra.mxu3 %v16689_v60  ;;  %v16801_v60 = vor.u32 %v18679_v22, %v16800_v45  ;;  %v18200_v45 = vld [vmem:[#allocation3 + $0x11c] sm:$0xf]  ;;  %v15629_v22 = vor.u32 %v18382_v49, %v15626_v20  ;;  %v15514_v49 = vld [vmem:[#allocation3 + $0x604] sm:$0xf0] }
 0x802   :  { %10987 = vmatpush.bf16.msra.mxu0 %v16913_v5  ;;  %v17025_v5 = vor.u32 %v18735_v50, %v17024_v11  ;;  %v15122_v11 = vld [vmem:[#allocation3 + $0x2f4] sm:$0xf0]  ;;  %v18312_v50 = vld [vmem:[#allocation3 + $0x49c] sm:$0xf] }
 0x803   :  { %11000 = vmatpush.bf16.msra.mxu2 %v17137_v6  ;;  %v16772_v6 = vld [vmem:[#allocation3 + $0xfc0] sm:$0xf] }
 0x804   :  { %11013 = vmatpush.bf16.msrb.mxu1 %v17361_v25  ;;  %v18728_v25 = vld [vmem:[#allocation3 + $0x1198] sm:$0xf0]  ;;  %v16773_v10 = vor.u32 %v18672_v21, %v16772_v6  ;;  %v18249_v21 = vld [vmem:[#allocation3 + $0x2a4] sm:$0xf] }
 0x805   :  { %10975 = vmatpush.bf16.msra.mxu3 %v16661_v12  ;;  %v16549_v12 = vor.u32 %v18616_v16, %v16548_v4  ;;  %v16997_v39 = vor.u32 %v18728_v25, %v16996_v8  ;;  %v18193_v16 = vld [vmem:[#allocation3 + $0xe4] sm:$0xf]  ;;  %v15094_v8 = vld [vmem:[#allocation3 + $0x2bc] sm:$0xf0] }
 0x806   :  { %10988 = vmatpush.bf16.msra.mxu0 %v16885_v14  ;;  %v14954_v14 = vld [vmem:[#allocation3 + $0x1a4] sm:$0xf0]  ;;  %v15318_v25 = vld [vmem:[#allocation3 + $0x47c] sm:$0xf0]  ;;  %v15097_v29 = vor.u32 %v18249_v21, %v15094_v8  ;;  %v18340_v8 = vld [vmem:[#allocation3 + $0x57c] sm:$0xf] }
 0x807   :  { %11001 = vmatpush.bf16.msra.mxu2 %v17109_v18  ;;  %v18270_v18 = vld [vmem:[#allocation3 + $0x34c] sm:$0xf]  ;;  %v14957_v34 = vor.u32 %v18214_v28, %v14954_v14  ;;  %v15206_v21 = vld [vmem:[#allocation3 + $0x39c] sm:$0xf0] }
 0x808   :  { %11014 = vmatpush.bf16.msrb.mxu1 %v17333_v62  ;;  %v18326_v62 = vld [vmem:[#allocation3 + $0x50c] sm:$0xf] }
 0x809   :  { %10976 = vmatpush.bf16.msra.mxu3 %v16633_v24  ;;  %v15181_v24 = vor.u32 %v18270_v18, %v15178_v23  ;;  %v15405_v53 = vor.u32 %v18326_v62, %v15402_v27  ;;  %v18186_v28 = vld [vmem:[#allocation3 + $0xac] sm:$0xf]  ;;  %v15573_v18 = vor.u32 %v18368_v35, %v15570_v32  ;;  %v15290_v62 = vld [vmem:[#allocation3 + $0x444] sm:$0xf0]  ;;  %v18361_v27 = vld [vmem:[#allocation3 + $0x624] sm:$0xf] }
 0x80a   :  { %10989 = vmatpush.bf16.msra.mxu0 %v16857_v40  ;;  %v18840_v40 = vld [vmem:[#allocation3 + $0x1518] sm:$0xf0]  ;;  %v18242_v23 = vld [vmem:[#allocation3 + $0x26c] sm:$0xf]  ;;  %v15850_v35 = vld [vmem:[#allocation3 + $0x8a4] sm:$0xf0] }
 0x80b   :  { %11002 = vmatpush.bf16.msra.mxu2 %v17081_v7  ;;  %v18207_v7 = vld [vmem:[#allocation3 + $0x154] sm:$0xf]  ;;  %v17445_v13 = vor.u32 %v18840_v40, %v17444_v33  ;;  %v18494_v32 = vld [vmem:[#allocation3 + $0xa4c] sm:$0xf] }
 0x80c   :  { %11015 = vmatpush.bf16.msrb.mxu1 %v17305_v42  ;;  %v18263_v42 = vld [vmem:[#allocation3 + $0x314] sm:$0xf]  ;;  %v14929_v56 = vor.u32 %v18207_v7, %v14926_v41 }
 0x80d   :  { %10977 = vmatpush.bf16.msra.mxu3 %v16605_v0  ;;  %v20321_v0 = vpack.c.bf16 %v20262_v19, %v20262_v19  ;;  %v15153_v55 = vor.u32 %v18263_v42, %v15150_v48  ;;  %v15377_v19 = vor.u32 %v18319_v43, %v15374_v30  ;;  %v18235_v41 = vld [vmem:[#allocation3 + $0x234] sm:$0xf]  ;;  %v20337_v48 = vpack.c.bf16 %v20273_v26, %v20273_v26  ;;  %v15262_v43 = vld [vmem:[#allocation3 + $0x40c] sm:$0xf0]  ;;  %v18354_v30 = vld [vmem:[#allocation3 + $0x5ec] sm:$0xf] }
 0x80e   :  { %10990 = vmatpush.bf16.msra.mxu0 %v16829_v51  ;;  %v20325_v51 = vpack.c.bf16 %v20266_v2, %v20266_v2  ;;  %v18256_v2 = vld [vmem:[#allocation3 + $0x2dc] sm:$0xf]  ;;  %v18291_v42 = vld [vmem:[#allocation3 + $0x3f4] sm:$0xf]  ;;  %v15234_v26 = vld [vmem:[#allocation3 + $0x3d4] sm:$0xf0] }
 0x80f   :  { %11003 = vmatpush.bf16.msra.mxu2 %v17053_v52  ;;  %v20329_v52 = vpack.c.bf16 %v20269_v36, %v20269_v36  ;;  %v15598_v36 = vld [vmem:[#allocation3 + $0x6ac] sm:$0xf0]  ;;  %v15125_v4 = vor.u32 %v18256_v2, %v15122_v11  ;;  %v18284_v2 = vld [vmem:[#allocation3 + $0x3bc] sm:$0xf]  ;;  %v18347_v11 = vld [vmem:[#allocation3 + $0x5b4] sm:$0xf] }
 0x810   :  { %11016 = vmatpush.bf16.msrb.mxu1 %v17277_v61  ;;  %v14898_v61 = vld [vmem:[#allocation3 + $0x134] sm:$0xf0]  ;;  %v15601_v6 = vor.u32 %v18375_v3, %v15598_v36  ;;  %v18165_v36 = vld [vmem:[#allocation3 + $0x4] sm:$0xf] }
 0x811   :  { %10978 = vmatpush.bf16.msra.mxu3 %v16577_v17  ;;  %v14901_v17 = vor.u32 %v18200_v45, %v14898_v61  ;;  %v15265_v45 = vor.u32 %v18291_v42, %v15262_v43  ;;  %v15517_v61 = vor.u32 %v18354_v30, %v15514_v49  ;;  %v18424_v49 = vld [vmem:[#allocation3 + $0x81c] sm:$0xf] }
 0x812   :  { %10991 = vmatpush.bf16.msra.mxu0 %v16801_v60  ;;  %v14870_v60 = vld [vmem:[#allocation3 + $0xfc] sm:$0xf0] }
 0x813   :  { %11004 = vmatpush.bf16.msra.mxu2 %v17025_v5  ;;  %v15349_v5 = vor.u32 %v18312_v50, %v15346_v59  ;;  %v14873_v46 = vor.u32 %v18193_v16, %v14870_v60  ;;  %v15486_v50 = vld [vmem:[#allocation3 + $0x5cc] sm:$0xf0]  ;;  %v15237_v16 = vor.u32 %v18284_v2, %v15234_v26 }
 0x814   :  { %11017 = vmatpush.bf16.msrb.mxu1 %v17249_v9  ;;  %v18305_v9 = vld [vmem:[#allocation3 + $0x464] sm:$0xf]  ;;  %v15489_v60 = vor.u32 %v18347_v11, %v15486_v50  ;;  %v16494_v2 = vld [vmem:[#allocation3 + $0xdac] sm:$0xf0] }
 0x815   :  { %10979 = vmatpush.bf16.msra.mxu3 %v16549_v12  ;;  %v14842_v12 = vld [vmem:[#allocation3 + $0xc4] sm:$0xf0]  ;;  %v15321_v14 = vor.u32 %v18305_v9, %v15318_v25  ;;  %v15458_v9 = vld [vmem:[#allocation3 + $0x594] sm:$0xf0]  ;;  %v18438_v25 = vld [vmem:[#allocation3 + $0x88c] sm:$0xf] }
 0x816   :  { %10992 = vmatpush.bf16.msra.mxu0 %v16773_v10  ;;  %v15066_v10 = vld [vmem:[#allocation3 + $0x284] sm:$0xf0]  ;;  %v18417_v50 = vld [vmem:[#allocation3 + $0x7e4] sm:$0xf] }
 0x817   :  { %11005 = vmatpush.bf16.msra.mxu2 %v16997_v39  ;;  %v18298_v39 = vld [vmem:[#allocation3 + $0x42c] sm:$0xf]  ;;  %v15069_v33 = vor.u32 %v18242_v23, %v15066_v10  ;;  %v15461_v23 = vor.u32 %v18340_v8, %v15458_v9  ;;  %v18333_v10 = vld [vmem:[#allocation3 + $0x544] sm:$0xf] }
 0x818   :  { %11018 = vmatpush.bf16.msrb.mxu1 %v17221_v38  ;;  %10980 = vmatmul.bf16.vlgmr.msra.gmra.mxu3 %v20317_v44  ;;  %v15542_v38 = vld [vmem:[#allocation3 + $0x63c] sm:$0xf0]  ;;  %v15293_v40 = vor.u32 %v18298_v39, %v15290_v62  ;;  %v15853_v39 = vor.u32 %v18438_v25, %v15850_v35  ;;  %v18410_v9 = vld [vmem:[#allocation3 + $0x7ac] sm:$0xf]  ;;  %v15738_v25 = vld [vmem:[#allocation3 + $0x7c4] sm:$0xf0] }
 0x819   :  { %11030 = vmatpush.bf16.msrb.mxu3 %v17473_v31  ;;  %10993 = vmatmul.bf16.vlgmr.msra.gmra.mxu0 %v20325_v51  ;;  %v14845_v31 = vor.u32 %v18186_v28, %v14842_v12  ;;  %v15545_v7 = vor.u32 %v18361_v27, %v15542_v38  ;;  %v18550_v12 = vld [vmem:[#allocation3 + $0xc0c] sm:$0xf]  ;;  %v15430_v27 = vld [vmem:[#allocation3 + $0x55c] sm:$0xf0]  ;;  %v18431_v38 = vld [vmem:[#allocation3 + $0x854] sm:$0xf] }
 0x81a   :  { %11037 = vmatpush.bf16.msrb.mxu0 %v14957_v34  ;;  %11006 = vmatmul.bf16.vlgmr.msra.gmra.mxu2 %v20321_v0  ;;  %v18179_v34 = vld [vmem:[#allocation3 + $0x74] sm:$0xf]  ;;  %v15433_v42 = vor.u32 %v18333_v10, %v15430_v27 }
 0x81b   :  { %11050 = vmatpush.bf16.msrb.mxu2 %v15181_v24  ;;  %11019 = vmatmul.bf16.vlgmr.msrb.gmra.mxu1 %v20329_v52  ;;  %v14814_v24 = vld [vmem:[#allocation3 + $0x8c] sm:$0xf0] }
 0x81c   :  { %11063 = vmatpush.bf16.msra.mxu1 %v15405_v53  ;;  %v15038_v53 = vld [vmem:[#allocation3 + $0x24c] sm:$0xf0]  ;;  %v14817_v20 = vor.u32 %v18179_v34, %v14814_v24  ;;  %v18487_v34 = vld [vmem:[#allocation3 + $0xa14] sm:$0xf] }
 0x81d   :  { %11031 = vmatpush.bf16.msrb.mxu3 %v17445_v13  ;;  %v15041_v13 = vor.u32 %v18235_v41, %v15038_v53  ;;  %v16046_v24 = vld [vmem:[#allocation3 + $0xa2c] sm:$0xf0]  ;;  %v18606_v41 = vld [vmem:[#allocation3 + $0xdcc] sm:$0xf]  ;;  %v16522_v53 = vld [vmem:[#allocation3 + $0xde4] sm:$0xf0] }
 0x81e   :  { %11038 = vmatpush.bf16.msrb.mxu0 %v14929_v56  ;;  %v18172_v56 = vld [vmem:[#allocation3 + $0x3c] sm:$0xf]  ;;  %v16049_v30 = vor.u32 %v18487_v34, %v16046_v24  ;;  %v18515_v34 = vld [vmem:[#allocation3 + $0xaf4] sm:$0xf]  ;;  %v16158_v24 = vld [vmem:[#allocation3 + $0xb0c] sm:$0xf0] }
 0x81f   :  { %11051 = vmatpush.bf16.msrb.mxu2 %v15153_v55  ;;  %v14786_v55 = vld [vmem:[#allocation3 + $0x54] sm:$0xf0] }
 0x820   :  { %11064 = vmatpush.bf16.msra.mxu1 %v15377_v19  ;;  %v18228_v19 = vld [vmem:[#allocation3 + $0x1fc] sm:$0xf]  ;;  %v14789_v59 = vor.u32 %v18172_v56, %v14786_v55  ;;  %v16525_v56 = vor.u32 %v18606_v41, %v16522_v53 }
 0x821   :  { %11076 = vmatpush.bf16.msra.mxu3 %v15629_v22  ;;  %v15010_v22 = vld [vmem:[#allocation3 + $0x214] sm:$0xf0]  ;;  %v18480_v55 = vld [vmem:[#allocation3 + $0x9dc] sm:$0xf] }
 0x822   :  { %11039 = vmatpush.bf16.msrb.mxu0 %v14901_v17  ;;  %v15013_v3 = vor.u32 %v18228_v19, %v15010_v22  ;;  %v14758_v17 = vld [vmem:[#allocation3 + $0x1c] sm:$0xf0]  ;;  %v16242_v19 = vld [vmem:[#allocation3 + $0xbb4] sm:$0xf0]  ;;  %v18599_v22 = vld [vmem:[#allocation3 + $0xd94] sm:$0xf] }
 0x823   :  { %11052 = vmatpush.bf16.msrb.mxu2 %v15125_v4  ;;  %v18221_v4 = vld [vmem:[#allocation3 + $0x1c4] sm:$0xf] }
 0x824   :  { %11065 = vmatpush.bf16.msra.mxu1 %v15349_v5  ;;  %v14982_v5 = vld [vmem:[#allocation3 + $0x1dc] sm:$0xf0] }
 0x825   :  { %11077 = vmatpush.bf16.msra.mxu3 %v15601_v6  ;;  %v18277_v6 = vld [vmem:[#allocation3 + $0x384] sm:$0xf]  ;;  %v14985_v28 = vor.u32 %v18221_v4, %v14982_v5  ;;  %v15990_v4 = vld [vmem:[#allocation3 + $0x9bc] sm:$0xf0]  ;;  %v18592_v5 = vld [vmem:[#allocation3 + $0xd5c] sm:$0xf] }
 0x826   :  { %11040 = vmatpush.bf16.msrb.mxu0 %v14873_v46  ;;  %v16074_v46 = vld [vmem:[#allocation3 + $0xa64] sm:$0xf0] }
 0x827   :  { %11053 = vmatpush.bf16.msrb.mxu2 %v15097_v29  ;;  %v14761_v29 = vor.u32 %v18165_v36, %v14758_v17  ;;  %v16077_v62 = vor.u32 %v18494_v32, %v16074_v46  ;;  %v16497_v36 = vor.u32 %v18599_v22, %v16494_v2  ;;  %v18473_v17 = vld [vmem:[#allocation3 + $0x9a4] sm:$0xf]  ;;  %v18466_v46 = vld [vmem:[#allocation3 + $0x96c] sm:$0xf] }
 0x828   :  { %11066 = vmatpush.bf16.msra.mxu1 %v15321_v14  ;;  %17498 = vmatmul.msk.bf16.vlgmr.msrb.gmra.mxu3 %vm344_vm5, %v20337_v48  ;;  %v16298_v14 = vld [vmem:[#allocation3 + $0xc24] sm:$0xf0]  ;;  %v15993_v8 = vor.u32 %v18473_v17, %v15990_v4  ;;  %v18389_v2 = vld [vmem:[#allocation3 + $0x704] sm:$0xf]  ;;  %v16102_v17 = vld [vmem:[#allocation3 + $0xa9c] sm:$0xf0] }
 0x829   :  { %11078 = vmatpush.bf16.msra.mxu3 %v15573_v18  ;;  %v15209_v18 = vor.u32 %v18277_v6, %v15206_v21  ;;  %v16466_v6 = vld [vmem:[#allocation3 + $0xd74] sm:$0xf0]  ;;  %v18564_v4 = vld [vmem:[#allocation3 + $0xc7c] sm:$0xf] }
 0x82a   :  { %11041 = vmatpush.bf16.msrb.mxu0 %v14845_v31  ;;  %v15822_v31 = vld [vmem:[#allocation3 + $0x86c] sm:$0xf0]  ;;  %v16469_v32 = vor.u32 %v18592_v5, %v16466_v6  ;;  %v16746_v5 = vld [vmem:[#allocation3 + $0xfa4] sm:$0xf0]  ;;  %v18718_v6 = vld [vmem:[#allocation3 + $0x114c] sm:$0xf] }
 0x82b   :  { %11054 = vmatpush.bf16.msrb.mxu2 %v15069_v33  ;;  %v16301_v33 = vor.u32 %v18550_v12, %v16298_v14  ;;  %v15825_v43 = vor.u32 %v18431_v38, %v15822_v31  ;;  %v16186_v12 = vld [vmem:[#allocation3 + $0xb44] sm:$0xf0]  ;;  %v18585_v14 = vld [vmem:[#allocation3 + $0xd24] sm:$0xf]  ;;  %v18459_v31 = vld [vmem:[#allocation3 + $0x934] sm:$0xf] }
 0x82c   :  { %11067 = vmatpush.bf16.msra.mxu1 %v15293_v40  ;;  %v18543_v40 = vld [vmem:[#allocation3 + $0xbd4] sm:$0xf] }
 0x82d   :  { %11079 = vmatpush.bf16.msra.mxu3 %v15545_v7  ;;  %v16270_v7 = vld [vmem:[#allocation3 + $0xbec] sm:$0xf0] }
 0x82e   :  { %11042 = vmatpush.bf16.msrb.mxu0 %v14817_v20  ;;  %v15794_v20 = vld [vmem:[#allocation3 + $0x834] sm:$0xf0] }
 0x82f   :  { %11055 = vmatpush.bf16.msrb.mxu2 %v15041_v13  ;;  %v16273_v13 = vor.u32 %v18543_v40, %v16270_v7  ;;  %v15797_v26 = vor.u32 %v18424_v49, %v15794_v20  ;;  %v18578_v40 = vld [vmem:[#allocation3 + $0xcec] sm:$0xf]  ;;  %v16410_v7 = vld [vmem:[#allocation3 + $0xd04] sm:$0xf0]  ;;  %v18452_v20 = vld [vmem:[#allocation3 + $0x8fc] sm:$0xf] }
 0x830   :  { %11068 = vmatpush.bf16.msra.mxu1 %v15265_v45  ;;  %v16018_v45 = vld [vmem:[#allocation3 + $0x9f4] sm:$0xf0]  ;;  %v16413_v49 = vor.u32 %v18578_v40, %v16410_v7  ;;  %v18648_v7 = vld [vmem:[#allocation3 + $0xf1c] sm:$0xf] }
 0x831   :  { %11080 = vmatpush.bf16.msra.mxu3 %v15517_v61  ;;  %v18536_v61 = vld [vmem:[#allocation3 + $0xb9c] sm:$0xf]  ;;  %v16021_v11 = vor.u32 %v18480_v55, %v16018_v45  ;;  %v16130_v55 = vld [vmem:[#allocation3 + $0xad4] sm:$0xf0]  ;;  %v18571_v45 = vld [vmem:[#allocation3 + $0xcb4] sm:$0xf] }
 0x832   :  { %11043 = vmatpush.bf16.msrb.mxu0 %v14789_v59  ;;  %v15766_v59 = vld [vmem:[#allocation3 + $0x7fc] sm:$0xf0] }
 0x833   :  { %11056 = vmatpush.bf16.msrb.mxu2 %v15013_v3  ;;  %v16245_v3 = vor.u32 %v18536_v61, %v16242_v19  ;;  %v15769_v21 = vor.u32 %v18417_v50, %v15766_v59  ;;  %v16382_v61 = vld [vmem:[#allocation3 + $0xccc] sm:$0xf0] }
 0x834   :  { %11069 = vmatpush.bf16.msra.mxu1 %v15237_v16  ;;  %v18529_v16 = vld [vmem:[#allocation3 + $0xb64] sm:$0xf]  ;;  %v16385_v59 = vor.u32 %v18571_v45, %v16382_v61 }
 0x835   :  { %11081 = vmatpush.bf16.msra.mxu3 %v15489_v60  ;;  %v16214_v60 = vld [vmem:[#allocation3 + $0xb7c] sm:$0xf0]  ;;  %v18641_v61 = vld [vmem:[#allocation3 + $0xee4] sm:$0xf] }
 0x836   :  { %11044 = vmatpush.bf16.msrb.mxu0 %v14761_v29  ;;  %v16217_v35 = vor.u32 %v18529_v16, %v16214_v60  ;;  %v15962_v29 = vld [vmem:[#allocation3 + $0x984] sm:$0xf0]  ;;  %v16354_v16 = vld [vmem:[#allocation3 + $0xc94] sm:$0xf0]  ;;  %v18662_v60 = vld [vmem:[#allocation3 + $0xf8c] sm:$0xf] }
 0x837   :  { %11057 = vmatpush.bf16.msrb.mxu2 %v14985_v28  ;;  %v18522_v28 = vld [vmem:[#allocation3 + $0xb2c] sm:$0xf]  ;;  %v15965_v10 = vor.u32 %v18466_v46, %v15962_v29  ;;  %v16357_v46 = vor.u32 %v18564_v4, %v16354_v16  ;;  %v18557_v29 = vld [vmem:[#allocation3 + $0xc44] sm:$0xf] }
 0x838   :  { %11070 = vmatpush.bf16.msra.mxu1 %v15209_v18  ;;  %v16438_v18 = vld [vmem:[#allocation3 + $0xd3c] sm:$0xf0]  ;;  %v16189_v27 = vor.u32 %v18522_v28, %v16186_v12  ;;  %v16749_v28 = vor.u32 %v18662_v60, %v16746_v5  ;;  %v18634_v60 = vld [vmem:[#allocation3 + $0xeac] sm:$0xf]  ;;  %v16634_v5 = vld [vmem:[#allocation3 + $0xec4] sm:$0xf0] }
 0x839   :  { %11082 = vmatpush.bf16.msra.mxu3 %v15461_v23  ;;  %11045 = vmatmul.bf16.vlgmr.msrb.gmra.mxu0 %v20277_v57  ;;  %v15741_v23 = vor.u32 %v18410_v9, %v15738_v25  ;;  %v16441_v38 = vor.u32 %v18585_v14, %v16438_v18  ;;  %v18774_v25 = vld [vmem:[#allocation3 + $0x130c] sm:$0xf]  ;;  %v16326_v14 = vld [vmem:[#allocation3 + $0xc5c] sm:$0xf0]  ;;  %v18655_v18 = vld [vmem:[#allocation3 + $0xf54] sm:$0xf] }
 0x83a   :  { %11089 = vmatpush.bf16.msra.mxu0 %v15853_v39  ;;  %11058 = vmatmul.bf16.vlgmr.msrb.gmra.mxu2 %v20285_v58  ;;  %v18403_v39 = vld [vmem:[#allocation3 + $0x774] sm:$0xf] }
 0x83b   :  { %11102 = vmatpush.bf16.msra.mxu2 %v16077_v62  ;;  %11071 = vmatmul.bf16.vlgmr.msra.gmra.mxu1 %v20281_v63  ;;  %v15710_v62 = vld [vmem:[#allocation3 + $0x78c] sm:$0xf0] }
 0x83c   :  { %11115 = vmatpush.bf16.msrb.mxu1 %v16301_v33  ;;  %v15934_v33 = vld [vmem:[#allocation3 + $0x94c] sm:$0xf0]  ;;  %v15713_v41 = vor.u32 %v18403_v39, %v15710_v62  ;;  %v18711_v39 = vld [vmem:[#allocation3 + $0x1114] sm:$0xf] }
 0x83d   :  { %11083 = vmatpush.bf16.msra.mxu3 %v15433_v42  ;;  %v15937_v53 = vor.u32 %v18459_v31, %v15934_v33  ;;  %v18396_v42 = vld [vmem:[#allocation3 + $0x73c] sm:$0xf]  ;;  %v16942_v62 = vld [vmem:[#allocation3 + $0x112c] sm:$0xf0]  ;;  %v18830_v31 = vld [vmem:[#allocation3 + $0x14cc] sm:$0xf] }
 0x83e   :  { %11090 = vmatpush.bf16.msra.mxu0 %v15825_v43  ;;  %v15682_v43 = vld [vmem:[#allocation3 + $0x754] sm:$0xf0]  ;;  %v17418_v33 = vld [vmem:[#allocation3 + $0x14e4] sm:$0xf0]  ;;  %v16945_v40 = vor.u32 %v18711_v39, %v16942_v62  ;;  %v18683_v62 = vld [vmem:[#allocation3 + $0x1034] sm:$0xf] }
 0x83f   :  { %11103 = vmatpush.bf16.msra.mxu2 %v16049_v30  ;;  %v16161_v30 = vor.u32 %v18515_v34, %v16158_v24  ;;  %v15685_v19 = vor.u32 %v18396_v42, %v15682_v43  ;;  %v16329_v34 = vor.u32 %v18557_v29, %v16326_v14  ;;  %v17421_v42 = vor.u32 %v18830_v31, %v17418_v33  ;;  %v18704_v43 = vld [vmem:[#allocation3 + $0x10dc] sm:$0xf]  ;;  %v17334_v29 = vld [vmem:[#allocation3 + $0x143c] sm:$0xf0]  ;;  %v18627_v14 = vld [vmem:[#allocation3 + $0xe74] sm:$0xf] }
 0x840   :  { %11116 = vmatpush.bf16.msrb.mxu1 %v16273_v13  ;;  %11084 = vmatmul.bf16.vlgmr.msra.gmra.mxu3 %v20289_v1  ;;  %v15906_v13 = vld [vmem:[#allocation3 + $0x914] sm:$0xf0]  ;;  %v17054_v33 = vld [vmem:[#allocation3 + $0x120c] sm:$0xf0] }
 0x841   :  { %11128 = vmatpush.bf16.msrb.mxu3 %v16525_v56  ;;  %v18508_v56 = vld [vmem:[#allocation3 + $0xabc] sm:$0xf]  ;;  %v15909_v22 = vor.u32 %v18452_v20, %v15906_v13  ;;  %v17138_v20 = vld [vmem:[#allocation3 + $0x12b4] sm:$0xf0]  ;;  %v18823_v13 = vld [vmem:[#allocation3 + $0x1494] sm:$0xf] }
 0x842   :  { %11091 = vmatpush.bf16.msra.mxu0 %v15797_v26  ;;  %v15654_v26 = vld [vmem:[#allocation3 + $0x71c] sm:$0xf0]  ;;  %v16133_v50 = vor.u32 %v18508_v56, %v16130_v55  ;;  %v17390_v56 = vld [vmem:[#allocation3 + $0x14ac] sm:$0xf0] }
 0x843   :  { %11104 = vmatpush.bf16.msra.mxu2 %v16021_v11  ;;  %v18445_v11 = vld [vmem:[#allocation3 + $0x8c4] sm:$0xf] }
 0x844   :  { %11117 = vmatpush.bf16.msrb.mxu1 %v16245_v3  ;;  %v15878_v3 = vld [vmem:[#allocation3 + $0x8dc] sm:$0xf0] }
 0x845   :  { %11129 = vmatpush.bf16.msrb.mxu3 %v16497_v36  ;;  %v18501_v36 = vld [vmem:[#allocation3 + $0xa84] sm:$0xf]  ;;  %v15881_v9 = vor.u32 %v18445_v11, %v15878_v3  ;;  %v16886_v11 = vld [vmem:[#allocation3 + $0x10bc] sm:$0xf0]  ;;  %v18816_v3 = vld [vmem:[#allocation3 + $0x145c] sm:$0xf] }
 0x846   :  { %11092 = vmatpush.bf16.msra.mxu0 %v15769_v21  ;;  %v16970_v21 = vld [vmem:[#allocation3 + $0x1164] sm:$0xf0] }
 0x847   :  { %11105 = vmatpush.bf16.msra.mxu2 %v15993_v8  ;;  %v15657_v8 = vor.u32 %v18389_v2, %v15654_v26  ;;  %v16973_v12 = vor.u32 %v18718_v6, %v16970_v21  ;;  %v17393_v2 = vor.u32 %v18823_v13, %v17390_v56  ;;  %v18697_v26 = vld [vmem:[#allocation3 + $0x10a4] sm:$0xf]  ;;  %v16802_v13 = vld [vmem:[#allocation3 + $0x1014] sm:$0xf0]  ;;  %v18732_v56 = vld [vmem:[#allocation3 + $0x11bc] sm:$0xf] }
 0x848   :  { %11118 = vmatpush.bf16.msrb.mxu1 %v16217_v35  ;;  %v17194_v35 = vld [vmem:[#allocation3 + $0x1324] sm:$0xf0]  ;;  %v16889_v16 = vor.u32 %v18697_v26, %v16886_v11  ;;  %v16550_v26 = vld [vmem:[#allocation3 + $0xe1c] sm:$0xf0]  ;;  %v18669_v11 = vld [vmem:[#allocation3 + $0xfc4] sm:$0xf] }
 0x849   :  { %11130 = vmatpush.bf16.msrb.mxu3 %v16469_v32  ;;  %v16105_v32 = vor.u32 %v18501_v36, %v16102_v17  ;;  %v17362_v36 = vld [vmem:[#allocation3 + $0x1474] sm:$0xf0] }
 0x84a   :  { %11093 = vmatpush.bf16.msra.mxu0 %v15741_v23  ;;  %v16718_v23 = vld [vmem:[#allocation3 + $0xf6c] sm:$0xf0] }
 0x84b   :  { %11106 = vmatpush.bf16.msra.mxu2 %v15965_v10  ;;  %v17197_v10 = vor.u32 %v18774_v25, %v17194_v35  ;;  %v16721_v24 = vor.u32 %v18655_v18, %v16718_v23  ;;  %v16858_v25 = vld [vmem:[#allocation3 + $0x1084] sm:$0xf0]  ;;  %v18746_v35 = vld [vmem:[#allocation3 + $0x122c] sm:$0xf]  ;;  %v16606_v18 = vld [vmem:[#allocation3 + $0xe8c] sm:$0xf0] }
 0x84c   :  { %11119 = vmatpush.bf16.msrb.mxu1 %v16189_v27  ;;  %v18767_v27 = vld [vmem:[#allocation3 + $0x12d4] sm:$0xf] }
 0x84d   :  { %11131 = vmatpush.bf16.msrb.mxu3 %v16441_v38  ;;  %v17166_v38 = vld [vmem:[#allocation3 + $0x12ec] sm:$0xf0] }
 0x84e   :  { %11094 = vmatpush.bf16.msra.mxu0 %v15713_v41  ;;  %v16690_v41 = vld [vmem:[#allocation3 + $0xf34] sm:$0xf0] }
 0x84f   :  { %11107 = vmatpush.bf16.msra.mxu2 %v15937_v53  ;;  %v17169_v53 = vor.u32 %v18767_v27, %v17166_v38  ;;  %v16693_v55 = vor.u32 %v18648_v7, %v16690_v41  ;;  %v16830_v27 = vld [vmem:[#allocation3 + $0x104c] sm:$0xf0]  ;;  %v18739_v38 = vld [vmem:[#allocation3 + $0x11f4] sm:$0xf]  ;;  %v16609_v7 = vor.u32 %v18627_v14, %v16606_v18  ;;  %v18781_v18 = vld [vmem:[#allocation3 + $0x1344] sm:$0xf] }
 0x850   :  { %11120 = vmatpush.bf16.msrb.mxu1 %v16161_v30  ;;  %v16914_v30 = vld [vmem:[#allocation3 + $0x10f4] sm:$0xf0]  ;;  %v16833_v41 = vor.u32 %v18683_v62, %v16830_v27  ;;  %v17222_v62 = vld [vmem:[#allocation3 + $0x135c] sm:$0xf0]  ;;  %v18837_v27 = vld [vmem:[#allocation3 + $0x1504] sm:$0xf] }
 0x851   :  { %11132 = vmatpush.bf16.msrb.mxu3 %v16413_v49  ;;  %v18760_v49 = vld [vmem:[#allocation3 + $0x129c] sm:$0xf]  ;;  %v16917_v45 = vor.u32 %v18704_v43, %v16914_v30  ;;  %v17057_v30 = vor.u32 %v18739_v38, %v17054_v33  ;;  %v17446_v38 = vld [vmem:[#allocation3 + $0x151c] sm:$0xf0] }
 0x852   :  { %11095 = vmatpush.bf16.msra.mxu0 %v15685_v19  ;;  %v16662_v19 = vld [vmem:[#allocation3 + $0xefc] sm:$0xf0] }
 0x853   :  { %11108 = vmatpush.bf16.msra.mxu2 %v15909_v22  ;;  %v17141_v22 = vor.u32 %v18760_v49, %v17138_v20  ;;  %v16665_v4 = vor.u32 %v18641_v61, %v16662_v19  ;;  %v18676_v20 = vld [vmem:[#allocation3 + $0xffc] sm:$0xf]  ;;  %v17278_v61 = vld [vmem:[#allocation3 + $0x13cc] sm:$0xf0] }
 0x854   :  { %11121 = vmatpush.bf16.msrb.mxu1 %v16133_v50  ;;  %v18753_v50 = vld [vmem:[#allocation3 + $0x1264] sm:$0xf] }
 0x855   :  { %11133 = vmatpush.bf16.msrb.mxu3 %v16385_v59  ;;  %v17110_v59 = vld [vmem:[#allocation3 + $0x127c] sm:$0xf0] }
 0x856   :  { %11096 = vmatpush.bf16.msra.mxu0 %v15657_v8  ;;  %v20349_v17 = vpop.f32.mrf.mxu0  ;;  %v17113_v21 = vor.u32 %v18753_v50, %v17110_v59  ;;  %v17365_v8 = vor.u32 %v18816_v3, %v17362_v36  ;;  %v16774_v36 = vld [vmem:[#allocation3 + $0xfdc] sm:$0xf0] }
 0x857   :  { %11109 = vmatpush.bf16.msra.mxu2 %v15881_v9  ;;  %v18690_v9 = vld [vmem:[#allocation3 + $0x106c] sm:$0xf] }
 0x858   :  { %11122 = vmatpush.bf16.msrb.mxu1 %v16105_v32  ;;  %v20351_v6 = vpop.f32.mrf.mxu1  ;;  %v17082_v32 = vld [vmem:[#allocation3 + $0x1244] sm:$0xf0] }
 0x859   :  { %11134 = vmatpush.bf16.msrb.mxu3 %v16357_v46  ;;  %11097 = vmatmul.bf16.vlgmr.msra.gmra.mxu0 %v20297_v47  ;;  %v18809_v46 = vld [vmem:[#allocation3 + $0x1424] sm:$0xf] }
 0x85a   :  { %11141 = vmatpush.bf16.msrb.mxu0 %v16749_v28  ;;  %11110 = vmatmul.bf16.vlgmr.msra.gmra.mxu2 %v20305_v15  ;;  %v16637_v28 = vor.u32 %v18634_v60, %v16634_v5  ;;  %v17337_v39 = vor.u32 %v18809_v46, %v17334_v29  ;;  %v18788_v5 = vld [vmem:[#allocation3 + $0x137c] sm:$0xf]  ;;  %v16777_v46 = vor.u32 %v18669_v11, %v16774_v36  ;;  %v15184_v29 = vld [vmem:[#allocation3 + $0x350] sm:$0xf]  ;;  %v15604_v11 = vld [vmem:[#allocation3 + $0x698] sm:$0xf] }
 0x85b   :  { %11154 = vmatpush.bf16.msrb.mxu2 %v16973_v12  ;;  %11123 = vmatmul.bf16.vlgmr.msrb.gmra.mxu1 %v20301_v54  ;;  %v16861_v12 = vor.u32 %v18690_v9, %v16858_v25  ;;  %v20353_v23 = vpop.f32.mrf.mxu3  ;;  %v17474_v9 = vld [vmem:[#allocation3 + $0x1554] sm:$0xf0]  ;;  %v14960_v25 = vld [vmem:[#allocation3 + $0x190] sm:$0xf] }
 0x85c   :  { %11167 = vmatpush.bf16.msra.mxu1 %v17197_v10  ;;  %v17085_v10 = vor.u32 %v18746_v35, %v17082_v32  ;;  %v18218_v35 = vld [vmem:[#allocation3 + $0x1a8] sm:$0xf0] }
 0x85d   :  { %11135 = vmatpush.bf16.msrb.mxu3 %v16329_v34  ;;  %v20355_v31 = vpop.f32.mrf.mxu2  ;;  %v18802_v34 = vld [vmem:[#allocation3 + $0x13ec] sm:$0xf] }
 0x85e   :  { %11142 = vmatpush.bf16.msrb.mxu0 %v16721_v24  ;;  %v17306_v24 = vld [vmem:[#allocation3 + $0x1404] sm:$0xf0] }
 0x85f   :  { %11155 = vmatpush.bf16.msrb.mxu2 %v16945_v40  ;;  %v10892_v40 = vpop.f32.mrf.mxu0  ;;  %v17309_v49 = vor.u32 %v18802_v34, %v17306_v24  ;;  %v14932_v34 = vld [vmem:[#allocation3 + $0x158] sm:$0xf]  ;;  %v18211_v24 = vld [vmem:[#allocation3 + $0x170] sm:$0xf0] }
 0x860   :  { %11168 = vmatpush.bf16.msra.mxu1 %v17169_v53  ;;  %11136 = vmatmul.bf16.vlgmr.msrb.gmra.mxu3 %v20309_v37  ;;  %v18620_v53 = vld [vmem:[#allocation3 + $0xe3c] sm:$0xf]  ;;  %v10918_v43 = vpop.f32.mrf.mxu1  ;;  %v15156_v40 = vld [vmem:[#allocation3 + $0x318] sm:$0xf] }
 0x861   :  { %11180 = vmatpush.bf16.msra.mxu3 %v17421_v42  ;;  %v16578_v42 = vld [vmem:[#allocation3 + $0xe54] sm:$0xf0]  ;;  %v15632_v43 = vld [vmem:[#allocation3 + $0x6d0] sm:$0xf] }
 0x862   :  { %11143 = vmatpush.bf16.msrb.mxu0 %v16693_v55  ;;  %v17026_v55 = vld [vmem:[#allocation3 + $0x11d4] sm:$0xf0]  ;;  %v16581_v19 = vor.u32 %v18620_v53, %v16578_v42  ;;  %v18330_v53 = vld [vmem:[#allocation3 + $0x528] sm:$0xf0]  ;;  %v17225_v42 = vor.u32 %v18781_v18, %v17222_v62 }
 0x863   :  { %11156 = vmatpush.bf16.msrb.mxu2 %v16917_v45  ;;  %v18795_v45 = vld [vmem:[#allocation3 + $0x13b4] sm:$0xf]  ;;  %v10879_v50 = vpop.f32.mrf.mxu3  ;;  %v17029_v59 = vor.u32 %v18732_v56, %v17026_v55  ;;  %v14904_v55 = vld [vmem:[#allocation3 + $0x120] sm:$0xf]  ;;  %v18190_v18 = vld [vmem:[#allocation3 + $0xc8] sm:$0xf0] }
 0x864   :  { %11169 = vmatpush.bf16.msra.mxu1 %v17141_v22  ;;  %v16805_v22 = vor.u32 %v18676_v20, %v16802_v13  ;;  %v17281_v3 = vor.u32 %v18795_v45, %v17278_v61  ;;  %v14933_v20 = vor.u32 %v18211_v24, %v14932_v34  ;;  %v18204_v45 = vld [vmem:[#allocation3 + $0x138] sm:$0xf0]  ;;  %v15128_v61 = vld [vmem:[#allocation3 + $0x2e0] sm:$0xf]  ;;  %v18379_v50 = vld [vmem:[#allocation3 + $0x6b0] sm:$0xf0] }
 0x865   :  { %11181 = vmatpush.bf16.msra.mxu3 %v17393_v2  ;;  %v18613_v2 = vld [vmem:[#allocation3 + $0xe04] sm:$0xf]  ;;  %v10905_v60 = vpop.f32.mrf.mxu2  ;;  %v18246_v62 = vld [vmem:[#allocation3 + $0x288] sm:$0xf0] }
 0x866   :  { %11144 = vmatpush.bf16.msrb.mxu0 %v16665_v4  ;;  %v18725_v4 = vld [vmem:[#allocation3 + $0x1184] sm:$0xf]  ;;  %v16553_v32 = vor.u32 %v18613_v2, %v16550_v26  ;;  %v15380_v2 = vld [vmem:[#allocation3 + $0x4d8] sm:$0xf]  ;;  %v18323_v26 = vld [vmem:[#allocation3 + $0x4f0] sm:$0xf0] }
 0x867   :  { %11157 = vmatpush.bf16.msrb.mxu2 %v16889_v16  ;;  %v16998_v16 = vld [vmem:[#allocation3 + $0x119c] sm:$0xf0]  ;;  %v15381_v36 = vor.u32 %v18323_v26, %v15380_v2  ;;  %v15100_v60 = vld [vmem:[#allocation3 + $0x2a8] sm:$0xf]  ;;  %v18365_v34 = vld [vmem:[#allocation3 + $0x640] sm:$0xf0] }
 0x868   :  { %11170 = vmatpush.bf16.msra.mxu1 %v17113_v21  ;;  %v17250_v21 = vld [vmem:[#allocation3 + $0x1394] sm:$0xf0] }
 0x869   :  { %11182 = vmatpush.bf16.msra.mxu3 %v17365_v8  ;;  %v18844_v8 = vld [vmem:[#allocation3 + $0x153c] sm:$0xf]  ;;  %v17253_v14 = vor.u32 %v18788_v5, %v17250_v21  ;;  %v15605_v5 = vor.u32 %v18379_v50, %v15604_v11  ;;  %v18253_v21 = vld [vmem:[#allocation3 + $0x2c0] sm:$0xf0]  ;;  %v14792_v11 = vld [vmem:[#allocation3 + $0x40] sm:$0xf] }
 0x86a   :  { %11145 = vmatpush.bf16.msrb.mxu0 %v16637_v28  ;;  %v18274_v28 = vld [vmem:[#allocation3 + $0x368] sm:$0xf0]  ;;  %v18176_v50 = vld [vmem:[#allocation3 + $0x58] sm:$0xf0] }
 0x86b   :  { %11158 = vmatpush.bf16.msrb.mxu2 %v16861_v12  ;;  %v17001_v12 = vor.u32 %v18725_v4, %v16998_v16  ;;  %v15185_v33 = vor.u32 %v18274_v28, %v15184_v29  ;;  %v14876_v4 = vld [vmem:[#allocation3 + $0xe8] sm:$0xf]  ;;  %v18197_v16 = vld [vmem:[#allocation3 + $0x100] sm:$0xf0]  ;;  %v15101_v28 = vor.u32 %v18253_v21, %v15100_v60  ;;  %v15492_v60 = vld [vmem:[#allocation3 + $0x5b8] sm:$0xf]  ;;  %v10891_v21 = vadd.f32 %v20349_v17, %v20353_v23 }
 0x86c   :  { %11171 = vmatpush.bf16.msra.mxu1 %v17085_v10  ;;  %v17477_v10 = vor.u32 %v18844_v8, %v17474_v9  ;;  %v15352_v8 = vld [vmem:[#allocation3 + $0x4a0] sm:$0xf]  ;;  %v18316_v9 = vld [vmem:[#allocation3 + $0x4b8] sm:$0xf0]  ;;  %v18442_v17 = vld [vmem:[#allocation3 + $0x8a8] sm:$0xf0] }
 0x86d   :  { %11183 = vmatpush.bf16.msra.mxu3 %v17337_v39  ;;  %v14961_v39 = vor.u32 %v18218_v35, %v14960_v25  ;;  %v15576_v25 = vld [vmem:[#allocation3 + $0x660] sm:$0xf]  ;;  %v18372_v35 = vld [vmem:[#allocation3 + $0x678] sm:$0xf0]  ;;  %v10904_v23 = vadd.f32 %v20355_v31, %v10891_v21 }
 0x86e   :  { %11146 = vmatpush.bf16.msrb.mxu0 %v16609_v7  ;;  %v18267_v7 = vld [vmem:[#allocation3 + $0x330] sm:$0xf0]  ;;  %v16024_v21 = vld [vmem:[#allocation3 + $0x9e0] sm:$0xf] }
 0x86f   :  { %11159 = vmatpush.bf16.msrb.mxu2 %v16833_v41  ;;  %v15408_v41 = vld [vmem:[#allocation3 + $0x510] sm:$0xf]  ;;  %v15157_v13 = vor.u32 %v18267_v7, %v15156_v40  ;;  %v10917_v31 = vadd.f32 %v20351_v6, %v10904_v23  ;;  %v16472_v23 = vld [vmem:[#allocation3 + $0xd60] sm:$0xf] }
 0x870   :  { %11172 = vmatpush.bf16.msra.mxu1 %v17057_v30  ;;  %v18386_v30 = vld [vmem:[#allocation3 + $0x6e8] sm:$0xf0]  ;;  %v15409_v56 = vor.u32 %v18330_v53, %v15408_v41  ;;  %v14820_v53 = vld [vmem:[#allocation3 + $0x78] sm:$0xf] }
 0x871   :  { %11184 = vmatpush.bf16.msra.mxu3 %v17309_v49  ;;  %v17449_v49 = vor.u32 %v18837_v27, %v17446_v38  ;;  %v15324_v27 = vld [vmem:[#allocation3 + $0x468] sm:$0xf]  ;;  %v18309_v38 = vld [vmem:[#allocation3 + $0x480] sm:$0xf0] }
 0x872   :  { %11147 = vmatpush.bf16.msrb.mxu0 %v16581_v19  ;;  %v15633_v19 = vor.u32 %v18386_v30, %v15632_v43  ;;  %v15325_v41 = vor.u32 %v18309_v38, %v15324_v27  ;;  %v15044_v43 = vld [vmem:[#allocation3 + $0x238] sm:$0xf]  ;;  %v15464_v27 = vld [vmem:[#allocation3 + $0x580] sm:$0xf]  ;;  %v18344_v38 = vld [vmem:[#allocation3 + $0x598] sm:$0xf0] }
 0x873   :  { %11160 = vmatpush.bf16.msrb.mxu2 %v16805_v22  ;;  %v18260_v22 = vld [vmem:[#allocation3 + $0x2f8] sm:$0xf0] }
 0x874   :  { %11173 = vmatpush.bf16.msra.mxu1 %v17029_v59  ;;  %v14905_v59 = vor.u32 %v18204_v45, %v14904_v55  ;;  %v15520_v55 = vld [vmem:[#allocation3 + $0x5f0] sm:$0xf]  ;;  %v18358_v45 = vld [vmem:[#allocation3 + $0x608] sm:$0xf0] }
 0x875   :  { %11185 = vmatpush.bf16.msra.mxu3 %v17281_v3  ;;  %v15129_v3 = vor.u32 %v18260_v22, %v15128_v61 }
 0x876   :  { %11148 = vmatpush.bf16.msrb.mxu0 %v16553_v32  ;;  %v20361_v32 = vpop.f32.mrf.mxu0 }
 0x877   :  { %11161 = vmatpush.bf16.msrb.mxu2 %v16777_v46  ;;  %v14877_v46 = vor.u32 %v18197_v16, %v14876_v4  ;;  %v15268_v4 = vld [vmem:[#allocation3 + $0x3f8] sm:$0xf]  ;;  %v18295_v16 = vld [vmem:[#allocation3 + $0x410] sm:$0xf0] }
 0x878   :  { %11174 = vmatpush.bf16.msra.mxu1 %v17001_v12  ;;  %v20363_v29 = vpop.f32.mrf.mxu1  ;;  %v15353_v12 = vor.u32 %v18316_v9, %v15352_v8  ;;  %v14793_v8 = vor.u32 %v18176_v50, %v14792_v11  ;;  %v14764_v9 = vld [vmem:[#allocation3 + $0x8] sm:$0xf]  ;;  %v16528_v50 = vld [vmem:[#allocation3 + $0xdd0] sm:$0xf] }
 0x879   :  { %11186 = vmatpush.bf16.msra.mxu3 %v17253_v14  ;;  %11149 = vmatmul.bf16.vlgmr.msrb.gmra.mxu0 %v20317_v44  ;;  %v14848_v14 = vld [vmem:[#allocation3 + $0xb0] sm:$0xf] }
 0x87a   :  { %11199 = vmatpush.bf16.msra.mxu0 %v17477_v10  ;;  %11162 = vmatmul.bf16.vlgmr.msrb.gmra.mxu2 %v20325_v51  ;;  %v15072_v10 = vld [vmem:[#allocation3 + $0x270] sm:$0xf]  ;;  %v14849_v24 = vor.u32 %v18190_v18, %v14848_v14  ;;  %v18225_v14 = vld [vmem:[#allocation3 + $0x1e0] sm:$0xf0] }
 0x87b   :  { %11206 = vmatpush.bf16.msra.mxu2 %v14961_v39  ;;  %11175 = vmatmul.bf16.vlgmr.msra.gmra.mxu1 %v20321_v0  ;;  %v15577_v39 = vor.u32 %v18372_v35, %v15576_v25  ;;  %v20365_v40 = vpop.f32.mrf.mxu3  ;;  %v15073_v7 = vor.u32 %v18246_v62, %v15072_v10  ;;  %v18288_v62 = vld [vmem:[#allocation3 + $0x3d8] sm:$0xf0] }
 0x87c   :  { %11219 = vmatpush.bf16.msrb.mxu1 %v15185_v33  ;;  %v15548_v33 = vld [vmem:[#allocation3 + $0x628] sm:$0xf]  ;;  %v10930_v6 = vadd.f32 %v20365_v40, %v10917_v31 }
 0x87d   :  { %11187 = vmatpush.bf16.msra.mxu3 %v17225_v42  ;;  %v18183_v42 = vld [vmem:[#allocation3 + $0x90] sm:$0xf0]  ;;  %v20367_v30 = vpop.f32.mrf.mxu2 }
 0x87e   :  { %11200 = vmatpush.bf16.msra.mxu0 %v17449_v49  ;;  %v15549_v49 = vor.u32 %v18365_v34, %v15548_v33  ;;  %v10944_v61 = vpop.f32.mrf.mxu0  ;;  %v15856_v33 = vld [vmem:[#allocation3 + $0x890] sm:$0xf]  ;;  %v10943_v40 = vadd.f32 %v20361_v32, %v10930_v6 }
 0x87f   :  { %11207 = vmatpush.bf16.msra.mxu2 %v14933_v20  ;;  %v18239_v20 = vld [vmem:[#allocation3 + $0x250] sm:$0xf0] }
 0x880   :  { %11220 = vmatpush.bf16.msrb.mxu1 %v15157_v13  ;;  %11188 = vmatmul.bf16.vlgmr.msra.gmra.mxu3 %v20329_v52  ;;  %v15296_v13 = vld [vmem:[#allocation3 + $0x430] sm:$0xf]  ;;  %v10970_v22 = vpop.f32.mrf.mxu1  ;;  %v15045_v2 = vor.u32 %v18239_v20, %v15044_v43  ;;  %v15465_v43 = vor.u32 %v18344_v38, %v15464_v27  ;;  %v18281_v20 = vld [vmem:[#allocation3 + $0x3a0] sm:$0xf0]  ;;  %v18435_v61 = vld [vmem:[#allocation3 + $0x870] sm:$0xf0] }
 0x881   :  { %11232 = vmatpush.bf16.msrb.mxu3 %v15409_v56  ;;  %v18302_v56 = vld [vmem:[#allocation3 + $0x448] sm:$0xf0]  ;;  %v18491_v22 = vld [vmem:[#allocation3 + $0xa30] sm:$0xf0]  ;;  %v18477_v38 = vld [vmem:[#allocation3 + $0x9c0] sm:$0xf0] }
 0x882   :  { %11245 = vmatpush.bf16.msrb.mxu0 %v15633_v19  ;;  %v14821_v19 = vor.u32 %v18183_v42, %v14820_v53  ;;  %v15297_v26 = vor.u32 %v18302_v56, %v15296_v13  ;;  %v15212_v42 = vld [vmem:[#allocation3 + $0x388] sm:$0xf]  ;;  %v18337_v56 = vld [vmem:[#allocation3 + $0x560] sm:$0xf0] }
 0x883   :  { %11208 = vmatpush.bf16.msra.mxu2 %v14905_v59  ;;  %v15016_v59 = vld [vmem:[#allocation3 + $0x200] sm:$0xf]  ;;  %v10931_v25 = vpop.f32.mrf.mxu3  ;;  %v15436_v13 = vld [vmem:[#allocation3 + $0x548] sm:$0xf]  ;;  %v15213_v11 = vor.u32 %v18281_v20, %v15212_v42  ;;  %v15744_v42 = vld [vmem:[#allocation3 + $0x7b0] sm:$0xf]  ;;  %v10956_v20 = vadd.f32 %v20367_v30, %v10943_v40 }
 0x884   :  { %11221 = vmatpush.bf16.msrb.mxu1 %v15129_v3  ;;  %v15521_v3 = vor.u32 %v18358_v45, %v15520_v55  ;;  %v15828_v45 = vld [vmem:[#allocation3 + $0x858] sm:$0xf]  ;;  %v18575_v40 = vld [vmem:[#allocation3 + $0xcd0] sm:$0xf0] }
 0x885   :  { %11233 = vmatpush.bf16.msrb.mxu3 %v15381_v36  ;;  %v18232_v36 = vld [vmem:[#allocation3 + $0x218] sm:$0xf0]  ;;  %v10957_v18 = vpop.f32.mrf.mxu2  ;;  %v16276_v25 = vld [vmem:[#allocation3 + $0xbd8] sm:$0xf]  ;;  %v10969_v30 = vadd.f32 %v20363_v29, %v10956_v20 }
 0x886   :  { %11246 = vmatpush.bf16.msrb.mxu0 %v15605_v5  ;;  %v18351_v5 = vld [vmem:[#allocation3 + $0x5d0] sm:$0xf0]  ;;  %v15017_v35 = vor.u32 %v18232_v36, %v15016_v59  ;;  %v18610_v59 = vld [vmem:[#allocation3 + $0xde8] sm:$0xf0]  ;;  %v15829_v36 = vor.u32 %v18435_v61, %v15828_v45  ;;  %v18533_v45 = vld [vmem:[#allocation3 + $0xb80] sm:$0xf0] }
 0x887   :  { %11209 = vmatpush.bf16.msra.mxu2 %v14877_v46  ;;  %v15269_v46 = vor.u32 %v18295_v16, %v15268_v4  ;;  %v15493_v10 = vor.u32 %v18351_v5, %v15492_v60  ;;  %v15800_v60 = vld [vmem:[#allocation3 + $0x820] sm:$0xf]  ;;  %v18428_v5 = vld [vmem:[#allocation3 + $0x838] sm:$0xf0]  ;;  %v16444_v61 = vld [vmem:[#allocation3 + $0xd28] sm:$0xf] }
 0x888   :  { %11222 = vmatpush.bf16.msrb.mxu1 %v15101_v28  ;;  %v18169_v28 = vld [vmem:[#allocation3 + $0x20] sm:$0xf0]  ;;  %v18512_v20 = vld [vmem:[#allocation3 + $0xad8] sm:$0xf0] }
 0x889   :  { %11234 = vmatpush.bf16.msrb.mxu3 %v15353_v12  ;;  %17499 = vmatmul.msk.bf16.vlgmr.msra.gmra.mxu0 %vm344_vm5, %v20337_v48  ;;  %v14988_v12 = vld [vmem:[#allocation3 + $0x1c8] sm:$0xf]  ;;  %v14765_v34 = vor.u32 %v18169_v28, %v14764_v9  ;;  %v18484_v9 = vld [vmem:[#allocation3 + $0x9f8] sm:$0xf0]  ;;  %v18603_v28 = vld [vmem:[#allocation3 + $0xdb0] sm:$0xf0] }
 0x88a   :  { %11247 = vmatpush.bf16.msrb.mxu0 %v15577_v39  ;;  %v15240_v39 = vld [vmem:[#allocation3 + $0x3c0] sm:$0xf] }
 0x88b   :  { %11210 = vmatpush.bf16.msra.mxu2 %v14849_v24  ;;  %v16080_v24 = vld [vmem:[#allocation3 + $0xa50] sm:$0xf]  ;;  %v15241_v53 = vor.u32 %v18288_v62, %v15240_v39  ;;  %v18421_v39 = vld [vmem:[#allocation3 + $0x800] sm:$0xf0]  ;;  %v15996_v62 = vld [vmem:[#allocation3 + $0x9a8] sm:$0xf] }
 0x88c   :  { %11223 = vmatpush.bf16.msrb.mxu1 %v15073_v7  ;;  %v18498_v7 = vld [vmem:[#allocation3 + $0xa68] sm:$0xf0] }
 0x88d   :  { %11235 = vmatpush.bf16.msrb.mxu3 %v15325_v41  ;;  %v14989_v41 = vor.u32 %v18225_v14, %v14988_v12  ;;  %v16081_v55 = vor.u32 %v18498_v7, %v16080_v24  ;;  %v15801_v12 = vor.u32 %v18428_v5, %v15800_v60  ;;  %v16025_v14 = vor.u32 %v18484_v9, %v16024_v21  ;;  %v18526_v60 = vld [vmem:[#allocation3 + $0xb48] sm:$0xf0]  ;;  %v16416_v5 = vld [vmem:[#allocation3 + $0xcf0] sm:$0xf] }
 0x88e   :  { %11248 = vmatpush.bf16.msrb.mxu0 %v15549_v49  ;;  %v15857_v49 = vor.u32 %v18442_v17, %v15856_v33  ;;  %v16248_v33 = vld [vmem:[#allocation3 + $0xba0] sm:$0xf]  ;;  %v18540_v17 = vld [vmem:[#allocation3 + $0xbb8] sm:$0xf0]  ;;  %v18582_v21 = vld [vmem:[#allocation3 + $0xd08] sm:$0xf0] }
 0x88f   :  { %11211 = vmatpush.bf16.msra.mxu2 %v14821_v19  ;;  %v16052_v19 = vld [vmem:[#allocation3 + $0xa18] sm:$0xf]  ;;  %v16249_v32 = vor.u32 %v18540_v17, %v16248_v33  ;;  %v16417_v29 = vor.u32 %v18582_v21, %v16416_v5  ;;  %v15660_v17 = vld [vmem:[#allocation3 + $0x708] sm:$0xf]  ;;  %v18715_v21 = vld [vmem:[#allocation3 + $0x1130] sm:$0xf0] }
 0x890   :  { %11224 = vmatpush.bf16.msrb.mxu1 %v15045_v2  ;;  %v16304_v2 = vld [vmem:[#allocation3 + $0xc10] sm:$0xf]  ;;  %v16053_v4 = vor.u32 %v18491_v22, %v16052_v19  ;;  %v18589_v19 = vld [vmem:[#allocation3 + $0xd40] sm:$0xf0]  ;;  %v16948_v5 = vld [vmem:[#allocation3 + $0x1118] sm:$0xf] }
 0x891   :  { %11236 = vmatpush.bf16.msrb.mxu3 %v15297_v26  ;;  %v18554_v26 = vld [vmem:[#allocation3 + $0xc28] sm:$0xf0] }
 0x892   :  { %11249 = vmatpush.bf16.msrb.mxu0 %v15521_v3  ;;  %v15437_v3 = vor.u32 %v18337_v56, %v15436_v13  ;;  %v16305_v16 = vor.u32 %v18554_v26, %v16304_v2  ;;  %v18470_v56 = vld [vmem:[#allocation3 + $0x988] sm:$0xf0] }
 0x893   :  { %11212 = vmatpush.bf16.msra.mxu2 %v14793_v8  ;;  %v16529_v8 = vor.u32 %v18610_v59, %v16528_v50  ;;  %v18407_v50 = vld [vmem:[#allocation3 + $0x790] sm:$0xf0]  ;;  %v15940_v59 = vld [vmem:[#allocation3 + $0x938] sm:$0xf] }
 0x894   :  { %11225 = vmatpush.bf16.msrb.mxu1 %v15017_v35  ;;  %v18547_v35 = vld [vmem:[#allocation3 + $0xbf0] sm:$0xf0] }
 0x895   :  { %11237 = vmatpush.bf16.msrb.mxu3 %v15269_v46  ;;  %v16500_v46 = vld [vmem:[#allocation3 + $0xd98] sm:$0xf]  ;;  %v16277_v18 = vor.u32 %v18547_v35, %v16276_v25 }
 0x896   :  { %11250 = vmatpush.bf16.msrb.mxu0 %v15493_v10  ;;  %v15772_v10 = vld [vmem:[#allocation3 + $0x7e8] sm:$0xf]  ;;  %v16501_v27 = vor.u32 %v18603_v28, %v16500_v46  ;;  %v10994_v24 = vpop.f32.mrf.mxu0  ;;  %v15688_v28 = vld [vmem:[#allocation3 + $0x740] sm:$0xf] }
 0x897   :  { %11213 = vmatpush.bf16.msra.mxu2 %v14765_v34  ;;  %v18596_v34 = vld [vmem:[#allocation3 + $0xd78] sm:$0xf0]  ;;  %v15773_v7 = vor.u32 %v18421_v39, %v15772_v10  ;;  %v16164_v10 = vld [vmem:[#allocation3 + $0xaf8] sm:$0xf]  ;;  %v18519_v39 = vld [vmem:[#allocation3 + $0xb10] sm:$0xf0] }
 0x898   :  { %11226 = vmatpush.bf16.msrb.mxu1 %v14989_v41  ;;  %v20381_v41 = vpop.f32.mrf.mxu1  ;;  %v16473_v13 = vor.u32 %v18596_v34, %v16472_v23  ;;  %v16165_v34 = vor.u32 %v18519_v39, %v16164_v10  ;;  %v18652_v10 = vld [vmem:[#allocation3 + $0xf38] sm:$0xf0]  ;;  %v16920_v39 = vld [vmem:[#allocation3 + $0x10e0] sm:$0xf] }
 0x899   :  { %11238 = vmatpush.bf16.msrb.mxu3 %v15241_v53  ;;  %v15997_v53 = vor.u32 %v18477_v38, %v15996_v62  ;;  %v16388_v62 = vld [vmem:[#allocation3 + $0xcb8] sm:$0xf] }
 0x89a   :  { %11251 = vmatpush.bf16.msrb.mxu0 %v15465_v43  ;;  %11214 = vmatmul.bf16.vlgmr.msra.gmra.mxu2 %v20277_v57  ;;  %v18414_v43 = vld [vmem:[#allocation3 + $0x7c8] sm:$0xf0] }
 0x89b   :  { %11258 = vmatpush.bf16.msrb.mxu2 %v15857_v49  ;;  %11227 = vmatmul.bf16.vlgmr.msrb.gmra.mxu1 %v20285_v58  ;;  %v15968_v49 = vld [vmem:[#allocation3 + $0x970] sm:$0xf]  ;;  %v15745_v31 = vor.u32 %v18414_v43, %v15744_v42  ;;  %v10981_v22 = vpop.f32.mrf.mxu3  ;;  %v16389_v43 = vor.u32 %v18575_v40, %v16388_v62  ;;  %v18708_v40 = vld [vmem:[#allocation3 + $0x10f8] sm:$0xf0] }
 0x89c   :  { %11271 = vmatpush.bf16.msra.mxu1 %v16081_v55  ;;  %v16220_v55 = vld [vmem:[#allocation3 + $0xb68] sm:$0xf]  ;;  %v15969_v2 = vor.u32 %v18470_v56, %v15968_v49  ;;  %v16136_v49 = vld [vmem:[#allocation3 + $0xac0] sm:$0xf]  ;;  %v18568_v56 = vld [vmem:[#allocation3 + $0xc98] sm:$0xf0] }
 0x89d   :  { %11239 = vmatpush.bf16.msrb.mxu3 %v15213_v11  ;;  %v16221_v26 = vor.u32 %v18533_v45, %v16220_v55  ;;  %v15716_v11 = vld [vmem:[#allocation3 + $0x778] sm:$0xf]  ;;  %v16752_v55 = vld [vmem:[#allocation3 + $0xf90] sm:$0xf] }
 0x89e   :  { %11252 = vmatpush.bf16.msrb.mxu0 %v15437_v3  ;;  %v11007_v3 = vpop.f32.mrf.mxu2  ;;  %v10996_v6 = vpop.f32.mrf.mxu0  ;;  %v15717_v9 = vor.u32 %v18407_v50, %v15716_v11 }
 0x89f   :  { %11259 = vmatpush.bf16.msrb.mxu2 %v15829_v36  ;;  %v16445_v36 = vor.u32 %v18589_v19, %v16444_v61  ;;  %v16976_v19 = vld [vmem:[#allocation3 + $0x1150] sm:$0xf] }
 0x8a0   :  { %11272 = vmatpush.bf16.msra.mxu1 %v16053_v4  ;;  %11240 = vmatmul.bf16.vlgmr.msrb.gmra.mxu3 %v20281_v63  ;;  %v18463_v4 = vld [vmem:[#allocation3 + $0x950] sm:$0xf0]  ;;  %v11022_v25 = vpop.f32.mrf.mxu1  ;;  %v17200_v6 = vld [vmem:[#allocation3 + $0x1310] sm:$0xf] }
 0x8a1   :  { %11284 = vmatpush.bf16.msra.mxu3 %v16305_v16  ;;  %11253 = vmatmul.bf16.vlgmr.msrb.gmra.mxu0 %v20289_v1  ;;  %v16192_v16 = vld [vmem:[#allocation3 + $0xb30] sm:$0xf]  ;;  %v15941_v35 = vor.u32 %v18463_v4, %v15940_v59  ;;  %v18505_v59 = vld [vmem:[#allocation3 + $0xaa0] sm:$0xf0] }
 0x8a2   :  { %11297 = vmatpush.bf16.msra.mxu0 %v16529_v8  ;;  %v10982_v8 = vadd.f32 %v10981_v22, %v10969_v30  ;;  %v16193_v46 = vor.u32 %v18526_v60, %v16192_v16  ;;  %v16332_v30 = vld [vmem:[#allocation3 + $0xc48] sm:$0xf]  ;;  %v16724_v16 = vld [vmem:[#allocation3 + $0xf58] sm:$0xf]  ;;  %v18659_v60 = vld [vmem:[#allocation3 + $0xf70] sm:$0xf0] }
 0x8a3   :  { %11260 = vmatpush.bf16.msrb.mxu2 %v15801_v12  ;;  %v18400_v12 = vld [vmem:[#allocation3 + $0x758] sm:$0xf0]  ;;  %v10983_v33 = vpop.f32.mrf.mxu3 }
 0x8a4   :  { %11273 = vmatpush.bf16.msra.mxu1 %v16025_v14  ;;  %v15912_v14 = vld [vmem:[#allocation3 + $0x900] sm:$0xf]  ;;  %v15689_v38 = vor.u32 %v18400_v12, %v15688_v28  ;;  %v17396_v33 = vld [vmem:[#allocation3 + $0x1498] sm:$0xf] }
 0x8a5   :  { %11285 = vmatpush.bf16.msra.mxu3 %v16277_v18  ;;  %v18456_v18 = vld [vmem:[#allocation3 + $0x918] sm:$0xf0] }
 0x8a6   :  { %11298 = vmatpush.bf16.msra.mxu0 %v16501_v27  ;;  %v10995_v27 = vadd.f32 %v10994_v24, %v10982_v8  ;;  %v15913_v23 = vor.u32 %v18456_v18, %v15912_v14  ;;  %v11009_v42 = vpop.f32.mrf.mxu2  ;;  %v18666_v24 = vld [vmem:[#allocation3 + $0xfa8] sm:$0xf0]  ;;  %v16725_v14 = vor.u32 %v18659_v60, %v16724_v16  ;;  %v17340_v16 = vld [vmem:[#allocation3 + $0x1428] sm:$0xf]  ;;  %v18813_v60 = vld [vmem:[#allocation3 + $0x1440] sm:$0xf0] }
 0x8a7   :  { %11261 = vmatpush.bf16.msrb.mxu2 %v15773_v7  ;;  %v18393_v7 = vld [vmem:[#allocation3 + $0x720] sm:$0xf0]  ;;  %v16753_v50 = vor.u32 %v18666_v24, %v16752_v55  ;;  %v18778_v8 = vld [vmem:[#allocation3 + $0x1328] sm:$0xf0]  ;;  %v16892_v42 = vld [vmem:[#allocation3 + $0x10a8] sm:$0xf] }
 0x8a8   :  { %11274 = vmatpush.bf16.msra.mxu1 %v15997_v53  ;;  %v15884_v53 = vld [vmem:[#allocation3 + $0x8c8] sm:$0xf]  ;;  %v11008_v45 = vadd.f32 %v11007_v3, %v10995_v27  ;;  %v15661_v61 = vor.u32 %v18393_v7, %v15660_v17  ;;  %v17201_v18 = vor.u32 %v18778_v8, %v17200_v6  ;;  %v17172_v27 = vld [vmem:[#allocation3 + $0x12d8] sm:$0xf]  ;;  %v18827_v17 = vld [vmem:[#allocation3 + $0x14b0] sm:$0xf0] }
 0x8a9   :  { %11286 = vmatpush.bf16.msra.mxu3 %v16249_v32  ;;  %v18449_v32 = vld [vmem:[#allocation3 + $0x8e0] sm:$0xf0]  ;;  %v18820_v55 = vld [vmem:[#allocation3 + $0x1478] sm:$0xf0]  ;;  %v16612_v8 = vld [vmem:[#allocation3 + $0xe78] sm:$0xf] }
 0x8aa   :  { %11299 = vmatpush.bf16.msra.mxu0 %v16473_v13  ;;  %v16360_v13 = vld [vmem:[#allocation3 + $0xc80] sm:$0xf]  ;;  %v15885_v22 = vor.u32 %v18449_v32, %v15884_v53  ;;  %v11021_v3 = vadd.f32 %v20381_v41, %v11008_v45  ;;  %v16668_v53 = vld [vmem:[#allocation3 + $0xee8] sm:$0xf]  ;;  %v18645_v32 = vld [vmem:[#allocation3 + $0xf00] sm:$0xf0] }
 0x8ab   :  { %11262 = vmatpush.bf16.msrb.mxu2 %v15745_v31  ;;  %v18722_v31 = vld [vmem:[#allocation3 + $0x1168] sm:$0xf0]  ;;  %v16361_v11 = vor.u32 %v18568_v56, %v16360_v13  ;;  %v16696_v41 = vld [vmem:[#allocation3 + $0xf20] sm:$0xf]  ;;  %v18764_v13 = vld [vmem:[#allocation3 + $0x12b8] sm:$0xf0] }
 0x8ac   :  { %11275 = vmatpush.bf16.msra.mxu1 %v15969_v2  ;;  %v16137_v2 = vor.u32 %v18512_v20, %v16136_v49  ;;  %v16977_v4 = vor.u32 %v18722_v31, %v16976_v19  ;;  %v18701_v49 = vld [vmem:[#allocation3 + $0x10c0] sm:$0xf0]  ;;  %v17144_v20 = vld [vmem:[#allocation3 + $0x12a0] sm:$0xf]  ;;  %v16669_v19 = vor.u32 %v18645_v32, %v16668_v53  ;;  %v17284_v53 = vld [vmem:[#allocation3 + $0x13b8] sm:$0xf] }
 0x8ad   :  { %11287 = vmatpush.bf16.msra.mxu3 %v16221_v26  ;;  %v16108_v26 = vld [vmem:[#allocation3 + $0xa88] sm:$0xf]  ;;  %v17368_v56 = vld [vmem:[#allocation3 + $0x1460] sm:$0xf]  ;;  %v18799_v32 = vld [vmem:[#allocation3 + $0x13d0] sm:$0xf0] }
 0x8ae   :  { %11300 = vmatpush.bf16.msra.mxu0 %v16445_v36  ;;  %v18561_v36 = vld [vmem:[#allocation3 + $0xc60] sm:$0xf0]  ;;  %v16109_v25 = vor.u32 %v18505_v59, %v16108_v26  ;;  %v16640_v26 = vld [vmem:[#allocation3 + $0xeb0] sm:$0xf]  ;;  %v17369_v59 = vor.u32 %v18820_v55, %v17368_v56  ;;  %v16780_v55 = vld [vmem:[#allocation3 + $0xfc8] sm:$0xf] }
 0x8af   :  { %11263 = vmatpush.bf16.msrb.mxu2 %v15717_v9  ;;  %v11033_v9 = vpop.f32.mrf.mxu3  ;;  %v16333_v12 = vor.u32 %v18561_v36, %v16332_v30  ;;  %v18694_v30 = vld [vmem:[#allocation3 + $0x1088] sm:$0xf0]  ;;  %v17116_v36 = vld [vmem:[#allocation3 + $0x1268] sm:$0xf]  ;;  %v18617_v56 = vld [vmem:[#allocation3 + $0xe20] sm:$0xf0] }
 0x8b0   :  { %11276 = vmatpush.bf16.msra.mxu1 %v15941_v35  ;;  %v17424_v35 = vld [vmem:[#allocation3 + $0x14d0] sm:$0xf]  ;;  %v11034_v28 = vadd.f32 %v11033_v9, %v11021_v3  ;;  %v18631_v9 = vld [vmem:[#allocation3 + $0xe90] sm:$0xf0] }
 0x8b1   :  { %11288 = vmatpush.bf16.msra.mxu3 %v16193_v46  ;;  %v18834_v46 = vld [vmem:[#allocation3 + $0x14e8] sm:$0xf0] }
 0x8b2   :  { %11301 = vmatpush.bf16.msra.mxu0 %v16417_v29  ;;  %v16949_v29 = vor.u32 %v18715_v21, %v16948_v5  ;;  %18871 = vtanh.f32 %v11034_v28  ;;  %v17425_v62 = vor.u32 %v18834_v46, %v17424_v35  ;;  %v17341_v35 = vor.u32 %v18813_v60, %v17340_v16  ;;  %v18687_v46 = vld [vmem:[#allocation3 + $0x1050] sm:$0xf0]  ;;  %v17088_v28 = vld [vmem:[#allocation3 + $0x1230] sm:$0xf]  ;;  %v17004_v60 = vld [vmem:[#allocation3 + $0x1188] sm:$0xf] }
 0x8b3   :  { %11264 = vmatpush.bf16.msrb.mxu2 %v15689_v38  ;;  %v18771_v38 = vld [vmem:[#allocation3 + $0x12f0] sm:$0xf0] }
 0x8b4   :  { %11277 = vmatpush.bf16.msra.mxu1 %v15913_v23  ;;  %v16697_v23 = vor.u32 %v18652_v10, %v16696_v41  ;;  %v17173_v7 = vor.u32 %v18771_v38, %v17172_v27  ;;  %v16613_v41 = vor.u32 %v18631_v9, %v16612_v8  ;;  %v18624_v27 = vld [vmem:[#allocation3 + $0xe58] sm:$0xf0]  ;;  %v16808_v38 = vld [vmem:[#allocation3 + $0x1000] sm:$0xf]  ;;  %v17228_v9 = vld [vmem:[#allocation3 + $0x1348] sm:$0xf] }
 0x8b5   :  { %11289 = vmatpush.bf16.msra.mxu3 %v16165_v34  ;;  %v16921_v34 = vor.u32 %v18708_v40, %v16920_v39  ;;  %v16584_v40 = vld [vmem:[#allocation3 + $0xe40] sm:$0xf] }
 0x8b6   :  { %11302 = vmatpush.bf16.msra.mxu0 %v16389_v43  ;;  %v17397_v43 = vor.u32 %v18827_v17, %v17396_v33  ;;  %v20390_v45 = vpop.f32.mrf.mxu0 }
 0x8b7   :  { %11265 = vmatpush.bf16.msrb.mxu2 %v15661_v61  ;;  %v11035_v24 = vpop.f32.mrf.mxu3 }
 0x8b8   :  { %11278 = vmatpush.bf16.msra.mxu1 %v15885_v22  ;;  %v18872_v61 = vpop.eup %18871  ;;  %v20392_v31 = vpop.f32.mrf.mxu1  ;;  %v16893_v22 = vor.u32 %v18701_v49, %v16892_v42  ;;  %v16585_v42 = vor.u32 %v18624_v27, %v16584_v40  ;;  %v18673_v24 = vld [vmem:[#allocation3 + $0xfe0] sm:$0xf0]  ;;  %v15634_v40 = vld [vmem:[#allocation3 + $0x6ec] sm:$0xf0] }
 0x8b9   :  { %11290 = vmatpush.bf16.msra.mxu3 %v16137_v2  ;;  %12058 = vst [vmem:[%s20601_s14] sm:$0xff] %v18872_v61  ;;  %v17145_v2 = vor.u32 %v18764_v13, %v17144_v20  ;;  %v17285_v61 = vor.u32 %v18799_v32, %v17284_v53 }
 0x8ba   :  { %11303 = vmatpush.bf16.msra.mxu0 %v16361_v11  ;;  %11266 = vmatmul.bf16.vlgmr.msrb.gmra.mxu2 %v20297_v47  ;;  %v18638_v11 = vld [vmem:[#allocation3 + $0xec8] sm:$0xf0] }
 0x8bb   :  { %11310 = vmatpush.bf16.msra.mxu2 %v16753_v50  ;;  %11279 = vmatmul.bf16.vlgmr.msra.gmra.mxu1 %v20305_v15  ;;  %v16864_v50 = vld [vmem:[#allocation3 + $0x1070] sm:$0xf]  ;;  %v16641_v5 = vor.u32 %v18638_v11, %v16640_v26  ;;  %v18792_v26 = vld [vmem:[#allocation3 + $0x1398] sm:$0xf0]  ;;  %v17480_v11 = vld [vmem:[#allocation3 + $0x1540] sm:$0xf] }
 0x8bc   :  { %11323 = vmatpush.bf16.msrb.mxu1 %v16977_v4  ;;  %v18757_v4 = vld [vmem:[#allocation3 + $0x1280] sm:$0xf0]  ;;  %v16865_v21 = vor.u32 %v18694_v30, %v16864_v50  ;;  %v18848_v50 = vld [vmem:[#allocation3 + $0x1558] sm:$0xf0]  ;;  %v18215_v30 = vld [vmem:[#allocation3 + $0x194] sm:$0xf] }
 0x8bd   :  { %11291 = vmatpush.bf16.msra.mxu3 %v16109_v25  ;;  %v20397_v3 = vpop.f32.mrf.mxu2  ;;  %v17117_v6 = vor.u32 %v18757_v4, %v17116_v36  ;;  %v16836_v25 = vld [vmem:[#allocation3 + $0x1038] sm:$0xf]  ;;  %v14962_v36 = vld [vmem:[#allocation3 + $0x1ac] sm:$0xf0]  ;;  %v16781_v4 = vor.u32 %v18673_v24, %v16780_v55  ;;  %v17481_v8 = vor.u32 %v18848_v50, %v17480_v11  ;;  %v15130_v11 = vld [vmem:[#allocation3 + $0x2fc] sm:$0xf0] }
 0x8be   :  { %11304 = vmatpush.bf16.msra.mxu0 %v16333_v12  ;;  %v18750_v12 = vld [vmem:[#allocation3 + $0x1248] sm:$0xf0]  ;;  %v16837_v39 = vor.u32 %v18687_v46, %v16836_v25  ;;  %v18785_v25 = vld [vmem:[#allocation3 + $0x1360] sm:$0xf0]  ;;  %v14965_v46 = vor.u32 %v18215_v30, %v14962_v36  ;;  %v15578_v36 = vld [vmem:[#allocation3 + $0x67c] sm:$0xf0] }
 0x8bf   :  { %11311 = vmatpush.bf16.msra.mxu2 %v16725_v14  ;;  %v17312_v14 = vld [vmem:[#allocation3 + $0x13f0] sm:$0xf]  ;;  %v17229_v27 = vor.u32 %v18785_v25, %v17228_v9  ;;  %v18313_v50 = vld [vmem:[#allocation3 + $0x4a4] sm:$0xf]  ;;  %v18250_v25 = vld [vmem:[#allocation3 + $0x2ac] sm:$0xf] }
 0x8c0   :  { %11324 = vmatpush.bf16.msrb.mxu1 %v16949_v29  ;;  %11292 = vmatmul.bf16.vlgmr.msra.gmra.mxu3 %v20301_v54  ;;  %v18806_v29 = vld [vmem:[#allocation3 + $0x1408] sm:$0xf0]  ;;  %v11074_v10 = vpop.f32.mrf.mxu1  ;;  %v18369_v30 = vld [vmem:[#allocation3 + $0x664] sm:$0xf] }
 0x8c1   :  { %11336 = vmatpush.bf16.msrb.mxu3 %v17201_v18  ;;  %11305 = vmatmul.bf16.vlgmr.msra.gmra.mxu0 %v20309_v37  ;;  %v11048_v18 = vpop.f32.mrf.mxu0  ;;  %v17313_v17 = vor.u32 %v18806_v29, %v17312_v14  ;;  %v14934_v14 = vld [vmem:[#allocation3 + $0x174] sm:$0xf0]  ;;  %v18271_v29 = vld [vmem:[#allocation3 + $0x354] sm:$0xf]  ;;  %v15581_v9 = vor.u32 %v18369_v30, %v15578_v36  ;;  %v18166_v30 = vld [vmem:[#allocation3 + $0xc] sm:$0xf] }
 0x8c2   :  { %11349 = vmatpush.bf16.msrb.mxu0 %v17425_v62  ;;  %v17089_v62 = vor.u32 %v18750_v12, %v17088_v28  ;;  %v18841_v28 = vld [vmem:[#allocation3 + $0x1520] sm:$0xf0]  ;;  %v18208_v12 = vld [vmem:[#allocation3 + $0x15c] sm:$0xf]  ;;  %v15186_v18 = vld [vmem:[#allocation3 + $0x36c] sm:$0xf0] }
 0x8c3   :  { %11312 = vmatpush.bf16.msra.mxu2 %v16697_v23  ;;  %v20399_v33 = vpop.f32.mrf.mxu3  ;;  %v18680_v23 = vld [vmem:[#allocation3 + $0x1018] sm:$0xf0]  ;;  %v14766_v36 = vld [vmem:[#allocation3 + $0x24] sm:$0xf0] }
 0x8c4   :  { %11325 = vmatpush.bf16.msrb.mxu1 %v16921_v34  ;;  %v17060_v34 = vld [vmem:[#allocation3 + $0x11f8] sm:$0xf]  ;;  %v16809_v20 = vor.u32 %v18680_v23, %v16808_v38  ;;  %v15189_v23 = vor.u32 %v18271_v29, %v15186_v18 }
 0x8c5   :  { %11337 = vmatpush.bf16.msrb.mxu3 %v17173_v7  ;;  %v18743_v7 = vld [vmem:[#allocation3 + $0x1210] sm:$0xf0]  ;;  %v11061_v49 = vpop.f32.mrf.mxu2 }
 0x8c6   :  { %11350 = vmatpush.bf16.msrb.mxu0 %v17397_v43  ;;  %v16556_v43 = vld [vmem:[#allocation3 + $0xe08] sm:$0xf]  ;;  %v17061_v13 = vor.u32 %v18743_v7, %v17060_v34  ;;  %v18201_v34 = vld [vmem:[#allocation3 + $0x124] sm:$0xf]  ;;  %v14906_v7 = vld [vmem:[#allocation3 + $0x13c] sm:$0xf0] }
 0x8c7   :  { %11313 = vmatpush.bf16.msra.mxu2 %v16669_v19  ;;  %v17032_v19 = vld [vmem:[#allocation3 + $0x11c0] sm:$0xf]  ;;  %v18320_v49 = vld [vmem:[#allocation3 + $0x4dc] sm:$0xf]  ;;  %v14909_v55 = vor.u32 %v18201_v34, %v14906_v7  ;;  %v18355_v34 = vld [vmem:[#allocation3 + $0x5f4] sm:$0xf] }
 0x8c8   :  { %11326 = vmatpush.bf16.msrb.mxu1 %v16893_v22  ;;  %v18736_v22 = vld [vmem:[#allocation3 + $0x11d8] sm:$0xf0]  ;;  %v15522_v7 = vld [vmem:[#allocation3 + $0x60c] sm:$0xf0] }
 0x8c9   :  { %11338 = vmatpush.bf16.msrb.mxu3 %v17145_v2  ;;  %v17256_v2 = vld [vmem:[#allocation3 + $0x1380] sm:$0xf]  ;;  %v17033_v16 = vor.u32 %v18736_v22, %v17032_v19  ;;  %v14878_v19 = vld [vmem:[#allocation3 + $0x104] sm:$0xf0] }
 0x8ca   :  { %11351 = vmatpush.bf16.msrb.mxu0 %v17369_v59  ;;  %v16557_v59 = vor.u32 %v18617_v56, %v16556_v43  ;;  %v15158_v43 = vld [vmem:[#allocation3 + $0x334] sm:$0xf0] }
 0x8cb   :  { %11314 = vmatpush.bf16.msra.mxu2 %v16641_v5  ;;  %v18729_v5 = vld [vmem:[#allocation3 + $0x11a0] sm:$0xf0]  ;;  %v15606_v56 = vld [vmem:[#allocation3 + $0x6b4] sm:$0xf0] }
 0x8cc   :  { %11327 = vmatpush.bf16.msrb.mxu1 %v16865_v21  ;;  %v11087_v21 = vpop.f32.mrf.mxu3  ;;  %v17005_v10 = vor.u32 %v18729_v5, %v17004_v60 }
 0x8cd   :  { %11339 = vmatpush.bf16.msrb.mxu3 %v17117_v6  ;;  %v17257_v6 = vor.u32 %v18792_v26, %v17256_v2  ;;  %v18257_v26 = vld [vmem:[#allocation3 + $0x2e4] sm:$0xf]  ;;  %v18187_v21 = vld [vmem:[#allocation3 + $0xb4] sm:$0xf] }
 0x8ce   :  { %11352 = vmatpush.bf16.msrb.mxu0 %v17341_v35  ;;  %v17452_v35 = vld [vmem:[#allocation3 + $0x1508] sm:$0xf]  ;;  %v15133_v5 = vor.u32 %v18257_v26, %v15130_v11 }
 0x8cf   :  { %11315 = vmatpush.bf16.msra.mxu2 %v16613_v41  ;;  %v18327_v41 = vld [vmem:[#allocation3 + $0x514] sm:$0xf]  ;;  %v17453_v38 = vor.u32 %v18841_v28, %v17452_v35  ;;  %v15102_v35 = vld [vmem:[#allocation3 + $0x2c4] sm:$0xf0] }
 0x8d0   :  { %11328 = vmatpush.bf16.msrb.mxu1 %v16837_v39  ;;  %v15410_v39 = vld [vmem:[#allocation3 + $0x52c] sm:$0xf0]  ;;  %v15326_v28 = vld [vmem:[#allocation3 + $0x484] sm:$0xf0] }
 0x8d1   :  { %11340 = vmatpush.bf16.msrb.mxu3 %v17089_v62  ;;  %v18383_v62 = vld [vmem:[#allocation3 + $0x6d4] sm:$0xf]  ;;  %v15413_v53 = vor.u32 %v18327_v41, %v15410_v39  ;;  %v15105_v41 = vor.u32 %v18250_v25, %v15102_v35  ;;  %v14822_v39 = vld [vmem:[#allocation3 + $0x94] sm:$0xf0]  ;;  %v18341_v25 = vld [vmem:[#allocation3 + $0x584] sm:$0xf] }
 0x8d2   :  { %11353 = vmatpush.bf16.msrb.mxu0 %v17313_v17  ;;  %v14937_v17 = vor.u32 %v18208_v12, %v14934_v14  ;;  %v15637_v32 = vor.u32 %v18383_v62, %v15634_v40  ;;  %v18362_v12 = vld [vmem:[#allocation3 + $0x62c] sm:$0xf]  ;;  %v15550_v14 = vld [vmem:[#allocation3 + $0x644] sm:$0xf0]  ;;  %v15466_v35 = vld [vmem:[#allocation3 + $0x59c] sm:$0xf0] }
 0x8d3   :  { %11316 = vmatpush.bf16.msra.mxu2 %v16585_v42  ;;  %v18264_v42 = vld [vmem:[#allocation3 + $0x31c] sm:$0xf]  ;;  %v15553_v40 = vor.u32 %v18362_v12, %v15550_v14  ;;  %v14769_v12 = vor.u32 %v18166_v30, %v14766_v36  ;;  %v16502_v36 = vld [vmem:[#allocation3 + $0xdb4] sm:$0xf0] }
 0x8d4   :  { %11329 = vmatpush.bf16.msrb.mxu1 %v16809_v20  ;;  %v15382_v20 = vld [vmem:[#allocation3 + $0x4f4] sm:$0xf0]  ;;  %v15161_v24 = vor.u32 %v18264_v42, %v15158_v43  ;;  %v11060_v42 = vadd.f32 %v20397_v3, %v20390_v45  ;;  %v18348_v45 = vld [vmem:[#allocation3 + $0x5bc] sm:$0xf] }
 0x8d5   :  { %11341 = vmatpush.bf16.msrb.mxu3 %v17061_v13  ;;  %v18376_v13 = vld [vmem:[#allocation3 + $0x69c] sm:$0xf]  ;;  %v15385_v22 = vor.u32 %v18320_v49, %v15382_v20  ;;  %v18173_v20 = vld [vmem:[#allocation3 + $0x44] sm:$0xf]  ;;  %v15494_v3 = vld [vmem:[#allocation3 + $0x5d4] sm:$0xf0] }
 0x8d6   :  { %11354 = vmatpush.bf16.msrb.mxu0 %v17285_v61  ;;  %v18194_v61 = vld [vmem:[#allocation3 + $0xec] sm:$0xf]  ;;  %v15609_v2 = vor.u32 %v18376_v13, %v15606_v56  ;;  %v14794_v13 = vld [vmem:[#allocation3 + $0x5c] sm:$0xf0]  ;;  %v11073_v11 = vadd.f32 %v20392_v31, %v11060_v42  ;;  %v18600_v30 = vld [vmem:[#allocation3 + $0xd9c] sm:$0xf] }
 0x8d7   :  { %11317 = vmatpush.bf16.msra.mxu2 %v16557_v59  ;;  %v15354_v59 = vld [vmem:[#allocation3 + $0x4bc] sm:$0xf0]  ;;  %v14881_v60 = vor.u32 %v18194_v61, %v14878_v19  ;;  %v18236_v61 = vld [vmem:[#allocation3 + $0x23c] sm:$0xf]  ;;  %v15046_v19 = vld [vmem:[#allocation3 + $0x254] sm:$0xf0] }
 0x8d8   :  { %11330 = vmatpush.bf16.msrb.mxu1 %v16781_v4  ;;  %v20405_v4 = vpop.f32.mrf.mxu0  ;;  %v11086_v31 = vadd.f32 %v20399_v33, %v11073_v11  ;;  %v16082_v33 = vld [vmem:[#allocation3 + $0xa6c] sm:$0xf0]  ;;  %v16054_v11 = vld [vmem:[#allocation3 + $0xa34] sm:$0xf0] }
 0x8d9   :  { %11342 = vmatpush.bf16.msrb.mxu3 %v17033_v16  ;;  %v20407_v16 = vpop.f32.mrf.mxu1 }
 0x8da   :  { %11355 = vmatpush.bf16.msrb.mxu0 %v17257_v6  ;;  %11318 = vmatmul.bf16.vlgmr.msra.gmra.mxu2 %v20317_v44  ;;  %v14850_v6 = vld [vmem:[#allocation3 + $0xcc] sm:$0xf0]  ;;  %v11099_v42 = vadd.f32 %v20405_v4, %v11086_v31  ;;  %v18544_v4 = vld [vmem:[#allocation3 + $0xbdc] sm:$0xf]  ;;  %v16250_v31 = vld [vmem:[#allocation3 + $0xbbc] sm:$0xf0] }
 0x8db   :  { %11368 = vmatpush.bf16.msrb.mxu2 %v17481_v8  ;;  %11331 = vmatmul.bf16.vlgmr.msrb.gmra.mxu1 %v20325_v51  ;;  %v15357_v8 = vor.u32 %v18313_v50, %v15354_v59  ;;  %v14853_v18 = vor.u32 %v18187_v21, %v14850_v6  ;;  %v14797_v50 = vor.u32 %v18173_v20, %v14794_v13  ;;  %v18229_v21 = vld [vmem:[#allocation3 + $0x204] sm:$0xf]  ;;  %v15018_v6 = vld [vmem:[#allocation3 + $0x21c] sm:$0xf0]  ;;  %v18607_v20 = vld [vmem:[#allocation3 + $0xdd4] sm:$0xf] }
 0x8dc   :  { %11375 = vmatpush.bf16.msra.mxu1 %v14965_v46  ;;  %v18306_v46 = vld [vmem:[#allocation3 + $0x46c] sm:$0xf]  ;;  %v15049_v59 = vor.u32 %v18236_v61, %v15046_v19  ;;  %v15021_v14 = vor.u32 %v18229_v21, %v15018_v6  ;;  %v16530_v13 = vld [vmem:[#allocation3 + $0xdec] sm:$0xf0]  ;;  %v15774_v6 = vld [vmem:[#allocation3 + $0x804] sm:$0xf0] }
 0x8dd   :  { %11343 = vmatpush.bf16.msrb.mxu3 %v17005_v10  ;;  %v20409_v29 = vpop.f32.mrf.mxu2  ;;  %v18180_v10 = vld [vmem:[#allocation3 + $0x7c] sm:$0xf]  ;;  %v15329_v62 = vor.u32 %v18306_v46, %v15326_v28  ;;  %v18439_v46 = vld [vmem:[#allocation3 + $0x894] sm:$0xf]  ;;  %v15858_v28 = vld [vmem:[#allocation3 + $0x8ac] sm:$0xf0] }
 0x8de   :  { %11356 = vmatpush.bf16.msrb.mxu0 %v17229_v27  ;;  %v18243_v27 = vld [vmem:[#allocation3 + $0x274] sm:$0xf]  ;;  %v14825_v43 = vor.u32 %v18180_v10, %v14822_v39  ;;  %v18418_v21 = vld [vmem:[#allocation3 + $0x7ec] sm:$0xf] }
 0x8df   :  { %11369 = vmatpush.bf16.msrb.mxu2 %v17453_v38  ;;  %v15074_v38 = vld [vmem:[#allocation3 + $0x28c] sm:$0xf0] }
 0x8e0   :  { %11376 = vmatpush.bf16.msra.mxu1 %v14937_v17  ;;  %11344 = vmatmul.bf16.vlgmr.msrb.gmra.mxu3 %v20321_v0  ;;  %v18299_v17 = vld [vmem:[#allocation3 + $0x434] sm:$0xf]  ;;  %v15077_v49 = vor.u32 %v18243_v27, %v15074_v38  ;;  %v15214_v27 = vld [vmem:[#allocation3 + $0x3a4] sm:$0xf0]  ;;  %v18334_v38 = vld [vmem:[#allocation3 + $0x54c] sm:$0xf] }
 0x8e1   :  { %11388 = vmatpush.bf16.msra.mxu3 %v15189_v23  ;;  %11357 = vmatmul.bf16.vlgmr.msrb.gmra.mxu0 %v20329_v52  ;;  %v15298_v23 = vld [vmem:[#allocation3 + $0x44c] sm:$0xf0] }
 0x8e2   :  { %11401 = vmatpush.bf16.msra.mxu0 %v15413_v53  ;;  %v11100_v53 = vpop.f32.mrf.mxu0 }
 0x8e3   :  { %11414 = vmatpush.bf16.msra.mxu2 %v15637_v32  ;;  %v11126_v32 = vpop.f32.mrf.mxu1  ;;  %v20413_v56 = vpop.f32.mrf.mxu3  ;;  %v18495_v53 = vld [vmem:[#allocation3 + $0xa54] sm:$0xf] }
 0x8e4   :  { %11377 = vmatpush.bf16.msra.mxu1 %v14909_v55  ;;  %v15301_v55 = vor.u32 %v18299_v17, %v15298_v23  ;;  %v15861_v17 = vor.u32 %v18439_v46, %v15858_v28  ;;  %v15438_v23 = vld [vmem:[#allocation3 + $0x564] sm:$0xf0]  ;;  %v18551_v32 = vld [vmem:[#allocation3 + $0xc14] sm:$0xf]  ;;  %v16085_v19 = vor.u32 %v18495_v53, %v16082_v33  ;;  %v16026_v46 = vld [vmem:[#allocation3 + $0x9fc] sm:$0xf0] }
 0x8e5   :  { %11389 = vmatpush.bf16.msra.mxu3 %v15161_v24  ;;  %v15525_v24 = vor.u32 %v18355_v34, %v15522_v7  ;;  %v11113_v26 = vpop.f32.mrf.mxu2  ;;  %v18432_v34 = vld [vmem:[#allocation3 + $0x85c] sm:$0xf]  ;;  %v15830_v7 = vld [vmem:[#allocation3 + $0x874] sm:$0xf0]  ;;  %v16446_v53 = vld [vmem:[#allocation3 + $0xd44] sm:$0xf0] }
 0x8e6   :  { %11402 = vmatpush.bf16.msra.mxu0 %v15385_v22  ;;  %v18292_v22 = vld [vmem:[#allocation3 + $0x3fc] sm:$0xf]  ;;  %v15833_v61 = vor.u32 %v18432_v34, %v15830_v7  ;;  %v16222_v34 = vld [vmem:[#allocation3 + $0xb84] sm:$0xf0]  ;;  %v18586_v7 = vld [vmem:[#allocation3 + $0xd2c] sm:$0xf] }
 0x8e7   :  { %11415 = vmatpush.bf16.msra.mxu2 %v15609_v2  ;;  %v15270_v2 = vld [vmem:[#allocation3 + $0x414] sm:$0xf0]  ;;  %v18488_v26 = vld [vmem:[#allocation3 + $0xa1c] sm:$0xf] }
 0x8e8   :  { %11378 = vmatpush.bf16.msra.mxu1 %v14881_v60  ;;  %v15273_v60 = vor.u32 %v18292_v22, %v15270_v2  ;;  %v18425_v22 = vld [vmem:[#allocation3 + $0x824] sm:$0xf]  ;;  %v15802_v2 = vld [vmem:[#allocation3 + $0x83c] sm:$0xf0] }
 0x8e9   :  { %11390 = vmatpush.bf16.msra.mxu3 %v15133_v5  ;;  %v15497_v5 = vor.u32 %v18348_v45, %v15494_v3  ;;  %v16533_v3 = vor.u32 %v18607_v20, %v16530_v13  ;;  %v15718_v20 = vld [vmem:[#allocation3 + $0x794] sm:$0xf0] }
 0x8ea   :  { %11403 = vmatpush.bf16.msra.mxu0 %v15357_v8  ;;  %17500 = vmatmul.msk.bf16.vlgmr.msrb.gmra.mxu2 %vm344_vm5, %v20337_v48  ;;  %v18285_v8 = vld [vmem:[#allocation3 + $0x3c4] sm:$0xf] }
 0x8eb   :  { %11416 = vmatpush.bf16.msra.mxu2 %v15581_v9  ;;  %v15242_v9 = vld [vmem:[#allocation3 + $0x3dc] sm:$0xf0]  ;;  %v11139_v10 = vpop.f32.mrf.mxu3 }
 0x8ec   :  { %11379 = vmatpush.bf16.msra.mxu1 %v14853_v18  ;;  %v18222_v18 = vld [vmem:[#allocation3 + $0x1cc] sm:$0xf]  ;;  %v15245_v39 = vor.u32 %v18285_v8, %v15242_v9  ;;  %v16505_v9 = vor.u32 %v18600_v30, %v16502_v36  ;;  %v15690_v30 = vld [vmem:[#allocation3 + $0x75c] sm:$0xf0] }
 0x8ed   :  { %11391 = vmatpush.bf16.msra.mxu3 %v15105_v41  ;;  %v14990_v41 = vld [vmem:[#allocation3 + $0x1e4] sm:$0xf0] }
 0x8ee   :  { %11404 = vmatpush.bf16.msra.mxu0 %v15329_v62  ;;  %v15469_v62 = vor.u32 %v18341_v25, %v15466_v35  ;;  %v18481_v35 = vld [vmem:[#allocation3 + $0x9e4] sm:$0xf] }
 0x8ef   :  { %11417 = vmatpush.bf16.msra.mxu2 %v15553_v40  ;;  %v18278_v40 = vld [vmem:[#allocation3 + $0x38c] sm:$0xf]  ;;  %v16029_v10 = vor.u32 %v18481_v35, %v16026_v46  ;;  %v16390_v35 = vld [vmem:[#allocation3 + $0xcd4] sm:$0xf0] }
 0x8f0   :  { %11380 = vmatpush.bf16.msra.mxu1 %v14825_v43  ;;  %v14993_v43 = vor.u32 %v18222_v18, %v14990_v41  ;;  %v15777_v41 = vor.u32 %v18418_v21, %v15774_v6  ;;  %v15942_v21 = vld [vmem:[#allocation3 + $0x954] sm:$0xf0]  ;;  %v18516_v6 = vld [vmem:[#allocation3 + $0xafc] sm:$0xf] }
 0x8f1   :  { %11392 = vmatpush.bf16.msra.mxu3 %v15077_v49  ;;  %v16306_v49 = vld [vmem:[#allocation3 + $0xc2c] sm:$0xf0] }
 0x8f2   :  { %11405 = vmatpush.bf16.msra.mxu0 %v15301_v55  ;;  %v15217_v55 = vor.u32 %v18278_v40, %v15214_v27  ;;  %v16309_v45 = vor.u32 %v18551_v32, %v16306_v49  ;;  %v18474_v27 = vld [vmem:[#allocation3 + $0x9ac] sm:$0xf]  ;;  %v18404_v49 = vld [vmem:[#allocation3 + $0x77c] sm:$0xf] }
 0x8f3   :  { %11418 = vmatpush.bf16.msra.mxu2 %v15525_v24  ;;  %v15441_v24 = vor.u32 %v18334_v38, %v15438_v23  ;;  %v15998_v38 = vld [vmem:[#allocation3 + $0x9c4] sm:$0xf0] }
 0x8f4   :  { %11381 = vmatpush.bf16.msra.mxu1 %v14797_v50  ;;  %v11112_v50 = vadd.f32 %v20409_v29, %v11099_v42  ;;  %v18537_v29 = vld [vmem:[#allocation3 + $0xba4] sm:$0xf] }
 0x8f5   :  { %11393 = vmatpush.bf16.msra.mxu3 %v15049_v59  ;;  %v16278_v59 = vld [vmem:[#allocation3 + $0xbf4] sm:$0xf0]  ;;  %v16253_v40 = vor.u32 %v18537_v29, %v16250_v31  ;;  %v15662_v31 = vld [vmem:[#allocation3 + $0x724] sm:$0xf0] }
 0x8f6   :  { %11406 = vmatpush.bf16.msra.mxu0 %v15273_v60  ;;  %v15805_v60 = vor.u32 %v18425_v22, %v15802_v2  ;;  %v16281_v8 = vor.u32 %v18544_v4, %v16278_v59  ;;  %v11150_v25 = vpop.f32.mrf.mxu0  ;;  %v11125_v28 = vadd.f32 %v20407_v16, %v11112_v50  ;;  %v18523_v22 = vld [vmem:[#allocation3 + $0xb34] sm:$0xf]  ;;  %v16194_v2 = vld [vmem:[#allocation3 + $0xb4c] sm:$0xf0]  ;;  %v18397_v59 = vld [vmem:[#allocation3 + $0x744] sm:$0xf] }
 0x8f7   :  { %11419 = vmatpush.bf16.msra.mxu2 %v15497_v5  ;;  %v16057_v5 = vor.u32 %v18488_v26, %v16054_v11  ;;  %v15721_v11 = vor.u32 %v18404_v49, %v15718_v20  ;;  %v16197_v36 = vor.u32 %v18523_v22, %v16194_v2  ;;  %v15693_v46 = vor.u32 %v18397_v59, %v15690_v30  ;;  %v18502_v20 = vld [vmem:[#allocation3 + $0xa8c] sm:$0xf]  ;;  %v16726_v22 = vld [vmem:[#allocation3 + $0xf74] sm:$0xf0]  ;;  %v16978_v2 = vld [vmem:[#allocation3 + $0x116c] sm:$0xf0] }
 0x8f8   :  { %11382 = vmatpush.bf16.msra.mxu1 %v14769_v12  ;;  %v18593_v12 = vld [vmem:[#allocation3 + $0xd64] sm:$0xf]  ;;  %v11176_v18 = vpop.f32.mrf.mxu1  ;;  %v11138_v23 = vadd.f32 %v20413_v56, %v11125_v28  ;;  %v18390_v28 = vld [vmem:[#allocation3 + $0x70c] sm:$0xf] }
 0x8f9   :  { %11394 = vmatpush.bf16.msra.mxu3 %v15021_v14  ;;  %v16474_v14 = vld [vmem:[#allocation3 + $0xd7c] sm:$0xf0] }
 0x8fa   :  { %11407 = vmatpush.bf16.msra.mxu0 %v15245_v39  ;;  %v18411_v39 = vld [vmem:[#allocation3 + $0x7b4] sm:$0xf]  ;;  %v16477_v16 = vor.u32 %v18593_v12, %v16474_v14  ;;  %v11151_v33 = vadd.f32 %v11150_v25, %v11138_v23  ;;  %v18572_v25 = vld [vmem:[#allocation3 + $0xcbc] sm:$0xf]  ;;  %v16754_v23 = vld [vmem:[#allocation3 + $0xfac] sm:$0xf0] }
 0x8fb   :  { %11420 = vmatpush.bf16.msra.mxu2 %v15469_v62  ;;  %11383 = vmatmul.bf16.vlgmr.msra.gmra.mxu1 %v20277_v57  ;;  %v15746_v62 = vld [vmem:[#allocation3 + $0x7cc] sm:$0xf0] }
 0x8fc   :  { %11427 = vmatpush.bf16.msrb.mxu1 %v15861_v17  ;;  %v18530_v17 = vld [vmem:[#allocation3 + $0xb6c] sm:$0xf]  ;;  %v15749_v32 = vor.u32 %v18411_v39, %v15746_v62  ;;  %v15914_v39 = vld [vmem:[#allocation3 + $0x91c] sm:$0xf0]  ;;  %v18509_v62 = vld [vmem:[#allocation3 + $0xac4] sm:$0xf] }
 0x8fd   :  { %11395 = vmatpush.bf16.msra.mxu3 %v14993_v43  ;;  %v11163_v42 = vpop.f32.mrf.mxu2  ;;  %v16001_v43 = vor.u32 %v18474_v27, %v15998_v38  ;;  %v16225_v13 = vor.u32 %v18530_v17, %v16222_v34  ;;  %v16362_v27 = vld [vmem:[#allocation3 + $0xc9c] sm:$0xf0]  ;;  %v18663_v17 = vld [vmem:[#allocation3 + $0xf94] sm:$0xf] }
 0x8fe   :  { %11408 = vmatpush.bf16.msra.mxu0 %v15217_v55  ;;  %v16449_v55 = vor.u32 %v18586_v7, %v16446_v53  ;;  %v11164_v56 = vadd.f32 %v11163_v42, %v11151_v33  ;;  %v15665_v7 = vor.u32 %v18390_v28, %v15662_v31  ;;  %v18446_v33 = vld [vmem:[#allocation3 + $0x8cc] sm:$0xf]  ;;  %v18824_v28 = vld [vmem:[#allocation3 + $0x149c] sm:$0xf]  ;;  %v17398_v31 = vld [vmem:[#allocation3 + $0x14b4] sm:$0xf0] }
 0x8ff   :  { %11421 = vmatpush.bf16.msra.mxu2 %v15441_v24  ;;  %v11152_v24 = vpop.f32.mrf.mxu0 }
 0x900   :  { %11428 = vmatpush.bf16.msrb.mxu1 %v15833_v61  ;;  %11396 = vmatmul.bf16.vlgmr.msra.gmra.mxu3 %v20285_v58  ;;  %v18467_v61 = vld [vmem:[#allocation3 + $0x974] sm:$0xf]  ;;  %v11178_v26 = vpop.f32.mrf.mxu1  ;;  %v16757_v24 = vor.u32 %v18663_v17, %v16754_v23  ;;  %v17370_v17 = vld [vmem:[#allocation3 + $0x147c] sm:$0xf0] }
 0x901   :  { %11440 = vmatpush.bf16.msrb.mxu3 %v16085_v19  ;;  %11409 = vmatmul.bf16.vlgmr.msra.gmra.mxu0 %v20281_v63  ;;  %v15970_v19 = vld [vmem:[#allocation3 + $0x98c] sm:$0xf0] }
 0x902   :  { %11453 = vmatpush.bf16.msrb.mxu0 %v16309_v45  ;;  %11422 = vmatmul.bf16.vlgmr.msra.gmra.mxu2 %v20289_v1  ;;  %v18579_v45 = vld [vmem:[#allocation3 + $0xcf4] sm:$0xf]  ;;  %v15973_v4 = vor.u32 %v18467_v61, %v15970_v19  ;;  %v16334_v61 = vld [vmem:[#allocation3 + $0xc64] sm:$0xf0]  ;;  %v18656_v19 = vld [vmem:[#allocation3 + $0xf5c] sm:$0xf] }
 0x903   :  { %11466 = vmatpush.bf16.msrb.mxu2 %v16533_v3  ;;  %v16418_v3 = vld [vmem:[#allocation3 + $0xd0c] sm:$0xf0]  ;;  %v11189_v50 = vpop.f32.mrf.mxu3  ;;  %v16729_v30 = vor.u32 %v18656_v19, %v16726_v22 }
 0x904   :  { %11429 = vmatpush.bf16.msrb.mxu1 %v15805_v60  ;;  %v16421_v60 = vor.u32 %v18579_v45, %v16418_v3  ;;  %v18775_v45 = vld [vmem:[#allocation3 + $0x1314] sm:$0xf]  ;;  %v17202_v26 = vld [vmem:[#allocation3 + $0x132c] sm:$0xf0] }
 0x905   :  { %11441 = vmatpush.bf16.msrb.mxu3 %v16057_v5  ;;  %v18460_v5 = vld [vmem:[#allocation3 + $0x93c] sm:$0xf]  ;;  %v11165_v12 = vpop.f32.mrf.mxu2 }
 0x906   :  { %11454 = vmatpush.bf16.msrb.mxu0 %v16281_v8  ;;  %v11177_v8 = vadd.f32 %v11176_v18, %v11164_v56  ;;  %v15945_v29 = vor.u32 %v18460_v5, %v15942_v21  ;;  %v18565_v18 = vld [vmem:[#allocation3 + $0xc84] sm:$0xf]  ;;  %v18719_v56 = vld [vmem:[#allocation3 + $0x1154] sm:$0xf]  ;;  %v16698_v5 = vld [vmem:[#allocation3 + $0xf3c] sm:$0xf0]  ;;  %v17205_v21 = vor.u32 %v18775_v45, %v17202_v26 }
 0x907   :  { %11467 = vmatpush.bf16.msrb.mxu2 %v16505_v9  ;;  %v16166_v9 = vld [vmem:[#allocation3 + $0xb14] sm:$0xf0]  ;;  %v11202_v38 = vpop.f32.mrf.mxu0  ;;  %v16365_v49 = vor.u32 %v18565_v18, %v16362_v27  ;;  %v18761_v18 = vld [vmem:[#allocation3 + $0x12a4] sm:$0xf]  ;;  %v17146_v27 = vld [vmem:[#allocation3 + $0x12bc] sm:$0xf0] }
 0x908   :  { %11430 = vmatpush.bf16.msrb.mxu1 %v15777_v41  ;;  %v16169_v14 = vor.u32 %v18516_v6, %v16166_v9  ;;  %v16393_v41 = vor.u32 %v18572_v25, %v16390_v35  ;;  %v16950_v9 = vld [vmem:[#allocation3 + $0x1134] sm:$0xf0]  ;;  %v18768_v25 = vld [vmem:[#allocation3 + $0x12dc] sm:$0xf] }
 0x909   :  { %11442 = vmatpush.bf16.msrb.mxu3 %v16029_v10  ;;  %v18453_v10 = vld [vmem:[#allocation3 + $0x904] sm:$0xf]  ;;  %v16614_v45 = vld [vmem:[#allocation3 + $0xe94] sm:$0xf0] }
 0x90a   :  { %11455 = vmatpush.bf16.msrb.mxu0 %v16253_v40  ;;  %v11190_v40 = vadd.f32 %v11189_v50, %v11177_v8  ;;  %v15917_v53 = vor.u32 %v18453_v10, %v15914_v39  ;;  %v18712_v8 = vld [vmem:[#allocation3 + $0x111c] sm:$0xf]  ;;  %v16670_v10 = vld [vmem:[#allocation3 + $0xf04] sm:$0xf0] }
 0x90b   :  { %11468 = vmatpush.bf16.msrb.mxu2 %v16477_v16  ;;  %v16138_v16 = vld [vmem:[#allocation3 + $0xadc] sm:$0xf0]  ;;  %v11191_v42 = vpop.f32.mrf.mxu3 }
 0x90c   :  { %11431 = vmatpush.bf16.msrb.mxu1 %v15749_v32  ;;  %v11203_v34 = vadd.f32 %v11202_v38, %v11190_v40  ;;  %v15886_v32 = vld [vmem:[#allocation3 + $0x8e4] sm:$0xf0]  ;;  %v18705_v40 = vld [vmem:[#allocation3 + $0x10e4] sm:$0xf] }
 0x90d   :  { %11443 = vmatpush.bf16.msrb.mxu3 %v16001_v43  ;;  %v16141_v43 = vor.u32 %v18509_v62, %v16138_v16  ;;  %v15889_v3 = vor.u32 %v18446_v33, %v15886_v32  ;;  %v17401_v62 = vor.u32 %v18824_v28, %v17398_v31  ;;  %v16922_v16 = vld [vmem:[#allocation3 + $0x10fc] sm:$0xf0]  ;;  %v18817_v38 = vld [vmem:[#allocation3 + $0x1464] sm:$0xf]  ;;  %v16642_v33 = vld [vmem:[#allocation3 + $0xecc] sm:$0xf0]  ;;  %v17149_v32 = vor.u32 %v18761_v18, %v17146_v27 }
 0x90e   :  { %11456 = vmatpush.bf16.msrb.mxu0 %v16225_v13  ;;  %v16110_v13 = vld [vmem:[#allocation3 + $0xaa4] sm:$0xf0]  ;;  %18873 = vtanh.f32 %v11203_v34  ;;  %v17373_v42 = vor.u32 %v18817_v38, %v17370_v17  ;;  %v18740_v28 = vld [vmem:[#allocation3 + $0x11fc] sm:$0xf]  ;;  %v17062_v31 = vld [vmem:[#allocation3 + $0x1214] sm:$0xf0] }
 0x90f   :  { %11469 = vmatpush.bf16.msrb.mxu2 %v16449_v55  ;;  %v18558_v55 = vld [vmem:[#allocation3 + $0xc4c] sm:$0xf]  ;;  %v16113_v50 = vor.u32 %v18502_v20, %v16110_v13  ;;  %v11204_v35 = vpop.f32.mrf.mxu0  ;;  %v17118_v13 = vld [vmem:[#allocation3 + $0x1284] sm:$0xf0]  ;;  %v17065_v18 = vor.u32 %v18740_v28, %v17062_v31  ;;  %v18677_v38 = vld [vmem:[#allocation3 + $0x1004] sm:$0xf] }
 0x910   :  { %11432 = vmatpush.bf16.msrb.mxu1 %v15721_v11  ;;  %v18831_v11 = vld [vmem:[#allocation3 + $0x14d4] sm:$0xf]  ;;  %v16337_v59 = vor.u32 %v18558_v55, %v16334_v61  ;;  %v18754_v20 = vld [vmem:[#allocation3 + $0x126c] sm:$0xf]  ;;  %v16810_v17 = vld [vmem:[#allocation3 + $0x101c] sm:$0xf0] }
 0x911   :  { %11444 = vmatpush.bf16.msrb.mxu3 %v15973_v4  ;;  %v17426_v4 = vld [vmem:[#allocation3 + $0x14ec] sm:$0xf0]  ;;  %v18810_v55 = vld [vmem:[#allocation3 + $0x142c] sm:$0xf]  ;;  %v18387_v28 = vld [vmem:[#allocation3 + $0x6f0] sm:$0xf0] }
 0x912   :  { %11457 = vmatpush.bf16.msrb.mxu0 %v16197_v36  ;;  %v16981_v36 = vor.u32 %v18719_v56, %v16978_v2  ;;  %v17429_v6 = vor.u32 %v18831_v11, %v17426_v4  ;;  %v18628_v2 = vld [vmem:[#allocation3 + $0xe7c] sm:$0xf]  ;;  %v18691_v11 = vld [vmem:[#allocation3 + $0x1074] sm:$0xf]  ;;  %v16866_v4 = vld [vmem:[#allocation3 + $0x108c] sm:$0xf0] }
 0x913   :  { %11470 = vmatpush.bf16.msrb.mxu2 %v16421_v60  ;;  %v18649_v60 = vld [vmem:[#allocation3 + $0xf24] sm:$0xf] }
 0x914   :  { %11433 = vmatpush.bf16.msrb.mxu1 %v15693_v46  ;;  %v18874_v46 = vpop.eup %18873  ;;  %v16701_v12 = vor.u32 %v18649_v60, %v16698_v5  ;;  %v16617_v5 = vor.u32 %v18628_v2, %v16614_v45  ;;  %v17006_v2 = vld [vmem:[#allocation3 + $0x11a4] sm:$0xf0]  ;;  %v18782_v45 = vld [vmem:[#allocation3 + $0x134c] sm:$0xf] }
 0x915   :  { %11445 = vmatpush.bf16.msrb.mxu3 %v15945_v29  ;;  %v17174_v29 = vld [vmem:[#allocation3 + $0x12f4] sm:$0xf0]  ;;  %12059 = vst [vmem:[%s20601_s14 + $0x8] sm:$0xff] %v18874_v46  ;;  %v18684_v46 = vld [vmem:[#allocation3 + $0x103c] sm:$0xf] }
 0x916   :  { %11458 = vmatpush.bf16.msrb.mxu0 %v16169_v14  ;;  %v16953_v14 = vor.u32 %v18712_v8, %v16950_v9  ;;  %v17177_v39 = vor.u32 %v18768_v25, %v17174_v29  ;;  %v16586_v8 = vld [vmem:[#allocation3 + $0xe5c] sm:$0xf0]  ;;  %v16838_v29 = vld [vmem:[#allocation3 + $0x1054] sm:$0xf0] }
 0x917   :  { %11471 = vmatpush.bf16.msrb.mxu2 %v16393_v41  ;;  %v18642_v41 = vld [vmem:[#allocation3 + $0xeec] sm:$0xf] }
 0x918   :  { %11434 = vmatpush.bf16.msrb.mxu1 %v15665_v7  ;;  %v20433_v23 = vpop.f32.mrf.mxu1  ;;  %v16673_v34 = vor.u32 %v18642_v41, %v16670_v10  ;;  %v16925_v7 = vor.u32 %v18705_v40, %v16922_v16  ;;  %v18614_v40 = vld [vmem:[#allocation3 + $0xe0c] sm:$0xf]  ;;  %v16558_v16 = vld [vmem:[#allocation3 + $0xe24] sm:$0xf0] }
 0x919   :  { %11446 = vmatpush.bf16.msrb.mxu3 %v15917_v53  ;;  %v18635_v53 = vld [vmem:[#allocation3 + $0xeb4] sm:$0xf] }
 0x91a   :  { %11459 = vmatpush.bf16.msrb.mxu0 %v16141_v43  ;;  %v18698_v43 = vld [vmem:[#allocation3 + $0x10ac] sm:$0xf]  ;;  %v16645_v22 = vor.u32 %v18635_v53, %v16642_v33  ;;  %v18789_v53 = vld [vmem:[#allocation3 + $0x1384] sm:$0xf]  ;;  %v17258_v33 = vld [vmem:[#allocation3 + $0x139c] sm:$0xf0] }
 0x91b   :  { %11472 = vmatpush.bf16.msrb.mxu2 %v16365_v49  ;;  %11435 = vmatmul.bf16.vlgmr.msrb.gmra.mxu1 %v20297_v47  ;;  %v16894_v49 = vld [vmem:[#allocation3 + $0x10c4] sm:$0xf0] }
 0x91c   :  { %11479 = vmatpush.bf16.msra.mxu1 %v16757_v24  ;;  %v17342_v24 = vld [vmem:[#allocation3 + $0x1444] sm:$0xf0]  ;;  %v16897_v56 = vor.u32 %v18698_v43, %v16894_v49  ;;  %v16561_v43 = vor.u32 %v18614_v40, %v16558_v16  ;;  %v16813_v49 = vor.u32 %v18677_v38, %v16810_v17  ;;  %v15612_v38 = vld [vmem:[#allocation3 + $0x6a0] sm:$0xf]  ;;  %v18380_v17 = vld [vmem:[#allocation3 + $0x6b8] sm:$0xf0] }
 0x91d   :  { %11447 = vmatpush.bf16.msrb.mxu3 %v15889_v3  ;;  %v20436_v61 = vpop.f32.mrf.mxu2  ;;  %v17121_v3 = vor.u32 %v18754_v20, %v17118_v13  ;;  %v17345_v26 = vor.u32 %v18810_v55, %v17342_v24  ;;  %v18670_v20 = vld [vmem:[#allocation3 + $0xfcc] sm:$0xf]  ;;  %v17261_v24 = vor.u32 %v18789_v53, %v17258_v33  ;;  %v15136_v53 = vld [vmem:[#allocation3 + $0x2e8] sm:$0xf]  ;;  %v18261_v33 = vld [vmem:[#allocation3 + $0x300] sm:$0xf0] }
 0x91e   :  { %11460 = vmatpush.bf16.msrb.mxu0 %v16113_v50  ;;  %v20438_v19 = vpop.f32.mrf.mxu0  ;;  %v18747_v50 = vld [vmem:[#allocation3 + $0x1234] sm:$0xf] }
 0x91f   :  { %11473 = vmatpush.bf16.msrb.mxu2 %v16337_v59  ;;  %v17090_v59 = vld [vmem:[#allocation3 + $0x124c] sm:$0xf0] }
 0x920   :  { %11480 = vmatpush.bf16.msra.mxu1 %v16729_v30  ;;  %11448 = vmatmul.bf16.vlgmr.msrb.gmra.mxu3 %v20305_v15  ;;  %v18803_v30 = vld [vmem:[#allocation3 + $0x13f4] sm:$0xf]  ;;  %v11230_v60 = vpop.f32.mrf.mxu1  ;;  %v17093_v25 = vor.u32 %v18747_v50, %v17090_v59  ;;  %v15192_v50 = vld [vmem:[#allocation3 + $0x358] sm:$0xf] }
 0x921   :  { %11492 = vmatpush.bf16.msra.mxu3 %v16981_v36  ;;  %11461 = vmatmul.bf16.vlgmr.msrb.gmra.mxu0 %v20301_v54  ;;  %v17314_v36 = vld [vmem:[#allocation3 + $0x140c] sm:$0xf0]  ;;  %v18275_v59 = vld [vmem:[#allocation3 + $0x370] sm:$0xf0] }
 0x922   :  { %11505 = vmatpush.bf16.msra.mxu0 %v17205_v21  ;;  %11474 = vmatmul.bf16.vlgmr.msrb.gmra.mxu2 %v20309_v37  ;;  %v16869_v21 = vor.u32 %v18691_v11, %v16866_v4  ;;  %v17317_v35 = vor.u32 %v18803_v30, %v17314_v36  ;;  %v18219_v4 = vld [vmem:[#allocation3 + $0x1b0] sm:$0xf0]  ;;  %v15416_v36 = vld [vmem:[#allocation3 + $0x518] sm:$0xf] }
 0x923   :  { %11518 = vmatpush.bf16.msra.mxu2 %v17429_v6  ;;  %v18621_v6 = vld [vmem:[#allocation3 + $0xe44] sm:$0xf]  ;;  %v20440_v9 = vpop.f32.mrf.mxu3  ;;  %v18331_v60 = vld [vmem:[#allocation3 + $0x530] sm:$0xf0] }
 0x924   :  { %11481 = vmatpush.bf16.msra.mxu1 %v16701_v12  ;;  %v18796_v12 = vld [vmem:[#allocation3 + $0x13bc] sm:$0xf]  ;;  %v15417_v31 = vor.u32 %v18331_v60, %v15416_v36  ;;  %v14856_v60 = vld [vmem:[#allocation3 + $0xb8] sm:$0xf] }
 0x925   :  { %11493 = vmatpush.bf16.msra.mxu3 %v16953_v14  ;;  %v17286_v14 = vld [vmem:[#allocation3 + $0x13d4] sm:$0xf0]  ;;  %v11217_v41 = vpop.f32.mrf.mxu2 }
 0x926   :  { %11506 = vmatpush.bf16.msra.mxu0 %v17177_v39  ;;  %v11256_v10 = vpop.f32.mrf.mxu0  ;;  %v16589_v39 = vor.u32 %v18621_v6, %v16586_v8  ;;  %v17289_v27 = vor.u32 %v18796_v12, %v17286_v14  ;;  %v18838_v6 = vld [vmem:[#allocation3 + $0x150c] sm:$0xf]  ;;  %v17454_v8 = vld [vmem:[#allocation3 + $0x1524] sm:$0xf0]  ;;  %v18212_v12 = vld [vmem:[#allocation3 + $0x178] sm:$0xf0] }
 0x927   :  { %11519 = vmatpush.bf16.msra.mxu2 %v17401_v62  ;;  %v16841_v62 = vor.u32 %v18684_v46, %v16838_v29  ;;  %v14940_v46 = vld [vmem:[#allocation3 + $0x160] sm:$0xf]  ;;  %v15640_v29 = vld [vmem:[#allocation3 + $0x6d8] sm:$0xf]  ;;  %v18268_v41 = vld [vmem:[#allocation3 + $0x338] sm:$0xf0] }
 0x928   :  { %11482 = vmatpush.bf16.msra.mxu1 %v16673_v34  ;;  %v18733_v34 = vld [vmem:[#allocation3 + $0x11c4] sm:$0xf]  ;;  %v15164_v14 = vld [vmem:[#allocation3 + $0x320] sm:$0xf]  ;;  %v15641_v40 = vor.u32 %v18387_v28, %v15640_v29  ;;  %v14941_v16 = vor.u32 %v18212_v12, %v14940_v46  ;;  %v15304_v46 = vld [vmem:[#allocation3 + $0x438] sm:$0xf] }
 0x929   :  { %11494 = vmatpush.bf16.msra.mxu3 %v16925_v7  ;;  %v17034_v7 = vld [vmem:[#allocation3 + $0x11dc] sm:$0xf0]  ;;  %v18303_v29 = vld [vmem:[#allocation3 + $0x450] sm:$0xf0] }
 0x92a   :  { %11507 = vmatpush.bf16.msra.mxu0 %v17149_v32  ;;  %v18845_v32 = vld [vmem:[#allocation3 + $0x1544] sm:$0xf]  ;;  %v17037_v55 = vor.u32 %v18733_v34, %v17034_v7  ;;  %v15388_v10 = vld [vmem:[#allocation3 + $0x4e0] sm:$0xf] }
 0x92b   :  { %11520 = vmatpush.bf16.msra.mxu2 %v17373_v42  ;;  %v17482_v42 = vld [vmem:[#allocation3 + $0x155c] sm:$0xf0]  ;;  %v11243_v13 = vpop.f32.mrf.mxu3  ;;  %v18205_v7 = vld [vmem:[#allocation3 + $0x140] sm:$0xf0] }
 0x92c   :  { %11483 = vmatpush.bf16.msra.mxu1 %v16645_v22  ;;  %v16782_v22 = vld [vmem:[#allocation3 + $0xfe4] sm:$0xf0]  ;;  %v17485_v11 = vor.u32 %v18845_v32, %v17482_v42  ;;  %v18317_v42 = vld [vmem:[#allocation3 + $0x4c0] sm:$0xf0]  ;;  %v15137_v13 = vor.u32 %v18261_v33, %v15136_v53  ;;  %v11229_v33 = vadd.f32 %v20433_v23, %v20436_v61 }
 0x92d   :  { %11495 = vmatpush.bf16.msra.mxu3 %v16897_v56  ;;  %v18726_v56 = vld [vmem:[#allocation3 + $0x118c] sm:$0xf]  ;;  %v16785_v30 = vor.u32 %v18670_v20, %v16782_v22  ;;  %v15360_v32 = vld [vmem:[#allocation3 + $0x4a8] sm:$0xf]  ;;  %v18373_v22 = vld [vmem:[#allocation3 + $0x680] sm:$0xf0] }
 0x92e   :  { %11508 = vmatpush.bf16.msra.mxu0 %v17121_v3  ;;  %v17230_v3 = vld [vmem:[#allocation3 + $0x1364] sm:$0xf0]  ;;  %v11242_v23 = vadd.f32 %v20440_v9, %v11229_v33  ;;  %v18555_v9 = vld [vmem:[#allocation3 + $0xc30] sm:$0xf0]  ;;  %v16060_v33 = vld [vmem:[#allocation3 + $0xa20] sm:$0xf] }
 0x92f   :  { %11521 = vmatpush.bf16.msra.mxu2 %v17345_v26  ;;  %v14968_v26 = vld [vmem:[#allocation3 + $0x198] sm:$0xf] }
 0x930   :  { %11484 = vmatpush.bf16.msra.mxu1 %v16617_v5  ;;  %v17009_v5 = vor.u32 %v18726_v56, %v17006_v2  ;;  %v15361_v56 = vor.u32 %v18317_v42, %v15360_v32  ;;  %v18198_v2 = vld [vmem:[#allocation3 + $0x108] sm:$0xf0] }
 0x931   :  { %11496 = vmatpush.bf16.msra.mxu3 %v16869_v21  ;;  %v17233_v21 = vor.u32 %v18782_v45, %v17230_v3  ;;  %v15108_v45 = vld [vmem:[#allocation3 + $0x2b0] sm:$0xf]  ;;  %v18254_v3 = vld [vmem:[#allocation3 + $0x2c8] sm:$0xf0] }
 0x932   :  { %11509 = vmatpush.bf16.msra.mxu0 %v17093_v25  ;;  %v14969_v25 = vor.u32 %v18219_v4, %v14968_v26  ;;  %v15332_v26 = vld [vmem:[#allocation3 + $0x470] sm:$0xf]  ;;  %v15109_v36 = vor.u32 %v18254_v3, %v15108_v45  ;;  %v18289_v45 = vld [vmem:[#allocation3 + $0x3e0] sm:$0xf0] }
 0x933   :  { %11522 = vmatpush.bf16.msra.mxu2 %v17317_v35  ;;  %v15193_v35 = vor.u32 %v18275_v59, %v15192_v50  ;;  %v14772_v3 = vld [vmem:[#allocation3 + $0x10] sm:$0xf] }
 0x934   :  { %11485 = vmatpush.bf16.msra.mxu1 %v16589_v39  ;;  %v18324_v39 = vld [vmem:[#allocation3 + $0x4f8] sm:$0xf0] }
 0x935   :  { %11497 = vmatpush.bf16.msra.mxu3 %v16841_v62  ;;  %v17457_v62 = vor.u32 %v18838_v6, %v17454_v8  ;;  %v15389_v34 = vor.u32 %v18324_v39, %v15388_v10  ;;  %v18191_v8 = vld [vmem:[#allocation3 + $0xd0] sm:$0xf0]  ;;  %v14828_v10 = vld [vmem:[#allocation3 + $0x80] sm:$0xf]  ;;  %v15528_v39 = vld [vmem:[#allocation3 + $0x5f8] sm:$0xf] }
 0x936   :  { %11510 = vmatpush.bf16.msra.mxu0 %v17065_v18  ;;  %v15165_v18 = vor.u32 %v18268_v41, %v15164_v14  ;;  %v14857_v12 = vor.u32 %v18191_v8, %v14856_v60  ;;  %v18345_v60 = vld [vmem:[#allocation3 + $0x5a0] sm:$0xf0]  ;;  %v15220_v8 = vld [vmem:[#allocation3 + $0x390] sm:$0xf] }
 0x937   :  { %11523 = vmatpush.bf16.msra.mxu2 %v17289_v27  ;;  %v14912_v27 = vld [vmem:[#allocation3 + $0x128] sm:$0xf] }
 0x938   :  { %11486 = vmatpush.bf16.msra.mxu1 %v16561_v43  ;;  %v20445_v43 = vpop.f32.mrf.mxu1  ;;  %v14913_v20 = vor.u32 %v18205_v7, %v14912_v27  ;;  %v18240_v27 = vld [vmem:[#allocation3 + $0x258] sm:$0xf0] }
 0x939   :  { %11498 = vmatpush.bf16.msra.mxu3 %v16813_v49  ;;  %v15613_v49 = vor.u32 %v18380_v17, %v15612_v38  ;;  %v15276_v38 = vld [vmem:[#allocation3 + $0x400] sm:$0xf]  ;;  %v18296_v17 = vld [vmem:[#allocation3 + $0x418] sm:$0xf0] }
 0x93a   :  { %11511 = vmatpush.bf16.msra.mxu0 %v17037_v55  ;;  %v14884_v55 = vld [vmem:[#allocation3 + $0xf0] sm:$0xf] }
 0x93b   :  { %11524 = vmatpush.bf16.msra.mxu2 %v17261_v24  ;;  %11487 = vmatmul.bf16.vlgmr.msra.gmra.mxu1 %v20317_v44  ;;  %v15584_v24 = vld [vmem:[#allocation3 + $0x668] sm:$0xf] }
 0x93c   :  { %11537 = vmatpush.bf16.msrb.mxu1 %v17485_v11  ;;  %v18310_v11 = vld [vmem:[#allocation3 + $0x488] sm:$0xf0]  ;;  %v15585_v50 = vor.u32 %v18373_v22, %v15584_v24  ;;  %v18177_v24 = vld [vmem:[#allocation3 + $0x60] sm:$0xf0]  ;;  %v15024_v22 = vld [vmem:[#allocation3 + $0x208] sm:$0xf] }
 0x93d   :  { %11499 = vmatpush.bf16.msra.mxu3 %v16785_v30  ;;  %v20448_v4 = vpop.f32.mrf.mxu2  ;;  %v14885_v30 = vor.u32 %v18198_v2, %v14884_v55  ;;  %v15333_v6 = vor.u32 %v18310_v11, %v15332_v26  ;;  %v15277_v55 = vor.u32 %v18296_v17, %v15276_v38  ;;  %v15248_v2 = vld [vmem:[#allocation3 + $0x3c8] sm:$0xf]  ;;  %v18170_v26 = vld [vmem:[#allocation3 + $0x28] sm:$0xf0]  ;;  %v18611_v38 = vld [vmem:[#allocation3 + $0xdf0] sm:$0xf0] }
 0x93e   :  { %11512 = vmatpush.bf16.msra.mxu0 %v17009_v5  ;;  %v20450_v59 = vpop.f32.mrf.mxu0  ;;  %v15556_v5 = vld [vmem:[#allocation3 + $0x630] sm:$0xf] }
 0x93f   :  { %11525 = vmatpush.bf16.msra.mxu2 %v17233_v21  ;;  %v18366_v21 = vld [vmem:[#allocation3 + $0x648] sm:$0xf0] }
 0x940   :  { %11500 = vmatmul.bf16.vlgmr.msra.gmra.mxu3 %v20325_v51  ;;  %11538 = vmatpush.bf16.msrb.mxu1 %v17457_v62  ;;  %v11282_v28 = vpop.f32.mrf.mxu1  ;;  %v18359_v62 = vld [vmem:[#allocation3 + $0x610] sm:$0xf0] }
 0x941   :  { %11544 = vmatpush.bf16.msrb.mxu3 %v14969_v25  ;;  %11513 = vmatmul.bf16.vlgmr.msra.gmra.mxu0 %v20321_v0  ;;  %v15080_v25 = vld [vmem:[#allocation3 + $0x278] sm:$0xf]  ;;  %v18499_v28 = vld [vmem:[#allocation3 + $0xa70] sm:$0xf0] }
 0x942   :  { %11557 = vmatpush.bf16.msrb.mxu0 %v15193_v35  ;;  %11526 = vmatmul.bf16.vlgmr.msra.gmra.mxu2 %v20329_v52  ;;  %v18247_v35 = vld [vmem:[#allocation3 + $0x290] sm:$0xf0] }
 0x943   :  { %11570 = vmatpush.bf16.msrb.mxu2 %v15417_v31  ;;  %v15557_v31 = vor.u32 %v18366_v21, %v15556_v5  ;;  %v15081_v14 = vor.u32 %v18247_v35, %v15080_v25  ;;  %v20452_v41 = vpop.f32.mrf.mxu3  ;;  %v15249_v21 = vor.u32 %v18289_v45, %v15248_v2  ;;  %v18282_v25 = vld [vmem:[#allocation3 + $0x3a8] sm:$0xf0]  ;;  %v15864_v35 = vld [vmem:[#allocation3 + $0x898] sm:$0xf]  ;;  %v15808_v45 = vld [vmem:[#allocation3 + $0x828] sm:$0xf] }
 0x944   :  { %11583 = vmatpush.bf16.msra.mxu1 %v15641_v40  ;;  %v15305_v40 = vor.u32 %v18303_v29, %v15304_v46  ;;  %v18443_v46 = vld [vmem:[#allocation3 + $0x8b0] sm:$0xf0]  ;;  %v16088_v29 = vld [vmem:[#allocation3 + $0xa58] sm:$0xf] }
 0x945   :  { %11545 = vmatpush.bf16.msrb.mxu3 %v14941_v16  ;;  %v18184_v16 = vld [vmem:[#allocation3 + $0x98] sm:$0xf0]  ;;  %v11269_v7 = vpop.f32.mrf.mxu2  ;;  %v16089_v17 = vor.u32 %v18499_v28, %v16088_v29  ;;  %v18534_v29 = vld [vmem:[#allocation3 + $0xb88] sm:$0xf0] }
 0x946   :  { %11558 = vmatpush.bf16.msrb.mxu0 %v15165_v18  ;;  %v15052_v18 = vld [vmem:[#allocation3 + $0x240] sm:$0xf]  ;;  %v11308_v53 = vpop.f32.mrf.mxu0  ;;  %v14829_v32 = vor.u32 %v18184_v16, %v14828_v10  ;;  %v14773_v10 = vor.u32 %v18170_v26, %v14772_v3  ;;  %v15221_v16 = vor.u32 %v18282_v25, %v15220_v8  ;;  %v18429_v3 = vld [vmem:[#allocation3 + $0x840] sm:$0xf0]  ;;  %v16032_v26 = vld [vmem:[#allocation3 + $0x9e8] sm:$0xf] }
 0x947   :  { %11571 = vmatpush.bf16.msrb.mxu2 %v15389_v34  ;;  %v15529_v34 = vor.u32 %v18359_v62, %v15528_v39  ;;  %v15053_v42 = vor.u32 %v18240_v27, %v15052_v18  ;;  %v15444_v62 = vld [vmem:[#allocation3 + $0x550] sm:$0xf]  ;;  %v15865_v18 = vor.u32 %v18443_v46, %v15864_v35  ;;  %v16536_v27 = vld [vmem:[#allocation3 + $0xdd8] sm:$0xf]  ;;  %v15836_v7 = vld [vmem:[#allocation3 + $0x860] sm:$0xf] }
 0x948   :  { %11584 = vmatpush.bf16.msra.mxu1 %v15613_v49  ;;  %v14800_v49 = vld [vmem:[#allocation3 + $0x48] sm:$0xf]  ;;  %v18436_v53 = vld [vmem:[#allocation3 + $0x878] sm:$0xf0]  ;;  %v15780_v8 = vld [vmem:[#allocation3 + $0x7f0] sm:$0xf] }
 0x949   :  { %11546 = vmatpush.bf16.msrb.mxu3 %v14913_v20  ;;  %v15500_v20 = vld [vmem:[#allocation3 + $0x5c0] sm:$0xf]  ;;  %v14801_v61 = vor.u32 %v18177_v24, %v14800_v49  ;;  %v18422_v25 = vld [vmem:[#allocation3 + $0x808] sm:$0xf0]  ;;  %v16004_v35 = vld [vmem:[#allocation3 + $0x9b0] sm:$0xf] }
 0x94a   :  { %11559 = vmatpush.bf16.msrb.mxu0 %v15137_v13  ;;  %v18352_v13 = vld [vmem:[#allocation3 + $0x5d8] sm:$0xf0]  ;;  %v16508_v24 = vld [vmem:[#allocation3 + $0xda0] sm:$0xf]  ;;  %v16228_v46 = vld [vmem:[#allocation3 + $0xb70] sm:$0xf] }
 0x94b   :  { %11572 = vmatpush.bf16.msrb.mxu2 %v15361_v56  ;;  %17501 = vmatmul.msk.bf16.vlgmr.msrb.gmra.mxu1 %vm344_vm5, %v20337_v48  ;;  %v18233_v56 = vld [vmem:[#allocation3 + $0x220] sm:$0xf0]  ;;  %v15501_v11 = vor.u32 %v18352_v13, %v15500_v20  ;;  %v11295_v5 = vpop.f32.mrf.mxu3  ;;  %v16537_v13 = vor.u32 %v18611_v38, %v16536_v27  ;;  %v15976_v27 = vld [vmem:[#allocation3 + $0x978] sm:$0xf]  ;;  %v18471_v38 = vld [vmem:[#allocation3 + $0x990] sm:$0xf0] }
 0x94c   :  { %11585 = vmatpush.bf16.msra.mxu1 %v15585_v50  ;;  %v15025_v50 = vor.u32 %v18233_v56, %v15024_v22  ;;  %v18604_v22 = vld [vmem:[#allocation3 + $0xdb8] sm:$0xf0]  ;;  %v18597_v5 = vld [vmem:[#allocation3 + $0xd80] sm:$0xf0] }
 0x94d   :  { %11547 = vmatpush.bf16.msrb.mxu3 %v14885_v30  ;;  %v14996_v30 = vld [vmem:[#allocation3 + $0x1d0] sm:$0xf] }
 0x94e   :  { %11560 = vmatpush.bf16.msrb.mxu0 %v15109_v36  ;;  %v15472_v36 = vld [vmem:[#allocation3 + $0x588] sm:$0xf] }
 0x94f   :  { %11573 = vmatpush.bf16.msrb.mxu2 %v15333_v6  ;;  %v18226_v6 = vld [vmem:[#allocation3 + $0x1e8] sm:$0xf0] }
 0x950   :  { %11586 = vmatpush.bf16.msra.mxu1 %v15557_v31  ;;  %v16312_v31 = vld [vmem:[#allocation3 + $0xc18] sm:$0xf]  ;;  %v14997_v39 = vor.u32 %v18226_v6, %v14996_v30 }
 0x951   :  { %11548 = vmatpush.bf16.msrb.mxu3 %v14857_v12  ;;  %v15473_v12 = vor.u32 %v18345_v60, %v15472_v36  ;;  %v15809_v36 = vor.u32 %v18429_v3, %v15808_v45  ;;  %v16480_v60 = vld [vmem:[#allocation3 + $0xd68] sm:$0xf]  ;;  %v18520_v45 = vld [vmem:[#allocation3 + $0xb18] sm:$0xf0] }
 0x952   :  { %11561 = vmatpush.bf16.msrb.mxu0 %v15081_v14  ;;  %v11255_v14 = vadd.f32 %v20438_v19, %v11242_v23  ;;  %v18548_v19 = vld [vmem:[#allocation3 + $0xbf8] sm:$0xf0]  ;;  %v16256_v23 = vld [vmem:[#allocation3 + $0xba8] sm:$0xf] }
 0x953   :  { %11574 = vmatpush.bf16.msrb.mxu2 %v15305_v40  ;;  %v18338_v40 = vld [vmem:[#allocation3 + $0x568] sm:$0xf0] }
 0x954   :  { %11587 = vmatpush.bf16.msra.mxu1 %v15529_v34  ;;  %v16313_v34 = vor.u32 %v18555_v9, %v16312_v31  ;;  %v15445_v49 = vor.u32 %v18338_v40, %v15444_v62  ;;  %v11268_v20 = vadd.f32 %v20448_v4, %v11255_v14  ;;  %v16481_v31 = vor.u32 %v18597_v5, %v16480_v60  ;;  %v15696_v60 = vld [vmem:[#allocation3 + $0x748] sm:$0xf]  ;;  %v18401_v5 = vld [vmem:[#allocation3 + $0x760] sm:$0xf0] }
 0x955   :  { %11549 = vmatpush.bf16.msrb.mxu3 %v14829_v32  ;;  %v18492_v32 = vld [vmem:[#allocation3 + $0xa38] sm:$0xf0]  ;;  %v16229_v40 = vor.u32 %v18534_v29, %v16228_v46  ;;  %v15668_v46 = vld [vmem:[#allocation3 + $0x710] sm:$0xf]  ;;  %v16368_v29 = vld [vmem:[#allocation3 + $0xc88] sm:$0xf] }
 0x956   :  { %11562 = vmatpush.bf16.msrb.mxu0 %v15053_v42  ;;  %v16284_v42 = vld [vmem:[#allocation3 + $0xbe0] sm:$0xf]  ;;  %v16061_v56 = vor.u32 %v18492_v32, %v16060_v33  ;;  %v11281_v4 = vadd.f32 %v20445_v43, %v11268_v20  ;;  %v18478_v43 = vld [vmem:[#allocation3 + $0x9c8] sm:$0xf0]  ;;  %v16424_v32 = vld [vmem:[#allocation3 + $0xcf8] sm:$0xf] }
 0x957   :  { %11575 = vmatpush.bf16.msrb.mxu2 %v15277_v55  ;;  %v15837_v55 = vor.u32 %v18436_v53, %v15836_v7  ;;  %v16285_v2 = vor.u32 %v18548_v19, %v16284_v42  ;;  %v16005_v62 = vor.u32 %v18478_v43, %v16004_v35  ;;  %v18583_v42 = vld [vmem:[#allocation3 + $0xd10] sm:$0xf0]  ;;  %v15697_v43 = vor.u32 %v18401_v5, %v15696_v60  ;;  %v17404_v60 = vld [vmem:[#allocation3 + $0x14a0] sm:$0xf]  ;;  %v18828_v5 = vld [vmem:[#allocation3 + $0x14b8] sm:$0xf0] }
 0x958   :  { %11588 = vmatpush.bf16.msra.mxu1 %v15501_v11  ;;  %v18485_v11 = vld [vmem:[#allocation3 + $0xa00] sm:$0xf0]  ;;  %v20463_v30 = vpop.f32.mrf.mxu1  ;;  %v11294_v28 = vadd.f32 %v20452_v41, %v11281_v4 }
 0x959   :  { %11550 = vmatpush.bf16.msrb.mxu3 %v14801_v61  ;;  %v18541_v61 = vld [vmem:[#allocation3 + $0xbc0] sm:$0xf0] }
 0x95a   :  { %11563 = vmatpush.bf16.msrb.mxu0 %v15025_v50  ;;  %v16509_v50 = vor.u32 %v18604_v22, %v16508_v24  ;;  %v16257_v6 = vor.u32 %v18541_v61, %v16256_v23  ;;  %v11307_v41 = vadd.f32 %v20450_v59, %v11294_v28  ;;  %v15948_v24 = vld [vmem:[#allocation3 + $0x940] sm:$0xf]  ;;  %v16425_v59 = vor.u32 %v18583_v42, %v16424_v32  ;;  %v18576_v23 = vld [vmem:[#allocation3 + $0xcd8] sm:$0xf0]  ;;  %v18569_v28 = vld [vmem:[#allocation3 + $0xca0] sm:$0xf0] }
 0x95b   :  { %11576 = vmatpush.bf16.msrb.mxu2 %v15249_v21  ;;  %v16033_v21 = vor.u32 %v18485_v11, %v16032_v26  ;;  %v16396_v11 = vld [vmem:[#allocation3 + $0xcc0] sm:$0xf] }
 0x95c   :  { %11589 = vmatpush.bf16.msra.mxu1 %v15473_v12  ;;  %v15781_v12 = vor.u32 %v18422_v25, %v15780_v8  ;;  %v16144_v8 = vld [vmem:[#allocation3 + $0xac8] sm:$0xf]  ;;  %v18513_v25 = vld [vmem:[#allocation3 + $0xae0] sm:$0xf0]  ;;  %v16397_v35 = vor.u32 %v18576_v23, %v16396_v11  ;;  %v18772_v11 = vld [vmem:[#allocation3 + $0x12f8] sm:$0xf0] }
 0x95d   :  { %11551 = vmatpush.bf16.msrb.mxu3 %v14773_v10  ;;  %v11319_v9 = vpop.f32.mrf.mxu2  ;;  %v16452_v10 = vld [vmem:[#allocation3 + $0xd30] sm:$0xf] }
 0x95e   :  { %11564 = vmatpush.bf16.msrb.mxu0 %v14997_v39  ;;  %v20469_v14 = vpop.f32.mrf.mxu0  ;;  %v18590_v39 = vld [vmem:[#allocation3 + $0xd48] sm:$0xf0]  ;;  %v11320_v19 = vadd.f32 %v11319_v9, %v11307_v41  ;;  %v16145_v9 = vor.u32 %v18513_v25, %v16144_v8  ;;  %v16928_v8 = vld [vmem:[#allocation3 + $0x10e8] sm:$0xf]  ;;  %v18709_v25 = vld [vmem:[#allocation3 + $0x1100] sm:$0xf0] }
 0x95f   :  { %11577 = vmatpush.bf16.msrb.mxu2 %v15221_v16  ;;  %v15752_v16 = vld [vmem:[#allocation3 + $0x7b8] sm:$0xf]  ;;  %v16453_v7 = vor.u32 %v18590_v39, %v16452_v10  ;;  %v15892_v10 = vld [vmem:[#allocation3 + $0x8d0] sm:$0xf]  ;;  %v18450_v39 = vld [vmem:[#allocation3 + $0x8e8] sm:$0xf0] }
 0x960   :  { %11590 = vmatpush.bf16.msra.mxu1 %v15445_v49  ;;  %11552 = vmatmul.bf16.vlgmr.msrb.gmra.mxu3 %v20277_v57  ;;  %v11334_v53 = vpop.f32.mrf.mxu1  ;;  %v15977_v49 = vor.u32 %v18471_v38, %v15976_v27  ;;  %v11333_v4 = vadd.f32 %v20463_v30, %v11320_v19  ;;  %v18667_v27 = vld [vmem:[#allocation3 + $0xfb0] sm:$0xf0]  ;;  %v16984_v38 = vld [vmem:[#allocation3 + $0x1158] sm:$0xf]  ;;  %v15893_v32 = vor.u32 %v18450_v39, %v15892_v10  ;;  %v16340_v19 = vld [vmem:[#allocation3 + $0xc50] sm:$0xf] }
 0x961   :  { %11596 = vmatpush.bf16.msra.mxu3 %v15865_v18  ;;  %11565 = vmatmul.bf16.vlgmr.msrb.gmra.mxu0 %v20285_v58  ;;  %v18415_v18 = vld [vmem:[#allocation3 + $0x7d0] sm:$0xf0]  ;;  %v18821_v10 = vld [vmem:[#allocation3 + $0x1480] sm:$0xf0] }
 0x962   :  { %11609 = vmatpush.bf16.msra.mxu0 %v16089_v17  ;;  %11578 = vmatmul.bf16.vlgmr.msrb.gmra.mxu2 %v20281_v63  ;;  %v16200_v17 = vld [vmem:[#allocation3 + $0xb38] sm:$0xf]  ;;  %v15753_v33 = vor.u32 %v18415_v18, %v15752_v16  ;;  %v18779_v53 = vld [vmem:[#allocation3 + $0x1330] sm:$0xf0] }
 0x963   :  { %11622 = vmatpush.bf16.msra.mxu2 %v16313_v34  ;;  %11591 = vmatmul.bf16.vlgmr.msra.gmra.mxu1 %v20289_v1  ;;  %v18527_v34 = vld [vmem:[#allocation3 + $0xb50] sm:$0xf0]  ;;  %v11345_v22 = vpop.f32.mrf.mxu3  ;;  %v16760_v16 = vld [vmem:[#allocation3 + $0xf98] sm:$0xf] }
 0x964   :  { %11635 = vmatpush.bf16.msrb.mxu1 %v16537_v13  ;;  %v16201_v20 = vor.u32 %v18527_v34, %v16200_v17  ;;  %v15724_v13 = vld [vmem:[#allocation3 + $0x780] sm:$0xf]  ;;  %v18723_v17 = vld [vmem:[#allocation3 + $0x1170] sm:$0xf0]  ;;  %v16369_v34 = vor.u32 %v18569_v28, %v16368_v29 }
 0x965   :  { %11597 = vmatpush.bf16.msra.mxu3 %v15837_v55  ;;  %v18408_v55 = vld [vmem:[#allocation3 + $0x798] sm:$0xf0]  ;;  %v11321_v3 = vpop.f32.mrf.mxu2 }
 0x966   :  { %11610 = vmatpush.bf16.msra.mxu0 %v16061_v56  ;;  %v18464_v56 = vld [vmem:[#allocation3 + $0x958] sm:$0xf0]  ;;  %v15725_v26 = vor.u32 %v18408_v55, %v15724_v13  ;;  %v11360_v61 = vpop.f32.mrf.mxu0  ;;  %v16761_v13 = vor.u32 %v18667_v27, %v16760_v16  ;;  %v16985_v55 = vor.u32 %v18723_v17, %v16984_v38  ;;  %v16956_v3 = vld [vmem:[#allocation3 + $0x1120] sm:$0xf]  ;;  %v16900_v16 = vld [vmem:[#allocation3 + $0x10b0] sm:$0xf] }
 0x967   :  { %11623 = vmatpush.bf16.msra.mxu2 %v16285_v2  ;;  %v16172_v2 = vld [vmem:[#allocation3 + $0xb00] sm:$0xf]  ;;  %v17124_v27 = vld [vmem:[#allocation3 + $0x1270] sm:$0xf]  ;;  %v18758_v38 = vld [vmem:[#allocation3 + $0x1288] sm:$0xf0] }
 0x968   :  { %11636 = vmatpush.bf16.msrb.mxu1 %v16509_v50  ;;  %v15949_v50 = vor.u32 %v18464_v56, %v15948_v24  ;;  %v16732_v24 = vld [vmem:[#allocation3 + $0xf60] sm:$0xf]  ;;  %v18835_v56 = vld [vmem:[#allocation3 + $0x14f0] sm:$0xf0] }
 0x969   :  { %11598 = vmatpush.bf16.msra.mxu3 %v15809_v36  ;;  %v16173_v36 = vor.u32 %v18520_v45, %v16172_v2 }
 0x96a   :  { %11611 = vmatpush.bf16.msra.mxu0 %v16033_v21  ;;  %v15920_v21 = vld [vmem:[#allocation3 + $0x908] sm:$0xf] }
 0x96b   :  { %11624 = vmatpush.bf16.msra.mxu2 %v16257_v6  ;;  %v18457_v6 = vld [vmem:[#allocation3 + $0x920] sm:$0xf0]  ;;  %v11347_v18 = vpop.f32.mrf.mxu3 }
 0x96c   :  { %11637 = vmatpush.bf16.msrb.mxu1 %v16481_v31  ;;  %v11346_v31 = vadd.f32 %v11345_v22, %v11333_v4  ;;  %v15921_v30 = vor.u32 %v18457_v6, %v15920_v21  ;;  %v17432_v22 = vld [vmem:[#allocation3 + $0x14d8] sm:$0xf]  ;;  %v18653_v6 = vld [vmem:[#allocation3 + $0xf40] sm:$0xf0]  ;;  %v18702_v18 = vld [vmem:[#allocation3 + $0x10c8] sm:$0xf0] }
 0x96d   :  { %11599 = vmatpush.bf16.msra.mxu3 %v15781_v12  ;;  %v18394_v12 = vld [vmem:[#allocation3 + $0x728] sm:$0xf0]  ;;  %v17433_v61 = vor.u32 %v18835_v56, %v17432_v22 }
 0x96e   :  { %11612 = vmatpush.bf16.msra.mxu0 %v16005_v62  ;;  %v16116_v62 = vld [vmem:[#allocation3 + $0xa90] sm:$0xf]  ;;  %v15669_v41 = vor.u32 %v18394_v12, %v15668_v46  ;;  %v17405_v46 = vor.u32 %v18828_v5, %v17404_v60  ;;  %v17376_v12 = vld [vmem:[#allocation3 + $0x1468] sm:$0xf] }
 0x96f   :  { %11625 = vmatpush.bf16.msra.mxu2 %v16229_v40  ;;  %v18506_v40 = vld [vmem:[#allocation3 + $0xaa8] sm:$0xf0]  ;;  %v17377_v17 = vor.u32 %v18821_v10, %v17376_v12  ;;  %v16564_v12 = vld [vmem:[#allocation3 + $0xe10] sm:$0xf] }
 0x970   :  { %11638 = vmatpush.bf16.msrb.mxu1 %v16453_v7  ;;  %v17208_v7 = vld [vmem:[#allocation3 + $0x1318] sm:$0xf]  ;;  %v16117_v42 = vor.u32 %v18506_v40, %v16116_v62  ;;  %v18646_v40 = vld [vmem:[#allocation3 + $0xf08] sm:$0xf0] }
 0x971   :  { %11600 = vmatpush.bf16.msra.mxu3 %v15753_v33  ;;  %v11359_v33 = vadd.f32 %v20469_v14, %v11346_v31  ;;  %v17209_v45 = vor.u32 %v18779_v53, %v17208_v7  ;;  %v17180_v14 = vld [vmem:[#allocation3 + $0x12e0] sm:$0xf]  ;;  %v16929_v31 = vor.u32 %v18709_v25, %v16928_v8  ;;  %v16648_v7 = vld [vmem:[#allocation3 + $0xeb8] sm:$0xf]  ;;  %v17348_v53 = vld [vmem:[#allocation3 + $0x1430] sm:$0xf] }
 0x972   :  { %11613 = vmatpush.bf16.msra.mxu0 %v15977_v49  ;;  %v18562_v49 = vld [vmem:[#allocation3 + $0xc68] sm:$0xf0]  ;;  %v17181_v21 = vor.u32 %v18772_v11, %v17180_v14  ;;  %v18632_v14 = vld [vmem:[#allocation3 + $0xe98] sm:$0xf0]  ;;  %v16844_v11 = vld [vmem:[#allocation3 + $0x1040] sm:$0xf] }
 0x973   :  { %11626 = vmatpush.bf16.msra.mxu2 %v16201_v20  ;;  %v11371_v20 = vpop.f32.mrf.mxu2  ;;  %v16341_v23 = vor.u32 %v18562_v49, %v16340_v19  ;;  %v16872_v19 = vld [vmem:[#allocation3 + $0x1078] sm:$0xf]  ;;  %v18695_v49 = vld [vmem:[#allocation3 + $0x1090] sm:$0xf0]  ;;  %v17292_v8 = vld [vmem:[#allocation3 + $0x13c0] sm:$0xf] }
 0x974   :  { %11639 = vmatpush.bf16.msrb.mxu1 %v16425_v59  ;;  %v11372_v2 = vadd.f32 %v11371_v20, %v11359_v33  ;;  %v18660_v59 = vld [vmem:[#allocation3 + $0xf78] sm:$0xf0]  ;;  %v18814_v33 = vld [vmem:[#allocation3 + $0x1448] sm:$0xf0] }
 0x975   :  { %11601 = vmatpush.bf16.msra.mxu3 %v15725_v26  ;;  %v18716_v26 = vld [vmem:[#allocation3 + $0x1138] sm:$0xf0]  ;;  %v16733_v4 = vor.u32 %v18660_v59, %v16732_v24  ;;  %v17349_v24 = vor.u32 %v18814_v33, %v17348_v53  ;;  %v17320_v59 = vld [vmem:[#allocation3 + $0x13f8] sm:$0xf]  ;;  %v18618_v10 = vld [vmem:[#allocation3 + $0xe28] sm:$0xf0] }
 0x976   :  { %11614 = vmatpush.bf16.msra.mxu0 %v15949_v50  ;;  %18875 = vtanh.f32 %v11372_v2  ;;  %v16957_v50 = vor.u32 %v18716_v26, %v16956_v3  ;;  %v16873_v2 = vor.u32 %v18695_v49, %v16872_v19  ;;  %v18807_v3 = vld [vmem:[#allocation3 + $0x1410] sm:$0xf0]  ;;  %v18800_v25 = vld [vmem:[#allocation3 + $0x13d8] sm:$0xf0]  ;;  %v18849_v53 = vld [vmem:[#allocation3 + $0x1560] sm:$0xf0] }
 0x977   :  { %11627 = vmatpush.bf16.msra.mxu2 %v16173_v36  ;;  %v16704_v36 = vld [vmem:[#allocation3 + $0xf28] sm:$0xf]  ;;  %v17321_v60 = vor.u32 %v18807_v3, %v17320_v59  ;;  %v18216_v33 = vld [vmem:[#allocation3 + $0x19c] sm:$0xf]  ;;  %v14970_v19 = vld [vmem:[#allocation3 + $0x1b4] sm:$0xf0] }
 0x978   :  { %11640 = vmatpush.bf16.msrb.mxu1 %v16397_v35  ;;  %v17152_v35 = vld [vmem:[#allocation3 + $0x12a8] sm:$0xf]  ;;  %v20477_v29 = vpop.f32.mrf.mxu1  ;;  %v16705_v28 = vor.u32 %v18653_v6, %v16704_v36  ;;  %v18272_v49 = vld [vmem:[#allocation3 + $0x35c] sm:$0xf] }
 0x979   :  { %11602 = vmatpush.bf16.msra.mxu3 %v15697_v43  ;;  %v18765_v43 = vld [vmem:[#allocation3 + $0x12c0] sm:$0xf0]  ;;  %v16592_v6 = vld [vmem:[#allocation3 + $0xe48] sm:$0xf]  ;;  %v18328_v3 = vld [vmem:[#allocation3 + $0x51c] sm:$0xf] }
 0x97a   :  { %11615 = vmatpush.bf16.msra.mxu0 %v15921_v30  ;;  %v16676_v30 = vld [vmem:[#allocation3 + $0xef0] sm:$0xf]  ;;  %v17153_v62 = vor.u32 %v18765_v43, %v17152_v35  ;;  %v18625_v43 = vld [vmem:[#allocation3 + $0xe60] sm:$0xf0] }
 0x97b   :  { %11628 = vmatpush.bf16.msra.mxu2 %v16145_v9  ;;  %v11373_v9 = vpop.f32.mrf.mxu2 }
 0x97c   :  { %11641 = vmatpush.bf16.msrb.mxu1 %v16369_v34  ;;  %v18876_v39 = vpop.eup %18875  ;;  %v16677_v34 = vor.u32 %v18646_v40, %v16676_v30  ;;  %v17040_v30 = vld [vmem:[#allocation3 + $0x11c8] sm:$0xf]  ;;  %v18737_v9 = vld [vmem:[#allocation3 + $0x11e0] sm:$0xf0] }
 0x97d   :  { %11603 = vmatpush.bf16.msra.mxu3 %v15669_v41  ;;  %12060 = vst [vmem:[%s20601_s14 + $0x10] sm:$0xff] %v18876_v39  ;;  %v16901_v41 = vor.u32 %v18702_v18, %v16900_v16  ;;  %v17293_v39 = vor.u32 %v18800_v25, %v17292_v8  ;;  %v16788_v16 = vld [vmem:[#allocation3 + $0xfd0] sm:$0xf]  ;;  %v17264_v18 = vld [vmem:[#allocation3 + $0x1388] sm:$0xf] }
 0x97e   :  { %11616 = vmatpush.bf16.msra.mxu0 %v15893_v32  ;;  %v17125_v32 = vor.u32 %v18758_v38, %v17124_v27  ;;  %v20483_v20 = vpop.f32.mrf.mxu0  ;;  %v18793_v27 = vld [vmem:[#allocation3 + $0x13a0] sm:$0xf0]  ;;  %v17041_v38 = vor.u32 %v18737_v9, %v17040_v30  ;;  %v18384_v8 = vld [vmem:[#allocation3 + $0x6dc] sm:$0xf]  ;;  %v15642_v25 = vld [vmem:[#allocation3 + $0x6f4] sm:$0xf0] }
 0x97f   :  { %11629 = vmatpush.bf16.msra.mxu2 %v16117_v42  ;;  %v18639_v42 = vld [vmem:[#allocation3 + $0xed0] sm:$0xf0]  ;;  %v18202_v9 = vld [vmem:[#allocation3 + $0x12c] sm:$0xf] }
 0x980   :  { %11604 = vmatmul.bf16.vlgmr.msra.gmra.mxu3 %v20297_v47  ;;  %11642 = vmatpush.bf16.msrb.mxu1 %v16341_v23  ;;  %v11386_v22 = vpop.f32.mrf.mxu1  ;;  %v16649_v56 = vor.u32 %v18639_v42, %v16648_v7  ;;  %v18688_v23 = vld [vmem:[#allocation3 + $0x1058] sm:$0xf0]  ;;  %v17488_v7 = vld [vmem:[#allocation3 + $0x1548] sm:$0xf] }
 0x981   :  { %11648 = vmatpush.bf16.msrb.mxu3 %v16761_v13  ;;  %11617 = vmatmul.bf16.vlgmr.msra.gmra.mxu0 %v20305_v15  ;;  %v17096_v13 = vld [vmem:[#allocation3 + $0x1238] sm:$0xf]  ;;  %v17489_v59 = vor.u32 %v18849_v53, %v17488_v7  ;;  %v18195_v7 = vld [vmem:[#allocation3 + $0xf4] sm:$0xf] }
 0x982   :  { %11661 = vmatpush.bf16.msrb.mxu0 %v16985_v55  ;;  %11630 = vmatmul.bf16.vlgmr.msra.gmra.mxu2 %v20301_v54  ;;  %v18751_v55 = vld [vmem:[#allocation3 + $0x1250] sm:$0xf0] }
 0x983   :  { %11674 = vmatpush.bf16.msrb.mxu2 %v17209_v45  ;;  %11643 = vmatmul.bf16.vlgmr.msrb.gmra.mxu1 %v20309_v37  ;;  %v16620_v45 = vld [vmem:[#allocation3 + $0xe80] sm:$0xf]  ;;  %v17097_v26 = vor.u32 %v18751_v55, %v17096_v13  ;;  %v15194_v13 = vld [vmem:[#allocation3 + $0x374] sm:$0xf0]  ;;  %v17265_v55 = vor.u32 %v18793_v27, %v17264_v18  ;;  %v18314_v27 = vld [vmem:[#allocation3 + $0x4ac] sm:$0xf] }
 0x984   :  { %11687 = vmatpush.bf16.msra.mxu1 %v17433_v61  ;;  %v17068_v61 = vld [vmem:[#allocation3 + $0x1200] sm:$0xf]  ;;  %v16621_v5 = vor.u32 %v18632_v14, %v16620_v45  ;;  %v14973_v14 = vor.u32 %v18216_v33, %v14970_v19  ;;  %v14886_v33 = vld [vmem:[#allocation3 + $0x10c] sm:$0xf0]  ;;  %v18370_v19 = vld [vmem:[#allocation3 + $0x66c] sm:$0xf] }
 0x985   :  { %11649 = vmatpush.bf16.msrb.mxu3 %v16733_v4  ;;  %v18744_v4 = vld [vmem:[#allocation3 + $0x1218] sm:$0xf0]  ;;  %v20487_v36 = vpop.f32.mrf.mxu2 }
 0x986   :  { %11662 = vmatpush.bf16.msrb.mxu0 %v16957_v50  ;;  %v20485_v50 = vpop.f32.mrf.mxu3  ;;  %v17069_v35 = vor.u32 %v18744_v4, %v17068_v61  ;;  %v18842_v61 = vld [vmem:[#allocation3 + $0x1528] sm:$0xf0]  ;;  %v18209_v4 = vld [vmem:[#allocation3 + $0x164] sm:$0xf] }
 0x987   :  { %11675 = vmatpush.bf16.msrb.mxu2 %v17181_v21  ;;  %v16845_v21 = vor.u32 %v18688_v23, %v16844_v11  ;;  %v15197_v11 = vor.u32 %v18272_v49, %v15194_v13  ;;  %v17460_v23 = vld [vmem:[#allocation3 + $0x1510] sm:$0xf]  ;;  %v15586_v49 = vld [vmem:[#allocation3 + $0x684] sm:$0xf0] }
 0x988   :  { %11688 = vmatpush.bf16.msra.mxu1 %v17405_v46  ;;  %v16816_v46 = vld [vmem:[#allocation3 + $0x1008] sm:$0xf] }
 0x989   :  { %11650 = vmatpush.bf16.msrb.mxu3 %v16705_v28  ;;  %v18681_v28 = vld [vmem:[#allocation3 + $0x1020] sm:$0xf0] }
 0x98a   :  { %11663 = vmatpush.bf16.msrb.mxu0 %v16929_v31  ;;  %v11412_v31 = vpop.f32.mrf.mxu0  ;;  %v16817_v40 = vor.u32 %v18681_v28, %v16816_v46  ;;  %v18321_v46 = vld [vmem:[#allocation3 + $0x4e4] sm:$0xf]  ;;  %v15390_v28 = vld [vmem:[#allocation3 + $0x4fc] sm:$0xf0] }
 0x98b   :  { %11676 = vmatpush.bf16.msrb.mxu2 %v17153_v62  ;;  %v16593_v62 = vor.u32 %v18625_v43, %v16592_v6  ;;  %v17461_v43 = vor.u32 %v18842_v61, %v17460_v23  ;;  %v15393_v18 = vor.u32 %v18321_v46, %v15390_v28  ;;  %v15558_v23 = vld [vmem:[#allocation3 + $0x64c] sm:$0xf0]  ;;  %v15054_v46 = vld [vmem:[#allocation3 + $0x25c] sm:$0xf0] }
 0x98c   :  { %11689 = vmatpush.bf16.msra.mxu1 %v17377_v17  ;;  %v18674_v17 = vld [vmem:[#allocation3 + $0xfe8] sm:$0xf0] }
 0x98d   :  { %11651 = vmatpush.bf16.msrb.mxu3 %v16677_v34  ;;  %v17012_v34 = vld [vmem:[#allocation3 + $0x1190] sm:$0xf]  ;;  %v11425_v42 = vpop.f32.mrf.mxu2  ;;  %v16789_v22 = vor.u32 %v18674_v17, %v16788_v16  ;;  %v15614_v16 = vld [vmem:[#allocation3 + $0x6bc] sm:$0xf0] }
 0x98e   :  { %11664 = vmatpush.bf16.msrb.mxu0 %v16901_v41  ;;  %v18730_v41 = vld [vmem:[#allocation3 + $0x11a8] sm:$0xf0]  ;;  %v15110_v42 = vld [vmem:[#allocation3 + $0x2cc] sm:$0xf0] }
 0x98f   :  { %11677 = vmatpush.bf16.msrb.mxu2 %v17125_v32  ;;  %v11399_v32 = vpop.f32.mrf.mxu3  ;;  %v17013_v45 = vor.u32 %v18730_v41, %v17012_v34 }
 0x990   :  { %11690 = vmatpush.bf16.msra.mxu1 %v17349_v24  ;;  %v16565_v24 = vor.u32 %v18618_v10, %v16564_v12  ;;  %v15645_v12 = vor.u32 %v18384_v8, %v15642_v25  ;;  %v14914_v10 = vld [vmem:[#allocation3 + $0x144] sm:$0xf0]  ;;  %v18251_v32 = vld [vmem:[#allocation3 + $0x2b4] sm:$0xf]  ;;  %v18181_v8 = vld [vmem:[#allocation3 + $0x84] sm:$0xf] }
 0x991   :  { %11652 = vmatpush.bf16.msrb.mxu3 %v16649_v56  ;;  %v17236_v56 = vld [vmem:[#allocation3 + $0x1350] sm:$0xf]  ;;  %v14917_v34 = vor.u32 %v18202_v9, %v14914_v10  ;;  %v18293_v10 = vld [vmem:[#allocation3 + $0x404] sm:$0xf] }
 0x992   :  { %11665 = vmatpush.bf16.msrb.mxu0 %v16873_v2  ;;  %v18786_v2 = vld [vmem:[#allocation3 + $0x1368] sm:$0xf0] }
 0x993   :  { %11678 = vmatpush.bf16.msrb.mxu2 %v17097_v26  ;;  %v15418_v26 = vld [vmem:[#allocation3 + $0x534] sm:$0xf0]  ;;  %v17237_v6 = vor.u32 %v18786_v2, %v17236_v56  ;;  %v15113_v56 = vor.u32 %v18251_v32, %v15110_v42  ;;  %v18188_v2 = vld [vmem:[#allocation3 + $0xbc] sm:$0xf]  ;;  %v18286_v42 = vld [vmem:[#allocation3 + $0x3cc] sm:$0xf] }
 0x994   :  { %11691 = vmatpush.bf16.msra.mxu1 %v17321_v60  ;;  %v14942_v60 = vld [vmem:[#allocation3 + $0x17c] sm:$0xf0] }
 0x995   :  { %11653 = vmatpush.bf16.msrb.mxu3 %v16621_v5  ;;  %v18265_v5 = vld [vmem:[#allocation3 + $0x324] sm:$0xf]  ;;  %v14945_v31 = vor.u32 %v18209_v4, %v14942_v60  ;;  %v18300_v4 = vld [vmem:[#allocation3 + $0x43c] sm:$0xf]  ;;  %v15306_v60 = vld [vmem:[#allocation3 + $0x454] sm:$0xf0] }
 0x996   :  { %11666 = vmatpush.bf16.msrb.mxu0 %v16845_v21  ;;  %v15166_v21 = vld [vmem:[#allocation3 + $0x33c] sm:$0xf0] }
 0x997   :  { %11679 = vmatpush.bf16.msrb.mxu2 %v17069_v35  ;;  %v15421_v35 = vor.u32 %v18328_v3, %v15418_v26  ;;  %v15169_v30 = vor.u32 %v18265_v5, %v15166_v21  ;;  %v18244_v3 = vld [vmem:[#allocation3 + $0x27c] sm:$0xf]  ;;  %v15082_v26 = vld [vmem:[#allocation3 + $0x294] sm:$0xf0] }
 0x998   :  { %11692 = vmatpush.bf16.msra.mxu1 %v17293_v39  ;;  %v18258_v39 = vld [vmem:[#allocation3 + $0x2ec] sm:$0xf]  ;;  %v20492_v17 = vpop.f32.mrf.mxu1 }
 0x999   :  { %11654 = vmatpush.bf16.msrb.mxu3 %v16593_v62  ;;  %v15138_v62 = vld [vmem:[#allocation3 + $0x304] sm:$0xf0] }
 0x99a   :  { %11667 = vmatpush.bf16.msrb.mxu0 %v16817_v40  ;;  %v18377_v40 = vld [vmem:[#allocation3 + $0x6a4] sm:$0xf]  ;;  %v15141_v41 = vor.u32 %v18258_v39, %v15138_v62  ;;  %v15278_v39 = vld [vmem:[#allocation3 + $0x41c] sm:$0xf0]  ;;  %v11398_v62 = vadd.f32 %v20485_v50, %v20477_v29  ;;  %v15250_v29 = vld [vmem:[#allocation3 + $0x3e4] sm:$0xf0] }
 0x99b   :  { %11680 = vmatpush.bf16.msrb.mxu2 %v17041_v38  ;;  %v15362_v38 = vld [vmem:[#allocation3 + $0x4c4] sm:$0xf0]  ;;  %v15617_v53 = vor.u32 %v18377_v40, %v15614_v16  ;;  %v15281_v32 = vor.u32 %v18293_v10, %v15278_v39  ;;  %v15838_v10 = vld [vmem:[#allocation3 + $0x87c] sm:$0xf0]  ;;  %v18489_v39 = vld [vmem:[#allocation3 + $0xa24] sm:$0xf] }
 0x99c   :  { %11693 = vmatpush.bf16.msra.mxu1 %v17265_v55  ;;  %v15365_v13 = vor.u32 %v18314_v27, %v15362_v38  ;;  %v18307_v55 = vld [vmem:[#allocation3 + $0x474] sm:$0xf]  ;;  %v14802_v38 = vld [vmem:[#allocation3 + $0x64] sm:$0xf0]  ;;  %v11411_v50 = vadd.f32 %v20483_v20, %v11398_v62  ;;  %v16090_v20 = vld [vmem:[#allocation3 + $0xa74] sm:$0xf0] }
 0x99d   :  { %11655 = vmatpush.bf16.msrb.mxu3 %v16565_v24  ;;  %v15334_v24 = vld [vmem:[#allocation3 + $0x48c] sm:$0xf0] }
 0x99e   :  { %11668 = vmatpush.bf16.msrb.mxu0 %v16789_v22  ;;  %v14889_v22 = vor.u32 %v18195_v7, %v14886_v33  ;;  %v15337_v61 = vor.u32 %v18307_v55, %v15334_v24  ;;  %v15502_v33 = vld [vmem:[#allocation3 + $0x5dc] sm:$0xf0]  ;;  %v14774_v55 = vld [vmem:[#allocation3 + $0x2c] sm:$0xf0]  ;;  %v18223_v24 = vld [vmem:[#allocation3 + $0x1d4] sm:$0xf] }
 0x99f   :  { %11681 = vmatpush.bf16.msrb.mxu2 %v17013_v45  ;;  %v15589_v45 = vor.u32 %v18370_v19, %v15586_v49 }
 0x9a0   :  { %11656 = vmatmul.bf16.vlgmr.msrb.gmra.mxu3 %v20317_v44  ;;  %11694 = vmatpush.bf16.msra.mxu1 %v17237_v6  ;;  %v11438_v5 = vpop.f32.mrf.mxu1  ;;  %v15085_v6 = vor.u32 %v18244_v3, %v15082_v26  ;;  %v15866_v3 = vld [vmem:[#allocation3 + $0x8b4] sm:$0xf0]  ;;  %v18496_v26 = vld [vmem:[#allocation3 + $0xa5c] sm:$0xf] }
 0x9a1   :  { %11706 = vmatpush.bf16.msra.mxu3 %v17489_v59  ;;  %11669 = vmatmul.bf16.vlgmr.msrb.gmra.mxu0 %v20325_v51  ;;  %v14858_v59 = vld [vmem:[#allocation3 + $0xd4] sm:$0xf0]  ;;  %v11424_v5 = vadd.f32 %v20487_v36, %v11411_v50  ;;  %v16034_v50 = vld [vmem:[#allocation3 + $0xa04] sm:$0xf0] }
 0x9a2   :  { %11713 = vmatpush.bf16.msra.mxu0 %v14973_v14  ;;  %11682 = vmatmul.bf16.vlgmr.msrb.gmra.mxu2 %v20321_v0  ;;  %v20495_v14 = vpop.f32.mrf.mxu0  ;;  %v14861_v21 = vor.u32 %v18188_v2, %v14858_v59  ;;  %v18342_v2 = vld [vmem:[#allocation3 + $0x58c] sm:$0xf]  ;;  %v18440_v59 = vld [vmem:[#allocation3 + $0x89c] sm:$0xf]  ;;  %v16538_v36 = vld [vmem:[#allocation3 + $0xdf4] sm:$0xf0] }
 0x9a3   :  { %11726 = vmatpush.bf16.msra.mxu2 %v15197_v11  ;;  %11695 = vmatmul.bf16.vlgmr.msra.gmra.mxu1 %v20329_v52  ;;  %v18363_v11 = vld [vmem:[#allocation3 + $0x634] sm:$0xf]  ;;  %v20497_v28 = vpop.f32.mrf.mxu3 }
 0x9a4   :  { %11739 = vmatpush.bf16.msrb.mxu1 %v15421_v35  ;;  %v15561_v25 = vor.u32 %v18363_v11, %v15558_v23  ;;  %v14830_v35 = vld [vmem:[#allocation3 + $0x9c] sm:$0xf0]  ;;  %v15253_v11 = vor.u32 %v18286_v42, %v15250_v29  ;;  %v15810_v42 = vld [vmem:[#allocation3 + $0x844] sm:$0xf0]  ;;  %v18482_v29 = vld [vmem:[#allocation3 + $0x9ec] sm:$0xf] }
 0x9a5   :  { %11707 = vmatpush.bf16.msra.mxu3 %v17461_v43  ;;  %v18237_v43 = vld [vmem:[#allocation3 + $0x244] sm:$0xf]  ;;  %v20499_v9 = vpop.f32.mrf.mxu2  ;;  %v14833_v40 = vor.u32 %v18181_v8, %v14830_v35  ;;  %v18552_v8 = vld [vmem:[#allocation3 + $0xc1c] sm:$0xf] }
 0x9a6   :  { %11714 = vmatpush.bf16.msra.mxu0 %v14945_v31  ;;  %v18356_v31 = vld [vmem:[#allocation3 + $0x5fc] sm:$0xf]  ;;  %v15057_v16 = vor.u32 %v18237_v43, %v15054_v46  ;;  %v15869_v43 = vor.u32 %v18440_v59, %v15866_v3  ;;  %v18335_v46 = vld [vmem:[#allocation3 + $0x554] sm:$0xf]  ;;  %v15782_v3 = vld [vmem:[#allocation3 + $0x80c] sm:$0xf0] }
 0x9a7   :  { %11727 = vmatpush.bf16.msra.mxu2 %v15169_v30  ;;  %v15530_v30 = vld [vmem:[#allocation3 + $0x614] sm:$0xf0]  ;;  %v18419_v59 = vld [vmem:[#allocation3 + $0x7f4] sm:$0xf] }
 0x9a8   :  { %11740 = vmatpush.bf16.msrb.mxu1 %v15393_v18  ;;  %v18174_v18 = vld [vmem:[#allocation3 + $0x4c] sm:$0xf]  ;;  %v15533_v27 = vor.u32 %v18356_v31, %v15530_v30  ;;  %v15446_v31 = vld [vmem:[#allocation3 + $0x56c] sm:$0xf0]  ;;  %v16093_v30 = vor.u32 %v18496_v26, %v16090_v20  ;;  %v18475_v26 = vld [vmem:[#allocation3 + $0x9b4] sm:$0xf] }
 0x9a9   :  { %11752 = vmatpush.bf16.msrb.mxu3 %v15645_v12  ;;  %v15309_v12 = vor.u32 %v18300_v4, %v15306_v60  ;;  %v14805_v19 = vor.u32 %v18174_v18, %v14802_v38  ;;  %v18279_v4 = vld [vmem:[#allocation3 + $0x394] sm:$0xf]  ;;  %v15222_v60 = vld [vmem:[#allocation3 + $0x3ac] sm:$0xf0]  ;;  %v18545_v38 = vld [vmem:[#allocation3 + $0xbe4] sm:$0xf] }
 0x9aa   :  { %11715 = vmatpush.bf16.msra.mxu0 %v14917_v34  ;;  %v18230_v34 = vld [vmem:[#allocation3 + $0x20c] sm:$0xf]  ;;  %v11464_v7 = vpop.f32.mrf.mxu0  ;;  %v15225_v62 = vor.u32 %v18279_v4, %v15222_v60  ;;  %v18531_v4 = vld [vmem:[#allocation3 + $0xb74] sm:$0xf]  ;;  %v16230_v60 = vld [vmem:[#allocation3 + $0xb8c] sm:$0xf0] }
 0x9ab   :  { %11728 = vmatpush.bf16.msra.mxu2 %v15141_v41  ;;  %v15026_v41 = vld [vmem:[#allocation3 + $0x224] sm:$0xf0]  ;;  %v11451_v23 = vpop.f32.mrf.mxu3 }
 0x9ac   :  { %11741 = vmatpush.bf16.msrb.mxu1 %v15365_v13  ;;  %v15029_v49 = vor.u32 %v18230_v34, %v15026_v41  ;;  %v18167_v13 = vld [vmem:[#allocation3 + $0x14] sm:$0xf]  ;;  %v16286_v34 = vld [vmem:[#allocation3 + $0xbfc] sm:$0xf0]  ;;  %v15449_v41 = vor.u32 %v18335_v46, %v15446_v31  ;;  %v18594_v23 = vld [vmem:[#allocation3 + $0xd6c] sm:$0xf] }
 0x9ad   :  { %11753 = vmatpush.bf16.msrb.mxu3 %v15617_v53  ;;  %v18349_v53 = vld [vmem:[#allocation3 + $0x5c4] sm:$0xf]  ;;  %v18587_v46 = vld [vmem:[#allocation3 + $0xd34] sm:$0xf]  ;;  %v16454_v31 = vld [vmem:[#allocation3 + $0xd4c] sm:$0xf0] }
 0x9ae   :  { %11716 = vmatpush.bf16.msra.mxu0 %v14889_v22  ;;  %v15505_v22 = vor.u32 %v18349_v53, %v15502_v33 }
 0x9af   :  { %11729 = vmatpush.bf16.msra.mxu2 %v15113_v56  ;;  %v14998_v56 = vld [vmem:[#allocation3 + $0x1ec] sm:$0xf0] }
 0x9b0   :  { %11742 = vmatpush.bf16.msrb.mxu1 %v15337_v61  ;;  %17502 = vmatmul.msk.bf16.vlgmr.msra.gmra.mxu3 %vm344_vm5, %v20337_v48  ;;  %v11477_v61 = vpop.f32.mrf.mxu2 }
 0x9b1   :  { %11754 = vmatpush.bf16.msrb.mxu3 %v15589_v45  ;;  %v15474_v45 = vld [vmem:[#allocation3 + $0x5a4] sm:$0xf0] }
 0x9b2   :  { %11717 = vmatpush.bf16.msra.mxu0 %v14861_v21  ;;  %v14777_v21 = vor.u32 %v18167_v13, %v14774_v55  ;;  %v15477_v35 = vor.u32 %v18342_v2, %v15474_v45  ;;  %v18538_v55 = vld [vmem:[#allocation3 + $0xbac] sm:$0xf]  ;;  %v16037_v2 = vor.u32 %v18482_v29, %v16034_v50  ;;  %v16482_v61 = vld [vmem:[#allocation3 + $0xd84] sm:$0xf0]  ;;  %v18517_v29 = vld [vmem:[#allocation3 + $0xb04] sm:$0xf] }
 0x9b3   :  { %11730 = vmatpush.bf16.msra.mxu2 %v15085_v6  ;;  %v15001_v6 = vor.u32 %v18223_v24, %v14998_v56  ;;  %v16258_v24 = vld [vmem:[#allocation3 + $0xbc4] sm:$0xf0]  ;;  %v16174_v50 = vld [vmem:[#allocation3 + $0xb1c] sm:$0xf0] }
 0x9b4   :  { %11743 = vmatpush.bf16.msrb.mxu1 %v15309_v12  ;;  %v18433_v12 = vld [vmem:[#allocation3 + $0x864] sm:$0xf] }
 0x9b5   :  { %11755 = vmatpush.bf16.msrb.mxu3 %v15561_v25  ;;  %v16314_v25 = vld [vmem:[#allocation3 + $0xc34] sm:$0xf0]  ;;  %v15841_v7 = vor.u32 %v18433_v12, %v15838_v10  ;;  %v18524_v10 = vld [vmem:[#allocation3 + $0xb3c] sm:$0xf] }
 0x9b6   :  { %11718 = vmatpush.bf16.msra.mxu0 %v14833_v40  ;;  %v16062_v40 = vld [vmem:[#allocation3 + $0xa3c] sm:$0xf0]  ;;  %v16317_v18 = vor.u32 %v18552_v8, %v16314_v25  ;;  %v18412_v8 = vld [vmem:[#allocation3 + $0x7bc] sm:$0xf]  ;;  %v15754_v25 = vld [vmem:[#allocation3 + $0x7d4] sm:$0xf0] }
 0x9b7   :  { %11731 = vmatpush.bf16.msra.mxu2 %v15057_v16  ;;  %v18608_v16 = vld [vmem:[#allocation3 + $0xddc] sm:$0xf]  ;;  %v16065_v53 = vor.u32 %v18489_v39, %v16062_v40  ;;  %v16202_v39 = vld [vmem:[#allocation3 + $0xb54] sm:$0xf0]  ;;  %v15757_v40 = vor.u32 %v18412_v8, %v15754_v25  ;;  %v15894_v8 = vld [vmem:[#allocation3 + $0x8ec] sm:$0xf0] }
 0x9b8   :  { %11744 = vmatpush.bf16.msrb.mxu1 %v15281_v32  ;;  %v16541_v33 = vor.u32 %v18608_v16, %v16538_v36  ;;  %v18426_v32 = vld [vmem:[#allocation3 + $0x82c] sm:$0xf] }
 0x9b9   :  { %11756 = vmatpush.bf16.msrb.mxu3 %v15533_v27  ;;  %v11437_v27 = vadd.f32 %v20492_v17, %v11424_v5  ;;  %v16289_v17 = vor.u32 %v18545_v38, %v16286_v34  ;;  %v15813_v56 = vor.u32 %v18426_v32, %v15810_v42  ;;  %v15785_v5 = vor.u32 %v18419_v59, %v15782_v3  ;;  %v15726_v38 = vld [vmem:[#allocation3 + $0x79c] sm:$0xf0]  ;;  %v18461_v34 = vld [vmem:[#allocation3 + $0x944] sm:$0xf]  ;;  %v18566_v25 = vld [vmem:[#allocation3 + $0xc8c] sm:$0xf] }
 0x9ba   :  { %11719 = vmatpush.bf16.msra.mxu0 %v14805_v19  ;;  %v18601_v19 = vld [vmem:[#allocation3 + $0xda4] sm:$0xf]  ;;  %v16205_v32 = vor.u32 %v18524_v10, %v16202_v39  ;;  %v16177_v59 = vor.u32 %v18517_v29, %v16174_v50  ;;  %v18832_v29 = vld [vmem:[#allocation3 + $0x14dc] sm:$0xf]  ;;  %v17434_v50 = vld [vmem:[#allocation3 + $0x14f4] sm:$0xf0] }
 0x9bb   :  { %11732 = vmatpush.bf16.msra.mxu2 %v15029_v49  ;;  %v16510_v49 = vld [vmem:[#allocation3 + $0xdbc] sm:$0xf0]  ;;  %v11450_v13 = vadd.f32 %v20497_v28, %v11437_v27  ;;  %v16261_v28 = vor.u32 %v18538_v55, %v16258_v24  ;;  %v18405_v27 = vld [vmem:[#allocation3 + $0x784] sm:$0xf]  ;;  %v18398_v55 = vld [vmem:[#allocation3 + $0x74c] sm:$0xf] }
 0x9bc   :  { %11745 = vmatpush.bf16.msrb.mxu1 %v15253_v11  ;;  %v16513_v45 = vor.u32 %v18601_v19, %v16510_v49  ;;  %v16006_v11 = vld [vmem:[#allocation3 + $0x9cc] sm:$0xf0]  ;;  %v15729_v19 = vor.u32 %v18405_v27, %v15726_v38  ;;  %v15698_v24 = vld [vmem:[#allocation3 + $0x764] sm:$0xf0]  ;;  %v17210_v27 = vld [vmem:[#allocation3 + $0x1334] sm:$0xf0] }
 0x9bd   :  { %11757 = vmatpush.bf16.msrb.mxu3 %v15505_v22  ;;  %v11488_v22 = vpop.f32.mrf.mxu1  ;;  %v11463_v20 = vadd.f32 %v20495_v14, %v11450_v13 }
 0x9be   :  { %11720 = vmatpush.bf16.msra.mxu0 %v14777_v21  ;;  %v16009_v21 = vor.u32 %v18475_v26, %v16006_v11  ;;  %v11514_v14 = vpop.f32.mrf.mxu0  ;;  %v18510_v11 = vld [vmem:[#allocation3 + $0xacc] sm:$0xf] }
 0x9bf   :  { %11733 = vmatpush.bf16.msra.mxu2 %v15001_v6  ;;  %v16485_v6 = vor.u32 %v18594_v23, %v16482_v61  ;;  %v11476_v12 = vadd.f32 %v20499_v9, %v11463_v20  ;;  %v16146_v23 = vld [vmem:[#allocation3 + $0xae4] sm:$0xf0]  ;;  %v18391_v20 = vld [vmem:[#allocation3 + $0x714] sm:$0xf] }
 0x9c0   :  { %11746 = vmatpush.bf16.msrb.mxu1 %v15225_v62 }
 0x9c1   :  { %11758 = vmatpush.bf16.msrb.mxu3 %v15477_v35  ;;  %11721 = vmatmul.bf16.vlgmr.msra.gmra.mxu0 %v20277_v57  ;;  %v18468_v35 = vld [vmem:[#allocation3 + $0x97c] sm:$0xf]  ;;  %v11489_v16 = vadd.f32 %v11488_v22, %v11476_v12  ;;  %v18454_v22 = vld [vmem:[#allocation3 + $0x90c] sm:$0xf]  ;;  %v16986_v12 = vld [vmem:[#allocation3 + $0x1174] sm:$0xf0] }
 0x9c2   :  { %11765 = vmatpush.bf16.msrb.mxu0 %v15869_v43  ;;  %11734 = vmatmul.bf16.vlgmr.msra.gmra.mxu2 %v20285_v58  ;;  %v15978_v43 = vld [vmem:[#allocation3 + $0x994] sm:$0xf0] }
 0x9c3   :  { %11778 = vmatpush.bf16.msrb.mxu2 %v16093_v30  ;;  %11747 = vmatmul.bf16.vlgmr.msrb.gmra.mxu1 %v20281_v63  ;;  %v16233_v30 = vor.u32 %v18531_v4, %v16230_v60  ;;  %v15981_v36 = vor.u32 %v18468_v35, %v15978_v43  ;;  %v16370_v35 = vld [vmem:[#allocation3 + $0xca4] sm:$0xf0]  ;;  %v18664_v43 = vld [vmem:[#allocation3 + $0xf9c] sm:$0xf] }
 0x9c4   :  { %11791 = vmatpush.bf16.msra.mxu1 %v16317_v18  ;;  %v16457_v18 = vor.u32 %v18587_v46, %v16454_v31  ;;  %v16149_v46 = vor.u32 %v18510_v11, %v16146_v23  ;;  %v18825_v11 = vld [vmem:[#allocation3 + $0x14a4] sm:$0xf]  ;;  %v17406_v23 = vld [vmem:[#allocation3 + $0x14bc] sm:$0xf0] }
 0x9c5   :  { %11759 = vmatpush.bf16.msrb.mxu3 %v15449_v41  ;;  %v11490_v62 = vpop.f32.mrf.mxu1  ;;  %v11501_v41 = vpop.f32.mrf.mxu3 }
 0x9c6   :  { %11766 = vmatpush.bf16.msrb.mxu0 %v15841_v7  ;;  %v15950_v7 = vld [vmem:[#allocation3 + $0x95c] sm:$0xf0]  ;;  %v11502_v9 = vadd.f32 %v11501_v41, %v11489_v16  ;;  %v11527_v42 = vpop.f32.mrf.mxu2  ;;  %v11516_v3 = vpop.f32.mrf.mxu0  ;;  %v18503_v62 = vld [vmem:[#allocation3 + $0xa94] sm:$0xf] }
 0x9c7   :  { %11779 = vmatpush.bf16.msrb.mxu2 %v16065_v53  ;;  %v18580_v53 = vld [vmem:[#allocation3 + $0xcfc] sm:$0xf]  ;;  %v18559_v41 = vld [vmem:[#allocation3 + $0xc54] sm:$0xf]  ;;  %v18706_v3 = vld [vmem:[#allocation3 + $0x10ec] sm:$0xf] }
 0x9c8   :  { %11792 = vmatpush.bf16.msra.mxu1 %v16289_v17  ;;  %11760 = vmatmul.bf16.vlgmr.msrb.gmra.mxu3 %v20289_v1  ;;  %v11515_v49 = vadd.f32 %v11514_v14, %v11502_v9  ;;  %v15953_v17 = vor.u32 %v18461_v34, %v15950_v7  ;;  %v16762_v14 = vld [vmem:[#allocation3 + $0xfb4] sm:$0xf0]  ;;  %v16342_v7 = vld [vmem:[#allocation3 + $0xc6c] sm:$0xf0]  ;;  %v16958_v9 = vld [vmem:[#allocation3 + $0x113c] sm:$0xf0] }
 0x9c9   :  { %11804 = vmatpush.bf16.msra.mxu3 %v16541_v33  ;;  %v16426_v33 = vld [vmem:[#allocation3 + $0xd14] sm:$0xf0]  ;;  %v16765_v38 = vor.u32 %v18664_v43, %v16762_v14  ;;  %v17378_v43 = vld [vmem:[#allocation3 + $0x1484] sm:$0xf0]  ;;  %v17126_v14 = vld [vmem:[#allocation3 + $0x128c] sm:$0xf0] }
 0x9ca   :  { %11767 = vmatpush.bf16.msrb.mxu0 %v15813_v56  ;;  %v16429_v13 = vor.u32 %v18580_v53, %v16426_v33  ;;  %v15922_v56 = vld [vmem:[#allocation3 + $0x924] sm:$0xf0]  ;;  %v11528_v26 = vadd.f32 %v11527_v42, %v11515_v49  ;;  %v18657_v53 = vld [vmem:[#allocation3 + $0xf64] sm:$0xf]  ;;  %v16734_v33 = vld [vmem:[#allocation3 + $0xf7c] sm:$0xf0] }
 0x9cb   :  { %11780 = vmatpush.bf16.msrb.mxu2 %v16037_v2  ;;  %v18573_v2 = vld [vmem:[#allocation3 + $0xcc4] sm:$0xf]  ;;  %v15925_v60 = vor.u32 %v18454_v22, %v15922_v56  ;;  %v16737_v22 = vor.u32 %v18657_v53, %v16734_v33 }
 0x9cc   :  { %11793 = vmatpush.bf16.msra.mxu1 %v16261_v28  ;;  %v15701_v28 = vor.u32 %v18398_v55, %v15698_v24  ;;  %v18769_v55 = vld [vmem:[#allocation3 + $0x12e4] sm:$0xf]  ;;  %v17182_v24 = vld [vmem:[#allocation3 + $0x12fc] sm:$0xf0] }
 0x9cd   :  { %11805 = vmatpush.bf16.msra.mxu3 %v16513_v45  ;;  %v16398_v45 = vld [vmem:[#allocation3 + $0xcdc] sm:$0xf0]  ;;  %v11540_v61 = vpop.f32.mrf.mxu1  ;;  %v11503_v31 = vpop.f32.mrf.mxu3  ;;  %v18629_v33 = vld [vmem:[#allocation3 + $0xe84] sm:$0xf] }
 0x9ce   :  { %11768 = vmatpush.bf16.msrb.mxu0 %v15785_v5  ;;  %v11541_v4 = vadd.f32 %v11540_v61, %v11528_v26  ;;  %v16401_v5 = vor.u32 %v18573_v2, %v16398_v45  ;;  %v11529_v10 = vpop.f32.mrf.mxu2  ;;  %v18650_v2 = vld [vmem:[#allocation3 + $0xf2c] sm:$0xf]  ;;  %v17437_v45 = vor.u32 %v18832_v29, %v17434_v50  ;;  %v16930_v26 = vld [vmem:[#allocation3 + $0x1104] sm:$0xf0]  ;;  %v17185_v61 = vor.u32 %v18769_v55, %v17182_v24  ;;  %v18755_v31 = vld [vmem:[#allocation3 + $0x1274] sm:$0xf] }
 0x9cf   :  { %11781 = vmatpush.bf16.msrb.mxu2 %v16009_v21  ;;  %v15670_v21 = vld [vmem:[#allocation3 + $0x72c] sm:$0xf0]  ;;  %v18636_v10 = vld [vmem:[#allocation3 + $0xebc] sm:$0xf]  ;;  %v18685_v29 = vld [vmem:[#allocation3 + $0x1044] sm:$0xf] }
 0x9d0   :  { %11794 = vmatpush.bf16.msra.mxu1 %v16233_v30  ;;  %18877 = vtanh.f32 %v11541_v4  ;;  %v18720_v30 = vld [vmem:[#allocation3 + $0x115c] sm:$0xf]  ;;  %v15673_v39 = vor.u32 %v18391_v20, %v15670_v21  ;;  %v17154_v20 = vld [vmem:[#allocation3 + $0x12c4] sm:$0xf0]  ;;  %v17409_v21 = vor.u32 %v18825_v11, %v17406_v23  ;;  %v16846_v50 = vld [vmem:[#allocation3 + $0x105c] sm:$0xf0] }
 0x9d1   :  { %11806 = vmatpush.bf16.msra.mxu3 %v16485_v6  ;;  %v18447_v6 = vld [vmem:[#allocation3 + $0x8d4] sm:$0xf]  ;;  %v16989_v34 = vor.u32 %v18720_v30, %v16986_v12  ;;  %v18741_v55 = vld [vmem:[#allocation3 + $0x1204] sm:$0xf]  ;;  %v17070_v24 = vld [vmem:[#allocation3 + $0x121c] sm:$0xf0] }
 0x9d2   :  { %11769 = vmatpush.bf16.msrb.mxu0 %v15757_v40  ;;  %v16118_v40 = vld [vmem:[#allocation3 + $0xaac] sm:$0xf0]  ;;  %v15897_v16 = vor.u32 %v18447_v6, %v15894_v8  ;;  %v18699_v8 = vld [vmem:[#allocation3 + $0x10b4] sm:$0xf]  ;;  %v16818_v11 = vld [vmem:[#allocation3 + $0x1024] sm:$0xf0] }
 0x9d3   :  { %11782 = vmatpush.bf16.msrb.mxu2 %v15981_v36  ;;  %v16373_v36 = vor.u32 %v18566_v25, %v16370_v35  ;;  %v16121_v42 = vor.u32 %v18503_v62, %v16118_v40  ;;  %v16678_v6 = vld [vmem:[#allocation3 + $0xf0c] sm:$0xf0]  ;;  %v18818_v35 = vld [vmem:[#allocation3 + $0x146c] sm:$0xf]  ;;  %v16650_v62 = vld [vmem:[#allocation3 + $0xed4] sm:$0xf0] }
 0x9d4   :  { %11795 = vmatpush.bf16.msra.mxu1 %v16205_v32  ;;  %v18713_v32 = vld [vmem:[#allocation3 + $0x1124] sm:$0xf]  ;;  %v16902_v25 = vld [vmem:[#allocation3 + $0x10cc] sm:$0xf0]  ;;  %v18692_v40 = vld [vmem:[#allocation3 + $0x107c] sm:$0xf] }
 0x9d5   :  { %11807 = vmatpush.bf16.msra.mxu3 %v16457_v18  ;;  %v18776_v18 = vld [vmem:[#allocation3 + $0x131c] sm:$0xf]  ;;  %v11542_v49 = vpop.f32.mrf.mxu1  ;;  %v16961_v56 = vor.u32 %v18713_v32, %v16958_v9  ;;  %v16905_v12 = vor.u32 %v18699_v8, %v16902_v25  ;;  %v18797_v23 = vld [vmem:[#allocation3 + $0x13c4] sm:$0xf]  ;;  %v16566_v8 = vld [vmem:[#allocation3 + $0xe2c] sm:$0xf0] }
 0x9d6   :  { %11770 = vmatpush.bf16.msrb.mxu0 %v15729_v19  ;;  %v17213_v19 = vor.u32 %v18776_v18, %v17210_v27  ;;  %v17350_v18 = vld [vmem:[#allocation3 + $0x144c] sm:$0xf0]  ;;  %v17129_v27 = vor.u32 %v18755_v31, %v17126_v14  ;;  %v17322_v49 = vld [vmem:[#allocation3 + $0x1414] sm:$0xf0]  ;;  %v18671_v25 = vld [vmem:[#allocation3 + $0xfd4] sm:$0xf] }
 0x9d7   :  { %11783 = vmatpush.bf16.msrb.mxu2 %v15953_v17  ;;  %v18878_v17 = vpop.eup %18877  ;;  %v18790_v31 = vld [vmem:[#allocation3 + $0x138c] sm:$0xf]  ;;  %v17266_v14 = vld [vmem:[#allocation3 + $0x13a4] sm:$0xf0] }
 0x9d8   :  { %11796 = vmatpush.bf16.msra.mxu1 %v16177_v59  ;;  %12061 = vst [vmem:[%s20601_s14 + $0x18] sm:$0xff] %v18878_v17  ;;  %v16706_v59 = vld [vmem:[#allocation3 + $0xf44] sm:$0xf0] }
 0x9d9   :  { %11808 = vmatpush.bf16.msra.mxu3 %v16429_v13  ;;  %v16345_v13 = vor.u32 %v18559_v41, %v16342_v7  ;;  %v16709_v4 = vor.u32 %v18650_v2, %v16706_v59  ;;  %v17098_v41 = vld [vmem:[#allocation3 + $0x1254] sm:$0xf0]  ;;  %v16653_v7 = vor.u32 %v18636_v10, %v16650_v62  ;;  %v16849_v2 = vor.u32 %v18685_v29, %v16846_v50  ;;  %v14948_v29 = vld [vmem:[#allocation3 + $0x168] sm:$0xf]  ;;  %v18213_v50 = vld [vmem:[#allocation3 + $0x180] sm:$0xf0] }
 0x9da   :  { %11771 = vmatpush.bf16.msrb.mxu0 %v15701_v28  ;;  %v18762_v28 = vld [vmem:[#allocation3 + $0x12ac] sm:$0xf] }
 0x9db   :  { %11784 = vmatpush.bf16.msrb.mxu2 %v15925_v60  ;;  %v16933_v60 = vor.u32 %v18706_v3, %v16930_v26  ;;  %v16594_v3 = vld [vmem:[#allocation3 + $0xe64] sm:$0xf0]  ;;  %v18678_v26 = vld [vmem:[#allocation3 + $0x100c] sm:$0xf] }
 0x9dc   :  { %11797 = vmatpush.bf16.msra.mxu1 %v16149_v46  ;;  %v17157_v46 = vor.u32 %v18762_v28, %v17154_v20  ;;  %v17073_v28 = vor.u32 %v18741_v55, %v17070_v24  ;;  %v18332_v55 = vld [vmem:[#allocation3 + $0x538] sm:$0xf0] }
 0x9dd   :  { %11809 = vmatpush.bf16.msra.mxu3 %v16401_v5  ;;  %v18643_v5 = vld [vmem:[#allocation3 + $0xef4] sm:$0xf] }
 0x9de   :  { %11772 = vmatpush.bf16.msrb.mxu0 %v15673_v39  ;;  %v16681_v30 = vor.u32 %v18643_v5, %v16678_v6  ;;  %v17381_v39 = vor.u32 %v18818_v35, %v17378_v43  ;;  %v18615_v6 = vld [vmem:[#allocation3 + $0xe14] sm:$0xf] }
 0x9df   :  { %11785 = vmatpush.bf16.msrb.mxu2 %v15897_v16  ;;  %v16874_v16 = vld [vmem:[#allocation3 + $0x1094] sm:$0xf0] }
 0x9e0   :  { %11798 = vmatpush.bf16.msra.mxu1 %v16121_v42  ;;  %v16877_v53 = vor.u32 %v18692_v40, %v16874_v16  ;;  %v20524_v32 = vpop.f32.mrf.mxu1  ;;  %v16622_v42 = vld [vmem:[#allocation3 + $0xe9c] sm:$0xf0]  ;;  %v17014_v40 = vld [vmem:[#allocation3 + $0x11ac] sm:$0xf0]  ;;  %v18846_v16 = vld [vmem:[#allocation3 + $0x154c] sm:$0xf] }
 0x9e1   :  { %11810 = vmatpush.bf16.msra.mxu3 %v16373_v36  ;;  %11773 = vmatmul.bf16.vlgmr.msrb.gmra.mxu0 %v20297_v47  ;;  %v18811_v36 = vld [vmem:[#allocation3 + $0x1434] sm:$0xf] }
 0x9e2   :  { %11817 = vmatpush.bf16.msra.mxu0 %v16765_v38  ;;  %11786 = vmatmul.bf16.vlgmr.msrb.gmra.mxu2 %v20305_v15  ;;  %v20522_v38 = vpop.f32.mrf.mxu0  ;;  %v17353_v9 = vor.u32 %v18811_v36, %v17350_v18  ;;  %v17490_v36 = vld [vmem:[#allocation3 + $0x1564] sm:$0xf0] }
 0x9e3   :  { %11830 = vmatpush.bf16.msra.mxu2 %v16989_v34  ;;  %11799 = vmatmul.bf16.vlgmr.msra.gmra.mxu1 %v20301_v54  ;;  %v18748_v34 = vld [vmem:[#allocation3 + $0x123c] sm:$0xf] }
 0x9e4   :  { %11843 = vmatpush.bf16.msrb.mxu1 %v17213_v19  ;;  %v18804_v19 = vld [vmem:[#allocation3 + $0x13fc] sm:$0xf]  ;;  %v17101_v17 = vor.u32 %v18748_v34, %v17098_v41  ;;  %v17269_v41 = vor.u32 %v18790_v31, %v17266_v14  ;;  %v18199_v31 = vld [vmem:[#allocation3 + $0x110] sm:$0xf0]  ;;  %v15620_v14 = vld [vmem:[#allocation3 + $0x6a8] sm:$0xf] }
 0x9e5   :  { %11811 = vmatpush.bf16.msra.mxu3 %v16345_v13  ;;  %v20526_v13 = vpop.f32.mrf.mxu3  ;;  %v17325_v59 = vor.u32 %v18804_v19, %v17322_v49  ;;  %v17493_v49 = vor.u32 %v18846_v16, %v17490_v36  ;;  %v15116_v36 = vld [vmem:[#allocation3 + $0x2b8] sm:$0xf] }
 0x9e6   :  { %11818 = vmatpush.bf16.msra.mxu0 %v16737_v22  ;;  %v20528_v22 = vpop.f32.mrf.mxu2 }
 0x9e7   :  { %11831 = vmatpush.bf16.msra.mxu2 %v16961_v56  ;;  %v16625_v56 = vor.u32 %v18629_v33, %v16622_v42  ;;  %v15200_v33 = vld [vmem:[#allocation3 + $0x360] sm:$0xf]  ;;  %v17238_v42 = vld [vmem:[#allocation3 + $0x136c] sm:$0xf0] }
 0x9e8   :  { %11812 = vmatmul.bf16.vlgmr.msra.gmra.mxu3 %v20309_v37  ;;  %11844 = vmatpush.bf16.msrb.mxu1 %v17185_v61  ;;  %v17294_v61 = vld [vmem:[#allocation3 + $0x13dc] sm:$0xf0]  ;;  %v11594_v35 = vpop.f32.mrf.mxu1 }
 0x9e9   :  { %11856 = vmatpush.bf16.msrb.mxu3 %v17437_v45  ;;  %v18622_v45 = vld [vmem:[#allocation3 + $0xe4c] sm:$0xf]  ;;  %v17297_v43 = vor.u32 %v18797_v23, %v17294_v61  ;;  %v15144_v35 = vld [vmem:[#allocation3 + $0x2f0] sm:$0xf] }
 0x9ea   :  { %11819 = vmatpush.bf16.msra.mxu0 %v16709_v4  ;;  %v11568_v20 = vpop.f32.mrf.mxu0  ;;  %v18734_v4 = vld [vmem:[#allocation3 + $0x11cc] sm:$0xf]  ;;  %v16597_v5 = vor.u32 %v18622_v45, %v16594_v3  ;;  %v14920_v3 = vld [vmem:[#allocation3 + $0x130] sm:$0xf] }
 0x9eb   :  { %11832 = vmatpush.bf16.msra.mxu2 %v16933_v60  ;;  %v17042_v60 = vld [vmem:[#allocation3 + $0x11e4] sm:$0xf0]  ;;  %v18206_v61 = vld [vmem:[#allocation3 + $0x148] sm:$0xf0]  ;;  %v18388_v20 = vld [vmem:[#allocation3 + $0x6f8] sm:$0xf0] }
 0x9ec   :  { %11845 = vmatpush.bf16.msrb.mxu1 %v17157_v46  ;;  %v16790_v46 = vld [vmem:[#allocation3 + $0xfec] sm:$0xf0]  ;;  %v17045_v10 = vor.u32 %v18734_v4, %v17042_v60  ;;  %v15396_v4 = vld [vmem:[#allocation3 + $0x4e8] sm:$0xf]  ;;  %v18325_v60 = vld [vmem:[#allocation3 + $0x500] sm:$0xf0] }
 0x9ed   :  { %11857 = vmatpush.bf16.msrb.mxu3 %v17409_v21  ;;  %v16821_v21 = vor.u32 %v18678_v26, %v16818_v11  ;;  %v11555_v62 = vpop.f32.mrf.mxu3  ;;  %v16793_v34 = vor.u32 %v18671_v25, %v16790_v46  ;;  %v15172_v26 = vld [vmem:[#allocation3 + $0x328] sm:$0xf]  ;;  %v18269_v11 = vld [vmem:[#allocation3 + $0x340] sm:$0xf0]  ;;  %v15397_v46 = vor.u32 %v18325_v60, %v15396_v4 }
 0x9ee   :  { %11820 = vmatpush.bf16.msra.mxu0 %v16681_v30  ;;  %v14976_v30 = vld [vmem:[#allocation3 + $0x1a0] sm:$0xf]  ;;  %v11581_v18 = vpop.f32.mrf.mxu2  ;;  %v15060_v4 = vld [vmem:[#allocation3 + $0x248] sm:$0xf]  ;;  %v18241_v60 = vld [vmem:[#allocation3 + $0x260] sm:$0xf0] }
 0x9ef   :  { %11833 = vmatpush.bf16.msra.mxu2 %v16905_v12  ;;  %v18220_v12 = vld [vmem:[#allocation3 + $0x1b8] sm:$0xf0]  ;;  %v18255_v18 = vld [vmem:[#allocation3 + $0x2d0] sm:$0xf0] }
 0x9f0   :  { %11846 = vmatpush.bf16.msrb.mxu1 %v17129_v27  ;;  %v16569_v27 = vor.u32 %v18615_v6, %v16566_v8  ;;  %v14921_v6 = vor.u32 %v18206_v61, %v14920_v3  ;;  %v14892_v8 = vld [vmem:[#allocation3 + $0xf8] sm:$0xf]  ;;  %v15312_v3 = vld [vmem:[#allocation3 + $0x440] sm:$0xf] }
 0x9f1   :  { %11858 = vmatpush.bf16.msrb.mxu3 %v17381_v39  ;;  %v18727_v39 = vld [vmem:[#allocation3 + $0x1194] sm:$0xf]  ;;  %v14893_v62 = vor.u32 %v18199_v31, %v14892_v8  ;;  %v18360_v8 = vld [vmem:[#allocation3 + $0x618] sm:$0xf0]  ;;  %v15061_v31 = vor.u32 %v18241_v60, %v15060_v4 }
 0x9f2   :  { %11821 = vmatpush.bf16.msra.mxu0 %v16653_v7  ;;  %v14977_v7 = vor.u32 %v18220_v12, %v14976_v30  ;;  %v17017_v19 = vor.u32 %v18727_v39, %v17014_v40  ;;  %v18381_v30 = vld [vmem:[#allocation3 + $0x6c0] sm:$0xf0]  ;;  %v15368_v12 = vld [vmem:[#allocation3 + $0x4b0] sm:$0xf]  ;;  %v14864_v40 = vld [vmem:[#allocation3 + $0xc0] sm:$0xf] }
 0x9f3   :  { %11834 = vmatpush.bf16.msra.mxu2 %v16877_v53  ;;  %v18783_v53 = vld [vmem:[#allocation3 + $0x1354] sm:$0xf]  ;;  %v15621_v16 = vor.u32 %v18381_v30, %v15620_v14 }
 0x9f4   :  { %11847 = vmatpush.bf16.msrb.mxu1 %v17101_v17  ;;  %v15424_v17 = vld [vmem:[#allocation3 + $0x520] sm:$0xf]  ;;  %v17241_v45 = vor.u32 %v18783_v53, %v17238_v42  ;;  %v15340_v53 = vld [vmem:[#allocation3 + $0x478] sm:$0xf]  ;;  %v15117_v42 = vor.u32 %v18255_v18, %v15116_v36  ;;  %v18171_v30 = vld [vmem:[#allocation3 + $0x30] sm:$0xf0] }
 0x9f5   :  { %11859 = vmatpush.bf16.msrb.mxu3 %v17353_v9  ;;  %v18276_v9 = vld [vmem:[#allocation3 + $0x378] sm:$0xf0]  ;;  %v15425_v23 = vor.u32 %v18332_v55, %v15424_v17  ;;  %v15508_v36 = vld [vmem:[#allocation3 + $0x5c8] sm:$0xf]  ;;  %v18353_v18 = vld [vmem:[#allocation3 + $0x5e0] sm:$0xf0] }
 0x9f6   :  { %11822 = vmatpush.bf16.msra.mxu0 %v16625_v56  ;;  %v15201_v24 = vor.u32 %v18276_v9, %v15200_v33  ;;  %v18839_v56 = vld [vmem:[#allocation3 + $0x1514] sm:$0xf]  ;;  %v18248_v17 = vld [vmem:[#allocation3 + $0x298] sm:$0xf0] }
 0x9f7   :  { %11835 = vmatpush.bf16.msra.mxu2 %v16849_v2  ;;  %v17462_v2 = vld [vmem:[#allocation3 + $0x152c] sm:$0xf0]  ;;  %v18311_v33 = vld [vmem:[#allocation3 + $0x490] sm:$0xf0] }
 0x9f8   :  { %11848 = vmatpush.bf16.msrb.mxu1 %v17073_v28  ;;  %v15648_v28 = vld [vmem:[#allocation3 + $0x6e0] sm:$0xf] }
 0x9f9   :  { %11860 = vmatpush.bf16.msrb.mxu3 %v17325_v59  ;;  %v14949_v59 = vor.u32 %v18213_v50, %v14948_v29  ;;  %v15649_v25 = vor.u32 %v18388_v20, %v15648_v28  ;;  %v14836_v50 = vld [vmem:[#allocation3 + $0x88] sm:$0xf]  ;;  %v14808_v28 = vld [vmem:[#allocation3 + $0x50] sm:$0xf] }
 0x9fa   :  { %11823 = vmatpush.bf16.msra.mxu0 %v16597_v5  ;;  %v17465_v5 = vor.u32 %v18839_v56, %v17462_v2  ;;  %v18185_v56 = vld [vmem:[#allocation3 + $0xa0] sm:$0xf0]  ;;  %v15564_v2 = vld [vmem:[#allocation3 + $0x638] sm:$0xf] }
 0x9fb   :  { %11836 = vmatpush.bf16.msra.mxu2 %v16821_v21  ;;  %v15173_v21 = vor.u32 %v18269_v11, %v15172_v26  ;;  %v18304_v26 = vld [vmem:[#allocation3 + $0x458] sm:$0xf0]  ;;  %v14837_v61 = vor.u32 %v18185_v56, %v14836_v50  ;;  %v15509_v50 = vor.u32 %v18353_v18, %v15508_v36  ;;  %v15788_v36 = vld [vmem:[#allocation3 + $0x7f8] sm:$0xf] }
 0x9fc   :  { %11849 = vmatpush.bf16.msrb.mxu1 %v17045_v10  ;;  %v18318_v10 = vld [vmem:[#allocation3 + $0x4c8] sm:$0xf0] }
 0x9fd   :  { %11861 = vmatpush.bf16.msrb.mxu3 %v17297_v43  ;;  %v18262_v43 = vld [vmem:[#allocation3 + $0x308] sm:$0xf0] }
 0x9fe   :  { %11824 = vmatpush.bf16.msra.mxu0 %v16569_v27  ;;  %v15145_v39 = vor.u32 %v18262_v43, %v15144_v35  ;;  %v15369_v27 = vor.u32 %v18318_v10, %v15368_v12  ;;  %v20534_v9 = vpop.f32.mrf.mxu0  ;;  %v18297_v35 = vld [vmem:[#allocation3 + $0x420] sm:$0xf0]  ;;  %v15032_v10 = vld [vmem:[#allocation3 + $0x210] sm:$0xf] }
 0x9ff   :  { %11837 = vmatpush.bf16.msra.mxu2 %v16793_v34  ;;  %v18192_v34 = vld [vmem:[#allocation3 + $0xd8] sm:$0xf0] }
 0xa00   :  { %11850 = vmatpush.bf16.msrb.mxu1 %v17017_v19  ;;  %v14865_v29 = vor.u32 %v18192_v34, %v14864_v40  ;;  %v20536_v55 = vpop.f32.mrf.mxu1  ;;  %v18290_v34 = vld [vmem:[#allocation3 + $0x3e8] sm:$0xf0] }
 0xa01   :  { %11862 = vmatpush.bf16.msrb.mxu3 %v17269_v41  ;;  %11825 = vmatmul.bf16.vlgmr.msra.gmra.mxu0 %v20317_v44  ;;  %v15592_v41 = vld [vmem:[#allocation3 + $0x670] sm:$0xf] }
 0xa02   :  { %11875 = vmatpush.bf16.msrb.mxu0 %v17493_v49  ;;  %11838 = vmatmul.bf16.vlgmr.msra.gmra.mxu2 %v20325_v51  ;;  %v15088_v49 = vld [vmem:[#allocation3 + $0x280] sm:$0xf] }
 0xa03   :  { %11882 = vmatpush.bf16.msrb.mxu2 %v14977_v7  ;;  %11851 = vmatmul.bf16.vlgmr.msrb.gmra.mxu1 %v20321_v0  ;;  %v18374_v7 = vld [vmem:[#allocation3 + $0x688] sm:$0xf0] }
 0xa04   :  { %11895 = vmatpush.bf16.msra.mxu1 %v15201_v24  ;;  %v15593_v19 = vor.u32 %v18374_v7, %v15592_v41  ;;  %v15341_v24 = vor.u32 %v18311_v33, %v15340_v53  ;;  %v15872_v41 = vld [vmem:[#allocation3 + $0x8a0] sm:$0xf]  ;;  %v18444_v7 = vld [vmem:[#allocation3 + $0x8b8] sm:$0xf0] }
 0xa05   :  { %11863 = vmatpush.bf16.msrb.mxu3 %v17241_v45  ;;  %v18367_v45 = vld [vmem:[#allocation3 + $0x650] sm:$0xf0]  ;;  %v20540_v11 = vpop.f32.mrf.mxu2 }
 0xa06   :  { %11876 = vmatpush.bf16.msrb.mxu0 %v17465_v5  ;;  %v15565_v20 = vor.u32 %v18367_v45, %v15564_v2  ;;  %v15313_v5 = vor.u32 %v18304_v26, %v15312_v3  ;;  %v11620_v43 = vpop.f32.mrf.mxu0  ;;  %v15873_v2 = vor.u32 %v18444_v7, %v15872_v41  ;;  %v18346_v45 = vld [vmem:[#allocation3 + $0x5a8] sm:$0xf0]  ;;  %v18283_v26 = vld [vmem:[#allocation3 + $0x3b0] sm:$0xf0] }
 0xa07   :  { %11883 = vmatpush.bf16.msrb.mxu2 %v14949_v59  ;;  %v20538_v59 = vpop.f32.mrf.mxu3  ;;  %v16068_v43 = vld [vmem:[#allocation3 + $0xa28] sm:$0xf]  ;;  %v18423_v7 = vld [vmem:[#allocation3 + $0x810] sm:$0xf0] }
 0xa08   :  { %11864 = vmatmul.bf16.vlgmr.msrb.gmra.mxu3 %v20329_v52  ;;  %11896 = vmatpush.bf16.msra.mxu1 %v15173_v21  ;;  %v18178_v21 = vld [vmem:[#allocation3 + $0x68] sm:$0xf0] }
 0xa09   :  { %11908 = vmatpush.bf16.msra.mxu3 %v15425_v23  ;;  %v15089_v23 = vor.u32 %v18248_v17, %v15088_v49  ;;  %v14809_v14 = vor.u32 %v18178_v21, %v14808_v28  ;;  %v15004_v49 = vld [vmem:[#allocation3 + $0x1d8] sm:$0xf]  ;;  %v18227_v17 = vld [vmem:[#allocation3 + $0x1f0] sm:$0xf0]  ;;  %v16320_v28 = vld [vmem:[#allocation3 + $0xc20] sm:$0xf] }
 0xa0a   :  { %11921 = vmatpush.bf16.msra.mxu0 %v15649_v25  ;;  %v15284_v25 = vld [vmem:[#allocation3 + $0x408] sm:$0xf]  ;;  %v15005_v4 = vor.u32 %v18227_v17, %v15004_v49  ;;  %v16012_v17 = vld [vmem:[#allocation3 + $0x9b8] sm:$0xf] }
 0xa0b   :  { %11884 = vmatpush.bf16.msrb.mxu2 %v14921_v6  ;;  %v15536_v6 = vld [vmem:[#allocation3 + $0x600] sm:$0xf]  ;;  %v15285_v40 = vor.u32 %v18297_v35, %v15284_v25  ;;  %v18339_v35 = vld [vmem:[#allocation3 + $0x570] sm:$0xf0] }
 0xa0c   :  { %11897 = vmatpush.bf16.msra.mxu1 %v15145_v39  ;;  %v15537_v12 = vor.u32 %v18360_v8, %v15536_v6  ;;  %v18234_v39 = vld [vmem:[#allocation3 + $0x228] sm:$0xf0]  ;;  %v15452_v6 = vld [vmem:[#allocation3 + $0x558] sm:$0xf] }
 0xa0d   :  { %11909 = vmatpush.bf16.msra.mxu3 %v15397_v46  ;;  %v14780_v46 = vld [vmem:[#allocation3 + $0x18] sm:$0xf]  ;;  %v15033_v33 = vor.u32 %v18234_v39, %v15032_v10  ;;  %v16292_v10 = vld [vmem:[#allocation3 + $0xbe8] sm:$0xf]  ;;  %v18549_v39 = vld [vmem:[#allocation3 + $0xc00] sm:$0xf0] }
 0xa0e   :  { %11922 = vmatpush.bf16.msra.mxu0 %v15621_v16  ;;  %v15256_v16 = vld [vmem:[#allocation3 + $0x3d0] sm:$0xf]  ;;  %v16293_v41 = vor.u32 %v18549_v39, %v16292_v10  ;;  %v18402_v10 = vld [vmem:[#allocation3 + $0x768] sm:$0xf0]  ;;  %v16432_v39 = vld [vmem:[#allocation3 + $0xd00] sm:$0xf] }
 0xa0f   :  { %11885 = vmatpush.bf16.msrb.mxu2 %v14893_v62  ;;  %v11646_v62 = vpop.f32.mrf.mxu1  ;;  %v11607_v53 = vpop.f32.mrf.mxu3  ;;  %v15257_v56 = vor.u32 %v18290_v34, %v15256_v16 }
 0xa10   :  { %11898 = vmatpush.bf16.msra.mxu1 %v15117_v42  ;;  %v11633_v42 = vpop.f32.mrf.mxu2  ;;  %v15453_v62 = vor.u32 %v18339_v35, %v15452_v6  ;;  %v16516_v53 = vld [vmem:[#allocation3 + $0xda8] sm:$0xf]  ;;  %v18591_v6 = vld [vmem:[#allocation3 + $0xd50] sm:$0xf0] }
 0xa11   :  { %11910 = vmatpush.bf16.msra.mxu3 %v15369_v27  ;;  %17503 = vmatmul.msk.bf16.vlgmr.msrb.gmra.mxu0 %vm344_vm5, %v20337_v48  ;;  %v11567_v27 = vadd.f32 %v20522_v38, %v20526_v13  ;;  %v16096_v38 = vld [vmem:[#allocation3 + $0xa60] sm:$0xf]  ;;  %v18500_v13 = vld [vmem:[#allocation3 + $0xa78] sm:$0xf0]  ;;  %v18542_v42 = vld [vmem:[#allocation3 + $0xbc8] sm:$0xf0] }
 0xa12   :  { %11923 = vmatpush.bf16.msra.mxu0 %v15593_v19  ;;  %v15228_v19 = vld [vmem:[#allocation3 + $0x398] sm:$0xf]  ;;  %v16097_v21 = vor.u32 %v18500_v13, %v16096_v38  ;;  %v18598_v38 = vld [vmem:[#allocation3 + $0xd88] sm:$0xf0]  ;;  %v18535_v13 = vld [vmem:[#allocation3 + $0xb90] sm:$0xf0] }
 0xa13   :  { %11886 = vmatpush.bf16.msrb.mxu2 %v14865_v29  ;;  %v14781_v29 = vor.u32 %v18171_v30, %v14780_v46  ;;  %v11580_v3 = vadd.f32 %v20528_v22, %v11567_v27  ;;  %v15229_v8 = vor.u32 %v18283_v26, %v15228_v19  ;;  %v18493_v22 = vld [vmem:[#allocation3 + $0xa40] sm:$0xf0]  ;;  %v16544_v30 = vld [vmem:[#allocation3 + $0xde0] sm:$0xf]  ;;  %v16040_v27 = vld [vmem:[#allocation3 + $0x9f0] sm:$0xf] }
 0xa14   :  { %11899 = vmatpush.bf16.msra.mxu1 %v15089_v23  ;;  %v15844_v23 = vld [vmem:[#allocation3 + $0x868] sm:$0xf]  ;;  %v15760_v19 = vld [vmem:[#allocation3 + $0x7c0] sm:$0xf] }
 0xa15   :  { %11911 = vmatpush.bf16.msra.mxu3 %v15341_v24  ;;  %v15480_v24 = vld [vmem:[#allocation3 + $0x590] sm:$0xf]  ;;  %v11593_v46 = vadd.f32 %v20524_v32, %v11580_v3  ;;  %v18486_v32 = vld [vmem:[#allocation3 + $0xa08] sm:$0xf0] }
 0xa16   :  { %11924 = vmatpush.bf16.msra.mxu0 %v15565_v20  ;;  %v18556_v20 = vld [vmem:[#allocation3 + $0xc38] sm:$0xf0]  ;;  %v15481_v60 = vor.u32 %v18346_v45, %v15480_v24  ;;  %v18479_v24 = vld [vmem:[#allocation3 + $0x9d0] sm:$0xf0]  ;;  %v16488_v45 = vld [vmem:[#allocation3 + $0xd70] sm:$0xf] }
 0xa17   :  { %11887 = vmatpush.bf16.msrb.mxu2 %v14837_v61  ;;  %v18437_v61 = vld [vmem:[#allocation3 + $0x880] sm:$0xf0]  ;;  %v11606_v34 = vadd.f32 %v20538_v59, %v11593_v46  ;;  %v16013_v26 = vor.u32 %v18479_v24, %v16012_v17  ;;  %v15704_v46 = vld [vmem:[#allocation3 + $0x750] sm:$0xf]  ;;  %v18668_v17 = vld [vmem:[#allocation3 + $0xfb8] sm:$0xf0] }
 0xa18   :  { %11900 = vmatpush.bf16.msra.mxu1 %v15061_v31  ;;  %v15845_v25 = vor.u32 %v18437_v61, %v15844_v23  ;;  %v16321_v31 = vor.u32 %v18556_v20, %v16320_v28  ;;  %v15732_v61 = vld [vmem:[#allocation3 + $0x788] sm:$0xf]  ;;  %v16489_v28 = vor.u32 %v18598_v38, %v16488_v45  ;;  %v18472_v20 = vld [vmem:[#allocation3 + $0x998] sm:$0xf0]  ;;  %v16124_v38 = vld [vmem:[#allocation3 + $0xa98] sm:$0xf] }
 0xa19   :  { %11912 = vmatpush.bf16.msra.mxu3 %v15313_v5  ;;  %v15816_v5 = vld [vmem:[#allocation3 + $0x830] sm:$0xf]  ;;  %v11619_v59 = vadd.f32 %v20534_v9, %v11606_v34  ;;  %v15984_v9 = vld [vmem:[#allocation3 + $0x980] sm:$0xf]  ;;  %v15705_v34 = vor.u32 %v18402_v10, %v15704_v46  ;;  %v17188_v10 = vld [vmem:[#allocation3 + $0x12e8] sm:$0xf] }
 0xa1a   :  { %11925 = vmatpush.bf16.msra.mxu0 %v15537_v12  ;;  %v18612_v12 = vld [vmem:[#allocation3 + $0xdf8] sm:$0xf0]  ;;  %v15985_v35 = vor.u32 %v18472_v20, %v15984_v9  ;;  %v18570_v9 = vld [vmem:[#allocation3 + $0xca8] sm:$0xf0]  ;;  %v16992_v20 = vld [vmem:[#allocation3 + $0x1160] sm:$0xf] }
 0xa1b   :  { %11888 = vmatpush.bf16.msrb.mxu2 %v14809_v14  ;;  %v18430_v14 = vld [vmem:[#allocation3 + $0x848] sm:$0xf0]  ;;  %v16545_v18 = vor.u32 %v18612_v12, %v16544_v30 }
 0xa1c   :  { %11901 = vmatpush.bf16.msra.mxu1 %v15033_v33  ;;  %v15817_v16 = vor.u32 %v18430_v14, %v15816_v5  ;;  %v18605_v33 = vld [vmem:[#allocation3 + $0xdc0] sm:$0xf0]  ;;  %v15956_v14 = vld [vmem:[#allocation3 + $0x948] sm:$0xf] }
 0xa1d   :  { %11913 = vmatpush.bf16.msra.mxu3 %v15285_v40  ;;  %v16069_v40 = vor.u32 %v18493_v22, %v16068_v43  ;;  %v16517_v49 = vor.u32 %v18605_v33, %v16516_v53  ;;  %v18409_v5 = vld [vmem:[#allocation3 + $0x7a0] sm:$0xf0]  ;;  %v15928_v53 = vld [vmem:[#allocation3 + $0x910] sm:$0xf]  ;;  %v18458_v33 = vld [vmem:[#allocation3 + $0x928] sm:$0xf0] }
 0xa1e   :  { %11926 = vmatpush.bf16.msra.mxu0 %v15509_v50  ;;  %v15789_v50 = vor.u32 %v18423_v7, %v15788_v36  ;;  %v11670_v3 = vpop.f32.mrf.mxu0  ;;  %v15733_v43 = vor.u32 %v18409_v5, %v15732_v61  ;;  %v18661_v5 = vld [vmem:[#allocation3 + $0xf80] sm:$0xf0] }
 0xa1f   :  { %11889 = vmatpush.bf16.msrb.mxu2 %v14781_v29  ;;  %v16041_v29 = vor.u32 %v18486_v32, %v16040_v27 }
 0xa20   :  { %11902 = vmatpush.bf16.msra.mxu1 %v15005_v4  ;;  %v11632_v4 = vadd.f32 %v20540_v11, %v11619_v59  ;;  %v18465_v11 = vld [vmem:[#allocation3 + $0x960] sm:$0xf0] }
 0xa21   :  { %11914 = vmatpush.bf16.msra.mxu3 %v15257_v56  ;;  %v15957_v27 = vor.u32 %v18465_v11, %v15956_v14  ;;  %v18654_v14 = vld [vmem:[#allocation3 + $0xf48] sm:$0xf0]  ;;  %v16348_v11 = vld [vmem:[#allocation3 + $0xc58] sm:$0xf] }
 0xa22   :  { %11890 = vmatmul.bf16.vlgmr.msrb.gmra.mxu2 %v20277_v57  ;;  %11927 = vmatpush.bf16.msra.mxu0 %v15481_v60  ;;  %v16264_v57 = vld [vmem:[#allocation3 + $0xbb0] sm:$0xf]  ;;  %v11645_v30 = vadd.f32 %v20536_v55, %v11632_v4  ;;  %v18724_v4 = vld [vmem:[#allocation3 + $0x1178] sm:$0xf0] }
 0xa23   :  { %11934 = vmatpush.bf16.msra.mxu2 %v15873_v2  ;;  %11903 = vmatmul.bf16.vlgmr.msra.gmra.mxu1 %v20285_v58  ;;  %v16265_v56 = vor.u32 %v18542_v42, %v16264_v57  ;;  %v18416_v2 = vld [vmem:[#allocation3 + $0x7d8] sm:$0xf0]  ;;  %v16236_v58 = vld [vmem:[#allocation3 + $0xb78] sm:$0xf]  ;;  %v16152_v57 = vld [vmem:[#allocation3 + $0xad0] sm:$0xf] }
 0xa24   :  { %11947 = vmatpush.bf16.msrb.mxu1 %v16097_v21  ;;  %v15761_v23 = vor.u32 %v18416_v2, %v15760_v19  ;;  %v16237_v60 = vor.u32 %v18535_v13, %v16236_v58  ;;  %v20555_v21 = vpop.f32.mrf.mxu1  ;;  %v16404_v42 = vld [vmem:[#allocation3 + $0xcc8] sm:$0xf]  ;;  %v18514_v19 = vld [vmem:[#allocation3 + $0xae8] sm:$0xf0]  ;;  %v15900_v58 = vld [vmem:[#allocation3 + $0x8d8] sm:$0xf] }
 0xa25   :  { %11915 = vmatpush.bf16.msra.mxu3 %v15229_v8  ;;  %v18528_v8 = vld [vmem:[#allocation3 + $0xb58] sm:$0xf0]  ;;  %v11683_v22 = vpop.f32.mrf.mxu2  ;;  %v18451_v13 = vld [vmem:[#allocation3 + $0x8f0] sm:$0xf0]  ;;  %v16153_v61 = vor.u32 %v18514_v19, %v16152_v57  ;;  %v18710_v57 = vld [vmem:[#allocation3 + $0x1108] sm:$0xf0] }
 0xa26   :  { %11928 = vmatpush.bf16.msra.mxu0 %v15453_v62  ;;  %v18584_v62 = vld [vmem:[#allocation3 + $0xd18] sm:$0xf0]  ;;  %v11672_v32 = vpop.f32.mrf.mxu0 }
 0xa27   :  { %11935 = vmatpush.bf16.msra.mxu2 %v15845_v25  ;;  %v11657_v25 = vpop.f32.mrf.mxu3  ;;  %v16433_v7 = vor.u32 %v18584_v62, %v16432_v39  ;;  %v16964_v39 = vld [vmem:[#allocation3 + $0x1128] sm:$0xf] }
 0xa28   :  { %11948 = vmatpush.bf16.msrb.mxu1 %v16069_v40  ;;  %11916 = vmatmul.bf16.vlgmr.msra.gmra.mxu3 %v20281_v63  ;;  %v16460_v63 = vld [vmem:[#allocation3 + $0xd38] sm:$0xf]  ;;  %v16180_v40 = vld [vmem:[#allocation3 + $0xb08] sm:$0xf]  ;;  %v11658_v36 = vadd.f32 %v11657_v25, %v11645_v30  ;;  %v18563_v30 = vld [vmem:[#allocation3 + $0xc70] sm:$0xf0] }
 0xa29   :  { %11960 = vmatpush.bf16.msrb.mxu3 %v16321_v31  ;;  %11929 = vmatmul.bf16.vlgmr.msra.gmra.mxu0 %v20289_v1  ;;  %v16208_v1 = vld [vmem:[#allocation3 + $0xb40] sm:$0xf]  ;;  %v16461_v31 = vor.u32 %v18591_v6, %v16460_v63 }
 0xa2a   :  { %11973 = vmatpush.bf16.msrb.mxu0 %v16545_v18  ;;  %v16209_v12 = vor.u32 %v18528_v8, %v16208_v1  ;;  %v15676_v18 = vld [vmem:[#allocation3 + $0x718] sm:$0xf]  ;;  %v11671_v24 = vadd.f32 %v11670_v3, %v11658_v36  ;;  %v16740_v3 = vld [vmem:[#allocation3 + $0xf68] sm:$0xf]  ;;  %v17216_v6 = vld [vmem:[#allocation3 + $0x1320] sm:$0xf]  ;;  %v15901_v8 = vor.u32 %v18451_v13, %v15900_v58 }
 0xa2b   :  { %11936 = vmatpush.bf16.msra.mxu2 %v15817_v16  ;;  %v18521_v16 = vld [vmem:[#allocation3 + $0xb20] sm:$0xf0]  ;;  %v18780_v1 = vld [vmem:[#allocation3 + $0x1338] sm:$0xf0]  ;;  %v17384_v58 = vld [vmem:[#allocation3 + $0x1470] sm:$0xf] }
 0xa2c   :  { %11949 = vmatpush.bf16.msrb.mxu1 %v16041_v29  ;;  %v16181_v55 = vor.u32 %v18521_v16, %v16180_v40  ;;  %v18577_v29 = vld [vmem:[#allocation3 + $0xce0] sm:$0xf0]  ;;  %v11684_v63 = vadd.f32 %v11683_v22, %v11671_v24  ;;  %v17440_v16 = vld [vmem:[#allocation3 + $0x14e0] sm:$0xf]  ;;  %v18836_v36 = vld [vmem:[#allocation3 + $0x14f8] sm:$0xf0] }
 0xa2d   :  { %11961 = vmatpush.bf16.msrb.mxu3 %v16293_v41  ;;  %v18395_v41 = vld [vmem:[#allocation3 + $0x730] sm:$0xf0]  ;;  %v16405_v45 = vor.u32 %v18577_v29, %v16404_v42  ;;  %v18717_v22 = vld [vmem:[#allocation3 + $0x1140] sm:$0xf0]  ;;  %v18766_v42 = vld [vmem:[#allocation3 + $0x12c8] sm:$0xf0] }
 0xa2e   :  { %11974 = vmatpush.bf16.msrb.mxu0 %v16517_v49  ;;  %v16768_v49 = vld [vmem:[#allocation3 + $0xfa0] sm:$0xf]  ;;  %v15677_v2 = vor.u32 %v18395_v41, %v15676_v18  ;;  %v11697_v62 = vadd.f32 %v20555_v21, %v11684_v63  ;;  %v18773_v40 = vld [vmem:[#allocation3 + $0x1300] sm:$0xf0]  ;;  %v16684_v41 = vld [vmem:[#allocation3 + $0xef8] sm:$0xf]  ;;  %v17441_v21 = vor.u32 %v18836_v36, %v17440_v16 }
 0xa2f   :  { %11937 = vmatpush.bf16.msra.mxu2 %v15789_v50  ;;  %v11698_v50 = vpop.f32.mrf.mxu1  ;;  %v11659_v59 = vpop.f32.mrf.mxu3  ;;  %v17412_v29 = vld [vmem:[#allocation3 + $0x14a8] sm:$0xf]  ;;  %v18822_v13 = vld [vmem:[#allocation3 + $0x1488] sm:$0xf0]  ;;  %v18752_v63 = vld [vmem:[#allocation3 + $0x1258] sm:$0xf0] }
 0xa30   :  { %11950 = vmatpush.bf16.msrb.mxu1 %v16013_v26  ;;  %v16376_v26 = vld [vmem:[#allocation3 + $0xc90] sm:$0xf]  ;;  %v18829_v50 = vld [vmem:[#allocation3 + $0x14c0] sm:$0xf0]  ;;  %v16572_v36 = vld [vmem:[#allocation3 + $0xe18] sm:$0xf] }
 0xa31   :  { %11962 = vmatpush.bf16.msrb.mxu3 %v16265_v56  ;;  %v15929_v56 = vor.u32 %v18458_v33, %v15928_v53  ;;  %v16377_v25 = vor.u32 %v18570_v9, %v16376_v26  ;;  %v16965_v53 = vor.u32 %v18717_v22, %v16964_v39  ;;  %v17189_v33 = vor.u32 %v18773_v40, %v17188_v10  ;;  %v18633_v9 = vld [vmem:[#allocation3 + $0xea0] sm:$0xf0]  ;;  %v17328_v22 = vld [vmem:[#allocation3 + $0x1400] sm:$0xf] }
 0xa32   :  { %11975 = vmatpush.bf16.msrb.mxu0 %v16489_v28  ;;  %v16769_v28 = vor.u32 %v18668_v17, %v16768_v49  ;;  %v16656_v49 = vld [vmem:[#allocation3 + $0xec0] sm:$0xf]  ;;  %v18640_v17 = vld [vmem:[#allocation3 + $0xed8] sm:$0xf0]  ;;  %v18689_v10 = vld [vmem:[#allocation3 + $0x1060] sm:$0xf0] }
 0xa33   :  { %11938 = vmatpush.bf16.msra.mxu2 %v15761_v23  ;;  %v11685_v23 = vpop.f32.mrf.mxu2  ;;  %v18745_v39 = vld [vmem:[#allocation3 + $0x1220] sm:$0xf0] }
 0xa34   :  { %11951 = vmatpush.bf16.msrb.mxu1 %v15985_v35  ;;  %v16712_v35 = vld [vmem:[#allocation3 + $0xf30] sm:$0xf] }
 0xa35   :  { %11963 = vmatpush.bf16.msrb.mxu3 %v16237_v60  ;;  %v18507_v60 = vld [vmem:[#allocation3 + $0xab0] sm:$0xf0] }
 0xa36   :  { %11976 = vmatpush.bf16.msrb.mxu0 %v16461_v31  ;;  %v16125_v46 = vor.u32 %v18507_v60, %v16124_v38  ;;  %v16741_v31 = vor.u32 %v18661_v5, %v16740_v3  ;;  %v18759_v38 = vld [vmem:[#allocation3 + $0x1290] sm:$0xf0]  ;;  %v17385_v60 = vor.u32 %v18822_v13, %v17384_v58  ;;  %v16880_v3 = vld [vmem:[#allocation3 + $0x1080] sm:$0xf]  ;;  %v18696_v5 = vld [vmem:[#allocation3 + $0x1098] sm:$0xf0] }
 0xa37   :  { %11939 = vmatpush.bf16.msra.mxu2 %v15733_v43  ;;  %v16993_v43 = vor.u32 %v18724_v4, %v16992_v20  ;;  %v11709_v18 = vpop.f32.mrf.mxu3  ;;  %v17104_v4 = vld [vmem:[#allocation3 + $0x1240] sm:$0xf]  ;;  %v18843_v58 = vld [vmem:[#allocation3 + $0x1530] sm:$0xf0]  ;;  %v17272_v13 = vld [vmem:[#allocation3 + $0x1390] sm:$0xf] }
 0xa38   :  { %11952 = vmatpush.bf16.msrb.mxu1 %v15957_v27  ;;  %v16349_v27 = vor.u32 %v18563_v30, %v16348_v11  ;;  %v11710_v32 = vadd.f32 %v11709_v18, %v11697_v62  ;;  %v17076_v30 = vld [vmem:[#allocation3 + $0x1208] sm:$0xf]  ;;  %v18808_v62 = vld [vmem:[#allocation3 + $0x1418] sm:$0xf0]  ;;  %v18619_v18 = vld [vmem:[#allocation3 + $0xe30] sm:$0xf0] }
 0xa39   :  { %11964 = vmatpush.bf16.msrb.mxu3 %v16209_v12  ;;  %v17217_v12 = vor.u32 %v18780_v1, %v17216_v6  ;;  %v17356_v6 = vld [vmem:[#allocation3 + $0x1438] sm:$0xf]  ;;  %v18815_v1 = vld [vmem:[#allocation3 + $0x1450] sm:$0xf0] }
 0xa3a   :  { %11977 = vmatpush.bf16.msrb.mxu0 %v16433_v7  ;;  %v18647_v7 = vld [vmem:[#allocation3 + $0xf10] sm:$0xf0]  ;;  %18879 = vtanh.f32 %v11710_v32  ;;  %v17357_v11 = vor.u32 %v18815_v1, %v17356_v6  ;;  %v17077_v32 = vor.u32 %v18745_v39, %v17076_v30 }
 0xa3b   :  { %11940 = vmatpush.bf16.msra.mxu2 %v15705_v34  ;;  %v16713_v34 = vor.u32 %v18654_v14, %v16712_v35  ;;  %v16685_v19 = vor.u32 %v18647_v7, %v16684_v41  ;;  %v16600_v35 = vld [vmem:[#allocation3 + $0xe50] sm:$0xf]  ;;  %v17105_v14 = vor.u32 %v18752_v63, %v17104_v4  ;;  %v17244_v4 = vld [vmem:[#allocation3 + $0x1358] sm:$0xf] }
 0xa3c   :  { %11953 = vmatpush.bf16.msrb.mxu1 %v15929_v56  ;;  %v17132_v56 = vld [vmem:[#allocation3 + $0x1278] sm:$0xf]  ;;  %v17048_v41 = vld [vmem:[#allocation3 + $0x11d0] sm:$0xf] }
 0xa3d   :  { %11965 = vmatpush.bf16.msrb.mxu3 %v16181_v55  ;;  %v16936_v55 = vld [vmem:[#allocation3 + $0x10f0] sm:$0xf] }
 0xa3e   :  { %11978 = vmatpush.bf16.msrb.mxu0 %v16405_v45  ;;  %v16937_v24 = vor.u32 %v18710_v57, %v16936_v55  ;;  %v18703_v45 = vld [vmem:[#allocation3 + $0x10d0] sm:$0xf0]  ;;  %v20563_v26 = vpop.f32.mrf.mxu0  ;;  %v16824_v7 = vld [vmem:[#allocation3 + $0x1010] sm:$0xf]  ;;  %v18850_v55 = vld [vmem:[#allocation3 + $0x1568] sm:$0xf0] }
 0xa3f   :  { %11941 = vmatpush.bf16.msra.mxu2 %v15677_v2  ;;  %v16908_v2 = vld [vmem:[#allocation3 + $0x10b8] sm:$0xf]  ;;  %v17300_v57 = vld [vmem:[#allocation3 + $0x13c8] sm:$0xf] }
 0xa40   :  { %11954 = vmatpush.bf16.msrb.mxu1 %v15901_v8  ;;  %v18880_v23 = vpop.eup %18879  ;;  %v16909_v20 = vor.u32 %v18703_v45, %v16908_v2  ;;  %v20568_v8 = vpop.f32.mrf.mxu1  ;;  %v18731_v45 = vld [vmem:[#allocation3 + $0x11b0] sm:$0xf0] }
 0xa41   :  { %11966 = vmatpush.bf16.msrb.mxu3 %v16153_v61  ;;  %v16657_v61 = vor.u32 %v18640_v17, %v16656_v49  ;;  %12062 = vst [vmem:[%s20601_s14 + $0x20] sm:$0xff] %v18880_v23 }
 0xa42   :  { %11942 = vmatmul.bf16.vlgmr.msra.gmra.mxu2 %v20297_v47  ;;  %11979 = vmatpush.bf16.msrb.mxu0 %v16377_v25  ;;  %v17160_v47 = vld [vmem:[#allocation3 + $0x12b0] sm:$0xf] }
 0xa43   :  { %11986 = vmatpush.bf16.msrb.mxu2 %v16769_v28  ;;  %11955 = vmatmul.bf16.vlgmr.msrb.gmra.mxu1 %v20305_v15  ;;  %v17161_v59 = vor.u32 %v18766_v42, %v17160_v47  ;;  %v17413_v15 = vor.u32 %v18829_v50, %v17412_v29  ;;  %v16628_v28 = vld [vmem:[#allocation3 + $0xe88] sm:$0xf]  ;;  %v17496_v47 = vld [vmem:[#allocation3 + $0x1550] sm:$0xf]  ;;  %v18801_v42 = vld [vmem:[#allocation3 + $0x13e0] sm:$0xf0]  ;;  %v16573_v50 = vor.u32 %v18619_v18, %v16572_v36 }
 0xa44   :  { %11999 = vmatpush.bf16.msra.mxu1 %v16993_v43  ;;  %v16629_v25 = vor.u32 %v18633_v9, %v16628_v28  ;;  %v18626_v43 = vld [vmem:[#allocation3 + $0xe68] sm:$0xf0]  ;;  %v17301_v2 = vor.u32 %v18801_v42, %v17300_v57 }
 0xa45   :  { %11967 = vmatpush.bf16.msrb.mxu3 %v16125_v46  ;;  %v16881_v46 = vor.u32 %v18696_v5, %v16880_v3  ;;  %v16601_v16 = vor.u32 %v18626_v43, %v16600_v35 }
 0xa46   :  { %11980 = vmatpush.bf16.msrb.mxu0 %v16349_v27  ;;  %v11724_v40 = vpop.f32.mrf.mxu0 }
 0xa47   :  { %11987 = vmatpush.bf16.msrb.mxu2 %v16741_v31  ;;  %v20570_v31 = vpop.f32.mrf.mxu2 }
 0xa48   :  { %11968 = vmatmul.bf16.vlgmr.msrb.gmra.mxu3 %v20301_v54  ;;  %12000 = vmatpush.bf16.msra.mxu1 %v16965_v53  ;;  %v11711_v54 = vpop.f32.mrf.mxu3  ;;  %v18682_v53 = vld [vmem:[#allocation3 + $0x1028] sm:$0xf0]  ;;  %v11750_v29 = vpop.f32.mrf.mxu1  ;;  %v11736_v6 = vadd.f32 %v20570_v31, %v20563_v26 }
 0xa49   :  { %12012 = vmatpush.bf16.msra.mxu3 %v17217_v12  ;;  %11981 = vmatmul.bf16.vlgmr.msrb.gmra.mxu0 %v20309_v37  ;;  %v17133_v37 = vor.u32 %v18759_v38, %v17132_v56  ;;  %v16852_v12 = vld [vmem:[#allocation3 + $0x1048] sm:$0xf]  ;;  %v18675_v56 = vld [vmem:[#allocation3 + $0xff0] sm:$0xf0]  ;;  %v17468_v38 = vld [vmem:[#allocation3 + $0x1518] sm:$0xf] }
 0xa4a   :  { %12025 = vmatpush.bf16.msra.mxu0 %v17441_v21  ;;  %v16853_v27 = vor.u32 %v18689_v10, %v16852_v12  ;;  %v18738_v21 = vld [vmem:[#allocation3 + $0x11e8] sm:$0xf0]  ;;  %v17469_v28 = vor.u32 %v18843_v58, %v17468_v38  ;;  %v11749_v35 = vadd.f32 %v20568_v8, %v11736_v6 }
 0xa4b   :  { %11988 = vmatpush.bf16.msrb.mxu2 %v16713_v34  ;;  %v17329_v34 = vor.u32 %v18808_v62, %v17328_v22  ;;  %v17049_v17 = vor.u32 %v18738_v21, %v17048_v41  ;;  %v18794_v54 = vld [vmem:[#allocation3 + $0x13a8] sm:$0xf0] }
 0xa4c   :  { %12001 = vmatpush.bf16.msra.mxu1 %v16937_v24  ;;  %v17497_v24 = vor.u32 %v18850_v55, %v17496_v47 }
 0xa4d   :  { %12013 = vmatpush.bf16.msra.mxu3 %v17189_v33 }
 0xa4e   :  { %12026 = vmatpush.bf16.msra.mxu0 %v17413_v15  ;;  %v16796_v15 = vld [vmem:[#allocation3 + $0xfd8] sm:$0xf] }
 0xa4f   :  { %11989 = vmatpush.bf16.msrb.mxu2 %v16685_v19  ;;  %v16825_v19 = vor.u32 %v18682_v53, %v16824_v7  ;;  %v11737_v49 = vpop.f32.mrf.mxu2  ;;  %v16797_v23 = vor.u32 %v18675_v56, %v16796_v15 }
 0xa50   :  { %12002 = vmatpush.bf16.msra.mxu1 %v16909_v20  ;;  %v11761_v33 = vpop.f32.mrf.mxu3  ;;  %v17273_v20 = vor.u32 %v18794_v54, %v17272_v13 }
 0xa51   :  { %12014 = vmatpush.bf16.msra.mxu3 %v17161_v59  ;;  %v17020_v59 = vld [vmem:[#allocation3 + $0x1198] sm:$0xf]  ;;  %v11762_v43 = vadd.f32 %v11761_v33, %v11749_v35 }
 0xa52   :  { %12027 = vmatpush.bf16.msra.mxu0 %v17385_v60 }
 0xa53   :  { %11990 = vmatpush.bf16.msrb.mxu2 %v16657_v61  ;;  %v17021_v61 = vor.u32 %v18731_v45, %v17020_v59 }
 0xa54   :  { %12003 = vmatpush.bf16.msra.mxu1 %v16881_v46 }
 0xa55   :  { %12015 = vmatpush.bf16.msra.mxu3 %v17133_v37  ;;  %v18787_v37 = vld [vmem:[#allocation3 + $0x1370] sm:$0xf0] }
 0xa56   :  { %12028 = vmatpush.bf16.msra.mxu0 %v17357_v11  ;;  %v17245_v60 = vor.u32 %v18787_v37, %v17244_v4 }
 0xa57   :  { %11991 = vmatpush.bf16.msrb.mxu2 %v16629_v25 }
 0xa58   :  { %12004 = vmatpush.bf16.msra.mxu1 %v16853_v27  ;;  %v11763_v9 = vpop.f32.mrf.mxu3 }
 0xa59   :  { %12016 = vmatpush.bf16.msra.mxu3 %v17105_v14 }
 0xa5a   :  { %12029 = vmatpush.bf16.msra.mxu0 %v17329_v34 }
 0xa5b   :  { %11992 = vmatpush.bf16.msrb.mxu2 %v16601_v16 }
 0xa5c   :  { %12005 = vmatpush.bf16.msra.mxu1 %v16825_v19 }
 0xa5d   :  { %12017 = vmatpush.bf16.msra.mxu3 %v17077_v32 }
 0xa5e   :  { %12030 = vmatpush.bf16.msra.mxu0 %v17301_v2  ;;  %v11774_v3 = vpop.f32.mrf.mxu0 }
 0xa5f   :  { %11993 = vmatpush.bf16.msrb.mxu2 %v16573_v50  ;;  %v11775_v46 = vadd.f32 %v11774_v3, %v11762_v43 }
 0xa60   :  { %12006 = vmatpush.bf16.msra.mxu1 %v16797_v23  ;;  %v11800_v5 = vpop.f32.mrf.mxu1 }
 0xa61   :  { %12018 = vmatpush.bf16.msra.mxu3 %v17049_v17 }
 0xa62   :  { %11994 = vmatmul.bf16.vlgmr.msrb.gmra.mxu2 %v20317_v44  ;;  %12031 = vmatpush.bf16.msra.mxu0 %v17273_v20 }
 0xa63   :  { %12044 = vmatpush.bf16.msra.mxu2 %v17497_v24  ;;  %12007 = vmatmul.bf16.vlgmr.msra.gmra.mxu1 %v20325_v51 }
 0xa65   :  { %12019 = vmatpush.bf16.msra.mxu3 %v17021_v61  ;;  %v11787_v63 = vpop.f32.mrf.mxu2 }
 0xa66   :  { %12032 = vmatpush.bf16.msra.mxu0 %v17245_v60  ;;  %v11776_v44 = vpop.f32.mrf.mxu0  ;;  %v11788_v14 = vadd.f32 %v11787_v63, %v11775_v46 }
 0xa67   :  { %12045 = vmatpush.bf16.msra.mxu2 %v17469_v28 }
 0xa68   :  { %12020 = vmatmul.bf16.vlgmr.msra.gmra.mxu3 %v20321_v0  ;;  %v11802_v25 = vpop.f32.mrf.mxu1  ;;  %v11801_v11 = vadd.f32 %v11800_v5, %v11788_v14 }
 0xa69   :  { %12033 = vmatmul.bf16.vlgmr.msra.gmra.mxu0 %v20329_v52 }
 0xa6b   :  { %v11813_v1 = vpop.f32.mrf.mxu3 }
 0xa6c   :  { %v11814_v30 = vadd.f32 %v11813_v1, %v11801_v11 }
 0xa6d   :  { %v11789_v51 = vpop.f32.mrf.mxu2 }
 0xa72   :  { %17504 = vmatmul.msk.bf16.vlgmr.msra.gmra.mxu2 %vm344_vm5, %v20337_v48 }
 0xa73   :  { %v11815_v0 = vpop.f32.mrf.mxu3 }
 0xa7e   :  { %v11826_v52 = vpop.f32.mrf.mxu0 }
 0xa7f   :  { %v11827_v10 = vadd.f32 %v11826_v52, %v11814_v30 }
 0xa80   :  { %v11852_v12 = vpop.f32.mrf.mxu1 }
 0xa85   :  { %v11839_v39 = vpop.f32.mrf.mxu2 }
 0xa86   :  { %v11840_v48 = vadd.f32 %v11839_v39, %v11827_v10  ;;  %v11828_v22 = vpop.f32.mrf.mxu0 }
 0xa88   :  { %v11853_v62 = vadd.f32 %v11852_v12, %v11840_v48  ;;  %v11854_v26 = vpop.f32.mrf.mxu1 }
 0xa8b   :  { %v11865_v40 = vpop.f32.mrf.mxu3 }
 0xa8c   :  { %v11866_v16 = vadd.f32 %v11865_v40, %v11853_v62 }
 0xa8d   :  { %v11841_v31 = vpop.f32.mrf.mxu2 }
 0xa8e   :  { %v11878_v36 = vpop.f32.mrf.mxu0 }
 0xa8f   :  { %v11879_v8 = vadd.f32 %v11878_v36, %v11866_v16 }
 0xa91   :  { %18881 = vtanh.f32 %v11879_v8 }
 0xa93   :  { %v11867_v18 = vpop.f32.mrf.mxu3 }
 0xa96   :  { %v11880_v27 = vpop.f32.mrf.mxu0 }
 0xa97   :  { %v18882_v32 = vpop.eup %18881 }
 0xa98   :  { %12063 = vst [vmem:[%s20601_s14 + $0x28] sm:$0xff] %v18882_v32 }
 0xaa0   :  { %v11904_v34 = vpop.f32.mrf.mxu1 }
 0xaa5   :  { %v11891_v41 = vpop.f32.mrf.mxu2 }
 0xaa6   :  { %v11930_v7 = vpop.f32.mrf.mxu0  ;;  %v11905_v49 = vadd.f32 %v11904_v34, %v11891_v41 }
 0xaa8   :  { %v11906_v53 = vpop.f32.mrf.mxu1 }
 0xaab   :  { %v11917_v33 = vpop.f32.mrf.mxu3 }
 0xaac   :  { %v11918_v24 = vadd.f32 %v11917_v33, %v11905_v49 }
 0xaad   :  { %v11893_v21 = vpop.f32.mrf.mxu2 }
 0xaae   :  { %v11932_v47 = vpop.f32.mrf.mxu0  ;;  %v11931_v56 = vadd.f32 %v11930_v7, %v11918_v24 }
 0xab3   :  { %v11919_v55 = vpop.f32.mrf.mxu3 }
 0xac0   :  { %v11956_v57 = vpop.f32.mrf.mxu1 }
 0xac5   :  { %v11943_v42 = vpop.f32.mrf.mxu2 }
 0xac6   :  { %v11982_v29 = vpop.f32.mrf.mxu0  ;;  %v11944_v2 = vadd.f32 %v11943_v42, %v11931_v56 }
 0xac8   :  { %v11958_v19 = vpop.f32.mrf.mxu1  ;;  %v11957_v45 = vadd.f32 %v11956_v57, %v11944_v2 }
 0xacb   :  { %v11969_v50 = vpop.f32.mrf.mxu3 }
 0xacc   :  { %v11970_v38 = vadd.f32 %v11969_v50, %v11957_v45 }
 0xacd   :  { %v11945_v17 = vpop.f32.mrf.mxu2 }
 0xace   :  { %v11984_v59 = vpop.f32.mrf.mxu0  ;;  %v11983_v54 = vadd.f32 %v11982_v29, %v11970_v38 }
 0xad3   :  { %v11971_v15 = vpop.f32.mrf.mxu3 }
 0xae0   :  { %v12008_v58 = vpop.f32.mrf.mxu1 }
 0xae5   :  { %v11995_v13 = vpop.f32.mrf.mxu2 }
 0xae6   :  { %v11996_v23 = vadd.f32 %v11995_v13, %v11983_v54  ;;  %v12034_v61 = vpop.f32.mrf.mxu0 }
 0xae8   :  { %v12010_v9 = vpop.f32.mrf.mxu1  ;;  %v12009_v20 = vadd.f32 %v12008_v58, %v11996_v23 }
 0xaeb   :  { %v12021_v28 = vpop.f32.mrf.mxu3 }
 0xaec   :  { %v12022_v37 = vadd.f32 %v12021_v28, %v12009_v20 }
 0xaed   :  { %v11997_v4 = vpop.f32.mrf.mxu2 }
 0xaee   :  { %v12036_v60 = vpop.f32.mrf.mxu0  ;;  %v12035_v5 = vadd.f32 %v12034_v61, %v12022_v37 }
 0xaf3   :  { %v12023_v3 = vpop.f32.mrf.mxu3 }
 0xaf5   :  { %v12047_v63 = vpop.f32.mrf.mxu2 }
 0xaf6   :  { %v12048_v44 = vadd.f32 %v12047_v63, %v12035_v5 }
 0xaf8   :  { %18883 = vtanh.f32 %v12048_v44 }
 0xafd   :  { %v12049_v6 = vpop.f32.mrf.mxu2 }
 0xafe   :  { %v18884_v1 = vpop.eup %18883 }
 0xaff   :  { %12064 = vst [vmem:[%s20601_s14 + $0x30] sm:$0xff] %v18884_v1 }
 0xb00   :  { %12069 = vsyncpa [#allocation6], 1 }
 0xb01   :  { %12070 = vsyncpa [#allocation8], 1 }
 0xb02   :  { %12071 = vsyncpa [#allocation11], 1 }
 0xb03   :  { %12072 = vsyncpa [#allocation14], 1 }
 0xb04   :  { %12073 = vsyncmov [#allocation4] }
 0xb07   :  { %s12074_s2 = vpop.sfrf %12073 }
 0xb08   :  { %p17505_p0 = scmp.ne.s32.totalorder %s12074_s2, 0 }
 0xb0a   :  { %12078 = shalt.err (%p17505_p0)  }
 0xb0b   :  { %12080 = vsyncmov [#allocation4 + $0x1] }
 0xb0e   :  { %s12081_s23 = vpop.sfrf %12080 }
 0xb0f   :  { %p17506_p1 = scmp.ne.s32.totalorder %s12081_s23, 0 }
 0xb11   :  { %12085 = shalt.err (%p17506_p1)  }

</bundles_post_ra>
